<compile_context>
chip_gen: v7x
topology: tpu7x:2x2x1
jax: 0.10.0
libtpu: 0.0.40
codegen_flags: <defaults>
</compile_context>

<pallas_src>
import jax
import jax.numpy as jnp
from jax.experimental import pallas as pl
from jax.experimental.pallas import tpu as pltpu


def basic_block_kernel(xpad_ref, w1_ref, s1_ref, b1_ref, w2_ref, s2_ref, b2_ref,
                       o_ref, mid_ref):
    # xpad_ref : (H+4, W+2, Cp)   bf16  padded image for this batch element
    #            (2 halo rows top/bottom for the fused 2-conv row halo,
    #             1 halo col left/right, channels zero-padded to Cp)
    # w*_ref   : (9*Cp, Cp)       bf16  im2col weights, tap-major row blocks (HWIO order)
    # s*/b*    : (1, Cp)          f32   folded BN scale / bias
    # o_ref    : (TH, W, Cp)      bf16  output row tile (lane-dense)
    # mid_ref  : (TH+2, W+2, Cp)  bf16  VMEM scratch: conv1 out + 1px halo ring
    TH, W, Cp = o_ref.shape
    r = pl.program_id(1)
    r0 = pl.multiple_of(r * TH, TH)

    # ---- conv1 (+ folded BN1 + ReLU) over TH+2 rows (1-row halo each side) ---
    # out1 row q = r0-1+m needs xpad rows r0+m+di (in-bounds thanks to the
    # 2-row spatial padding done in the wrapper). Single im2col dot, K = 9*Cp.
    M1 = (TH + 2) * W
    taps1 = [xpad_ref[pl.ds(r0 + di, TH + 2), pl.ds(dj, W), :]
             for di in range(3) for dj in range(3)]
    patch1 = jnp.concatenate(taps1, axis=-1).reshape(M1, 9 * Cp)
    acc1 = jnp.dot(patch1, w1_ref[...], preferred_element_type=jnp.float32)
    out1 = jnp.maximum(acc1 * s1_ref[...] + b1_ref[...], 0.0)

    # Stage conv1 result in bf16 scratch; zero only the halo ring (interior is
    # written exactly once per grid step, so nothing stale survives).
    mid_ref[:, pl.ds(1, W), :] = out1.reshape(TH + 2, W, Cp).astype(jnp.bfloat16)
    zero_col = jnp.zeros((TH + 2, 1, Cp), jnp.bfloat16)
    mid_ref[:, 0:1, :] = zero_col
    mid_ref[:, W + 1:W + 2, :] = zero_col

    # conv2 zero-pads conv1's *output*: halo rows outside the image must be
    # zero, not conv1 evaluated on padded input.
    @pl.when(r == 0)
    def _():
        mid_ref[0:1, :, :] = jnp.zeros((1, W + 2, Cp), jnp.bfloat16)

    @pl.when(r == pl.num_programs(1) - 1)
    def _():
        mid_ref[TH + 1:TH + 2, :, :] = jnp.zeros((1, W + 2, Cp), jnp.bfloat16)

    # ---- conv2 (+ folded BN2): single im2col dot, K = 9*Cp ----
    M2 = TH * W
    taps2 = [mid_ref[pl.ds(di, TH), pl.ds(dj, W), :]
             for di in range(3) for dj in range(3)]
    patch2 = jnp.concatenate(taps2, axis=-1).reshape(M2, 9 * Cp)
    acc2 = jnp.dot(patch2, w2_ref[...], preferred_element_type=jnp.float32)
    out2 = acc2 * s2_ref[...] + b2_ref[...]

    # residual add (identity path; stride=1, no downsample, Cin == Cout) + ReLU.
    # NOTE: identity is read back from the bf16-cast padded input (PyTorch adds
    # an f32 identity); the deviation is <0.5% relative and is dominated by the
    # bf16 output store anyway.
    identity = xpad_ref[pl.ds(r0 + 2, TH), pl.ds(1, W), :].astype(jnp.float32)
    o_ref[...] = jnp.maximum(out2.reshape(TH, W, Cp) + identity,
                             0.0).astype(o_ref.dtype)


def fold_bn(gamma, beta, mean, var, eps=1e-5):
    scale = gamma / jnp.sqrt(var + eps)
    bias = beta - mean * scale
    return scale.reshape(1, -1), bias.reshape(1, -1)


def _pick_row_tile(H, requested):
    """Largest divisor of H that is <= requested (handles H=14, 7, ...)."""
    t = max(1, min(requested, H))
    while H % t:
        t -= 1
    return t


def basic_block_pallas(x_nchw, w1, bn1, w2, bn2, *, row_tile=16):
    """x_nchw: (N, C, H, W) float32. Returns (N, C, H, W) float32."""
    N, C, H, W = x_nchw.shape
    # downsample=None + stride=1  =>  residual add requires inplanes == planes
    assert w1.shape == (3, 3, C, C) and w2.shape == (3, 3, C, C), \
        "BasicBlock with no downsample needs Cin == Cout"

    Cp = ((C + 127) // 128) * 128       # channel pad -> lane-dense, MXU-friendly
    TH = _pick_row_tile(H, row_tile)
    R = H // TH

    # NCHW -> NHWC; pad H by 2 (fused 2-conv halo), W by 1 (conv pad), C -> Cp;
    # single fused pad, then bf16 (halves DMA bytes, MXU runs at bf16 peak).
    x = jnp.transpose(x_nchw, (0, 2, 3, 1))
    xpad = jnp.pad(x, ((0, 0), (2, 2), (1, 1), (0, Cp - C))).astype(jnp.bfloat16)

    def prep_w(w):  # HWIO (3,3,C,C) -> (9*Cp, Cp) bf16, tap-major im2col layout
        w = jnp.pad(w, ((0, 0), (0, 0), (0, Cp - C), (0, Cp - C)))
        return w.reshape(9 * Cp, Cp).astype(jnp.bfloat16)

    def prep_bn(bn):
        s, b = fold_bn(*bn)
        return (jnp.pad(s, ((0, 0), (0, Cp - C))),
                jnp.pad(b, ((0, 0), (0, Cp - C))))

    w1p, w2p = prep_w(w1), prep_w(w2)
    s1, b1 = prep_bn(bn1)
    s2, b2 = prep_bn(bn2)

    # Constant operands: single-buffered (index_map never changes).
    def const_spec(shape):
        return pl.BlockSpec(shape, lambda n, r: (0,) * len(shape),
                            pipeline_mode=pl.Buffered(buffer_count=1))

    # Advisory cost (conv1 halo recompute (TH+2)/TH included).
    flops = 2 * 9 * N * W * Cp * Cp * (R * (TH + 2) + H)
    bytes_accessed = (xpad.size * 2 + (w1p.size + w2p.size) * 2
                      + N * H * W * Cp * 2)

    # VMEM budget: image block x2 (double-buffered) + single-buffered weights
    # + bf16 mid scratch + out tile x2 + im2col / f32 dot-result temps, with headroom.
    img_blk = (H + 4) * (W + 2) * Cp * 2
    w_bytes = 2 * 9 * Cp * Cp * 2
    mid_bytes = (TH + 2) * (W + 2) * Cp * 2
    out_blk = TH * W * Cp * 2
    temps = ((TH + 2) * W * (9 * Cp * 2 + Cp * 4)
             + TH * W * (9 * Cp * 2 + Cp * 4))
    budget = 2 * img_blk + w_bytes + mid_bytes + 2 * out_blk + temps
    vmem_limit = max(32 << 20, min(int(1.5 * budget) + (2 << 20), 96 << 20))

    grid_spec = pltpu.PrefetchScalarGridSpec(
        num_scalar_prefetch=0,
        grid=(N, R),
        in_specs=[
            # padded image: VMEM-resident per batch element (index ignores r)
            pl.BlockSpec((None, H + 4, W + 2, Cp), lambda n, r: (n, 0, 0, 0)),
            const_spec((9 * Cp, Cp)),   # w1
            const_spec((1, Cp)),        # s1
            const_spec((1, Cp)),        # b1
            const_spec((9 * Cp, Cp)),   # w2
            const_spec((1, Cp)),        # s2
            const_spec((1, Cp)),        # b2
        ],
        out_specs=pl.BlockSpec((None, TH, W, Cp), lambda n, r: (n, r, 0, 0)),
        scratch_shapes=[pltpu.VMEM((TH + 2, W + 2, Cp), jnp.bfloat16)],
    )

    # Keep the 2-TC (v7x megacore) split on the batch axis so the per-batch
    # resident image is not DMA'd twice; only row-parallelize when N == 1.
    dims = ("parallel", "arbitrary") if N > 1 else ("arbitrary", "parallel")

    out_nhwc = pl.pallas_call(
        basic_block_kernel,
        out_shape=jax.ShapeDtypeStruct((N, H, W, Cp), jnp.bfloat16),
        grid_spec=grid_spec,
        compiler_params=pltpu.CompilerParams(
            dimension_semantics=dims,
            vmem_limit_bytes=vmem_limit),
        cost_estimate=pl.CostEstimate(flops=flops, transcendentals=0,
                                      bytes_accessed=bytes_accessed),
    )(xpad, w1p, s1, b1, w2p, s2, b2)

    # Strip channel padding, NHWC -> NCHW, back to f32 (PyTorch I/O contract).
    # When chaining BasicBlocks, consume the padded NHWC-bf16 output directly
    # and skip this crop/transpose/cast.
    return jnp.transpose(out_nhwc[..., :C], (0, 3, 1, 2)).astype(jnp.float32)


def basic_block_ref(x_nchw, w1, bn1, w2, bn2):
    """Pure-JAX f32 reference (same math, XLA conv)."""
    x = jnp.transpose(x_nchw, (0, 2, 3, 1))

    def conv(x, w):
        return jax.lax.conv_general_dilated(
            x, w, window_strides=(1, 1), padding="SAME",
            dimension_numbers=("NHWC", "HWIO", "NHWC"))

    s1, b1 = fold_bn(*bn1)
    s2, b2 = fold_bn(*bn2)
    out = jnp.maximum(conv(x, w1) * s1 + b1, 0.0)
    out = conv(out, w2) * s2 + b2
    out = jnp.maximum(out + x, 0.0)
    return jnp.transpose(out, (0, 3, 1, 2))


if __name__ == "__main__":
    # Small shapes consistent with BasicBlock defaults (stride=1, no downsample
    # => inplanes == planes).
    N, C, H, W = 2, 8, 16, 16

    key = jax.random.PRNGKey(0)
    k = jax.random.split(key, 12)
    x = jax.random.normal(k[0], (N, C, H, W), jnp.float32)

    # conv weights, HWIO: (3, 3, Cin, Cout), bias=False
    w1 = 0.1 * jax.random.normal(k[1], (3, 3, C, C), jnp.float32)
    w2 = 0.1 * jax.random.normal(k[2], (3, 3, C, C), jnp.float32)

    # BN params (gamma, beta, running_mean, running_var)
    bn1 = (1.0 + 0.1 * jax.random.normal(k[3], (C,), jnp.float32),
           0.1 * jax.random.normal(k[4], (C,), jnp.float32),
           0.1 * jax.random.normal(k[5], (C,), jnp.float32),
           1.0 + 0.1 * jax.random.uniform(k[6], (C,), jnp.float32))
    bn2 = (1.0 + 0.1 * jax.random.normal(k[7], (C,), jnp.float32),
           0.1 * jax.random.normal(k[8], (C,), jnp.float32),
           0.1 * jax.random.normal(k[9], (C,), jnp.float32),
           1.0 + 0.1 * jax.random.uniform(k[10], (C,), jnp.float32))

    out = basic_block_pallas(x, w1, bn1, w2, bn2, row_tile=16)
    jax.block_until_ready(out)

    ref = basic_block_ref(x, w1, bn1, w2, bn2)
    assert out.shape == (N, C, H, W)
    # bf16 MXU inputs / bf16 output store vs f32 reference -> looser tolerance
    # (f32 accumulation keeps the error bounded).
    max_err = float(jnp.max(jnp.abs(out - ref)))
    assert jnp.allclose(out, ref, atol=5e-2, rtol=5e-2), max_err

    print("KERNEL_OK")
</pallas_src>

<mosaic_0001>
module attributes {stable_mosaic.version = 11 : i64} {
  func.func @basic_block_kernel(%arg0: i32, %arg1: i32, %arg2: memref<1x20x18x128xbf16, #tpu.memory_space<vmem>>, %arg3: memref<1152x128xbf16, #tpu.memory_space<vmem>>, %arg4: memref<1x128xf32, #tpu.memory_space<vmem>>, %arg5: memref<1x128xf32, #tpu.memory_space<vmem>>, %arg6: memref<1152x128xbf16, #tpu.memory_space<vmem>>, %arg7: memref<1x128xf32, #tpu.memory_space<vmem>>, %arg8: memref<1x128xf32, #tpu.memory_space<vmem>>, %arg9: memref<1x16x16x128xbf16, #tpu.memory_space<vmem>>, %arg10: memref<18x18x128xbf16, #tpu.memory_space<vmem>>) attributes {dimension_semantics = [#tpu.dimension_semantics<parallel>, #tpu.dimension_semantics<arbitrary>], iteration_bounds = array<i64: 2, 1>, scalar_prefetch = 0 : i64, scratch_operands = 1 : i64, tpu.core_type = #tpu.core_type<tc>, window_params = [{transform_indices = @transform_0, window_bounds = array<i64: 1, 20, 18, 128>}, {pipeline_mode = #tpu.pipeline_mode<synchronous>, transform_indices = @transform_1, window_bounds = array<i64: 1152, 128>}, {pipeline_mode = #tpu.pipeline_mode<synchronous>, transform_indices = @transform_2, window_bounds = array<i64: 1, 128>}, {pipeline_mode = #tpu.pipeline_mode<synchronous>, transform_indices = @transform_3, window_bounds = array<i64: 1, 128>}, {pipeline_mode = #tpu.pipeline_mode<synchronous>, transform_indices = @transform_4, window_bounds = array<i64: 1152, 128>}, {pipeline_mode = #tpu.pipeline_mode<synchronous>, transform_indices = @transform_5, window_bounds = array<i64: 1, 128>}, {pipeline_mode = #tpu.pipeline_mode<synchronous>, transform_indices = @transform_6, window_bounds = array<i64: 1, 128>}, {transform_indices = @transform_7, window_bounds = array<i64: 1, 16, 16, 128>}]} {
    %c16_i32 = arith.constant 16 : i32
    %0 = arith.muli %arg1, %c16_i32 : i32
    %1 = tpu.assume_multiple %0, 16 : i32
    %c0_i32 = arith.constant 0 : i32
    %2 = arith.addi %1, %c0_i32 : i32
    %c0 = arith.constant 0 : index
    %3 = arith.index_cast %2 : i32 to index
    %c0_0 = arith.constant 0 : index
    %c0_1 = arith.constant 0 : index
    %4 = vector.load %arg2[%c0, %3, %c0_0, %c0_1] : memref<1x20x18x128xbf16, #tpu.memory_space<vmem>>, vector<1x18x16x128xbf16>
    %5 = vector.shape_cast %4 : vector<1x18x16x128xbf16> to vector<18x16x128xbf16>
    %c0_i32_2 = arith.constant 0 : i32
    %6 = arith.addi %1, %c0_i32_2 : i32
    %c0_3 = arith.constant 0 : index
    %7 = arith.index_cast %6 : i32 to index
    %c1 = arith.constant 1 : index
    %c0_4 = arith.constant 0 : index
    %8 = vector.load %arg2[%c0_3, %7, %c1, %c0_4] : memref<1x20x18x128xbf16, #tpu.memory_space<vmem>>, vector<1x18x16x128xbf16>
    %9 = vector.shape_cast %8 : vector<1x18x16x128xbf16> to vector<18x16x128xbf16>
    %c0_i32_5 = arith.constant 0 : i32
    %10 = arith.addi %1, %c0_i32_5 : i32
    %c0_6 = arith.constant 0 : index
    %11 = arith.index_cast %10 : i32 to index
    %c2 = arith.constant 2 : index
    %c0_7 = arith.constant 0 : index
    %12 = vector.load %arg2[%c0_6, %11, %c2, %c0_7] : memref<1x20x18x128xbf16, #tpu.memory_space<vmem>>, vector<1x18x16x128xbf16>
    %13 = vector.shape_cast %12 : vector<1x18x16x128xbf16> to vector<18x16x128xbf16>
    %c1_i32 = arith.constant 1 : i32
    %14 = arith.addi %1, %c1_i32 : i32
    %c0_8 = arith.constant 0 : index
    %15 = arith.index_cast %14 : i32 to index
    %c0_9 = arith.constant 0 : index
    %c0_10 = arith.constant 0 : index
    %16 = vector.load %arg2[%c0_8, %15, %c0_9, %c0_10] : memref<1x20x18x128xbf16, #tpu.memory_space<vmem>>, vector<1x18x16x128xbf16>
    %17 = vector.shape_cast %16 : vector<1x18x16x128xbf16> to vector<18x16x128xbf16>
    %c1_i32_11 = arith.constant 1 : i32
    %18 = arith.addi %1, %c1_i32_11 : i32
    %c0_12 = arith.constant 0 : index
    %19 = arith.index_cast %18 : i32 to index
    %c1_13 = arith.constant 1 : index
    %c0_14 = arith.constant 0 : index
    %20 = vector.load %arg2[%c0_12, %19, %c1_13, %c0_14] : memref<1x20x18x128xbf16, #tpu.memory_space<vmem>>, vector<1x18x16x128xbf16>
    %21 = vector.shape_cast %20 : vector<1x18x16x128xbf16> to vector<18x16x128xbf16>
    %c1_i32_15 = arith.constant 1 : i32
    %22 = arith.addi %1, %c1_i32_15 : i32
    %c0_16 = arith.constant 0 : index
    %23 = arith.index_cast %22 : i32 to index
    %c2_17 = arith.constant 2 : index
    %c0_18 = arith.constant 0 : index
    %24 = vector.load %arg2[%c0_16, %23, %c2_17, %c0_18] : memref<1x20x18x128xbf16, #tpu.memory_space<vmem>>, vector<1x18x16x128xbf16>
    %25 = vector.shape_cast %24 : vector<1x18x16x128xbf16> to vector<18x16x128xbf16>
    %c2_i32 = arith.constant 2 : i32
    %26 = arith.addi %1, %c2_i32 : i32
    %c0_19 = arith.constant 0 : index
    %27 = arith.index_cast %26 : i32 to index
    %c0_20 = arith.constant 0 : index
    %c0_21 = arith.constant 0 : index
    %28 = vector.load %arg2[%c0_19, %27, %c0_20, %c0_21] : memref<1x20x18x128xbf16, #tpu.memory_space<vmem>>, vector<1x18x16x128xbf16>
    %29 = vector.shape_cast %28 : vector<1x18x16x128xbf16> to vector<18x16x128xbf16>
    %c2_i32_22 = arith.constant 2 : i32
    %30 = arith.addi %1, %c2_i32_22 : i32
    %c0_23 = arith.constant 0 : index
    %31 = arith.index_cast %30 : i32 to index
    %c1_24 = arith.constant 1 : index
    %c0_25 = arith.constant 0 : index
    %32 = vector.load %arg2[%c0_23, %31, %c1_24, %c0_25] : memref<1x20x18x128xbf16, #tpu.memory_space<vmem>>, vector<1x18x16x128xbf16>
    %33 = vector.shape_cast %32 : vector<1x18x16x128xbf16> to vector<18x16x128xbf16>
    %c2_i32_26 = arith.constant 2 : i32
    %34 = arith.addi %1, %c2_i32_26 : i32
    %c0_27 = arith.constant 0 : index
    %35 = arith.index_cast %34 : i32 to index
    %c2_28 = arith.constant 2 : index
    %c0_29 = arith.constant 0 : index
    %36 = vector.load %arg2[%c0_27, %35, %c2_28, %c0_29] : memref<1x20x18x128xbf16, #tpu.memory_space<vmem>>, vector<1x18x16x128xbf16>
    %37 = vector.shape_cast %36 : vector<1x18x16x128xbf16> to vector<18x16x128xbf16>
    %38 = tpu.concatenate %5, %9, %13, %17, %21, %25, %29, %33, %37 in 2 : vector<18x16x128xbf16>, vector<18x16x128xbf16>, vector<18x16x128xbf16>, vector<18x16x128xbf16>, vector<18x16x128xbf16>, vector<18x16x128xbf16>, vector<18x16x128xbf16>, vector<18x16x128xbf16>, vector<18x16x128xbf16> -> vector<18x16x1152xbf16>
    %39 = vector.shape_cast %38 : vector<18x16x1152xbf16> to vector<288x1152xbf16>
    %c0_30 = arith.constant 0 : index
    %c0_31 = arith.constant 0 : index
    %40 = vector.load %arg3[%c0_30, %c0_31] : memref<1152x128xbf16, #tpu.memory_space<vmem>>, vector<1152x128xbf16>
    %cst = arith.constant dense<0.000000e+00> : vector<288x128xf32>
    %41 = tpu.matmul %39, %40, %cst {dimension_numbers = #tpu.dot_dimension_numbers<[1], [0], [0], [1], [0, 0, 1, 1], [], []>} : vector<288x1152xbf16>, vector<1152x128xbf16>, vector<288x128xf32> -> vector<288x128xf32>
    %c0_32 = arith.constant 0 : index
    %c0_33 = arith.constant 0 : index
    %42 = vector.load %arg4[%c0_32, %c0_33] : memref<1x128xf32, #tpu.memory_space<vmem>>, vector<1x128xf32>
    %43 = vector.broadcast %42 : vector<1x128xf32> to vector<288x128xf32>
    %44 = arith.mulf %41, %43 : vector<288x128xf32>
    %c0_34 = arith.constant 0 : index
    %c0_35 = arith.constant 0 : index
    %45 = vector.load %arg5[%c0_34, %c0_35] : memref<1x128xf32, #tpu.memory_space<vmem>>, vector<1x128xf32>
    %46 = vector.broadcast %45 : vector<1x128xf32> to vector<288x128xf32>
    %47 = arith.addf %44, %46 : vector<288x128xf32>
    %cst_36 = arith.constant 0.000000e+00 : f32
    %48 = vector.broadcast %cst_36 : f32 to vector<288x128xf32>
    %49 = arith.maximumf %47, %48 : vector<288x128xf32>
    %50 = vector.shape_cast %49 : vector<288x128xf32> to vector<18x16x128xf32>
    %51 = arith.truncf %50 : vector<18x16x128xf32> to vector<18x16x128xbf16>
    %c0_37 = arith.constant 0 : index
    %c1_38 = arith.constant 1 : index
    %c0_39 = arith.constant 0 : index
    %52 = vector.load %arg10[%c0_37, %c1_38, %c0_39] : memref<18x18x128xbf16, #tpu.memory_space<vmem>>, vector<18x16x128xbf16>
    tpu.vector_store %arg10[%c0_37, %c1_38, %c0_39], %51 {strides = array<i32>} : memref<18x18x128xbf16, #tpu.memory_space<vmem>>, vector<18x16x128xbf16>,
    %cst_40 = arith.constant 0.000000e+00 : bf16
    %53 = vector.broadcast %cst_40 : bf16 to vector<18x1x128xbf16>
    %c0_41 = arith.constant 0 : index
    %c0_42 = arith.constant 0 : index
    %c0_43 = arith.constant 0 : index
    %54 = vector.load %arg10[%c0_41, %c0_42, %c0_43] : memref<18x18x128xbf16, #tpu.memory_space<vmem>>, vector<18x1x128xbf16>
    tpu.vector_store %arg10[%c0_41, %c0_42, %c0_43], %53 {strides = array<i32>} : memref<18x18x128xbf16, #tpu.memory_space<vmem>>, vector<18x1x128xbf16>,
    %c0_44 = arith.constant 0 : index
    %c17 = arith.constant 17 : index
    %c0_45 = arith.constant 0 : index
    %55 = vector.load %arg10[%c0_44, %c17, %c0_45] : memref<18x18x128xbf16, #tpu.memory_space<vmem>>, vector<18x1x128xbf16>
    tpu.vector_store %arg10[%c0_44, %c17, %c0_45], %53 {strides = array<i32>} : memref<18x18x128xbf16, #tpu.memory_space<vmem>>, vector<18x1x128xbf16>,
    %c0_i32_46 = arith.constant 0 : i32
    %56 = arith.cmpi eq, %arg1, %c0_i32_46 : i32
    %57 = arith.extui %56 : i1 to i32
    %c0_i32_47 = arith.constant 0 : i32
    %58 = arith.cmpi ne, %57, %c0_i32_47 : i32
    scf.if %58 {
      %cst_93 = arith.constant 0.000000e+00 : bf16
      %94 = vector.broadcast %cst_93 : bf16 to vector<1x18x128xbf16>
      %c0_94 = arith.constant 0 : index
      %c0_95 = arith.constant 0 : index
      %c0_96 = arith.constant 0 : index
      %95 = vector.load %arg10[%c0_94, %c0_95, %c0_96] : memref<18x18x128xbf16, #tpu.memory_space<vmem>>, vector<1x18x128xbf16>
      tpu.vector_store %arg10[%c0_94, %c0_95, %c0_96], %94 {strides = array<i32>} : memref<18x18x128xbf16, #tpu.memory_space<vmem>>, vector<1x18x128xbf16>,
    } else {
    }
    %c0_i32_48 = arith.constant 0 : i32
    %59 = arith.cmpi eq, %arg1, %c0_i32_48 : i32
    %60 = arith.extui %59 : i1 to i32
    %c0_i32_49 = arith.constant 0 : i32
    %61 = arith.cmpi ne, %60, %c0_i32_49 : i32
    scf.if %61 {
      %cst_93 = arith.constant 0.000000e+00 : bf16
      %94 = vector.broadcast %cst_93 : bf16 to vector<1x18x128xbf16>
      %c17_94 = arith.constant 17 : index
      %c0_95 = arith.constant 0 : index
      %c0_96 = arith.constant 0 : index
      %95 = vector.load %arg10[%c17_94, %c0_95, %c0_96] : memref<18x18x128xbf16, #tpu.memory_space<vmem>>, vector<1x18x128xbf16>
      tpu.vector_store %arg10[%c17_94, %c0_95, %c0_96], %94 {strides = array<i32>} : memref<18x18x128xbf16, #tpu.memory_space<vmem>>, vector<1x18x128xbf16>,
    } else {
    }
    %c0_50 = arith.constant 0 : index
    %c0_51 = arith.constant 0 : index
    %c0_52 = arith.constant 0 : index
    %62 = vector.load %arg10[%c0_50, %c0_51, %c0_52] : memref<18x18x128xbf16, #tpu.memory_space<vmem>>, vector<16x16x128xbf16>
    %c0_53 = arith.constant 0 : index
    %c1_54 = arith.constant 1 : index
    %c0_55 = arith.constant 0 : index
    %63 = vector.load %arg10[%c0_53, %c1_54, %c0_55] : memref<18x18x128xbf16, #tpu.memory_space<vmem>>, vector<16x16x128xbf16>
    %c0_56 = arith.constant 0 : index
    %c2_57 = arith.constant 2 : index
    %c0_58 = arith.constant 0 : index
    %64 = vector.load %arg10[%c0_56, %c2_57, %c0_58] : memref<18x18x128xbf16, #tpu.memory_space<vmem>>, vector<16x16x128xbf16>
    %c1_59 = arith.constant 1 : index
    %c0_60 = arith.constant 0 : index
    %c0_61 = arith.constant 0 : index
    %65 = vector.load %arg10[%c1_59, %c0_60, %c0_61] : memref<18x18x128xbf16, #tpu.memory_space<vmem>>, vector<16x16x128xbf16>
    %c1_62 = arith.constant 1 : index
    %c1_63 = arith.constant 1 : index
    %c0_64 = arith.constant 0 : index
    %66 = vector.load %arg10[%c1_62, %c1_63, %c0_64] : memref<18x18x128xbf16, #tpu.memory_space<vmem>>, vector<16x16x128xbf16>
    %c1_65 = arith.constant 1 : index
    %c2_66 = arith.constant 2 : index
    %c0_67 = arith.constant 0 : index
    %67 = vector.load %arg10[%c1_65, %c2_66, %c0_67] : memref<18x18x128xbf16, #tpu.memory_space<vmem>>, vector<16x16x128xbf16>
    %c2_68 = arith.constant 2 : index
    %c0_69 = arith.constant 0 : index
    %c0_70 = arith.constant 0 : index
    %68 = vector.load %arg10[%c2_68, %c0_69, %c0_70] : memref<18x18x128xbf16, #tpu.memory_space<vmem>>, vector<16x16x128xbf16>
    %c2_71 = arith.constant 2 : index
    %c1_72 = arith.constant 1 : index
    %c0_73 = arith.constant 0 : index
    %69 = vector.load %arg10[%c2_71, %c1_72, %c0_73] : memref<18x18x128xbf16, #tpu.memory_space<vmem>>, vector<16x16x128xbf16>
    %c2_74 = arith.constant 2 : index
    %c2_75 = arith.constant 2 : index
    %c0_76 = arith.constant 0 : index
    %70 = vector.load %arg10[%c2_74, %c2_75, %c0_76] : memref<18x18x128xbf16, #tpu.memory_space<vmem>>, vector<16x16x128xbf16>
    %71 = tpu.concatenate %62, %63, %64, %65, %66, %67, %68, %69, %70 in 2 : vector<16x16x128xbf16>, vector<16x16x128xbf16>, vector<16x16x128xbf16>, vector<16x16x128xbf16>, vector<16x16x128xbf16>, vector<16x16x128xbf16>, vector<16x16x128xbf16>, vector<16x16x128xbf16>, vector<16x16x128xbf16> -> vector<16x16x1152xbf16>
    %72 = vector.shape_cast %71 : vector<16x16x1152xbf16> to vector<256x1152xbf16>
    %c0_77 = arith.constant 0 : index
    %c0_78 = arith.constant 0 : index
    %73 = vector.load %arg6[%c0_77, %c0_78] : memref<1152x128xbf16, #tpu.memory_space<vmem>>, vector<1152x128xbf16>
    %cst_79 = arith.constant dense<0.000000e+00> : vector<256x128xf32>
    %74 = tpu.matmul %72, %73, %cst_79 {dimension_numbers = #tpu.dot_dimension_numbers<[1], [0], [0], [1], [0, 0, 1, 1], [], []>} : vector<256x1152xbf16>, vector<1152x128xbf16>, vector<256x128xf32> -> vector<256x128xf32>
    %c0_80 = arith.constant 0 : index
    %c0_81 = arith.constant 0 : index
    %75 = vector.load %arg7[%c0_80, %c0_81] : memref<1x128xf32, #tpu.memory_space<vmem>>, vector<1x128xf32>
    %76 = vector.broadcast %75 : vector<1x128xf32> to vector<256x128xf32>
    %77 = arith.mulf %74, %76 : vector<256x128xf32>
    %c0_82 = arith.constant 0 : index
    %c0_83 = arith.constant 0 : index
    %78 = vector.load %arg8[%c0_82, %c0_83] : memref<1x128xf32, #tpu.memory_space<vmem>>, vector<1x128xf32>
    %79 = vector.broadcast %78 : vector<1x128xf32> to vector<256x128xf32>
    %80 = arith.addf %77, %79 : vector<256x128xf32>
    %c2_i32_84 = arith.constant 2 : i32
    %81 = arith.addi %1, %c2_i32_84 : i32
    %c0_85 = arith.constant 0 : index
    %82 = arith.index_cast %81 : i32 to index
    %c1_86 = arith.constant 1 : index
    %c0_87 = arith.constant 0 : index
    %83 = vector.load %arg2[%c0_85, %82, %c1_86, %c0_87] : memref<1x20x18x128xbf16, #tpu.memory_space<vmem>>, vector<1x16x16x128xbf16>
    %84 = vector.shape_cast %83 : vector<1x16x16x128xbf16> to vector<16x16x128xbf16>
    %85 = arith.extf %84 : vector<16x16x128xbf16> to vector<16x16x128xf32>
    %86 = vector.shape_cast %80 : vector<256x128xf32> to vector<16x16x128xf32>
    %87 = arith.addf %86, %85 : vector<16x16x128xf32>
    %cst_88 = arith.constant 0.000000e+00 : f32
    %88 = vector.broadcast %cst_88 : f32 to vector<16x16x128xf32>
    %89 = arith.maximumf %87, %88 : vector<16x16x128xf32>
    %90 = arith.truncf %89 : vector<16x16x128xf32> to vector<16x16x128xbf16>
    %c0_89 = arith.constant 0 : index
    %c0_90 = arith.constant 0 : index
    %c0_91 = arith.constant 0 : index
    %c0_92 = arith.constant 0 : index
    %91 = vector.load %arg9[%c0_89, %c0_90, %c0_91, %c0_92] : memref<1x16x16x128xbf16, #tpu.memory_space<vmem>>, vector<1x16x16x128xbf16>
    %92 = vector.shape_cast %91 : vector<1x16x16x128xbf16> to vector<16x16x128xbf16>
    %93 = vector.shape_cast %90 : vector<16x16x128xbf16> to vector<1x16x16x128xbf16>
    tpu.vector_store %arg9[%c0_89, %c0_90, %c0_91, %c0_92], %93 {strides = array<i32>} : memref<1x16x16x128xbf16, #tpu.memory_space<vmem>>, vector<1x16x16x128xbf16>,
    return
  }
  func.func @transform_0(%arg0: i32, %arg1: i32) -> (i32, i32, i32, i32) {
    %c0_i32 = arith.constant 0 : i32
    %c0_i32_0 = arith.constant 0 : i32
    %c0_i32_1 = arith.constant 0 : i32
    %c0_i32_2 = arith.constant 0 : i32
    return %arg0, %c0_i32, %c0_i32_0, %c0_i32_1 : i32, i32, i32, i32
  }
  func.func @transform_1(%arg0: i32, %arg1: i32) -> (i32, i32) {
    %c0_i32 = arith.constant 0 : i32
    %c0_i32_0 = arith.constant 0 : i32
    %c0_i32_1 = arith.constant 0 : i32
    return %c0_i32, %c0_i32_0 : i32, i32
  }
  func.func @transform_2(%arg0: i32, %arg1: i32) -> (i32, i32) {
    %c0_i32 = arith.constant 0 : i32
    %c0_i32_0 = arith.constant 0 : i32
    %c0_i32_1 = arith.constant 0 : i32
    return %c0_i32, %c0_i32_0 : i32, i32
  }
  func.func @transform_3(%arg0: i32, %arg1: i32) -> (i32, i32) {
    %c0_i32 = arith.constant 0 : i32
    %c0_i32_0 = arith.constant 0 : i32
    %c0_i32_1 = arith.constant 0 : i32
    return %c0_i32, %c0_i32_0 : i32, i32
  }
  func.func @transform_4(%arg0: i32, %arg1: i32) -> (i32, i32) {
    %c0_i32 = arith.constant 0 : i32
    %c0_i32_0 = arith.constant 0 : i32
    %c0_i32_1 = arith.constant 0 : i32
    return %c0_i32, %c0_i32_0 : i32, i32
  }
  func.func @transform_5(%arg0: i32, %arg1: i32) -> (i32, i32) {
    %c0_i32 = arith.constant 0 : i32
    %c0_i32_0 = arith.constant 0 : i32
    %c0_i32_1 = arith.constant 0 : i32
    return %c0_i32, %c0_i32_0 : i32, i32
  }
  func.func @transform_6(%arg0: i32, %arg1: i32) -> (i32, i32) {
    %c0_i32 = arith.constant 0 : i32
    %c0_i32_0 = arith.constant 0 : i32
    %c0_i32_1 = arith.constant 0 : i32
    return %c0_i32, %c0_i32_0 : i32, i32
  }
  func.func @transform_7(%arg0: i32, %arg1: i32) -> (i32, i32, i32, i32) {
    %c0_i32 = arith.constant 0 : i32
    %c0_i32_0 = arith.constant 0 : i32
    %c0_i32_1 = arith.constant 0 : i32
    return %arg0, %arg1, %c0_i32, %c0_i32_0 : i32, i32, i32, i32
  }
}

</mosaic_0001>

<bundles_post_ra>
// kernel: tpu_custom_call.1
= control target key start
LH: loop header
LB: loop body
LE: loop exit
PB: predicated region body
PF: predicated region fallthrough
CT: control target
= control target key end

     0   :  { %12 = vsyncpa [#allocation4], 0  ;;  %s13360_s0 = inlined_call_operand.vmem [shape: bf16[2,20,18,128], index: 0, kind: input, shape index: {}]   ;;  %s13361_s1 = inlined_call_operand.vmem [shape: bf16[1152,128], index: 1, kind: input, shape index: {}]   ;;  %s13362_s2 = inlined_call_operand.vmem [shape: f32[1,128], index: 2, kind: input, shape index: {}]   ;;  %s13363_s3 = inlined_call_operand.vmem [shape: f32[1,128], index: 3, kind: input, shape index: {}]   ;;  %s13364_s4 = inlined_call_operand.hbm [shape: bf16[1152,128], index: 4, kind: input, shape index: {}]   ;;  %s13365_s5 = inlined_call_operand.vmem [shape: f32[1,128], index: 5, kind: input, shape index: {}]   ;;  %s13366_s6 = inlined_call_operand.vmem [shape: f32[1,128], index: 6, kind: input, shape index: {}]   ;;  %s13367_s7 = inlined_call_operand.hbm [shape: bf16[2,16,16,128], index: 7, kind: output, shape index: {}]  }
   0x1   :  { %13 = vsyncpa [#allocation5], 0 }
   0x2   :  { %15 = vsyncpa [#allocation5 + $0x1], 0  ;;  %s10537_s24 = smov 0   ;;  %s10539_s25 = smov 0  }
   0x3   :  { %s10541_s26 = smov 0   ;;  %s10543_s27 = smov 0  }
   0x4   :  { %s10545_s28 = smov 0   ;;  %s10547_s29 = smov 0  }
   0x5 LB: > { %s8047_s30 = sadd.s32 4294967295, %s10488_s29   ;;  %s8048_s8 = sadd.s32 4294967294, %s10488_s29   ;;  %s10488_s29 = sphi %s10547_s29, %s21_s29   ;;  %s10484_s28 = sphi %s10545_s28, %s13446_s28   ;;  %s10480_s27 = sphi %s10543_s27, %s13445_s27   ;;  %s10476_s26 = sphi %s10541_s26, %s13444_s26   ;;  %s10472_s25 = sphi %s10539_s25, %s13443_s25   ;;  %s10468_s24 = sphi %s10537_s24, %s13442_s24  }
   0x6   : > { %s33_s9 = sadd.s32 1, %s10484_s28  ;;  %s194_s10 = sadd.s32 1, %s10476_s26 }
   0x7   : > { %p35_p0 = scmp.ge.s32.totalorder %s33_s9, 2  ;;  %p204_p1 = scmp.ne.s32.totalorder %s10476_s26, %s10472_s25 }
   0x8   : > { %p205_p2 = scmp.eq.s32.totalorder %s8047_s30, 1  ;;  %p210_p3 = scmp.ne.s32.totalorder %s10472_s25, %s10468_s24 }
   0x9   : > { %s13448_s9 = smov (%p35_p0, %s33_s9), 0  ;;  %p211_p5 = scmp.eq.s32.totalorder %s8048_s8, 1 }
   0xa   : > { %p10577_p4 = por %p205_p2, %p204_p1  ;;  %s189_s12 = ssub.s32 %s10484_s28, %s13448_s9 }
   0xb   : > { %p8049_p6 = scmp.ge.s32.totalorder %s10488_s29, 1  ;;  %p192_p7 = scmp.eq.s32.totalorder %s189_s12, 0 }
   0xc   : > { %s13377_s11 = scalar_select %p10577_p4, 1, 0 }
   0xd   : > { %p10584_p8 = por %p211_p5, %p210_p3  ;;  %p218_p9 = scmp.lt.s32.totalorder %s10488_s29, 3 }
   0xe   : > { %s10590_s14 = scalar_select %p192_p7, %s10476_s26, %s194_s10  }
   0xf   : > { %s13378_s13 = scalar_select %p10584_p8, 1, 0 }
  0x10   : > { %p10592_p10 = pnand %p8049_p6, %p218_p9  ;;  %p10596_p11 = scmp.eq.s32.totalorder %s8047_s30, 0 }
  0x11   : > { %s10490_s17 = smov [#allocation3]   ;;  %s10378_s22 = scalar_lea.hbm %s13364_s4, 9216 }
  0x12   : > { %s13379_s15 = scalar_select %p10592_p10, 1, 0 }
  0x13   : > { %s13380_s16 = scalar_select %p10596_p11, 1, 0 }
  0x14   : > { %p9816_p12 = pneg %p10592_p10  ;;  %s239_s18 = sshll.u32 %s10490_s17, 4  ;;  %s240_s18 = int_to_ptr.vmem [resolvable:$true] %s239_s18 }
  0x15   : > { %p10379_p0 = scmp.ne.s32.totalorder %s13364_s4, %s10378_s22  ;;  %p10385_p5 = scmp.lt.u32.totalorder %s10378_s22, %s13364_s4 }
  0x16   : > { %p10604_p13 = pnand %p10596_p11, %p9816_p12 }
  0x18   : > { %p10380_p1 = pneg %p10604_p13 }
  0x1a   : > { %p10381_p2 = pnand %p10380_p1, %p10379_p0 }
  0x1c   : > { %p10382_p3 = pneg %p10381_p2 }
  0x1e   : > { %p10387_p6 = pnand %p10385_p5, %p10382_p3 }
  0x20   : > { %10390 = shalt.err (!%p10387_p6)
}
  0x21   : > { %s10391_s12 = scalar_lea.vmem %s240_s18, 9216  ;;  %p10399_p8 = scmp.lt.s32.totalorder %s240_s18, %s240_s18 }
  0x22   : > { %p10392_p7 = scmp.ne.s32.totalorder %s240_s18, %s10391_s12  ;;  %p10400_p4 = scmp.lt.s32.totalorder %s10391_s12, %s10391_s12 }
  0x24   : > { %p10394_p9 = pnand %p10392_p7, %p10380_p1  ;;  %p10401_p11 = por %p10400_p4, %p10399_p8 }
  0x26   : > { %p10395_p12 = pneg %p10394_p9 }
  0x28   : > { %p10402_p10 = pnand %p10401_p11, %p10395_p12 }
  0x2a   : > { %10405 = shalt.err (!%p10402_p10)
}
  0x2b   : > { %s10491_s17 = smov 64   ;;  %s10492_s20 = smov 4  }
  0x2c   : > { %9819 = dma.hbm_to_vmem [thread:$0]  (!%p10604_p13), %s13364_s4, 9216, %s240_s18, [#allocation4], %s10491_s17, %s10491_s17, %s10492_s20  }
  0x2d   : > { %p13382_p0 = scmp.ne.s32.totalorder %s13379_s15, 0 }
  0x2f   : > { %269 = sbr.rel (%p13382_p0) target bundleno = 1768 (0x6e8), region = 48 }
  0x36   : > { %p13383_p2 = scmp.ne.s32.totalorder %s13380_s16, 0 }
  0x38   : > { %10459 = dma.done.wait (%p13383_p2), [#allocation4], 9216  }
  0x39   : > { %10461 = vsyncadd (%p13383_p2), [#allocation4], 4294958080  ;;  %v13372_v0 = vmov 0   ;;  %v9881_v1 = vld [vmem:[%s13361_s1] sm:$0xff]   ;;  %p301_p4 = scmp.lt.s32.totalorder %s10480_s27, 1  ;;  %v9882_v2 = vld [vmem:[%s13361_s1 + $0x8] sm:$0xff]  }
  0x3a   : > { %2680 = vmatprep.subr.bf16.mxu0 %v13372_v0  ;;  %v9883_v3 = vld [vmem:[%s13361_s1 + $0x10] sm:$0xff]   ;;  %v9884_v4 = vld [vmem:[%s13361_s1 + $0x18] sm:$0xff]   ;;  %v9885_v5 = vld [vmem:[%s13361_s1 + $0x20] sm:$0xff]   ;;  %vm698_vm0 = vsmask.f32 7424  ;;  %vm987_vm1 = vcmask 1046528  }
  0x3b   : > { %2681 = vmatpush1.bf16.msra.mxu0 %v9881_v1  ;;  %s302_s30 = scalar_select %p301_p4, %s10480_s27, 1  ;;  %v9886_v10 = vld [vmem:[%s13361_s1 + $0x28] sm:$0xff]   ;;  %v9887_v16 = vld [vmem:[%s13361_s1 + $0x30] sm:$0xff]   ;;  %v9888_v19 = vld [vmem:[%s13361_s1 + $0x38] sm:$0xff]   ;;  %vm4158_vm2 = vcmask 1043456   ;;  %vm4165_vm5 = vcmask 1040384  }
  0x3c   : > { %2682 = vmatprep.subr.bf16.mxu0 %v13372_v0  ;;  %v9889_v20 = vld [vmem:[%s13361_s1 + $0x40] sm:$0xff]   ;;  %v9890_v21 = vld [vmem:[%s13361_s1 + $0x48] sm:$0xff]   ;;  %v9891_v22 = vld [vmem:[%s13361_s1 + $0x50] sm:$0xff]   ;;  %vm4159_vm3 = vsmask.f32 7938  ;;  %s298_s18 = sand.u32 1, %s10472_s25  }
  0x3d   : > { %s9809_s10 = smul.u32 240, %s302_s30  ;;  %v9892_v23 = vld [vmem:[%s13361_s1 + $0x58] sm:$0xff]   ;;  %v9893_v26 = vld [vmem:[%s13361_s1 + $0x60] sm:$0xff]   ;;  %v9894_v28 = vld [vmem:[%s13361_s1 + $0x68] sm:$0xff]   ;;  %vm3795_vm4 = vsmask.f32 256 }
  0x3e   : > { %v9895_v33 = vld [vmem:[%s13361_s1 + $0x70] sm:$0xff]   ;;  %v9896_v38 = vld [vmem:[%s13361_s1 + $0x78] sm:$0xff]   ;;  %v9899_v45 = vld [vmem:[%s13361_s1 + $0x80] sm:$0xff]   ;;  %vm3796_vm6 = vsmask.f32 4368  ;;  %s13118_s15 = sshll.u32 %s298_s18, 7 }
  0x3f   : > { %2683 = vmatpush1.bf16.msra.mxu0 %v9882_v2  ;;  %s10651_s23 = scalar_lea.vmem %s13360_s0, %s9809_s10  ;;  %v9902_v51 = vld [vmem:[%s13361_s1 + $0x88] sm:$0xff]   ;;  %v9905_v58 = vld [vmem:[%s13361_s1 + $0x90] sm:$0xff]   ;;  %v9908_v1 = vld [vmem:[%s13361_s1 + $0x98] sm:$0xff]   ;;  %s13138_s30 = scalar_lea.vmem [#allocation6], %s13118_s15 }
  0x40   : > { %2684 = vmatprep.subr.bf16.mxu0 %v13372_v0  ;;  %v312_v6 = vld [vmem:[%s10651_s23] sm:$0xf]  ;;  %v10659_v7 = vld [vmem:[%s10651_s23 + $0x4] sm:$0xf]  ;;  %v314_v24 = vld [vmem:[%s10651_s23 + $0xc] sm:$0xf] }
  0x41   : > { %v10662_v8 = vcombine.low %v312_v6, %v10659_v7  ;;  %v10665_v9 = vld [vmem:[%s10651_s23 + $0x8] ss:$0 sps:$4 sm:$0x11]   ;;  %v10701_v25 = vld [vmem:[%s10651_s23 + $0x10] sm:$0xf]  ;;  %vm11841_vm7 = vmand %vm4158_vm2, %vm4159_vm3  ;;  %s7952_s16 = sshll.u32 %s13138_s30, 4  ;;  %s13308_s16 = int_to_ptr.vmem [resolvable:$true] %s7952_s16 }
  0x42   : > { %v707_v13 = vshll.u32 %v10665_v9, 16  ;;  %v8201_v27 = vcombine.low %v314_v24, %v10701_v25  ;;  %v10713_v29 = vld [vmem:[%s10651_s23 + $0x14] ss:$0 sps:$4 sm:$0x11]   ;;  %v316_v31 = vld [vmem:[%s10651_s23 + $0x18] sm:$0xf]  ;;  %vm11848_vm8 = vmand %vm4165_vm5, %vm3795_vm4 }
  0x43   : > { %2685 = vmatpush1.bf16.msra.mxu0 %v9883_v3  ;;  %v700_v11 = vshrl.u32 %v10662_v8, 16  ;;  %v702_v12 = vshll.u32 %v10662_v8, 16  ;;  %v317_v32 = vld [vmem:[%s10651_s23 + $0x1c] sm:$0xf]  ;;  %v719_v36 = vshll.u32 %v10713_v29, 16  ;;  %vm11854_vm9 = vmor %vm3795_vm4, %vm3796_vm6  ;;  %s10406_s17 = scalar_lea.vmem %s13308_s16, 2048 }
  0x44   : > { %2686 = vmatprep.subr.bf16.mxu0 %v13372_v0  ;;  %v709_v15 = vrot.slane %v707_v13, 1  ;;  %v714_v30 = vshll.u32 %v8201_v27, 16  ;;  %v712_v34 = vshrl.u32 %v8201_v27, 16  ;;  %v10722_v37 = vcombine.low %v316_v31, %v317_v32  ;;  %v9904_v41 = vld [vmem:[%s10651_s23 + $0x20] ss:$0 sps:$4 sm:$0x11]   ;;  %vm11873_vm10 = vmand %vm4165_vm5, %vm4159_vm3  ;;  %p10407_p8 = scmp.ne.s32.totalorder %s13308_s16, %s10406_s17 }
  0x45   : > { %v704_v14 = vrot.slane %v702_v12, 1  ;;  %v721_v40 = vrot.slane %v719_v36, 1  ;;  %v318_v43 = vld [vmem:[%s10651_s23 + $0x24] sm:$0xf]  ;;  %v319_v44 = vld [vmem:[%s10651_s23 + $0x28] sm:$0xf] }
  0x46   : > { %v716_v35 = vrot.slane %v714_v30, 1  ;;  %v726_v42 = vshll.u32 %v10722_v37, 16  ;;  %v724_v46 = vshrl.u32 %v10722_v37, 16  ;;  %v731_v49 = vshll.u32 %v9904_v41, 16  ;;  %v320_v53 = vld [vmem:[%s10651_s23 + $0x30] sm:$0xf] }
  0x47   : > { %2687 = vmatpush1.bf16.msra.mxu0 %v9884_v4  ;;  %v705_v17 = vor.u32 %v704_v14, %v700_v11  ;;  %v10738_v50 = vcombine.low %v318_v43, %v319_v44  ;;  %v9907_v52 = vld [vmem:[%s10651_s23 + $0x2c] ss:$0 sps:$4 sm:$0x11]   ;;  %v321_v57 = vld [vmem:[%s10651_s23 + $0x34] sm:$0xf]  ;;  %v989_v11 = vrot.slane %v10665_v9, 1 }
  0x48   : > { %2688 = vmatprep.subr.bf16.mxu0 %v13372_v0  ;;  %v717_v39 = vor.u32 %v716_v35, %v712_v34  ;;  %v728_v48 = vrot.slane %v726_v42, 1  ;;  %v733_v55 = vrot.slane %v731_v49, 1  ;;  %v743_v59 = vshll.u32 %v9907_v52, 16  ;;  %v9910_v2 = vld [vmem:[%s10651_s23 + $0x38] ss:$0 sps:$4 sm:$0x11]  }
  0x49   : > { %v710_v18 = vsel %vm698_vm0, %v705_v17, %v709_v15  ;;  %v738_v56 = vshll.u32 %v10738_v50, 16  ;;  %v10752_v60 = vcombine.low %v320_v53, %v321_v57  ;;  %v736_v62 = vshrl.u32 %v10738_v50, 16  ;;  %v366_v6 = vld [vmem:[%s10651_s23] sm:$0xe]  ;;  %v9919_v30 = vld [vmem:[%s13361_s1 + $0xb0] sm:$0xff]   ;;  %v9922_v42 = vld [vmem:[%s13361_s1 + $0xb8] sm:$0xff]  }
  0x4a   : > { %2712 = vmatprep.mubr.bf16.mxu0 %v710_v18  ;;  %v722_v47 = vsel %vm698_vm0, %v717_v39, %v721_v40  ;;  %v729_v54 = vor.u32 %v728_v48, %v724_v46  ;;  %v745_v3 = vrot.slane %v743_v59, 1  ;;  %v8236_v12 = vcombine.low %v366_v6, %v10659_v7  ;;  %v9911_v13 = vld [vmem:[%s13361_s1 + $0xa0] sm:$0xff]   ;;  %v326_v40 = vld [vmem:[%s10651_s23 + $0x54] sm:$0xf]  ;;  %v327_v41 = vld [vmem:[%s10651_s23 + $0x58] sm:$0xf] }
  0x4b   : > { %2689 = vmatpush1.bf16.msra.mxu0 %v9885_v5  ;;  %v740_v63 = vrot.slane %v738_v56, 1  ;;  %v750_v4 = vshll.u32 %v10752_v60, 16  ;;  %v322_v5 = vld [vmem:[%s10651_s23 + $0x3c] sm:$0xf]  ;;  %v748_v14 = vshrl.u32 %v10752_v60, 16  ;;  %v755_v9 = vshll.u32 %v9910_v2, 16 }
  0x4c   : > { %2690 = vmatprep.subr.bf16.mxu0 %v13372_v0  ;;  %v734_v61 = vsel %vm698_vm0, %v729_v54, %v733_v55  ;;  %v9913_v7 = vld [vmem:[%s10651_s23 + $0x44] ss:$0 sps:$4 sm:$0x11]   ;;  %v8207_v48 = vcombine.low %v326_v40, %v327_v41  ;;  %v10819_v49 = vld [vmem:[%s10651_s23 + $0x5c] ss:$0 sps:$4 sm:$0x11]  }
  0x4d   : > { %v752_v18 = vrot.slane %v750_v4, 1  ;;  %v328_v53 = vld [vmem:[%s10651_s23 + $0x60] sm:$0xf]  ;;  %v10826_v54 = vld [vmem:[%s10651_s23 + $0x64] sm:$0xf]  ;;  %v9928_v55 = vld [vmem:[%s13361_s1 + $0xc8] sm:$0xff]  }
  0x4e   : > { %v791_v57 = vshll.u32 %v10819_v49, 16  ;;  %v784_v59 = vshrl.u32 %v8207_v48, 16  ;;  %v10845_v4 = vld [vmem:[%s10651_s23 + $0x70] sm:$0xf]  ;;  %p13440_p10 = scmp.ne.s32.totalorder %s13377_s11, 0  ;;  %s10494_s20 = smov [#allocation6]  }
  0x4f   : > { %2691 = vmatpush1.bf16.msra.mxu0 %v9886_v10  ;;  %v323_v10 = vld [vmem:[%s10651_s23 + $0x40] sm:$0xf]  ;;  %v753_v24 = vor.u32 %v752_v18, %v748_v14  ;;  %v10857_v14 = vld [vmem:[%s10651_s23 + $0x74] ss:$0 sps:$4 sm:$0x11]   ;;  %s10410_s21 = sshll.u32 %s10494_s20, 4  ;;  %s10411_s21 = int_to_ptr.vmem [resolvable:$false] %s10410_s21 }
  0x50   : > { %2692 = vmatprep.subr.bf16.mxu0 %v13372_v0  ;;  %v10772_v15 = vcombine.low %v322_v5, %v323_v10  ;;  %v793_v2 = vrot.slane %v791_v57, 1  ;;  %v9934_v5 = vld [vmem:[%s13361_s1 + $0xd8] sm:$0xff]   ;;  %v9937_v10 = vld [vmem:[%s13361_s1 + $0xe0] sm:$0xff]   ;;  %p10408_p11 = pnand %p10407_p8, %p13440_p10  ;;  %s10412_s22 = scalar_lea.vmem %s10411_s21, 4096 }
  0x51   : > { %v332_v18 = vld [vmem:[%s10651_s23 + $0x78] sm:$0xf]  ;;  %v338_v57 = vld [vmem:[%s10651_s23 + $0x9c] sm:$0xf]  ;;  %p10413_p1 = scmp.lt.s32.totalorder %s13308_s16, %s10411_s21  ;;  %p10414_p3 = scmp.lt.s32.totalorder %s10412_s22, %s10406_s17 }
  0x52   : > { %v760_v32 = vshrl.u32 %v10772_v15, 16  ;;  %p10409_p13 = pneg %p10408_p11 }
  0x53   : > { %2693 = vmatpush1.bf16.msra.mxu0 %v9887_v16  ;;  %v988_v16 = vrot.slane %v8236_v12, 1  ;;  %p10415_p5 = por %p10414_p3, %p10413_p1 }
  0x54   : > { %2694 = vmatprep.subr.bf16.mxu0 %v13372_v0 }
  0x55   : > { %p10416_p6 = pnand %p10415_p5, %p10409_p13 }
  0x57   : > { %2695 = vmatpush1.bf16.msra.mxu0 %v9888_v19  ;;  %v10778_v19 = vsel %vm987_vm1, %v988_v16, %v989_v11 }
  0x58   : > { %2696 = vmatprep.subr.bf16.mxu0 %v13372_v0 }
  0x5b   : > { %2697 = vmatpush1.bf16.msra.mxu0 %v9889_v20  ;;  %v762_v20 = vshll.u32 %v10772_v15, 16 }
  0x5c   : > { %2698 = vmatprep.subr.bf16.mxu0 %v13372_v0 }
  0x5d   : > { %v764_v35 = vrot.slane %v762_v20, 1 }
  0x5f   : > { %2699 = vmatpush1.bf16.msra.mxu0 %v9890_v21  ;;  %v9914_v21 = vld [vmem:[%s13361_s1 + $0xa8] sm:$0xff]   ;;  %v765_v43 = vor.u32 %v764_v35, %v760_v32  ;;  %v334_v32 = vld [vmem:[%s10651_s23 + $0x84] sm:$0xf] }
  0x60   : > { %2700 = vmatprep.subr.bf16.mxu0 %v13372_v0 }
  0x63   : > { %2701 = vmatpush1.bf16.msra.mxu0 %v9891_v22  ;;  %v324_v22 = vld [vmem:[%s10651_s23 + $0x48] sm:$0xf] }
  0x64   : > { %2702 = vmatprep.subr.bf16.mxu0 %v13372_v0 }
  0x67   : > { %2703 = vmatpush1.bf16.msra.mxu0 %v9892_v23  ;;  %v325_v23 = vld [vmem:[%s10651_s23 + $0x4c] sm:$0xf] }
  0x68   : > { %2704 = vmatprep.subr.bf16.mxu0 %v13372_v0  ;;  %v10795_v34 = vcombine.low %v324_v22, %v325_v23  ;;  %v815_v22 = vshll.u32 %v10857_v14, 16 }
  0x6a   : > { %v772_v44 = vshrl.u32 %v10795_v34, 16 }
  0x6b   : > { %2705 = vmatpush1.bf16.msra.mxu0 %v9893_v26  ;;  %v757_v26 = vrot.slane %v755_v9, 1  ;;  %v10864_v9 = vld [vmem:[%s10651_s23 + $0x7c] sm:$0xf] }
  0x6c   : > { %2706 = vmatprep.subr.bf16.mxu0 %v13372_v0 }
  0x6f   : > { %2707 = vmatpush1.bf16.msra.mxu0 %v9894_v28  ;;  %v992_v28 = vrot.slane %v10713_v29, 1 }
  0x70   : > { %2708 = vmatprep.subr.bf16.mxu0 %v13372_v0 }
  0x73   : > { %2709 = vmatpush1.bf16.msra.mxu0 %v9895_v33  ;;  %v767_v33 = vshll.u32 %v9913_v7, 16  ;;  %v9940_v7 = vld [vmem:[%s13361_s1 + $0xe8] sm:$0xff]  }
  0x74   : > { %2710 = vmatprep.subr.bf16.mxu0 %v13372_v0 }
  0x75   : > { %v769_v39 = vrot.slane %v767_v33, 1  ;;  %v10882_v33 = vld [vmem:[%s10651_s23 + $0x88] sm:$0xf] }
  0x77   : > { %2711 = vmatpush1.bf16.msra.mxu0 %v9896_v38  ;;  %v774_v38 = vshll.u32 %v10795_v34, 16 }
  0x78   : > { %2857 = vmatprep.subr.bf16.mxu0 %v13372_v0 }
  0x79   : > { %v776_v46 = vrot.slane %v774_v38, 1 }
  0x7a   : > { %2713 = vmatmul.mubr.bf16.vlgmr.msra.gmra.mrb[0].mxu0 %v10662_v8  ;;  %v741_v8 = vor.u32 %v740_v63, %v736_v62  ;;  %v10841_v63 = vld [vmem:[%s10651_s23 + $0x68] ss:$0 sps:$4 sm:$0x11]  }
  0x7b   : > { %2858 = vmatpush1.bf16.msra.mxu0 %v9899_v45  ;;  %2720 = vmatprep.mubr.bf16.mxu0 %v722_v47  ;;  %v9925_v45 = vld [vmem:[%s13361_s1 + $0xc0] sm:$0xff]   ;;  %v777_v56 = vor.u32 %v776_v46, %v772_v44  ;;  %v803_v12 = vshll.u32 %v10841_v63, 16  ;;  %v336_v44 = vld [vmem:[%s10651_s23 + $0x90] sm:$0xf] }
  0x7c   : > { %2859 = vmatprep.subr.bf16.mxu0 %v13372_v0  ;;  %v746_v17 = vsel %vm698_vm0, %v741_v8, %v745_v3  ;;  %v330_v3 = vld [vmem:[%s10651_s23 + $0x6c] sm:$0xf] }
  0x7f   : > { %2860 = vmatpush1.bf16.msra.mxu0 %v9902_v51  ;;  %v786_v51 = vshll.u32 %v8207_v48, 16 }
  0x80   : > { %2861 = vmatprep.subr.bf16.mxu0 %v13372_v0 }
  0x82   : > { %2721 = vmatmul.mubr.bf16.gmra.mrb[4].mxu0 %v8201_v27  ;;  %v367_v27 = vld [vmem:[%s10651_s23 + $0xc] sm:$0xe] }
  0x83   : > { %2728 = vmatprep.mubr.bf16.mxu0 %v734_v61  ;;  %2862 = vmatpush1.bf16.msra.mxu0 %v9905_v58  ;;  %v8237_v31 = vcombine.low %v367_v27, %v10701_v25  ;;  %v10804_v25 = vld [vmem:[%s10651_s23 + $0x50] ss:$0 sps:$4 sm:$0x11]   ;;  %v8208_v61 = vcombine.low %v328_v53, %v10826_v54 }
  0x84   : > { %2863 = vmatprep.subr.bf16.mxu0 %v13372_v0  ;;  %v779_v47 = vshll.u32 %v10804_v25, 16  ;;  %v9931_v58 = vld [vmem:[%s13361_s1 + $0xd0] sm:$0xff]  }
  0x85   : > { %v991_v36 = vrot.slane %v8237_v31, 1  ;;  %v796_v8 = vshrl.u32 %v8208_v61, 16  ;;  %v817_v31 = vrot.slane %v815_v22, 1  ;;  %v10927_v22 = vld [vmem:[%s10651_s23 + $0xb8] sm:$0xf] }
  0x86   : > { %v781_v52 = vrot.slane %v779_v47, 1 }
  0x87   : > { %2864 = vmatpush1.bf16.msra.mxu0 %v9908_v1  ;;  %v10800_v29 = vsel %vm987_vm1, %v991_v36, %v992_v28  ;;  %v798_v1 = vshll.u32 %v8208_v61, 16  ;;  %v10878_v28 = vld [vmem:[%s10651_s23 + $0x80] ss:$0 sps:$4 sm:$0x11]  }
  0x88   : > { %2865 = vmatprep.subr.bf16.mxu0 %v13372_v0  ;;  %v782_v62 = vsel %vm698_vm0, %v777_v56, %v781_v52  ;;  %v827_v38 = vshll.u32 %v10878_v28, 16 }
  0x89   : > { %v800_v11 = vrot.slane %v798_v1, 1 }
  0x8a   : > { %2729 = vmatmul.mubr.bf16.gmra.mrb[8].mxu0 %v10722_v37  ;;  %v758_v37 = vsel %vm698_vm0, %v753_v24, %v757_v26  ;;  %v8210_v24 = vcombine.low %v332_v18, %v10864_v9  ;;  %v9945_v26 = vld [vmem:[%s13361_s1 + $0xf0] sm:$0xff]   ;;  %v829_v41 = vrot.slane %v827_v38, 1 }
  0x8b   : > { %2736 = vmatprep.mubr.bf16.mxu0 %v746_v17  ;;  %2866 = vmatpush1.bf16.msra.mxu0 %v9911_v13  ;;  %v8209_v13 = vcombine.low %v330_v3, %v10845_v4  ;;  %v805_v17 = vrot.slane %v803_v12, 1  ;;  %v801_v20 = vor.u32 %v800_v11, %v796_v8  ;;  %v10913_v3 = vld [vmem:[%s10651_s23 + $0xa4] ss:$0 sps:$4 sm:$0x11]   ;;  %v340_v8 = vld [vmem:[%s10651_s23 + $0xa8] sm:$0xf] }
  0x8c   : > { %2867 = vmatprep.subr.bf16.mxu0 %v13372_v0  ;;  %v820_v36 = vshrl.u32 %v8210_v24, 16  ;;  %v10923_v18 = vld [vmem:[%s10651_s23 + $0xb0] ss:$0 sps:$4 sm:$0x11]  }
  0x8d   : > { %v810_v16 = vshll.u32 %v8209_v13, 16  ;;  %v806_v27 = vsel %vm698_vm0, %v801_v20, %v805_v17 }
  0x8f   : > { %2868 = vmatpush1.bf16.msra.mxu0 %v9914_v21  ;;  %v808_v21 = vshrl.u32 %v8209_v13, 16  ;;  %v812_v23 = vrot.slane %v810_v16, 1 }
  0x90   : > { %2869 = vmatprep.subr.bf16.mxu0 %v13372_v0 }
  0x91   : > { %v813_v35 = vor.u32 %v812_v23, %v808_v21  ;;  %v342_v21 = vld [vmem:[%s10651_s23 + $0xb4] sm:$0xf] }
  0x92   : > { %2737 = vmatmul.mubr.bf16.gmra.mrb[12].mxu0 %v10738_v50  ;;  %v770_v50 = vsel %vm698_vm0, %v765_v43, %v769_v39  ;;  %v8211_v39 = vcombine.low %v334_v32, %v10882_v33  ;;  %v10933_v32 = vld [vmem:[%s10651_s23 + $0xbc] ss:$0 sps:$4 sm:$0x11]  }
  0x93   : > { %2744 = vmatprep.mubr.bf16.mxu0 %v758_v37  ;;  %2870 = vmatpush1.bf16.msra.mxu0 %v9919_v30  ;;  %v822_v30 = vshll.u32 %v8210_v24, 16  ;;  %v818_v40 = vsel %vm698_vm0, %v813_v35, %v817_v31 }
  0x94   : > { %2871 = vmatprep.subr.bf16.mxu0 %v13372_v0  ;;  %v834_v43 = vshll.u32 %v8211_v39, 16  ;;  %v832_v47 = vshrl.u32 %v8211_v39, 16 }
  0x95   : > { %v824_v37 = vrot.slane %v822_v30, 1  ;;  %v8215_v30 = vcombine.low %v342_v21, %v10927_v22  ;;  %v10968_v21 = vld [vmem:[%s10651_s23 + $0x1c] sm:$0xf] }
  0x97   : > { %2872 = vmatpush1.bf16.msra.mxu0 %v9922_v42  ;;  %v10893_v42 = vld [vmem:[%s10651_s23 + $0x8c] ss:$0 sps:$4 sm:$0x11]   ;;  %v825_v46 = vor.u32 %v824_v37, %v820_v36  ;;  %v344_v36 = vld [vmem:[%s10651_s23 + $0xc0] sm:$0xf] }
  0x98   : > { %2873 = vmatprep.subr.bf16.mxu0 %v13372_v0  ;;  %v10937_v37 = vld [vmem:[%s10651_s23 + $0xc4] sm:$0xf] }
  0x99   : > { %v830_v52 = vsel %vm698_vm0, %v825_v46, %v829_v41  ;;  %v887_v41 = vshll.u32 %v10933_v32, 16  ;;  %v10943_v46 = vld [vmem:[%s10651_s23 + $0xc8] ss:$0 sps:$4 sm:$0x11]  }
  0x9a   : > { %2745 = vmatmul.mubr.bf16.gmra.mrb[16].mxu0 %v10752_v60  ;;  %v788_v60 = vrot.slane %v786_v51, 1 }
  0x9b   : > { %2752 = vmatprep.mubr.bf16.mxu0 %v770_v50  ;;  %2874 = vmatpush1.bf16.msra.mxu0 %v9925_v45  ;;  %v10897_v45 = vld [vmem:[%s10651_s23 + $0x94] sm:$0xf]  ;;  %v839_v50 = vshll.u32 %v10893_v42, 16 }
  0x9c   : > { %2875 = vmatprep.subr.bf16.mxu0 %v13372_v0  ;;  %v789_v6 = vor.u32 %v788_v60, %v784_v59  ;;  %v8212_v51 = vcombine.low %v336_v44, %v10897_v45 }
  0x9d   : > { %v841_v53 = vrot.slane %v839_v50, 1  ;;  %v346_v50 = vld [vmem:[%s10651_s23 + $0xcc] sm:$0xf] }
  0x9e   : > { %v846_v56 = vshll.u32 %v8212_v51, 16  ;;  %v844_v60 = vshrl.u32 %v8212_v51, 16 }
  0x9f   : > { %2876 = vmatpush1.bf16.msra.mxu0 %v9928_v55  ;;  %v10903_v55 = vld [vmem:[%s10651_s23 + $0x98] ss:$0 sps:$4 sm:$0x11]  }
  0xa0   : > { %2877 = vmatprep.subr.bf16.mxu0 %v13372_v0 }
  0xa2   : > { %2753 = vmatmul.mubr.bf16.gmra.mrb[20].mxu0 %v10772_v15  ;;  %v794_v15 = vsel %vm698_vm0, %v789_v6, %v793_v2 }
  0xa3   : > { %2760 = vmatprep.mubr.bf16.mxu0 %v782_v62  ;;  %2878 = vmatpush1.bf16.msra.mxu0 %v9931_v58  ;;  %v10907_v58 = vld [vmem:[%s10651_s23 + $0xa0] sm:$0xf]  ;;  %v851_v62 = vshll.u32 %v10903_v55, 16 }
  0xa4   : > { %2879 = vmatprep.subr.bf16.mxu0 %v13372_v0  ;;  %v8213_v1 = vcombine.low %v338_v57, %v10907_v58  ;;  %v899_v57 = vshll.u32 %v10943_v46, 16 }
  0xa5   : > { %v853_v6 = vrot.slane %v851_v62, 1 }
  0xa6   : > { %v856_v12 = vshrl.u32 %v8213_v1, 16 }
  0xa7   : > { %2880 = vmatpush1.bf16.msra.mxu0 %v9934_v5  ;;  %v858_v5 = vshll.u32 %v8213_v1, 16 }
  0xa8   : > { %2881 = vmatprep.subr.bf16.mxu0 %v13372_v0 }
  0xaa   : > { %2761 = vmatmul.mubr.bf16.gmra.mrb[24].mxu0 %v10795_v34  ;;  %v9948_v34 = vld [vmem:[%s13361_s1 + $0xf8] sm:$0xff]  }
  0xab   : > { %2768 = vmatprep.mubr.bf16.mxu0 %v794_v15  ;;  %2882 = vmatpush1.bf16.msra.mxu0 %v9937_v10  ;;  %v10917_v10 = vld [vmem:[%s10651_s23 + $0xac] sm:$0xf]  ;;  %v863_v15 = vshll.u32 %v10913_v3, 16 }
  0xac   : > { %2883 = vmatprep.subr.bf16.mxu0 %v13372_v0  ;;  %v8214_v16 = vcombine.low %v340_v8, %v10917_v10 }
  0xad   : > { %v865_v20 = vrot.slane %v863_v15, 1 }
  0xaf   : > { %2884 = vmatpush1.bf16.msra.mxu0 %v9940_v7  ;;  %v870_v7 = vshll.u32 %v8214_v16, 16 }
  0xb0   : > { %2885 = vmatprep.subr.bf16.mxu0 %v13372_v0 }
  0xb2   : > { %2769 = vmatmul.mubr.bf16.gmra.mrb[28].mxu0 %v8207_v48  ;;  %v836_v48 = vrot.slane %v834_v43, 1  ;;  %v8216_v43 = vcombine.low %v344_v36, %v10937_v37  ;;  %v9960_v36 = vld [vmem:[%s13361_s1 + $0x110] sm:$0xff]  }
  0xb3   : > { %2776 = vmatprep.mubr.bf16.mxu0 %v806_v27  ;;  %2886 = vmatpush1.bf16.msra.mxu0 %v9945_v26  ;;  %v872_v26 = vrot.slane %v870_v7, 1  ;;  %v875_v27 = vshll.u32 %v10923_v18, 16 }
  0xb4   : > { %2887 = vmatprep.subr.bf16.mxu0 %v13372_v0  ;;  %v837_v59 = vor.u32 %v836_v48, %v832_v47  ;;  %v894_v47 = vshll.u32 %v8216_v43, 16  ;;  %v889_v48 = vrot.slane %v887_v41, 1  ;;  %v9964_v41 = vld [vmem:[%s13361_s1 + $0x118] sm:$0xff]  }
  0xb5   : > { %v877_v35 = vrot.slane %v875_v27, 1  ;;  %v8060_v27 = vld [vmem:[%s10651_s23 + $0x24] sm:$0xf] }
  0xb6   : > { %v842_v2 = vsel %vm698_vm0, %v837_v59, %v841_v53  ;;  %v892_v53 = vshrl.u32 %v8216_v43, 16 }
  0xb7   : > { %2888 = vmatpush1.bf16.msra.mxu0 %v9948_v34  ;;  %v882_v34 = vshll.u32 %v8215_v30, 16 }
  0xb8   : > { %3034 = vmatprep.subr.bf16.mxu0 %v13372_v0 }
  0xba   : > { %2777 = vmatmul.mubr.bf16.gmra.mrb[32].mxu0 %v8208_v61  ;;  %v848_v61 = vrot.slane %v846_v56, 1  ;;  %v896_v56 = vrot.slane %v894_v47, 1  ;;  %v369_v47 = vld [vmem:[%s10651_s23 + $0x24] sm:$0xe] }
  0xbb   : > { %2784 = vmatprep.mubr.bf16.mxu0 %v818_v40  ;;  %v884_v40 = vrot.slane %v882_v34, 1  ;;  %v10331_v34 = vld [vmem:[%s10651_s23 + $0x1c] sm:$0xf] }
  0xbc   : > { %v849_v11 = vor.u32 %v848_v61, %v844_v60  ;;  %v10953_v61 = vld [vmem:[%s10651_s23 + $0xd4] ss:$0 sps:$4 sm:$0x11]  }
  0xbd   : > { %v911_v8 = vshll.u32 %v10953_v61, 16 }
  0xbe   : > { %v854_v17 = vsel %vm698_vm0, %v849_v11, %v853_v6 }
  0xc2   : > { %2785 = vmatmul.mubr.bf16.gmra.mrb[36].mxu0 %v8209_v13  ;;  %v860_v13 = vrot.slane %v858_v5, 1 }
  0xc3   : > { %2792 = vmatprep.mubr.bf16.mxu0 %v830_v52 }
  0xc4   : > { %v861_v23 = vor.u32 %v860_v13, %v856_v12  ;;  %v913_v12 = vrot.slane %v911_v8, 1  ;;  %v10335_v8 = vld [vmem:[%s10651_s23 + $0x34] sm:$0xf] }
  0xc6   : > { %v866_v31 = vsel %vm698_vm0, %v861_v23, %v865_v20  ;;  %v8058_v20 = vld [vmem:[%s10651_s23 + $0x18] sm:$0xf]  ;;  %v9952_v23 = vld [vmem:[%s13361_s1 + $0x100] sm:$0xff]  }
  0xca   : > { %2793 = vmatmul.mubr.bf16.gmra.mrb[40].mxu0 %v8210_v24  ;;  %v868_v24 = vshrl.u32 %v8214_v16, 16 }
  0xcb   : > { %2800 = vmatprep.mubr.bf16.mxu0 %v842_v2  ;;  %v897_v2 = vor.u32 %v896_v56, %v892_v53  ;;  %v9968_v53 = vld [vmem:[%s13361_s1 + $0x120] sm:$0xff]  }
  0xcc   : > { %v873_v38 = vor.u32 %v872_v26, %v868_v24  ;;  %v10974_v24 = vcombine.low %v8058_v20, %v10968_v21  ;;  %v9956_v26 = vld [vmem:[%s13361_s1 + $0x108] sm:$0xff]   ;;  %v9983_v20 = vld [vmem:[%s13361_s1 + $0x138] sm:$0xff]  }
  0xce   : > { %v878_v44 = vsel %vm698_vm0, %v873_v38, %v877_v35 }
  0xd2   : > { %2801 = vmatmul.mubr.bf16.gmra.mrb[44].mxu0 %v8211_v39  ;;  %v880_v39 = vshrl.u32 %v8215_v30, 16 }
  0xd3   : > { %2808 = vmatprep.mubr.bf16.mxu0 %v854_v17  ;;  %v10960_v17 = vld [vmem:[%s10651_s23 + $0x10] sm:$0xf] }
  0xd4   : > { %v885_v52 = vor.u32 %v884_v40, %v880_v39  ;;  %v10332_v39 = vld [vmem:[%s10651_s23 + $0x20] ss:$0 sps:$4 sm:$0x11]  }
  0xd5   : > { %v995_v40 = vrot.slane %v10332_v39, 1 }
  0xd6   : > { %v890_v60 = vsel %vm698_vm0, %v885_v52, %v889_v48 }
  0xda   : > { %2809 = vmatmul.mubr.bf16.gmra.mrb[48].mxu0 %v8212_v51  ;;  %v10947_v51 = vld [vmem:[%s10651_s23 + $0xd0] sm:$0xf] }
  0xdb   : > { %2816 = vmatprep.mubr.bf16.mxu0 %v866_v31  ;;  %v8217_v59 = vcombine.low %v346_v50, %v10947_v51  ;;  %v368_v31 = vld [vmem:[%s10651_s23 + $0x18] sm:$0xe]  ;;  %v10333_v50 = vld [vmem:[%s10651_s23 + $0x28] sm:$0xf] }
  0xdc   : > { %v8238_v35 = vcombine.low %v368_v31, %v10331_v34  ;;  %v8239_v52 = vcombine.low %v369_v47, %v10333_v50  ;;  %v8068_v47 = vld [vmem:[%s10651_s23 + $0x54] sm:$0xf]  ;;  %v372_v50 = vld [vmem:[%s10651_s23 + $0x48] sm:$0xe] }
  0xdd   : > { %v906_v62 = vshll.u32 %v8217_v59, 16  ;;  %v904_v5 = vshrl.u32 %v8217_v59, 16 }
  0xde   : > { %v994_v38 = vrot.slane %v8238_v35, 1  ;;  %v997_v56 = vrot.slane %v8239_v52, 1  ;;  %v10337_v35 = vld [vmem:[%s10651_s23 + $0x40] sm:$0xf] }
  0xdf   : > { %v908_v6 = vrot.slane %v906_v62, 1  ;;  %v8064_v62 = vld [vmem:[%s10651_s23 + $0x3c] sm:$0xf] }
  0xe1   : > { %v909_v13 = vor.u32 %v908_v6, %v904_v5 }
  0xe2   : > { %2817 = vmatmul.mubr.bf16.gmra.mrb[52].mxu0 %v8213_v1  ;;  %v901_v1 = vrot.slane %v899_v57, 1  ;;  %v10334_v57 = vld [vmem:[%s10651_s23 + $0x2c] ss:$0 sps:$4 sm:$0x11]  }
  0xe3   : > { %2824 = vmatprep.mubr.bf16.mxu0 %v878_v44  ;;  %v914_v15 = vsel %vm698_vm0, %v909_v13, %v913_v12  ;;  %v11003_v44 = vld [vmem:[%s10651_s23 + $0x34] sm:$0xf] }
  0xe4   : > { %v902_v11 = vsel %vm698_vm0, %v897_v2, %v901_v1  ;;  %v11023_v1 = vld [vmem:[%s10651_s23 + $0x40] sm:$0xf]  ;;  %v370_v2 = vld [vmem:[%s10651_s23 + $0x30] sm:$0xe] }
  0xe5   : > { %v11029_v6 = vcombine.low %v8064_v62, %v11023_v1  ;;  %v9978_v12 = vld [vmem:[%s13361_s1 + $0x130] sm:$0xff]   ;;  %v1007_v62 = vrot.slane %v10804_v25, 1  ;;  %v10340_v25 = vld [vmem:[%s10651_s23 + $0x58] sm:$0xf] }
  0xea   : > { %2825 = vmatmul.mubr.bf16.gmra.mrb[56].mxu0 %v8214_v16  ;;  %v8056_v16 = vld [vmem:[%s10651_s23 + $0xc] sm:$0xf] }
  0xeb   : > { %2832 = vmatprep.mubr.bf16.mxu0 %v890_v60  ;;  %v10963_v7 = vcombine.low %v8056_v16, %v10960_v17  ;;  %v9972_v60 = vld [vmem:[%s13361_s1 + $0x128] sm:$0xff]  }
  0xf2   : > { %2833 = vmatmul.mubr.bf16.gmra.mrb[60].mxu0 %v8215_v30  ;;  %v10984_v30 = vld [vmem:[%s10651_s23 + $0x28] sm:$0xf] }
  0xf3   : > { %2840 = vmatprep.mubr.bf16.mxu0 %v902_v11  ;;  %v8240_v11 = vcombine.low %v370_v2, %v10335_v8  ;;  %v9999_v2 = vld [vmem:[%s13361_s1 + $0x158] sm:$0xff]   ;;  %v11083_v8 = vld [vmem:[%s10651_s23 + $0x64] sm:$0xf] }
  0xf5   : > { %v1000_v13 = vrot.slane %v8240_v11, 1  ;;  %v373_v11 = vld [vmem:[%s10651_s23 + $0x54] sm:$0xe] }
  0xfa   : > { %2841 = vmatmul.mubr.bf16.gmra.mrb[64].mxu0 %v8216_v43  ;;  %v8062_v43 = vld [vmem:[%s10651_s23 + $0x30] sm:$0xf] }
  0xfb   : > { %2848 = vmatprep.mubr.bf16.mxu0 %v914_v15  ;;  %v11009_v48 = vcombine.low %v8062_v43, %v11003_v44  ;;  %v10336_v15 = vld [vmem:[%s10651_s23 + $0x38] ss:$0 sps:$4 sm:$0x11]   ;;  %v9991_v43 = vld [vmem:[%s13361_s1 + $0x148] sm:$0xff]  }
  0xfc   : > { %v1001_v16 = vrot.slane %v10336_v15, 1  ;;  %v8243_v15 = vcombine.low %v373_v11, %v10340_v25 }
  0xfe   : > { %v1002_v31 = vsel %vm987_vm1, %v1000_v13, %v1001_v16  ;;  %v10003_v16 = vld [vmem:[%s13361_s1 + $0x160] sm:$0xff]  }
 0x102   : > { %2849 = vmatmul.mubr.bf16.gmra.mrb[68].mxu0 %v8217_v59  ;;  %v998_v59 = vrot.slane %v10334_v57, 1 }
 0x103   : > { %2889 = vmatprep.mubr.bf16.mxu0 %v10963_v7 }
 0x104   : > { %v999_v5 = vsel %vm987_vm1, %v997_v56, %v998_v59  ;;  %v10339_v56 = vld [vmem:[%s10651_s23 + $0x4c] sm:$0xf]  ;;  %v9995_v59 = vld [vmem:[%s13361_s1 + $0x150] sm:$0xff]  }
 0x105   : > { %v8242_v57 = vcombine.low %v372_v50, %v10339_v56  ;;  %v11123_v50 = vld [vmem:[%s10651_s23 + $0x7c] sm:$0xf] }
 0x10a   : > { %2890 = vmatmul.mubr.bf16.vlgmr.msra.gmra.mrb[0].mxu0 %v10778_v19  ;;  %v10988_v19 = vcombine.low %v8060_v27, %v10984_v30  ;;  %v371_v27 = vld [vmem:[%s10651_s23 + $0x3c] sm:$0xe] }
 0x10b   : > { %3035 = vmatpush1.bf16.msra.mxu0 %v9952_v23  ;;  %2897 = vmatprep.mubr.bf16.mxu0 %v10974_v24  ;;  %v8066_v23 = vld [vmem:[%s10651_s23 + $0x48] sm:$0xf] }
 0x10c   : > { %3036 = vmatprep.subr.bf16.mxu0 %v13372_v0 }
 0x10f   : > { %3037 = vmatpush1.bf16.msra.mxu0 %v9956_v26  ;;  %v11043_v26 = vld [vmem:[%s10651_s23 + $0x4c] sm:$0xf] }
 0x110   : > { %3038 = vmatprep.subr.bf16.mxu0 %v13372_v0  ;;  %v11049_v34 = vcombine.low %v8066_v23, %v11043_v26  ;;  %v1010_v23 = vrot.slane %v10819_v49, 1 }
 0x112   : > { %2898 = vmatmul.mubr.bf16.gmra.mrb[4].mxu0 %v10800_v29  ;;  %v996_v29 = vsel %vm987_vm1, %v994_v38, %v995_v40  ;;  %v9987_v38 = vld [vmem:[%s13361_s1 + $0x140] sm:$0xff]  }
 0x113   : > { %2905 = vmatprep.mubr.bf16.mxu0 %v10988_v19  ;;  %3039 = vmatpush1.bf16.msra.mxu0 %v9960_v36  ;;  %v8241_v36 = vcombine.low %v371_v27, %v10337_v35  ;;  %v10338_v40 = vld [vmem:[%s10651_s23 + $0x44] ss:$0 sps:$4 sm:$0x11]   ;;  %v10007_v27 = vld [vmem:[%s13361_s1 + $0x168] sm:$0xff]   ;;  %v11103_v35 = vld [vmem:[%s10651_s23 + $0x70] sm:$0xf] }
 0x114   : > { %3040 = vmatprep.subr.bf16.mxu0 %v13372_v0 }
 0x115   : > { %v1003_v39 = vrot.slane %v8241_v36, 1  ;;  %v374_v36 = vld [vmem:[%s10651_s23 + $0x60] sm:$0xe] }
 0x116   : > { %v8244_v49 = vcombine.low %v374_v36, %v10826_v54  ;;  %v10018_v54 = vld [vmem:[%s13361_s1 + $0x178] sm:$0xff]  }
 0x117   : > { %3041 = vmatpush1.bf16.msra.mxu0 %v9964_v41  ;;  %v1004_v41 = vrot.slane %v10338_v40, 1  ;;  %v10013_v40 = vld [vmem:[%s13361_s1 + $0x170] sm:$0xff]   ;;  %v8080_v36 = vld [vmem:[%s10651_s23 + $0x9c] sm:$0xf] }
 0x118   : > { %3042 = vmatprep.subr.bf16.mxu0 %v13372_v0 }
 0x119   : > { %v1005_v52 = vsel %vm987_vm1, %v1003_v39, %v1004_v41  ;;  %v1012_v41 = vrot.slane %v8244_v49, 1  ;;  %v378_v49 = vld [vmem:[%s10651_s23 + $0x90] sm:$0xe] }
 0x11a   : > { %2906 = vmatmul.mubr.bf16.gmra.mrb[8].mxu0 %v996_v29  ;;  %v11063_v29 = vld [vmem:[%s10651_s23 + $0x58] sm:$0xf] }
 0x11b   : > { %2913 = vmatprep.mubr.bf16.mxu0 %v11009_v48  ;;  %3043 = vmatpush1.bf16.msra.mxu0 %v9968_v53  ;;  %v11069_v53 = vcombine.low %v8068_v47, %v11063_v29  ;;  %v8074_v47 = vld [vmem:[%s10651_s23 + $0x78] sm:$0xf] }
 0x11c   : > { %3044 = vmatprep.subr.bf16.mxu0 %v13372_v0 }
 0x11f   : > { %3045 = vmatpush1.bf16.msra.mxu0 %v9972_v60  ;;  %v1006_v60 = vrot.slane %v8242_v57, 1  ;;  %v11129_v57 = vcombine.low %v8074_v47, %v11123_v50  ;;  %v11173_v47 = vld [vmem:[%s10651_s23 + $0xac] sm:$0xf] }
 0x120   : > { %3046 = vmatprep.subr.bf16.mxu0 %v13372_v0 }
 0x122   : > { %2914 = vmatmul.mubr.bf16.gmra.mrb[12].mxu0 %v999_v5  ;;  %v8070_v5 = vld [vmem:[%s10651_s23 + $0x60] sm:$0xf] }
 0x123   : > { %2921 = vmatprep.mubr.bf16.mxu0 %v11029_v6  ;;  %3047 = vmatpush1.bf16.msra.mxu0 %v9978_v12  ;;  %v1008_v12 = vsel %vm987_vm1, %v1006_v60, %v1007_v62  ;;  %v11089_v13 = vcombine.low %v8070_v5, %v11083_v8  ;;  %v1016_v60 = vrot.slane %v10857_v14, 1  ;;  %v8076_v62 = vld [vmem:[%s10651_s23 + $0x84] sm:$0xf]  ;;  %v376_v5 = vld [vmem:[%s10651_s23 + $0x78] sm:$0xe]  ;;  %v1019_v14 = vrot.slane %v10878_v28, 1 }
 0x124   : > { %3048 = vmatprep.subr.bf16.mxu0 %v13372_v0  ;;  %v1022_v28 = vrot.slane %v10893_v42, 1  ;;  %v1025_v42 = vrot.slane %v10903_v55, 1  ;;  %v1028_v55 = vrot.slane %v10913_v3, 1  ;;  %v1031_v3 = vrot.slane %v10923_v18, 1 }
 0x125   : > { %v1034_v18 = vrot.slane %v10933_v32, 1  ;;  %v11221_v32 = vld [vmem:[%s10651_s23 + $0xdc] sm:$0xf] }
 0x127   : > { %3049 = vmatpush1.bf16.msra.mxu0 %v9983_v20  ;;  %v1009_v20 = vrot.slane %v8243_v15, 1  ;;  %v8078_v15 = vld [vmem:[%s10651_s23 + $0x90] sm:$0xf] }
 0x128   : > { %3050 = vmatprep.subr.bf16.mxu0 %v13372_v0 }
 0x12a   : > { %2922 = vmatmul.mubr.bf16.gmra.mrb[16].mxu0 %v1002_v31  ;;  %v8072_v31 = vld [vmem:[%s10651_s23 + $0x6c] sm:$0xf] }
 0x12b   : > { %2929 = vmatprep.mubr.bf16.mxu0 %v11049_v34  ;;  %3051 = vmatpush1.bf16.msra.mxu0 %v9987_v38  ;;  %v1011_v38 = vsel %vm987_vm1, %v1009_v20, %v1010_v23  ;;  %v11109_v39 = vcombine.low %v8072_v31, %v11103_v35  ;;  %v377_v20 = vld [vmem:[%s10651_s23 + $0x84] sm:$0xe] }
 0x12c   : > { %3052 = vmatprep.subr.bf16.mxu0 %v13372_v0 }
 0x12f   : > { %3053 = vmatpush1.bf16.msra.mxu0 %v9991_v43  ;;  %v1013_v43 = vrot.slane %v10841_v63, 1 }
 0x130   : > { %3054 = vmatprep.subr.bf16.mxu0 %v13372_v0 }
 0x131   : > { %v1014_v56 = vsel %vm987_vm1, %v1012_v41, %v1013_v43 }
 0x132   : > { %2930 = vmatmul.mubr.bf16.gmra.mrb[20].mxu0 %v1005_v52  ;;  %v375_v52 = vld [vmem:[%s10651_s23 + $0x6c] sm:$0xe] }
 0x133   : > { %2937 = vmatprep.mubr.bf16.mxu0 %v11069_v53  ;;  %3055 = vmatpush1.bf16.msra.mxu0 %v9995_v59  ;;  %v8245_v63 = vcombine.low %v375_v52, %v10845_v4  ;;  %v379_v52 = vld [vmem:[%s10651_s23 + $0x9c] sm:$0xe] }
 0x134   : > { %3056 = vmatprep.subr.bf16.mxu0 %v13372_v0 }
 0x135   : > { %v1015_v59 = vrot.slane %v8245_v63, 1 }
 0x137   : > { %3057 = vmatpush1.bf16.msra.mxu0 %v9999_v2  ;;  %v11137_v2 = vld [vmem:[%s10651_s23 + $0x88] sm:$0xf]  ;;  %v1017_v11 = vsel %vm987_vm1, %v1015_v59, %v1016_v60  ;;  %v8084_v60 = vld [vmem:[%s10651_s23 + $0xb4] sm:$0xf] }
 0x138   : > { %3058 = vmatprep.subr.bf16.mxu0 %v13372_v0  ;;  %v11142_v4 = vcombine.low %v8076_v62, %v11137_v2  ;;  %v11185_v62 = vld [vmem:[%s10651_s23 + $0xb8] sm:$0xf] }
 0x13a   : > { %2938 = vmatmul.mubr.bf16.gmra.mrb[24].mxu0 %v1008_v12  ;;  %v8246_v12 = vcombine.low %v376_v5, %v10864_v9  ;;  %v8247_v9 = vcombine.low %v377_v20, %v10882_v33  ;;  %v8248_v33 = vcombine.low %v378_v49, %v10897_v45  ;;  %v8249_v45 = vcombine.low %v379_v52, %v10907_v58  ;;  %v380_v5 = vld [vmem:[%s10651_s23 + $0xa8] sm:$0xe]  ;;  %v381_v20 = vld [vmem:[%s10651_s23 + $0xb4] sm:$0xe]  ;;  %v382_v49 = vld [vmem:[%s10651_s23 + $0xc0] sm:$0xe] }
 0x13b   : > { %2945 = vmatprep.mubr.bf16.mxu0 %v11089_v13  ;;  %3059 = vmatpush1.bf16.msra.mxu0 %v10003_v16  ;;  %v11149_v16 = vld [vmem:[%s10651_s23 + $0x94] sm:$0xf]  ;;  %v8250_v58 = vcombine.low %v380_v5, %v10917_v10  ;;  %v8251_v10 = vcombine.low %v381_v20, %v10927_v22  ;;  %v8252_v22 = vcombine.low %v382_v49, %v10937_v37  ;;  %v383_v52 = vld [vmem:[%s10651_s23 + $0xcc] sm:$0xe] }
 0x13c   : > { %3060 = vmatprep.subr.bf16.mxu0 %v13372_v0  ;;  %v1018_v25 = vrot.slane %v8246_v12, 1  ;;  %v1021_v31 = vrot.slane %v8247_v9, 1  ;;  %v1024_v43 = vrot.slane %v8248_v33, 1  ;;  %v1027_v59 = vrot.slane %v8249_v45, 1 }
 0x13d   : > { %v11190_v12 = vcombine.low %v8084_v60, %v11185_v62  ;;  %v10019_v60 = vld [vmem:[%s10651_s23 + $0x14] ss:$0 sps:$4 sm:$0x11]  }
 0x13e   : > { %v1020_v23 = vsel %vm987_vm1, %v1018_v25, %v1019_v14  ;;  %v1030_v25 = vrot.slane %v8250_v58, 1  ;;  %v8086_v14 = vld [vmem:[%s10651_s23 + $0xc0] sm:$0xf] }
 0x13f   : > { %3061 = vmatpush1.bf16.msra.mxu0 %v10007_v27  ;;  %v11154_v27 = vcombine.low %v8078_v15, %v11149_v16  ;;  %v11197_v15 = vld [vmem:[%s10651_s23 + $0xc4] sm:$0xf] }
 0x140   : > { %3062 = vmatprep.subr.bf16.mxu0 %v13372_v0  ;;  %v11202_v9 = vcombine.low %v8086_v14, %v11197_v15  ;;  %v1223_v14 = vshrl.u32 %v10963_v7, 16 }
 0x142   : > { %2946 = vmatmul.mubr.bf16.gmra.mrb[28].mxu0 %v1011_v38  ;;  %v11161_v38 = vld [vmem:[%s10651_s23 + $0xa0] sm:$0xf] }
 0x143   : > { %2953 = vmatprep.mubr.bf16.mxu0 %v11109_v39  ;;  %3063 = vmatpush1.bf16.msra.mxu0 %v10013_v40  ;;  %v1023_v40 = vsel %vm987_vm1, %v1021_v31, %v1022_v28  ;;  %v11166_v41 = vcombine.low %v8080_v36, %v11161_v38  ;;  %v1033_v31 = vrot.slane %v8251_v10, 1  ;;  %v8088_v28 = vld [vmem:[%s10651_s23 + $0xcc] sm:$0xf]  ;;  %v11209_v36 = vld [vmem:[%s10651_s23 + $0xd0] sm:$0xf] }
 0x144   : > { %3064 = vmatprep.subr.bf16.mxu0 %v13372_v0  ;;  %v11214_v33 = vcombine.low %v8088_v28, %v11209_v36 }
 0x147   : > { %3065 = vmatpush1.bf16.msra.mxu0 %v10018_v54  ;;  %v8082_v54 = vld [vmem:[%s10651_s23 + $0xa8] sm:$0xf] }
 0x148   : > { %3211 = vmatprep.subr.bf16.mxu0 %v13372_v0  ;;  %v11178_v63 = vcombine.low %v8082_v54, %v11173_v47  ;;  %v8090_v54 = vld [vmem:[%s10651_s23 + $0xd8] sm:$0xf] }
 0x14a   : > { %2954 = vmatmul.mubr.bf16.gmra.mrb[32].mxu0 %v1014_v56  ;;  %v1026_v56 = vsel %vm987_vm1, %v1024_v43, %v1025_v42  ;;  %v1036_v43 = vrot.slane %v8252_v22, 1  ;;  %v1037_v42 = vrot.slane %v10943_v46, 1  ;;  %v1225_v46 = vshll.u32 %v10963_v7, 16  ;;  %v8112_v22 = vld [vmem:[%s10651_s23 + $0x24] sm:$0xe] }
 0x14b   : > { %2961 = vmatprep.mubr.bf16.mxu0 %v11129_v57 }
 0x14c   : > { %v1038_v45 = vsel %vm987_vm1, %v1036_v43, %v1037_v42  ;;  %v1227_v20 = vrot.slane %v1225_v46, 1  ;;  %v10020_v43 = vld [vmem:[%s13361_s1 + $0x180] sm:$0xff]  }
 0x152   : > { %2962 = vmatmul.mubr.bf16.gmra.mrb[36].mxu0 %v1017_v11  ;;  %v1029_v11 = vsel %vm987_vm1, %v1027_v59, %v1028_v55  ;;  %v11227_v59 = vcombine.low %v8090_v54, %v11221_v32  ;;  %v8253_v55 = vcombine.low %v383_v52, %v10947_v51  ;;  %v8292_v52 = vcombine.low %v8112_v22, %v10984_v30  ;;  %v8113_v30 = vld [vmem:[%s10651_s23 + $0x30] sm:$0xe] }
 0x153   : > { %2969 = vmatprep.mubr.bf16.mxu0 %v11142_v4 }
 0x154   : > { %v1039_v5 = vrot.slane %v8253_v55, 1  ;;  %v1249_v55 = vshll.u32 %v10988_v19, 16  ;;  %v1516_v46 = vrot.slane %v8292_v52, 1  ;;  %v1273_v52 = vshll.u32 %v11029_v6, 16 }
 0x15a   : > { %2970 = vmatmul.mubr.bf16.gmra.mrb[40].mxu0 %v1020_v23  ;;  %v1032_v23 = vsel %vm987_vm1, %v1030_v25, %v1031_v3  ;;  %v1511_v25 = vrot.slane %v10019_v60, 1  ;;  %v8111_v3 = vld [vmem:[%s10651_s23 + $0x18] sm:$0xe] }
 0x15b   : > { %2977 = vmatprep.mubr.bf16.mxu0 %v11154_v27 }
 0x162   : > { %2978 = vmatmul.mubr.bf16.gmra.mrb[44].mxu0 %v1023_v40  ;;  %v1035_v40 = vsel %vm987_vm1, %v1033_v31, %v1034_v18  ;;  %v10021_v31 = vld [vmem:[%s10651_s23 + $0x20] ss:$0 sps:$4 sm:$0x11]   ;;  %v1237_v18 = vshll.u32 %v10974_v24, 16 }
 0x163   : > { %2985 = vmatprep.mubr.bf16.mxu0 %v11166_v41  ;;  %v1242_v54 = vshll.u32 %v10021_v31, 16 }
 0x164   : > { %v1239_v42 = vrot.slane %v1237_v18, 1 }
 0x16a   : > { %2986 = vmatmul.mubr.bf16.gmra.mrb[48].mxu0 %v1026_v56  ;;  %v8110_v56 = vld [vmem:[%s10651_s23 + $0xc] sm:$0xe] }
 0x16b   : > { %2993 = vmatprep.mubr.bf16.mxu0 %v11178_v63  ;;  %v8290_v37 = vcombine.low %v8110_v56, %v10960_v17  ;;  %v1230_v17 = vshll.u32 %v10019_v60, 16  ;;  %v1244_v60 = vrot.slane %v1242_v54, 1  ;;  %v10027_v54 = vld [vmem:[%s10651_s23 + $0x44] ss:$0 sps:$4 sm:$0x11]  }
 0x16d   : > { %v1510_v58 = vrot.slane %v8290_v37, 1  ;;  %v1232_v28 = vrot.slane %v1230_v17, 1  ;;  %v10025_v17 = vld [vmem:[%s10651_s23 + $0x38] ss:$0 sps:$4 sm:$0x11]  }
 0x16f   : > { %v1512_v10 = vsel %vm987_vm1, %v1510_v58, %v1511_v25  ;;  %v1247_v58 = vshrl.u32 %v10988_v19, 16  ;;  %v1251_v25 = vrot.slane %v1249_v55, 1  ;;  %v10059_v55 = vld [vmem:[%s13361_s1 + $0x210] sm:$0xff]  }
 0x172   : > { %2994 = vmatmul.mubr.bf16.gmra.mrb[52].mxu0 %v1029_v11  ;;  %v1040_v11 = vrot.slane %v10953_v61, 1  ;;  %v1228_v61 = vor.u32 %v1227_v20, %v1223_v14  ;;  %v10024_v14 = vld [vmem:[%s13361_s1 + $0x190] sm:$0xff]   ;;  %v8293_v20 = vcombine.low %v8113_v30, %v11003_v44  ;;  %v11273_v44 = vld [vmem:[%s13361_s1 + $0x200] sm:$0xff]   ;;  %v1275_v30 = vrot.slane %v1273_v52, 1 }
 0x173   : > { %3001 = vmatprep.mubr.bf16.mxu0 %v11190_v12  ;;  %9577 = vmatprep.subr.bf16.mxu1 %v11273_v44  ;;  %v1295_v52 = vshrl.u32 %v11069_v53, 16 }
 0x174   : > { %v1041_v51 = vsel %vm987_vm1, %v1039_v5, %v1040_v11  ;;  %v1233_v7 = vsel %vm698_vm0, %v1228_v61, %v1232_v28  ;;  %v1519_v18 = vrot.slane %v8293_v20, 1  ;;  %v1520_v61 = vrot.slane %v10025_v17, 1  ;;  %v8114_v28 = vld [vmem:[%s10651_s23 + $0x3c] sm:$0xe]  ;;  %9585 = vmatpush3.bf16.msra.mxu1 %v11273_v44 }
 0x175   : > { %v1285_v20 = vshll.u32 %v11049_v34, 16 }
 0x17a   : > { %3002 = vmatmul.mubr.bf16.gmra.mrb[56].mxu0 %v1032_v23  ;;  %v8291_v23 = vcombine.low %v8111_v3, %v10968_v21  ;;  %v1235_v21 = vshrl.u32 %v10974_v24, 16  ;;  %v10022_v24 = vld [vmem:[%s13361_s1 + $0x188] sm:$0xff]  }
 0x17b   : > { %3009 = vmatprep.mubr.bf16.mxu0 %v11202_v9 }
 0x17c   : > { %v1513_v49 = vrot.slane %v8291_v23, 1  ;;  %v1240_v37 = vor.u32 %v1239_v42, %v1235_v21  ;;  %v1261_v23 = vshll.u32 %v11009_v48, 16  ;;  %v8294_v21 = vcombine.low %v8114_v28, %v11023_v1  ;;  %v10056_v1 = vld [vmem:[%s13361_s1 + $0x208] sm:$0xff]  }
 0x17d   : > { %v1521_v42 = vsel %vm987_vm1, %v1519_v18, %v1520_v61  ;;  %9578 = vmatprep.subr.bf16.mxu1 %v10056_v1  ;;  %v1283_v18 = vshrl.u32 %v11049_v34, 16  ;;  %v1287_v61 = vrot.slane %v1285_v20, 1  ;;  %v1297_v28 = vshll.u32 %v11069_v53, 16  ;;  %v8117_v53 = vld [vmem:[%s10651_s23 + $0x60] sm:$0xe] }
 0x17e   : > { %v1245_v11 = vsel %vm698_vm0, %v1240_v37, %v1244_v60  ;;  %v1263_v22 = vrot.slane %v1261_v23, 1  ;;  %v1522_v37 = vrot.slane %v8294_v21, 1  ;;  %v1523_v60 = vrot.slane %v10027_v54, 1  ;;  %9586 = vmatpush3.bf16.msra.mxu1 %v10056_v1  ;;  %v10063_v23 = vld [vmem:[%s13361_s1 + $0x220] sm:$0xff]  }
 0x17f   : > { %9579 = vmatprep.subr.bf16.mxu1 %v10059_v55  ;;  %v1288_v34 = vor.u32 %v1287_v61, %v1283_v18  ;;  %v1321_v20 = vshll.u32 %v11109_v39, 16  ;;  %v8138_v18 = vld [vmem:[%s10651_s23 + $0x54] sm:$0xf]  ;;  %v8139_v61 = vld [vmem:[%s10651_s23 + $0x58] sm:$0xf] }
 0x182   : > { %3010 = vmatmul.mubr.bf16.gmra.mrb[60].mxu0 %v1035_v40  ;;  %v1514_v40 = vrot.slane %v10021_v31, 1  ;;  %v10026_v31 = vld [vmem:[%s13361_s1 + $0x198] sm:$0xff]   ;;  %9587 = vmatpush3.bf16.msra.mxu1 %v10059_v55 }
 0x183   : > { %3017 = vmatprep.mubr.bf16.mxu0 %v11214_v33 }
 0x184   : > { %v1515_v56 = vsel %vm987_vm1, %v1513_v49, %v1514_v40  ;;  %v1259_v40 = vshrl.u32 %v11009_v48, 16 }
 0x186   : > { %v1264_v48 = vor.u32 %v1263_v22, %v1259_v40  ;;  %v10031_v22 = vld [vmem:[%s10651_s23 + $0x5c] ss:$0 sps:$4 sm:$0x11]  }
 0x187   : > { %v1529_v55 = vrot.slane %v10031_v22, 1 }
 0x18a   : > { %3018 = vmatmul.mubr.bf16.gmra.mrb[64].mxu0 %v1038_v45  ;;  %v10023_v45 = vld [vmem:[%s10651_s23 + $0x2c] ss:$0 sps:$4 sm:$0x11]  }
 0x18b   : > { %3025 = vmatprep.mubr.bf16.mxu0 %v11227_v59  ;;  %v1517_v5 = vrot.slane %v10023_v45, 1  ;;  %v1254_v3 = vshll.u32 %v10023_v45, 16  ;;  %v10030_v45 = vld [vmem:[%s13361_s1 + $0x1a8] sm:$0xff]  }
 0x18d   : > { %v1256_v19 = vrot.slane %v1254_v3, 1  ;;  %v1524_v3 = vsel %vm987_vm1, %v1522_v37, %v1523_v60 }
 0x192   : > { %3026 = vmatmul.mubr.bf16.gmra.mrb[68].mxu0 %v1041_v51  ;;  %v1518_v51 = vsel %vm987_vm1, %v1516_v46, %v1517_v5  ;;  %v1271_v5 = vshrl.u32 %v11029_v6, 16  ;;  %v10060_v6 = vld [vmem:[%s13361_s1 + $0x218] sm:$0xff]  }
 0x193   : > { %3066 = vmatprep.mubr.bf16.mxu0 %v1512_v10  ;;  %v1252_v10 = vor.u32 %v1251_v25, %v1247_v58  ;;  %v10033_v58 = vld [vmem:[%s13361_s1 + $0x1b0] sm:$0xff]   ;;  %9580 = vmatprep.subr.bf16.mxu1 %v10060_v6 }
 0x194   : > { %9588 = vmatpush3.bf16.msra.mxu1 %v10060_v6  ;;  %v10043_v6 = vld [vmem:[%s13361_s1 + $0x1d8] sm:$0xff]  }
 0x195   : > { %v1257_v49 = vsel %vm698_vm0, %v1252_v10, %v1256_v19  ;;  %9581 = vmatprep.subr.bf16.mxu1 %v10063_v23 }
 0x198   : > { %9589 = vmatpush3.bf16.msra.mxu1 %v10063_v23 }
 0x19a   : > { %3067 = vmatmul.mubr.bf16.vlgmr.msra.gmra.mrb[0].mxu0 %v1233_v7  ;;  %v1266_v7 = vshll.u32 %v10025_v17, 16 }
 0x19b   : > { %3212 = vmatpush1.bf16.msra.mxu0 %v10020_v43  ;;  %3074 = vmatprep.mubr.bf16.mxu0 %v1515_v56  ;;  %v10028_v43 = vld [vmem:[%s13361_s1 + $0x1a0] sm:$0xff]  }
 0x19c   : > { %3213 = vmatprep.subr.bf16.mxu0 %v13372_v0  ;;  %v1268_v56 = vrot.slane %v1266_v7, 1  ;;  %v10037_v7 = vld [vmem:[%s13361_s1 + $0x1c0] sm:$0xff]  }
 0x19e   : > { %v1269_v46 = vsel %vm698_vm0, %v1264_v48, %v1268_v56  ;;  %v1299_v48 = vrot.slane %v1297_v28, 1  ;;  %v1302_v56 = vshll.u32 %v10031_v22, 16 }
 0x19f   : > { %3214 = vmatpush1.bf16.msra.mxu0 %v10022_v24  ;;  %v8115_v24 = vld [vmem:[%s10651_s23 + $0x48] sm:$0xe] }
 0x1a0   : > { %3215 = vmatprep.subr.bf16.mxu0 %v13372_v0  ;;  %v8295_v25 = vcombine.low %v8115_v24, %v11043_v26  ;;  %v10035_v26 = vld [vmem:[%s13361_s1 + $0x1b8] sm:$0xff]   ;;  %v1300_v60 = vor.u32 %v1299_v48, %v1295_v52  ;;  %v1304_v24 = vrot.slane %v1302_v56, 1 }
 0x1a2   : > { %3075 = vmatmul.mubr.bf16.gmra.mrb[4].mxu0 %v1245_v11  ;;  %v1278_v11 = vshll.u32 %v10027_v54, 16  ;;  %v1525_v10 = vrot.slane %v8295_v25, 1  ;;  %v10032_v25 = vld [vmem:[%s10651_s23 + $0x68] ss:$0 sps:$4 sm:$0x11]   ;;  %v1305_v23 = vsel %vm698_vm0, %v1300_v60, %v1304_v24 }
 0x1a3   : > { %3082 = vmatprep.mubr.bf16.mxu0 %v1518_v51  ;;  %3216 = vmatpush1.bf16.msra.mxu0 %v10024_v14  ;;  %v10029_v14 = vld [vmem:[%s10651_s23 + $0x50] ss:$0 sps:$4 sm:$0x11]   ;;  %v1276_v51 = vor.u32 %v1275_v30, %v1271_v5  ;;  %v8136_v5 = vld [vmem:[%s10651_s23 + $0x48] sm:$0xf]  ;;  %v1314_v56 = vshll.u32 %v10032_v25, 16 }
 0x1a4   : > { %3217 = vmatprep.subr.bf16.mxu0 %v13372_v0  ;;  %v1280_v17 = vrot.slane %v1278_v11, 1  ;;  %v1526_v19 = vrot.slane %v10029_v14, 1  ;;  %v1290_v40 = vshll.u32 %v10029_v14, 16  ;;  %v8137_v30 = vld [vmem:[%s10651_s23 + $0x4c] sm:$0xf]  ;;  %v8297_v11 = vcombine.low %v8117_v53, %v11083_v8  ;;  %v11371_v8 = vld [vmem:[%s13361_s1 + $0x238] sm:$0xff]  }
 0x1a5   : > { %v1309_v14 = vshll.u32 %v11089_v13, 16  ;;  %v10045_v53 = vld [vmem:[%s13361_s1 + $0x1e0] sm:$0xff]  }
 0x1a6   : > { %v1527_v21 = vsel %vm987_vm1, %v1525_v10, %v1526_v19  ;;  %v1292_v54 = vrot.slane %v1290_v40, 1  ;;  %v1531_v28 = vrot.slane %v8297_v11, 1 }
 0x1a7   : > { %3218 = vmatpush1.bf16.msra.mxu0 %v10026_v31  ;;  %v8116_v31 = vld [vmem:[%s10651_s23 + $0x54] sm:$0xe]  ;;  %v1311_v48 = vrot.slane %v1309_v14, 1 }
 0x1a8   : > { %3219 = vmatprep.subr.bf16.mxu0 %v13372_v0  ;;  %v1293_v37 = vsel %vm698_vm0, %v1288_v34, %v1292_v54  ;;  %v10073_v54 = vld [vmem:[%s10651_s23 + $0x5c] ss:$0 sps:$4 sm:$0x11]  }
 0x1a9   : > { %v2048_v24 = vrot.slane %v10073_v54, 1 }
 0x1aa   : > { %3083 = vmatmul.mubr.bf16.gmra.mrb[8].mxu0 %v1257_v49  ;;  %v1281_v49 = vsel %vm698_vm0, %v1276_v51, %v1280_v17  ;;  %v8186_v51 = vld [vmem:[%s10651_s23 + $0x48] sm:$0xe]  ;;  %v10070_v17 = vld [vmem:[%s10651_s23 + $0x50] ss:$0 sps:$4 sm:$0x11]  }
 0x1ab   : > { %3090 = vmatprep.mubr.bf16.mxu0 %v1521_v42  ;;  %3220 = vmatpush1.bf16.msra.mxu0 %v10028_v43  ;;  %v8296_v43 = vcombine.low %v8116_v31, %v11063_v29  ;;  %v11334_v42 = vld [vmem:[%s13361_s1 + $0x228] sm:$0xff]   ;;  %v8348_v10 = vcombine.low %v8186_v51, %v8137_v30  ;;  %v2045_v40 = vrot.slane %v10070_v17, 1  ;;  %v1800_v22 = vshll.u32 %v10070_v17, 16 }
 0x1ac   : > { %3221 = vmatprep.subr.bf16.mxu0 %v13372_v0  ;;  %v10039_v29 = vld [vmem:[%s13361_s1 + $0x1c8] sm:$0xff]   ;;  %9582 = vmatprep.subr.bf16.mxu1 %v11334_v42  ;;  %v1319_v51 = vshrl.u32 %v11109_v39, 16  ;;  %v1323_v17 = vrot.slane %v1321_v20, 1 }
 0x1ad   : > { %v1528_v1 = vrot.slane %v8296_v43, 1  ;;  %9590 = vmatpush3.bf16.msra.mxu1 %v11334_v42  ;;  %v1307_v43 = vshrl.u32 %v11089_v13, 16 }
 0x1ae   : > { %v1324_v20 = vor.u32 %v1323_v17, %v1319_v51 }
 0x1af   : > { %3222 = vmatpush1.bf16.msra.mxu0 %v10030_v45  ;;  %v11343_v45 = vld [vmem:[%s13361_s1 + $0x230] sm:$0xff]  }
 0x1b0   : > { %3223 = vmatprep.subr.bf16.mxu0 %v13372_v0  ;;  %9583 = vmatprep.subr.bf16.mxu1 %v11343_v45 }
 0x1b1   : > { %9591 = vmatpush3.bf16.msra.mxu1 %v11343_v45 }
 0x1b2   : > { %3091 = vmatmul.mubr.bf16.gmra.mrb[12].mxu0 %v1269_v46  ;;  %v10041_v46 = vld [vmem:[%s13361_s1 + $0x1d0] sm:$0xff]   ;;  %9584 = vmatprep.subr.bf16.mxu1 %v11371_v8 }
 0x1b3   : > { %3098 = vmatprep.mubr.bf16.mxu0 %v1524_v3  ;;  %3224 = vmatpush1.bf16.msra.mxu0 %v10033_v58  ;;  %v1530_v58 = vsel %vm987_vm1, %v1528_v1, %v1529_v55  ;;  %v11360_v3 = vcombine.low %v8136_v5, %v8137_v30  ;;  %v11387_v1 = vcombine.low %v8138_v18, %v8139_v61  ;;  %v10034_v55 = vld [vmem:[%s10651_s23 + $0x74] ss:$0 sps:$4 sm:$0x11]  }
 0x1b4   : > { %3225 = vmatprep.subr.bf16.mxu0 %v13372_v0 }
 0x1b5   : > { %v1793_v19 = vshrl.u32 %v11360_v3, 16  ;;  %v1795_v31 = vshll.u32 %v11360_v3, 16  ;;  %9592 = vmatpush3.bf16.msra.mxu1 %v11371_v8  ;;  %v1807_v14 = vshll.u32 %v11387_v1, 16 }
 0x1b7   : > { %3226 = vmatpush1.bf16.msra.mxu0 %v10035_v26  ;;  %v8118_v26 = vld [vmem:[%s10651_s23 + $0x6c] sm:$0xe]  ;;  %v1797_v34 = vrot.slane %v1795_v31, 1  ;;  %v1809_v31 = vrot.slane %v1807_v14, 1 }
 0x1b8   : > { %3227 = vmatprep.subr.bf16.mxu0 %v13372_v0 }
 0x1b9   : > { %v1798_v13 = vor.u32 %v1797_v34, %v1793_v19  ;;  %v1535_v19 = vrot.slane %v10034_v55, 1  ;;  %v10036_v34 = vld [vmem:[%s10651_s23 + $0x80] ss:$0 sps:$4 sm:$0x11]  }
 0x1ba   : > { %3099 = vmatmul.mubr.bf16.gmra.mrb[16].mxu0 %v1281_v49  ;;  %v1532_v49 = vrot.slane %v10032_v25, 1  ;;  %v1805_v25 = vshrl.u32 %v11387_v1, 16 }
 0x1bb   : > { %3106 = vmatprep.mubr.bf16.mxu0 %v1527_v21  ;;  %3228 = vmatpush1.bf16.msra.mxu0 %v10037_v7  ;;  %v8187_v7 = vld [vmem:[%s10651_s23 + $0x54] sm:$0xe]  ;;  %v2044_v21 = vrot.slane %v8348_v10, 1 }
 0x1bc   : > { %3229 = vmatprep.subr.bf16.mxu0 %v13372_v0  ;;  %v8349_v52 = vcombine.low %v8187_v7, %v8139_v61  ;;  %v1533_v5 = vsel %vm987_vm1, %v1531_v28, %v1532_v49  ;;  %v8119_v61 = vld [vmem:[%s10651_s23 + $0x78] sm:$0xe]  ;;  %v1810_v28 = vor.u32 %v1809_v31, %v1805_v25  ;;  %v8141_v7 = vld [vmem:[%s10651_s23 + $0x64] sm:$0xf] }
 0x1be   : > { %v2047_v60 = vrot.slane %v8349_v52, 1 }
 0x1bf   : > { %3230 = vmatpush1.bf16.msra.mxu0 %v10039_v29  ;;  %v1802_v29 = vrot.slane %v1800_v22, 1  ;;  %v8140_v22 = vld [vmem:[%s10651_s23 + $0x60] sm:$0xf] }
 0x1c0   : > { %3231 = vmatprep.subr.bf16.mxu0 %v13372_v0  ;;  %v2049_v11 = vsel %vm987_vm1, %v2047_v60, %v2048_v24  ;;  %v11422_v52 = vcombine.low %v8140_v22, %v8141_v7 }
 0x1c1   : > { %v11398_v30 = vsel %vm698_vm0, %v1798_v13, %v1802_v29  ;;  %v8188_v29 = vld [vmem:[%s10651_s23 + $0x60] sm:$0xe] }
 0x1c2   : > { %3107 = vmatmul.mubr.bf16.gmra.mrb[20].mxu0 %v1293_v37  ;;  %v2046_v37 = vsel %vm987_vm1, %v2044_v21, %v2045_v40  ;;  %v10050_v40 = vld [vmem:[%s13361_s1 + $0x1f0] sm:$0xff]   ;;  %v8350_v13 = vcombine.low %v8188_v29, %v8141_v7  ;;  %v1817_v60 = vshrl.u32 %v11422_v52, 16  ;;  %v1819_v24 = vshll.u32 %v11422_v52, 16 }
 0x1c3   : > { %3114 = vmatprep.mubr.bf16.mxu0 %v1530_v58  ;;  %3232 = vmatpush1.bf16.msra.mxu0 %v10041_v46  ;;  %v8298_v46 = vcombine.low %v8118_v26, %v11103_v35  ;;  %v1312_v58 = vor.u32 %v1311_v48, %v1307_v43  ;;  %v1316_v35 = vrot.slane %v1314_v56, 1  ;;  %v1326_v26 = vshll.u32 %v10034_v55, 16  ;;  %v10076_v55 = vld [vmem:[%s10651_s23 + $0x68] ss:$0 sps:$4 sm:$0x11]  }
 0x1c4   : > { %3233 = vmatprep.subr.bf16.mxu0 %v13372_v0  ;;  %9501 = vmatprep.mubr.bf16.mxu1 %v2046_v37  ;;  %v8299_v43 = vcombine.low %v8119_v61, %v11123_v50  ;;  %v1333_v48 = vshll.u32 %v11129_v57, 16  ;;  %v1345_v56 = vshll.u32 %v11142_v4, 16  ;;  %v10052_v50 = vld [vmem:[%s13361_s1 + $0x1f8] sm:$0xff]   ;;  %v2051_v25 = vrot.slane %v10076_v55, 1 }
 0x1c5   : > { %9502 = vmatmul.mubr.bf16.vlgmr.msra.gmra.mrb[0].mxu1 %v2049_v11  ;;  %v1534_v10 = vrot.slane %v8298_v46, 1  ;;  %v1317_v39 = vsel %vm698_vm0, %v1312_v58, %v1316_v35  ;;  %v1328_v49 = vrot.slane %v1326_v26, 1  ;;  %v8142_v46 = vld [vmem:[%s10651_s23 + $0x6c] sm:$0xf]  ;;  %v1538_v58 = vrot.slane %v10036_v34, 1 }
 0x1c6   : > { %v1537_v11 = vrot.slane %v8299_v43, 1  ;;  %v1824_v14 = vshll.u32 %v10076_v55, 16  ;;  %v1331_v35 = vshrl.u32 %v11129_v57, 16  ;;  %v2050_v51 = vrot.slane %v8350_v13, 1 }
 0x1c7   : > { %3234 = vmatpush1.bf16.msra.mxu0 %v10043_v6  ;;  %v1812_v6 = vshll.u32 %v10073_v54, 16  ;;  %v1536_v21 = vsel %vm987_vm1, %v1534_v10, %v1535_v19  ;;  %v1329_v37 = vsel %vm698_vm0, %v1324_v20, %v1328_v49  ;;  %v1821_v17 = vrot.slane %v1819_v24, 1  ;;  %v10079_v26 = vld [vmem:[%s10651_s23 + $0x74] ss:$0 sps:$4 sm:$0x11]  }
 0x1c8   : > { %3235 = vmatprep.subr.bf16.mxu0 %v13372_v0  ;;  %v1335_v10 = vrot.slane %v1333_v48, 1  ;;  %v1338_v19 = vshll.u32 %v10036_v34, 16  ;;  %v1826_v31 = vrot.slane %v1824_v14, 1  ;;  %v10038_v61 = vld [vmem:[%s10651_s23 + $0x8c] ss:$0 sps:$4 sm:$0x11]   ;;  %v1539_v57 = vsel %vm987_vm1, %v1537_v11, %v1538_v58 }
 0x1c9   : > { %v1814_v18 = vrot.slane %v1812_v6, 1  ;;  %v8189_v6 = vld [vmem:[%s10651_s23 + $0x6c] sm:$0xe]  ;;  %v2054_v49 = vrot.slane %v10079_v26, 1  ;;  %v1350_v29 = vshll.u32 %v10038_v61, 16 }
 0x1ca   : > { %3115 = vmatmul.mubr.bf16.gmra.mrb[24].mxu0 %v1305_v23  ;;  %v10047_v23 = vld [vmem:[%s13361_s1 + $0x1e8] sm:$0xff]   ;;  %v1336_v43 = vor.u32 %v1335_v10, %v1331_v35  ;;  %v1340_v48 = vrot.slane %v1338_v19, 1  ;;  %v8144_v58 = vld [vmem:[%s10651_s23 + $0x78] sm:$0xf]  ;;  %v8122_v10 = vld [vmem:[%s10651_s23 + $0x9c] sm:$0xe] }
 0x1cb   : > { %3122 = vmatprep.mubr.bf16.mxu0 %v1533_v5  ;;  %3236 = vmatpush1.bf16.msra.mxu0 %v10045_v53  ;;  %v11420_v54 = vsel %vm698_vm0, %v1810_v28, %v1814_v18  ;;  %v8120_v53 = vld [vmem:[%s10651_s23 + $0x84] sm:$0xe]  ;;  %v8143_v5 = vld [vmem:[%s10651_s23 + $0x70] sm:$0xf]  ;;  %v2052_v28 = vsel %vm987_vm1, %v2050_v51, %v2051_v25  ;;  %v1352_v11 = vrot.slane %v1350_v29, 1  ;;  %v1357_v51 = vshll.u32 %v11154_v27, 16 }
 0x1cc   : > { %3237 = vmatprep.subr.bf16.mxu0 %v13372_v0  ;;  %v11441_v18 = vcombine.low %v8142_v46, %v8143_v5  ;;  %9505 = vmatprep.mubr.bf16.mxu1 %v2052_v28  ;;  %v1341_v46 = vsel %vm698_vm0, %v1336_v43, %v1340_v48  ;;  %v8145_v25 = vld [vmem:[%s10651_s23 + $0x7c] sm:$0xf]  ;;  %v10040_v14 = vld [vmem:[%s10651_s23 + $0x98] ss:$0 sps:$4 sm:$0x11]   ;;  %v1355_v43 = vshrl.u32 %v11154_v27, 16 }
 0x1cd   : > { %v11465_v35 = vcombine.low %v8144_v58, %v8145_v25  ;;  %v8146_v28 = vld [vmem:[%s10651_s23 + $0x84] sm:$0xf] }
 0x1ce   : > { %v1831_v34 = vshll.u32 %v11441_v18, 16 }
 0x1cf   : > { %3238 = vmatpush1.bf16.msra.mxu0 %v10047_v23  ;;  %v8351_v23 = vcombine.low %v8189_v6, %v8143_v5 }
 0x1d0   : > { %3239 = vmatprep.subr.bf16.mxu0 %v13372_v0  ;;  %v1833_v13 = vrot.slane %v1831_v34, 1 }
 0x1d1   : > { %v2053_v20 = vrot.slane %v8351_v23, 1  ;;  %v10082_v23 = vld [vmem:[%s10651_s23 + $0x80] ss:$0 sps:$4 sm:$0x11]  }
 0x1d2   : > { %3123 = vmatmul.mubr.bf16.gmra.mrb[28].mxu0 %v1317_v39  ;;  %v1822_v39 = vor.u32 %v1821_v17, %v1817_v60  ;;  %v8121_v60 = vld [vmem:[%s10651_s23 + $0x90] sm:$0xe]  ;;  %v1369_v17 = vshll.u32 %v11166_v41, 16 }
 0x1d3   : > { %3130 = vmatprep.mubr.bf16.mxu0 %v1536_v21  ;;  %3240 = vmatpush1.bf16.msra.mxu0 %v10050_v40  ;;  %v8300_v40 = vcombine.low %v8120_v53, %v11137_v2  ;;  %v2055_v7 = vsel %vm987_vm1, %v2053_v20, %v2054_v49  ;;  %v1829_v21 = vshrl.u32 %v11441_v18, 16  ;;  %v1836_v2 = vshll.u32 %v10079_v26, 16  ;;  %v8190_v26 = vld [vmem:[%s10651_s23 + $0x78] sm:$0xe] }
 0x1d4   : > { %3241 = vmatprep.subr.bf16.mxu0 %v13372_v0  ;;  %v11449_v22 = vsel %vm698_vm0, %v1822_v39, %v1826_v31  ;;  %9506 = vmatmul.mubr.bf16.gmra.mrb[4].mxu1 %v2055_v7  ;;  %v1541_v53 = vrot.slane %v10038_v61, 1  ;;  %v8352_v19 = vcombine.low %v8190_v26, %v8145_v25  ;;  %v1841_v31 = vshrl.u32 %v11465_v35, 16  ;;  %v8147_v39 = vld [vmem:[%s10651_s23 + $0x88] sm:$0xf]  ;;  %v8191_v7 = vld [vmem:[%s10651_s23 + $0x84] sm:$0xe] }
 0x1d5   : > { %v1540_v55 = vrot.slane %v8300_v40, 1  ;;  %v1834_v24 = vor.u32 %v1833_v13, %v1829_v21  ;;  %v1843_v61 = vshll.u32 %v11465_v35, 16  ;;  %v1544_v49 = vrot.slane %v10040_v14, 1 }
 0x1d6   : > { %v2057_v40 = vrot.slane %v10082_v23, 1  ;;  %v2056_v21 = vrot.slane %v8352_v19, 1  ;;  %v8353_v48 = vcombine.low %v8191_v7, %v8147_v39 }
 0x1d7   : > { %3242 = vmatpush1.bf16.msra.mxu0 %v10052_v50  ;;  %v1347_v50 = vrot.slane %v1345_v56, 1  ;;  %v1542_v56 = vsel %vm987_vm1, %v1540_v55, %v1541_v53  ;;  %v1845_v34 = vrot.slane %v1843_v61, 1  ;;  %v11480_v55 = vcombine.low %v8146_v28, %v8147_v39  ;;  %v10042_v53 = vld [vmem:[%s10651_s23 + $0xa4] ss:$0 sps:$4 sm:$0x11]  }
 0x1d8   : > { %9477 = vmatprep.subr.bf16.mxu0 %v11273_v44  ;;  %v1343_v44 = vshrl.u32 %v11142_v4, 16  ;;  %v8301_v4 = vcombine.low %v8121_v60, %v11149_v16  ;;  %v2058_v13 = vsel %vm987_vm1, %v2056_v21, %v2057_v40  ;;  %v2059_v60 = vrot.slane %v8353_v48, 1  ;;  %v8149_v40 = vld [vmem:[%s10651_s23 + $0x94] sm:$0xf] }
 0x1d9   : > { %9509 = vmatprep.mubr.bf16.mxu1 %v2058_v13  ;;  %v1853_v25 = vshrl.u32 %v11480_v55, 16  ;;  %v1374_v26 = vshll.u32 %v10042_v53, 16  ;;  %v1381_v21 = vshll.u32 %v11178_v63, 16  ;;  %v8124_v48 = vld [vmem:[%s10651_s23 + $0xb4] sm:$0xe] }
 0x1da   : > { %3131 = vmatmul.mubr.bf16.gmra.mrb[32].mxu0 %v1329_v37  ;;  %v1838_v37 = vrot.slane %v1836_v2, 1  ;;  %v1348_v5 = vor.u32 %v1347_v50, %v1343_v44  ;;  %v1543_v20 = vrot.slane %v8301_v4, 1  ;;  %v10085_v2 = vld [vmem:[%s10651_s23 + $0x8c] ss:$0 sps:$4 sm:$0x11]   ;;  %v1359_v44 = vrot.slane %v1357_v51, 1 }
 0x1db   : > { %3138 = vmatprep.mubr.bf16.mxu0 %v1539_v57  ;;  %v1848_v57 = vshll.u32 %v10082_v23, 16  ;;  %v1362_v50 = vshll.u32 %v10040_v14, 16  ;;  %v1855_v4 = vshll.u32 %v11480_v55, 16  ;;  %v1367_v14 = vshrl.u32 %v11166_v41, 16  ;;  %v8151_v13 = vld [vmem:[%s10651_s23 + $0xa0] sm:$0xf] }
 0x1dc   : > { %v11463_v6 = vsel %vm698_vm0, %v1834_v24, %v1838_v37  ;;  %v1353_v16 = vsel %vm698_vm0, %v1348_v5, %v1352_v11  ;;  %v1846_v37 = vor.u32 %v1845_v34, %v1841_v31  ;;  %v2060_v24 = vrot.slane %v10085_v2, 1  ;;  %v8123_v31 = vld [vmem:[%s10651_s23 + $0xa8] sm:$0xe]  ;;  %v8192_v34 = vld [vmem:[%s10651_s23 + $0x90] sm:$0xe] }
 0x1dd   : > { %v1850_v29 = vrot.slane %v1848_v57, 1  ;;  %v1545_v5 = vsel %vm987_vm1, %v1543_v20, %v1544_v49  ;;  %v1360_v58 = vor.u32 %v1359_v44, %v1355_v43  ;;  %v1371_v51 = vrot.slane %v1369_v17, 1  ;;  %v8148_v49 = vld [vmem:[%s10651_s23 + $0x90] sm:$0xf] }
 0x1de   : > { %v2061_v11 = vsel %vm987_vm1, %v2059_v60, %v2060_v24  ;;  %v1857_v19 = vrot.slane %v1855_v4, 1  ;;  %v1376_v20 = vrot.slane %v1374_v26, 1  ;;  %v8303_v41 = vcombine.low %v8123_v31, %v11173_v47  ;;  %v10044_v57 = vld [vmem:[%s10651_s23 + $0xb0] ss:$0 sps:$4 sm:$0x11]  }
 0x1df   : > { %v11487_v27 = vsel %vm698_vm0, %v1846_v37, %v1850_v29  ;;  %9510 = vmatmul.mubr.bf16.gmra.mrb[8].mxu1 %v2061_v11  ;;  %v1372_v39 = vor.u32 %v1371_v51, %v1367_v14  ;;  %v11503_v43 = vcombine.low %v8148_v49, %v8149_v40  ;;  %v8354_v44 = vcombine.low %v8192_v34, %v8149_v40  ;;  %v10091_v4 = vld [vmem:[%s10651_s23 + $0xa4] ss:$0 sps:$4 sm:$0x11]  }
 0x1e0   : > { %v1858_v61 = vor.u32 %v1857_v19, %v1853_v25  ;;  %v1549_v37 = vrot.slane %v8303_v41, 1  ;;  %v1550_v60 = vrot.slane %v10044_v57, 1  ;;  %v1379_v11 = vshrl.u32 %v11178_v63, 16  ;;  %v10046_v63 = vld [vmem:[%s10651_s23 + $0xbc] ss:$0 sps:$4 sm:$0x11]  }
 0x1e1   : > { %v1377_v47 = vsel %vm698_vm0, %v1372_v39, %v1376_v20  ;;  %v1867_v29 = vshll.u32 %v11503_v43, 16  ;;  %v1386_v14 = vshll.u32 %v10044_v57, 16  ;;  %v8304_v31 = vcombine.low %v8124_v48, %v11185_v62  ;;  %v8125_v62 = vld [vmem:[%s10651_s23 + $0xc0] sm:$0xe] }
 0x1e2   : > { %3139 = vmatmul.mubr.bf16.gmra.mrb[36].mxu0 %v1341_v46  ;;  %v8302_v46 = vcombine.low %v8122_v10, %v11161_v38  ;;  %v1364_v38 = vrot.slane %v1362_v50, 1  ;;  %v1547_v10 = vrot.slane %v10042_v53, 1  ;;  %v1865_v50 = vshrl.u32 %v11503_v43, 16  ;;  %v8150_v53 = vld [vmem:[%s10651_s23 + $0x9c] sm:$0xf] }
 0x1e3   : > { %3146 = vmatprep.mubr.bf16.mxu0 %v1542_v56  ;;  %v1860_v56 = vshll.u32 %v10085_v2, 16  ;;  %v10088_v2 = vld [vmem:[%s10651_s23 + $0x98] ss:$0 sps:$4 sm:$0x11]   ;;  %v1869_v25 = vrot.slane %v1867_v29, 1  ;;  %v11517_v26 = vcombine.low %v8150_v53, %v8151_v13  ;;  %v1884_v41 = vshll.u32 %v10091_v4, 16 }
 0x1e4   : > { %v1546_v23 = vrot.slane %v8302_v46, 1  ;;  %v1365_v28 = vsel %vm698_vm0, %v1360_v58, %v1364_v38  ;;  %v2063_v24 = vrot.slane %v10088_v2, 1  ;;  %v1872_v46 = vshll.u32 %v10088_v2, 16 }
 0x1e5   : > { %v2062_v58 = vrot.slane %v8354_v44, 1  ;;  %v1383_v38 = vrot.slane %v1381_v21, 1  ;;  %v1877_v49 = vshrl.u32 %v11517_v26, 16  ;;  %v1879_v40 = vshll.u32 %v11517_v26, 16 }
 0x1e6   : > { %v1548_v17 = vsel %vm987_vm1, %v1546_v23, %v1547_v10  ;;  %v1874_v51 = vrot.slane %v1872_v46, 1  ;;  %v1870_v10 = vor.u32 %v1869_v25, %v1865_v50  ;;  %v1388_v57 = vrot.slane %v1386_v14, 1  ;;  %v10094_v14 = vld [vmem:[%s10651_s23 + $0xb0] ss:$0 sps:$4 sm:$0x11]  }
 0x1e7   : > { %v2064_v23 = vsel %vm987_vm1, %v2062_v58, %v2063_v24  ;;  %v1552_v21 = vrot.slane %v8304_v31, 1  ;;  %v1553_v34 = vrot.slane %v10046_v63, 1  ;;  %v1881_v2 = vrot.slane %v1879_v40, 1  ;;  %v8126_v24 = vld [vmem:[%s10651_s23 + $0xcc] sm:$0xe] }
 0x1e8   : > { %9513 = vmatprep.mubr.bf16.mxu1 %v2064_v23  ;;  %v11525_v39 = vsel %vm698_vm0, %v1870_v10, %v1874_v51  ;;  %v1886_v48 = vrot.slane %v1884_v41, 1  ;;  %v1398_v50 = vshll.u32 %v10046_v63, 16  ;;  %v8305_v29 = vcombine.low %v8125_v62, %v11197_v15  ;;  %v8155_v31 = vld [vmem:[%s10651_s23 + $0xb8] sm:$0xf] }
 0x1e9   : > { %v1882_v53 = vor.u32 %v1881_v2, %v1877_v49  ;;  %v1554_v46 = vsel %vm987_vm1, %v1552_v21, %v1553_v34  ;;  %v1405_v15 = vshll.u32 %v11202_v9, 16  ;;  %v1417_v58 = vshll.u32 %v11214_v33, 16  ;;  %v8195_v49 = vld [vmem:[%s10651_s23 + $0xb4] sm:$0xe] }
 0x1ea   : > { %3147 = vmatmul.mubr.bf16.gmra.mrb[40].mxu0 %v1353_v16  ;;  %v1862_v16 = vrot.slane %v1860_v56, 1  ;;  %v8306_v51 = vcombine.low %v8126_v24, %v11209_v36  ;;  %v10097_v36 = vld [vmem:[%s10651_s23 + $0xbc] ss:$0 sps:$4 sm:$0x11]  }
 0x1eb   : > { %3154 = vmatprep.mubr.bf16.mxu0 %v1545_v5  ;;  %v8193_v5 = vld [vmem:[%s10651_s23 + $0x9c] sm:$0xe]  ;;  %v1407_v21 = vrot.slane %v1405_v15, 1 }
 0x1ec   : > { %v11501_v7 = vsel %vm698_vm0, %v1858_v61, %v1862_v16  ;;  %v8355_v56 = vcombine.low %v8193_v5, %v8151_v13  ;;  %v2066_v16 = vrot.slane %v10091_v4, 1  ;;  %v1551_v61 = vsel %vm987_vm1, %v1549_v37, %v1550_v60  ;;  %v8152_v37 = vld [vmem:[%s10651_s23 + $0xa8] sm:$0xf]  ;;  %v8153_v60 = vld [vmem:[%s10651_s23 + $0xac] sm:$0xf] }
 0x1ed   : > { %v10048_v5 = vld [vmem:[%s10651_s23 + $0xc8] ss:$0 sps:$4 sm:$0x11]   ;;  %v1400_v4 = vrot.slane %v1398_v50, 1 }
 0x1ee   : > { %v2065_v19 = vrot.slane %v8355_v56, 1  ;;  %v1555_v56 = vrot.slane %v8305_v29, 1  ;;  %v1410_v63 = vshll.u32 %v10048_v5, 16  ;;  %v2072_v29 = vrot.slane %v10097_v36, 1 }
 0x1f0   : > { %v2067_v20 = vsel %vm987_vm1, %v2065_v19, %v2066_v16  ;;  %v8154_v16 = vld [vmem:[%s10651_s23 + $0xb4] sm:$0xf] }
 0x1f1   : > { %9514 = vmatmul.mubr.bf16.gmra.mrb[12].mxu1 %v2067_v20  ;;  %v1896_v20 = vshll.u32 %v10094_v14, 16  ;;  %v11557_v2 = vcombine.low %v8154_v16, %v8155_v31  ;;  %v10051_v16 = vld [vmem:[%s10651_s23 + $0xe0] ss:$0 sps:$4 sm:$0x11]  }
 0x1f2   : > { %3155 = vmatmul.mubr.bf16.gmra.mrb[44].mxu0 %v1365_v28  ;;  %v1393_v28 = vshll.u32 %v11190_v12, 16 }
 0x1f3   : > { %3162 = vmatprep.mubr.bf16.mxu0 %v1548_v17  ;;  %v1384_v17 = vor.u32 %v1383_v38, %v1379_v11  ;;  %v11540_v11 = vsel %vm698_vm0, %v1882_v53, %v1886_v48  ;;  %v8194_v38 = vld [vmem:[%s10651_s23 + $0xa8] sm:$0xe]  ;;  %v1898_v34 = vrot.slane %v1896_v20, 1  ;;  %v10049_v48 = vld [vmem:[%s10651_s23 + $0xd4] ss:$0 sps:$4 sm:$0x11]  }
 0x1f4   : > { %v1395_v44 = vrot.slane %v1393_v28, 1  ;;  %v8356_v23 = vcombine.low %v8194_v38, %v8153_v60  ;;  %v2069_v28 = vrot.slane %v10094_v14, 1  ;;  %v1901_v15 = vshrl.u32 %v11557_v2, 16  ;;  %v8128_v14 = vld [vmem:[%s10651_s23 + $0x18] sm:$0xf] }
 0x1f5   : > { %v1389_v13 = vsel %vm698_vm0, %v1384_v17, %v1388_v57  ;;  %v8357_v17 = vcombine.low %v8195_v49, %v8155_v31  ;;  %v1403_v57 = vshrl.u32 %v11202_v9, 16  ;;  %v1415_v9 = vshrl.u32 %v11214_v33, 16 }
 0x1f6   : > { %v2068_v41 = vrot.slane %v8356_v23, 1  ;;  %v1559_v38 = vrot.slane %v10049_v48, 1  ;;  %v1422_v33 = vshll.u32 %v10049_v48, 16  ;;  %v11591_v48 = vld [vmem:[%s10651_s23 + $0x20] ss:$0 sps:$4 sm:$0x11]  }
 0x1f7   : > { %v2071_v50 = vrot.slane %v8357_v17, 1 }
 0x1f8   : > { %v1424_v49 = vrot.slane %v1422_v33, 1  ;;  %v10103_v33 = vld [vmem:[%s10651_s23 + $0xd4] ss:$0 sps:$4 sm:$0x11]  }
 0x1fa   : > { %3163 = vmatmul.mubr.bf16.gmra.mrb[48].mxu0 %v1377_v47  ;;  %v1391_v47 = vshrl.u32 %v11190_v12, 16  ;;  %v11542_v12 = vcombine.low %v8152_v37, %v8153_v60  ;;  %v8127_v37 = vld [vmem:[%s10651_s23 + $0xd8] sm:$0xe]  ;;  %v1558_v60 = vrot.slane %v8306_v51, 1  ;;  %v11572_v51 = vld [vmem:[%s10651_s23 + $0x1c] sm:$0xf] }
 0x1fb   : > { %3170 = vmatprep.mubr.bf16.mxu0 %v1551_v61  ;;  %v1556_v61 = vrot.slane %v10048_v5, 1  ;;  %v1419_v5 = vrot.slane %v1417_v58, 1  ;;  %v8307_v23 = vcombine.low %v8127_v37, %v11221_v32  ;;  %v1429_v58 = vshll.u32 %v11227_v59, 16  ;;  %v8156_v32 = vld [vmem:[%s10651_s23 + $0xc0] sm:$0xf] }
 0x1fc   : > { %v1396_v25 = vor.u32 %v1395_v44, %v1391_v47  ;;  %v1889_v10 = vshrl.u32 %v11542_v12, 16  ;;  %v1891_v19 = vshll.u32 %v11542_v12, 16  ;;  %v2070_v47 = vsel %vm987_vm1, %v2068_v41, %v2069_v28  ;;  %v8158_v37 = vld [vmem:[%s10651_s23 + $0xcc] sm:$0xf] }
 0x1fd   : > { %v1557_v53 = vsel %vm987_vm1, %v1555_v56, %v1556_v61  ;;  %9517 = vmatprep.mubr.bf16.mxu1 %v2070_v47  ;;  %v1408_v56 = vor.u32 %v1407_v21, %v1403_v57  ;;  %v11578_v31 = vcombine.low %v8128_v14, %v11572_v51  ;;  %v1560_v28 = vsel %vm987_vm1, %v1558_v60, %v1559_v38  ;;  %v8159_v60 = vld [vmem:[%s10651_s23 + $0xd0] sm:$0xf] }
 0x1fe   : > { %v1401_v40 = vsel %vm698_vm0, %v1396_v25, %v1400_v4  ;;  %v1893_v62 = vrot.slane %v1891_v19, 1  ;;  %v1903_v25 = vshll.u32 %v11557_v2, 16  ;;  %v1908_v4 = vshll.u32 %v10097_v36, 16 }
 0x1ff   : > { %v1420_v20 = vor.u32 %v1419_v5, %v1415_v9  ;;  %v1561_v41 = vrot.slane %v8307_v23, 1  ;;  %v1562_v57 = vrot.slane %v10051_v16, 1  ;;  %v1431_v21 = vrot.slane %v1429_v58, 1 }
 0x200   : > { %v1894_v44 = vor.u32 %v1893_v62, %v1889_v10  ;;  %v1905_v10 = vrot.slane %v1903_v25, 1  ;;  %v1910_v19 = vrot.slane %v1908_v4, 1  ;;  %v1427_v62 = vshrl.u32 %v11227_v59, 16  ;;  %v8130_v59 = vld [vmem:[%s10651_s23 + $0x24] sm:$0xf] }
 0x201   : > { %v1747_v47 = vshll.u32 %v11578_v31, 16  ;;  %v1425_v9 = vsel %vm698_vm0, %v1420_v20, %v1424_v49  ;;  %v8197_v25 = vld [vmem:[%s10651_s23 + $0xcc] sm:$0xe]  ;;  %v1745_v4 = vshrl.u32 %v11578_v31, 16  ;;  %v11609_v58 = vcombine.low %v8158_v37, %v8159_v60  ;;  %v11627_v37 = vld [vmem:[%s10651_s23 + $0x34] sm:$0xf] }
 0x202   : > { %3171 = vmatmul.mubr.bf16.gmra.mrb[52].mxu0 %v1389_v13  ;;  %v1412_v13 = vrot.slane %v1410_v63, 1  ;;  %v11565_v24 = vsel %vm698_vm0, %v1894_v44, %v1898_v34  ;;  %v1906_v61 = vor.u32 %v1905_v10, %v1901_v15  ;;  %v1434_v34 = vshll.u32 %v10051_v16, 16  ;;  %v8196_v44 = vld [vmem:[%s10651_s23 + $0xc0] sm:$0xe] }
 0x203   : > { %3178 = vmatprep.mubr.bf16.mxu0 %v1554_v46  ;;  %v2073_v46 = vsel %vm987_vm1, %v2071_v50, %v2072_v29  ;;  %v10100_v50 = vld [vmem:[%s10651_s23 + $0xc8] ss:$0 sps:$4 sm:$0x11]   ;;  %v8359_v14 = vcombine.low %v8197_v25, %v8159_v60  ;;  %v1749_v23 = vrot.slane %v1747_v47, 1  ;;  %v1752_v10 = vshll.u32 %v11591_v48, 16 }
 0x204   : > { %9518 = vmatmul.mubr.bf16.gmra.mrb[16].mxu1 %v2073_v46  ;;  %v1413_v63 = vsel %vm698_vm0, %v1408_v56, %v1412_v13  ;;  %v11586_v36 = vsel %vm698_vm0, %v1906_v61, %v1910_v19  ;;  %v11603_v46 = vld [vmem:[%s10651_s23 + $0x28] sm:$0xf]  ;;  %v2075_v5 = vrot.slane %v10100_v50, 1  ;;  %v1920_v15 = vshll.u32 %v10100_v50, 16 }
 0x205   : > { %v1563_v20 = vsel %vm987_vm1, %v1561_v41, %v1562_v57  ;;  %v11614_v49 = vcombine.low %v8130_v59, %v11603_v46  ;;  %v1927_v50 = vshll.u32 %v11609_v58, 16  ;;  %v1932_v41 = vshll.u32 %v10103_v33, 16 }
 0x206   : > { %v1922_v19 = vrot.slane %v1920_v15, 1  ;;  %v1432_v57 = vor.u32 %v1431_v21, %v1427_v62  ;;  %v1436_v59 = vrot.slane %v1434_v34, 1  ;;  %v8160_v34 = vld [vmem:[%s10651_s23 + $0xd8] sm:$0xf] }
 0x207   : > { %v1759_v60 = vshll.u32 %v11614_v49, 16 }
 0x208   : > { %v1437_v62 = vsel %vm698_vm0, %v1432_v57, %v1436_v59  ;;  %v11656_v59 = vld [vmem:[%s10651_s23 + $0x40] sm:$0xf] }
 0x20a   : > { %3179 = vmatmul.mubr.bf16.gmra.mrb[56].mxu0 %v1401_v40  ;;  %v8157_v40 = vld [vmem:[%s10651_s23 + $0xc4] sm:$0xf] }
 0x20b   : > { %3186 = vmatprep.mubr.bf16.mxu0 %v1557_v53  ;;  %v11588_v17 = vcombine.low %v8156_v32, %v8157_v40  ;;  %v8358_v29 = vcombine.low %v8196_v44, %v8157_v40  ;;  %v11617_v32 = vld [vmem:[%s10651_s23 + $0x2c] ss:$0 sps:$4 sm:$0x11]   ;;  %v1925_v44 = vshrl.u32 %v11609_v58, 16 }
 0x20c   : > { %13384 = vst [vmem:[#allocation9_spill] sm:$0xff] %v11617_v32  ;;  %v1764_v15 = vshll.u32 %v11617_v32, 16 }
 0x20d   : > { %v1913_v53 = vshrl.u32 %v11588_v17, 16  ;;  %v1915_v13 = vshll.u32 %v11588_v17, 16  ;;  %v2074_v56 = vrot.slane %v8358_v29, 1  ;;  %v1750_v29 = vor.u32 %v1749_v23, %v1745_v4  ;;  %v8161_v4 = vld [vmem:[%s10651_s23 + $0xdc] sm:$0xf] }
 0x20e   : > { %v11642_v23 = vcombine.low %v8160_v34, %v8161_v4 }
 0x20f   : > { %v1917_v38 = vrot.slane %v1915_v13, 1  ;;  %v2076_v16 = vsel %vm987_vm1, %v2074_v56, %v2075_v5  ;;  %v8132_v13 = vld [vmem:[%s10651_s23 + $0x30] sm:$0xf]  ;;  %v1934_v5 = vrot.slane %v1932_v41, 1  ;;  %v8163_v41 = vld [vmem:[%s10651_s23 + $0xe8] sm:$0xf] }
 0x210   : > { %9521 = vmatprep.mubr.bf16.mxu1 %v2076_v16  ;;  %v11632_v25 = vcombine.low %v8132_v13, %v11627_v37  ;;  %v8199_v13 = vld [vmem:[%s10651_s23 + $0xe4] sm:$0xe] }
 0x211   : > { %v1918_v61 = vor.u32 %v1917_v38, %v1913_v53  ;;  %v1754_v53 = vrot.slane %v1752_v10, 1  ;;  %v1757_v38 = vshrl.u32 %v11614_v49, 16  ;;  %v1766_v10 = vrot.slane %v1764_v15, 1  ;;  %v10109_v15 = vld [vmem:[%s10651_s23 + $0xec] ss:$0 sps:$4 sm:$0x11]  }
 0x212   : > { %3187 = vmatmul.mubr.bf16.gmra.mrb[60].mxu0 %v1413_v63  ;;  %v2077_v63 = vrot.slane %v8359_v14, 1  ;;  %v1771_v16 = vshll.u32 %v11632_v25, 16  ;;  %v2084_v0 = vrot.slane %v10109_v15, 1 }
 0x213   : > { %3194 = vmatprep.mubr.bf16.mxu0 %v1560_v28  ;;  %v2078_v28 = vrot.slane %v10103_v33, 1  ;;  %v11620_v40 = vsel %vm698_vm0, %v1918_v61, %v1922_v19  ;;  %v1755_v21 = vsel %vm698_vm0, %v1750_v29, %v1754_v53  ;;  %v1761_v33 = vrot.slane %v1759_v60, 1  ;;  %v11645_v19 = vld [vmem:[%s10651_s23 + $0x38] ss:$0 sps:$4 sm:$0x11]  }
 0x214   : > { %v8198_v61 = vld [vmem:[%s10651_s23 + $0xd8] sm:$0xe]  ;;  %v1769_v60 = vshrl.u32 %v11632_v25, 16 }
 0x215   : > { %v2079_v47 = vsel %vm987_vm1, %v2077_v63, %v2078_v28  ;;  %v10106_v63 = vld [vmem:[%s10651_s23 + $0xe0] ss:$0 sps:$4 sm:$0x11]   ;;  %v8134_v28 = vld [vmem:[%s10651_s23 + $0x3c] sm:$0xf]  ;;  %v1762_v57 = vor.u32 %v1761_v33, %v1757_v38 }
 0x216   : > { %9522 = vmatmul.mubr.bf16.gmra.mrb[20].mxu1 %v2079_v47  ;;  %v1937_v47 = vshrl.u32 %v11642_v23, 16  ;;  %v2081_v29 = vrot.slane %v10106_v63, 1  ;;  %v1944_v53 = vshll.u32 %v10106_v63, 16  ;;  %v8311_v32 = vcombine.low %v8134_v28, %v11656_v59 }
 0x217   : > { %v1767_v63 = vsel %vm698_vm0, %v1762_v57, %v1766_v10  ;;  %v10341_v10 = vld [vmem:[%s13361_s1 + $0x200] sm:$0xff]  }
 0x218   : > { %v1946_v34 = vrot.slane %v1944_v53, 1  ;;  %v1783_v57 = vshll.u32 %v8311_v32, 16 }
 0x21a   : > { %3195 = vmatmul.mubr.bf16.gmra.mrb[64].mxu0 %v1425_v9  ;;  %v1929_v9 = vrot.slane %v1927_v50, 1  ;;  %v8162_v50 = vld [vmem:[%s10651_s23 + $0xe4] sm:$0xf] }
 0x21b   : > { %3202 = vmatprep.mubr.bf16.mxu0 %v1563_v20  ;;  %v8360_v20 = vcombine.low %v8198_v61, %v8161_v4  ;;  %v11662_v4 = vcombine.low %v8162_v50, %v8163_v41  ;;  %v1956_v50 = vshll.u32 %v10109_v15, 16  ;;  %v1785_v15 = vrot.slane %v1783_v57, 1 }
 0x21c   : > { %v1930_v56 = vor.u32 %v1929_v9, %v1925_v44  ;;  %v1939_v44 = vshll.u32 %v11642_v23, 16 }
 0x21d   : > { %v2080_v9 = vrot.slane %v8360_v20, 1  ;;  %v1958_v53 = vrot.slane %v1956_v50, 1 }
 0x21e   : > { %v11640_v14 = vsel %vm698_vm0, %v1930_v56, %v1934_v5  ;;  %v1941_v5 = vrot.slane %v1939_v44, 1  ;;  %v8361_v56 = vcombine.low %v8199_v13, %v8163_v41  ;;  %v1949_v44 = vshrl.u32 %v11662_v4, 16 }
 0x21f   : > { %v2082_v61 = vsel %vm987_vm1, %v2080_v9, %v2081_v29 }
 0x220   : > { %v1942_v38 = vor.u32 %v1941_v5, %v1937_v47  ;;  %v2083_v33 = vrot.slane %v8361_v56, 1  ;;  %9525 = vmatprep.mubr.bf16.mxu1 %v2082_v61  ;;  %v1951_v47 = vshll.u32 %v11662_v4, 16  ;;  %v1781_v5 = vshrl.u32 %v8311_v32, 16  ;;  %v10344_v61 = vld [vmem:[%s13361_s1 + $0x218] sm:$0xff]  }
 0x222   : > { %3203 = vmatmul.mubr.bf16.gmra.mrb[68].mxu0 %v1437_v62  ;;  %v1773_v62 = vrot.slane %v1771_v16, 1  ;;  %v11668_v20 = vsel %vm698_vm0, %v1942_v38, %v1946_v34  ;;  %v2085_v16 = vsel %vm987_vm1, %v2083_v33, %v2084_v0  ;;  %v10342_v0 = vld [vmem:[%s13361_s1 + $0x208] sm:$0xff]   ;;  %v1953_v29 = vrot.slane %v1951_v47, 1  ;;  %v10345_v33 = vld [vmem:[%s13361_s1 + $0x220] sm:$0xff]  }
 0x223   : > { %3243 = vmatprep.mubr.bf16.mxu0 %v1755_v21  ;;  %v1776_v21 = vshll.u32 %v11645_v19, 16  ;;  %9526 = vmatmul.mubr.bf16.gmra.mrb[24].mxu1 %v2085_v16 }
 0x224   : > { %v1774_v28 = vor.u32 %v1773_v62, %v1769_v60  ;;  %v1954_v13 = vor.u32 %v1953_v29, %v1949_v44  ;;  %v10343_v60 = vld [vmem:[%s13361_s1 + $0x210] sm:$0xff]  }
 0x225   : > { %v1778_v41 = vrot.slane %v1776_v21, 1  ;;  %v1786_v21 = vor.u32 %v1785_v15, %v1781_v5 }
 0x226   : > { %v1959_v62 = vsel %vm698_vm0, %v1954_v13, %v1958_v53 }
 0x227   : > { %v1779_v9 = vsel %vm698_vm0, %v1774_v28, %v1778_v41 }
 0x22a   : > { %3244 = vmatmul.mubr.bf16.vlgmr.msra.gmra.mrb[0].mxu0 %v11578_v31  ;;  %v11681_v31 = vld [vmem:[%s10651_s23 + $0x44] ss:$0 sps:$4 sm:$0x11]  }
 0x22b   : > { %9478 = vmatpush3.bf16.msra.mxu0 %v10341_v10  ;;  %3251 = vmatprep.mubr.bf16.mxu0 %v1767_v63  ;;  %v1788_v56 = vshll.u32 %v11681_v31, 16 }
 0x22c   : > { %9479 = vmatprep.subr.bf16.mxu0 %v10342_v0 }
 0x22d   : > { %v1790_v34 = vrot.slane %v1788_v56, 1 }
 0x22f   : > { %9480 = vmatpush3.bf16.msra.mxu0 %v10342_v0  ;;  %v1791_v38 = vsel %vm698_vm0, %v1786_v21, %v1790_v34 }
 0x230   : > { %9481 = vmatprep.subr.bf16.mxu0 %v10343_v60 }
 0x232   : > { %3252 = vmatmul.mubr.bf16.gmra.mrb[4].mxu0 %v11614_v49 }
 0x233   : > { %3259 = vmatprep.mubr.bf16.mxu0 %v1779_v9  ;;  %9482 = vmatpush3.bf16.msra.mxu0 %v10343_v60 }
 0x234   : > { %9483 = vmatprep.subr.bf16.mxu0 %v10344_v61 }
 0x237   : > { %9484 = vmatpush3.bf16.msra.mxu0 %v10344_v61 }
 0x238   : > { %9485 = vmatprep.subr.bf16.mxu0 %v10345_v33 }
 0x23a   : > { %3260 = vmatmul.mubr.bf16.gmra.mrb[8].mxu0 %v11632_v25 }
 0x23b   : > { %3267 = vmatprep.mubr.bf16.mxu0 %v1791_v38  ;;  %9486 = vmatpush3.bf16.msra.mxu0 %v10345_v33 }
 0x23c   : > { %9487 = vmatprep.subr.bf16.mxu0 %v11334_v42 }
 0x23f   : > { %9488 = vmatpush3.bf16.msra.mxu0 %v11334_v42 }
 0x240   : > { %9489 = vmatprep.subr.bf16.mxu0 %v11343_v45 }
 0x242   : > { %3268 = vmatmul.mubr.bf16.gmra.mrb[12].mxu0 %v8311_v32 }
 0x243   : > { %3275 = vmatprep.mubr.bf16.mxu0 %v11398_v30  ;;  %9490 = vmatpush3.bf16.msra.mxu0 %v11343_v45 }
 0x244   : > { %9491 = vmatprep.subr.bf16.mxu0 %v11371_v8 }
 0x247   : > { %9492 = vmatpush3.bf16.msra.mxu0 %v11371_v8 }
 0x24a   : > { %3276 = vmatmul.mubr.bf16.gmra.mrb[16].mxu0 %v11360_v3 }
 0x24b   : > { %3283 = vmatprep.mubr.bf16.mxu0 %v11420_v54 }
 0x252   : > { %3284 = vmatmul.mubr.bf16.gmra.mrb[20].mxu0 %v11387_v1  ;;  %v8182_v1 = vld [vmem:[%s10651_s23 + $0x18] sm:$0xe] }
 0x253   : > { %3291 = vmatprep.mubr.bf16.mxu0 %v11449_v22  ;;  %v8344_v30 = vcombine.low %v8182_v1, %v11572_v51  ;;  %v8184_v22 = vld [vmem:[%s10651_s23 + $0x30] sm:$0xe]  ;;  %v8185_v51 = vld [vmem:[%s10651_s23 + $0x3c] sm:$0xe] }
 0x255   : > { %v2032_v54 = vrot.slane %v8344_v30, 1  ;;  %v10115_v30 = vld [vmem:[#allocation3 + $0x40] sm:$0xff]  }
 0x256   : > { %9005 = vmatprep.subr.bf16.mxu1 %v10115_v30 }
 0x25a   : > { %3292 = vmatmul.mubr.bf16.gmra.mrb[24].mxu0 %v11422_v52  ;;  %v2033_v52 = vrot.slane %v11591_v48, 1 }
 0x25b   : > { %3299 = vmatprep.mubr.bf16.mxu0 %v11463_v6 }
 0x262   : > { %3300 = vmatmul.mubr.bf16.gmra.mrb[28].mxu0 %v11441_v18  ;;  %v8183_v18 = vld [vmem:[%s10651_s23 + $0x24] sm:$0xe] }
 0x263   : > { %3307 = vmatprep.mubr.bf16.mxu0 %v11487_v27  ;;  %v2034_v27 = vsel %vm987_vm1, %v2032_v54, %v2033_v52  ;;  %v11822_v52 = vld [vmem:[%s13362_s2] ss:$0 sm:$0xff] }
 0x26a   : > { %3308 = vmatmul.mubr.bf16.gmra.mrb[32].mxu0 %v11465_v35 }
 0x26b   : > { %3315 = vmatprep.mubr.bf16.mxu0 %v11501_v7  ;;  %v8346_v7 = vcombine.low %v8184_v22, %v11627_v37 }
 0x272   : > { %3316 = vmatmul.mubr.bf16.gmra.mrb[36].mxu0 %v11480_v55  ;;  %v8345_v55 = vcombine.low %v8183_v18, %v11603_v46  ;;  %v10116_v18 = vld [vmem:[#allocation3] sm:$0xff]  }
 0x273   : > { %3323 = vmatprep.mubr.bf16.mxu0 %v11525_v39  ;;  %9006 = vmatpush3.bf16.msra.mxu1 %v10116_v18 }
 0x274   : > { %v2035_v39 = vrot.slane %v8345_v55, 1 }
 0x27a   : > { %3324 = vmatmul.mubr.bf16.gmra.mrb[40].mxu0 %v11503_v43 }
 0x27b   : > { %3331 = vmatprep.mubr.bf16.mxu0 %v11540_v11  ;;  %v13385_v11 = vld [vmem:[#allocation9_spill] sm:$0xff] }
 0x282   : > { %3332 = vmatmul.mubr.bf16.gmra.mrb[44].mxu0 %v11517_v26 }
 0x283   : > { %3339 = vmatprep.mubr.bf16.mxu0 %v11565_v24  ;;  %v2039_v24 = vrot.slane %v11645_v19, 1 }
 0x28a   : > { %3340 = vmatmul.mubr.bf16.gmra.mrb[48].mxu0 %v11542_v12  ;;  %v2036_v12 = vrot.slane %v13385_v11, 1 }
 0x28b   : > { %3347 = vmatprep.mubr.bf16.mxu0 %v11586_v36 }
 0x28c   : > { %v2037_v36 = vsel %vm987_vm1, %v2035_v39, %v2036_v12 }
 0x292   : > { %3348 = vmatmul.mubr.bf16.gmra.mrb[52].mxu0 %v11557_v2  ;;  %v2038_v2 = vrot.slane %v8346_v7, 1 }
 0x293   : > { %3355 = vmatprep.mubr.bf16.mxu0 %v11620_v40 }
 0x294   : > { %v2040_v48 = vsel %vm987_vm1, %v2038_v2, %v2039_v24  ;;  %v10117_v2 = vld [vmem:[#allocation3 + $0x48] sm:$0xff]  }
 0x295   : > { %v10118_v24 = vld [vmem:[#allocation3 + $0x8] sm:$0xff]   ;;  %9007 = vmatprep.subr.bf16.mxu1 %v10117_v2 }
 0x296   : > { %9008 = vmatpush3.bf16.msra.mxu1 %v10118_v24 }
 0x298   : > { %v11727_v42 = vpop.f32.mrb[0].mxu1 }
 0x299   : > { %v11729_v45 = vpop.f32.mrb[1].mxu1 }
 0x29a   : > { %3356 = vmatmul.mubr.bf16.gmra.mrb[56].mxu0 %v11588_v17  ;;  %v11731_v3 = vpop.f32.mrb[2].mxu1  ;;  %v8347_v17 = vcombine.low %v8185_v51, %v11656_v59 }
 0x29b   : > { %3363 = vmatprep.mubr.bf16.mxu0 %v11640_v14  ;;  %v11733_v8 = vpop.f32.mrb[3].mxu1 }
 0x29c   : > { %v2041_v46 = vrot.slane %v8347_v17, 1 }
 0x2a2   : > { %3364 = vmatmul.mubr.bf16.gmra.mrb[60].mxu0 %v11609_v58  ;;  %v2042_v58 = vrot.slane %v11681_v31, 1 }
 0x2a3   : > { %3371 = vmatprep.mubr.bf16.mxu0 %v11668_v20 }
 0x2a4   : > { %v2043_v32 = vsel %vm987_vm1, %v2041_v46, %v2042_v58 }
 0x2a7   : > { %v11743_v6 = vpop.f32.mrb[4].mxu1 }
 0x2a8   : > { %v11745_v35 = vpop.f32.mrb[5].mxu1 }
 0x2a9   : > { %v11750_v43 = vpop.f32.mrb[6].mxu1 }
 0x2aa   : > { %3372 = vmatmul.mubr.bf16.gmra.mrb[64].mxu0 %v11642_v23  ;;  %v11752_v26 = vpop.f32.mrb[7].mxu1 }
 0x2ab   : > { %3379 = vmatprep.mubr.bf16.mxu0 %v1959_v62 }
 0x2b2   : > { %3380 = vmatmul.mubr.bf16.gmra.mrb[68].mxu0 %v11662_v4  ;;  %v11762_v49 = vpop.f32.mrb[8].mxu1 }
 0x2b3   : > { %9493 = vmatprep.mubr.bf16.mxu0 %v2034_v27  ;;  %v11765_v40 = vpop.f32.mrb[9].mxu1  ;;  %v11828_v27 = vld [vmem:[%s13363_s3] ss:$0 sm:$0xff] }
 0x2b4   : > { %v11767_v37 = vpop.f32.mrb[10].mxu1 }
 0x2b5   : > { %v11769_v25 = vpop.f32.mrb[11].mxu1 }
 0x2ba   : > { %9494 = vmatmul.mubr.bf16.vlgmr.msra.gmra.mrb[72].mxu0 %v2037_v36 }
 0x2bb   : > { %9497 = vmatprep.mubr.bf16.mxu0 %v2040_v48 }
 0x2c2   : > { %9498 = vmatmul.mubr.bf16.gmra.mrb[76].mxu0 %v2043_v32 }
 0x2c4   : > { %v11771_v14 = vpop.f32.mrb[12].mxu1 }
 0x2c5   : > { %v11773_v23 = vpop.f32.mrb[13].mxu1 }
 0x2c6   : > { %v11775_v19 = vpop.f32.mrb[14].mxu1 }
 0x2c7   : > { %v11777_v59 = vpop.f32.mrb[15].mxu1 }
 0x2d7   : > { %v11779_v4 = vpop.f32.mrb[16].mxu1 }
 0x2d8   : > { %v11781_v63 = vpop.f32.mrb[17].mxu1 }
 0x2d9   : > { %v11783_v20 = vpop.f32.mrb[18].mxu1 }
 0x2da   : > { %v11785_v16 = vpop.f32.mrb[19].mxu1 }
 0x2e9   : > { %v11787_v44 = vpop.f32.mrb[20].mxu1 }
 0x2ea   : > { %v11789_v47 = vpop.f32.mrb[21].mxu1 }
 0x2eb   : > { %v11791_v50 = vpop.f32.mrb[22].mxu1 }
 0x2ec   : > { %v11793_v10 = vpop.f32.mrb[23].mxu1 }
 0x2f6   : > { %v11797_v0 = vpop.f32.mrb[24].mxu1 }
 0x2f7   : > { %v11801_v57 = vpop.f32.mrb[25].mxu1 }
 0x2f8   : > { %v11803_v53 = vpop.f32.mrb[26].mxu1 }
 0x2f9   : > { %v11805_v13 = vpop.f32.mrb[27].mxu1 }
 0x2fd   : > { %v11795_v28 = vpop.f32.mrb[0].mxu0 }
 0x2fe   : > { %v3247_v41 = vpop.f32.mrb[1].mxu0 }
 0x2ff   : > { %v11799_v31 = vpop.f32.mrb[2].mxu0 }
 0x300   : > { %v3250_v29 = vpop.f32.mrb[3].mxu0 }
 0x301   : > { %v10119_v29 = vld [vmem:[#allocation3 + $0x50] sm:$0xff]  }
 0x302   : > { %9009 = vmatprep.subr.bf16.mxu1 %v10119_v29 }
 0x305   : > { %v11807_v9 = vpop.f32.mrb[4].mxu0 }
 0x306   : > { %v3255_v5 = vpop.f32.mrb[5].mxu0 }
 0x307   : > { %v11809_v15 = vpop.f32.mrb[6].mxu0  ;;  %v10120_v5 = vld [vmem:[#allocation3 + $0x10] sm:$0xff]  }
 0x308   : > { %v3258_v56 = vpop.f32.mrb[7].mxu0  ;;  %9010 = vmatpush3.bf16.msra.mxu1 %v10120_v5 }
 0x30d   : > { %v11811_v60 = vpop.f32.mrb[8].mxu0 }
 0x30e   : > { %v3263_v62 = vpop.f32.mrb[9].mxu0 }
 0x30f   : > { %v11813_v21 = vpop.f32.mrb[10].mxu0 }
 0x310   : > { %v3266_v34 = vpop.f32.mrb[11].mxu0 }
 0x315   : > { %v11815_v61 = vpop.f32.mrb[12].mxu0 }
 0x316   : > { %v3271_v38 = vpop.f32.mrb[13].mxu0 }
 0x317   : > { %v11817_v33 = vpop.f32.mrb[14].mxu0 }
 0x318   : > { %v3274_v1 = vpop.f32.mrb[15].mxu0 }
 0x31d   : > { %v3277_v54 = vpop.f32.mrb[16].mxu0 }
 0x31e   : > { %v3455_v22 = vadd.f32 %v11729_v45, %v3277_v54  ;;  %v3279_v55 = vpop.f32.mrb[17].mxu0 }
 0x31f   : > { %v3280_v7 = vpop.f32.mrb[18].mxu0  ;;  %v4191_v55 = vld [vmem:[#allocation2 + $0x30] sm:$0xf] }
 0x320   : > { %v3580_v39 = vmul.f32 %v11822_v52, %v3455_v22  ;;  %v3458_v11 = vadd.f32 %v11733_v8, %v3280_v7  ;;  %v3282_v12 = vpop.f32.mrb[19].mxu0 }
 0x322   : > { %v3623_v51 = vadd.f32 %v11828_v27, %v3580_v39  ;;  %v3581_v45 = vmul.f32 %v11822_v52, %v3458_v11 }
 0x324   : > { %v3659_v36 = vmax.f32 %v3623_v51, 0.0  ;;  %v3624_v17 = vadd.f32 %v11828_v27, %v3581_v45  ;;  %v4195_v45 = vld [vmem:[#allocation2 + $0x38] sm:$0x1] }
 0x325   : > { %v3285_v48 = vpop.f32.mrb[20].mxu0 }
 0x326   : > { %v8783_v46 = vpack.c.bf16 %v3659_v36, %v3659_v36  ;;  %v3660_v58 = vmax.f32 %v3624_v17, 0.0  ;;  %v3463_v32 = vadd.f32 %v11727_v42, %v3285_v48  ;;  %v3287_v41 = vpop.f32.mrb[21].mxu0 }
 0x327   : > { %v3288_v8 = vpop.f32.mrb[22].mxu0 }
 0x328   : > { %v3867_v56 = vshrl.u32 %v8783_v46, 16  ;;  %v8784_v62 = vpack.c.bf16 %v3660_v58, %v3660_v58  ;;  %v3582_v34 = vmul.f32 %v11822_v52, %v3463_v32  ;;  %v3290_v38 = vpop.f32.mrb[23].mxu0  ;;  %v3466_v1 = vadd.f32 %v11731_v3, %v3288_v8 }
 0x329   : > { %v3870_v42 = vshll.u32 %v8783_v46, 16 }
 0x32a   : > { %v3869_v30 = vrot.slane %v3867_v56, 7  ;;  %v3875_v54 = vshrl.u32 %v8784_v62, 16  ;;  %v3625_v18 = vadd.f32 %v11828_v27, %v3582_v34  ;;  %v3583_v7 = vmul.f32 %v11822_v52, %v3466_v1 }
 0x32b   : > { %v3878_v12 = vshll.u32 %v8784_v62, 16 }
 0x32c   : > { %v3872_v39 = vor.u32 %v3870_v42, %v3869_v30  ;;  %v3877_v11 = vrot.slane %v3875_v54, 7  ;;  %v3661_v2 = vmax.f32 %v3625_v18, 0.0  ;;  %v3873_v24 = vrot.slane %v3869_v30, 4  ;;  %v10121_v54 = vld [vmem:[#allocation3 + $0x58] sm:$0xff]  }
 0x32d   : > { %v3626_v36 = vadd.f32 %v11828_v27, %v3583_v7  ;;  %v3293_v17 = vpop.f32.mrb[24].mxu0  ;;  %v4198_v7 = vld [vmem:[#allocation2 + $0x3c] sm:$0xf]  ;;  %9011 = vmatprep.subr.bf16.mxu1 %v10121_v54 }
 0x32e   : > { %v4192_v48 = vsel %vm11841_vm7, %v3872_v39, %v4191_v55  ;;  %v3880_v46 = vor.u32 %v3878_v12, %v3877_v11  ;;  %v3882_v58 = vrot.slane %v3877_v11, 4  ;;  %v8785_v32 = vpack.c.bf16 %v3661_v2, %v3661_v2  ;;  %v3295_v41 = vpop.f32.mrb[25].mxu0 }
 0x32f   : > { %4193 = vst [vmem:[#allocation2 + $0x30] sm:$0xf] %v4192_v48  ;;  %v3662_v29 = vmax.f32 %v3626_v36, 0.0  ;;  %v3471_v8 = vadd.f32 %v11745_v35, %v3293_v17  ;;  %v3296_v5 = vpop.f32.mrb[26].mxu0  ;;  %v10122_v35 = vld [vmem:[#allocation3 + $0x18] sm:$0xff]  }
 0x330   : > { %v3881_v56 = vsel %vm11854_vm9, %v3873_v24, %v3880_v46  ;;  %v4196_v62 = vsel %vm11848_vm8, %v3882_v58, %v4195_v45  ;;  %v3884_v34 = vshrl.u32 %v8785_v32, 16  ;;  %v3298_v38 = vpop.f32.mrb[27].mxu0  ;;  %v3474_v42 = vadd.f32 %v11752_v26, %v3296_v5  ;;  %v4202_v24 = vld [vmem:[#allocation2 + $0x44] sm:$0x1]  ;;  %9012 = vmatpush3.bf16.msra.mxu1 %v10122_v35  ;;  %v10123_v46 = vld [vmem:[#allocation3 + $0x60] sm:$0xff]  }
 0x331   : > { %4194 = vst [vmem:[#allocation2 + $0x34] sm:$0xf] %v3881_v56  ;;  %4197 = vst [vmem:[#allocation2 + $0x38] sm:$0x1] %v4196_v62  ;;  %v8786_v1 = vpack.c.bf16 %v3662_v29, %v3662_v29  ;;  %v3584_v30 = vmul.f32 %v11822_v52, %v3471_v8  ;;  %v3887_v55 = vshll.u32 %v8785_v32, 16  ;;  %v10124_v56 = vld [vmem:[#allocation3 + $0x20] sm:$0xff]   ;;  %9013 = vmatprep.subr.bf16.mxu1 %v10123_v46 }
 0x332   : > { %v3886_v18 = vrot.slane %v3884_v34, 7  ;;  %v3585_v12 = vmul.f32 %v11822_v52, %v3474_v42 }
 0x333   : > { %v3892_v39 = vshrl.u32 %v8786_v1, 16  ;;  %v3627_v11 = vadd.f32 %v11828_v27, %v3584_v30  ;;  %v3895_v36 = vshll.u32 %v8786_v1, 16 }
 0x334   : > { %v3889_v2 = vor.u32 %v3887_v55, %v3886_v18  ;;  %v3628_v48 = vadd.f32 %v11828_v27, %v3585_v12  ;;  %v3890_v41 = vrot.slane %v3886_v18, 4  ;;  %9014 = vmatpush3.bf16.msra.mxu1 %v10124_v56  ;;  %v10125_v12 = vld [vmem:[#allocation3 + $0x68] sm:$0xff]  }
 0x335   : > { %v3894_v45 = vrot.slane %v3892_v39, 7  ;;  %v3663_v17 = vmax.f32 %v3627_v11, 0.0  ;;  %v3301_v26 = vpop.f32.mrb[28].mxu0  ;;  %9015 = vmatprep.subr.bf16.mxu1 %v10125_v12 }
 0x336   : > { %v4301_v58 = vld [vmem:[#allocation2 + $0x30] sm:$0x1]  ;;  %v4199_v29 = vsel %vm11841_vm7, %v3889_v2, %v4198_v7  ;;  %v3479_v8 = vadd.f32 %v11743_v6, %v3301_v26  ;;  %v3303_v5 = vpop.f32.mrb[29].mxu0  ;;  %v3664_v54 = vmax.f32 %v3628_v48, 0.0  ;;  %v4205_v26 = vld [vmem:[#allocation2 + $0x48] sm:$0xf] }
 0x337   : > { %v4302_v62 = vsel %vm11848_vm8, 0, %v4301_v58  ;;  %4200 = vst [vmem:[#allocation2 + $0x3c] sm:$0xf] %v4199_v29  ;;  %v3897_v34 = vor.u32 %v3895_v36, %v3894_v45  ;;  %v3899_v38 = vrot.slane %v3894_v45, 4  ;;  %v8787_v1 = vpack.c.bf16 %v3663_v17, %v3663_v17  ;;  %v3304_v30 = vpop.f32.mrb[30].mxu0  ;;  %v10126_v36 = vld [vmem:[#allocation3 + $0x28] sm:$0xff]  }
 0x338   : > { %4303 = vst [vmem:[#allocation2 + $0x30] sm:$0x1] %v4302_v62  ;;  %v4356_v42 = vld [vmem:[#allocation2 + $0x38] sm:$0x1]  ;;  %v3586_v18 = vmul.f32 %v11822_v52, %v3479_v8  ;;  %v3482_v55 = vadd.f32 %v11750_v43, %v3304_v30  ;;  %v3306_v35 = vpop.f32.mrb[31].mxu0  ;;  %v8788_v2 = vpack.c.bf16 %v3664_v54, %v3664_v54  ;;  %9016 = vmatpush3.bf16.msra.mxu1 %v10126_v36  ;;  %v10127_v5 = vld [vmem:[#allocation3 + $0x70] sm:$0xff]  }
 0x339   : > { %v4357_v6 = vsel %vm11873_vm10, 0, %v4356_v42  ;;  %v3898_v7 = vsel %vm11854_vm9, %v3890_v41, %v3897_v34  ;;  %v4203_v39 = vsel %vm11848_vm8, %v3899_v38, %v4202_v24  ;;  %v3901_v11 = vshrl.u32 %v8787_v1, 16  ;;  %v10128_v54 = vld [vmem:[#allocation3 + $0x30] sm:$0xff]   ;;  %9017 = vmatprep.subr.bf16.mxu1 %v10127_v5 }
 0x33a   : > { %4358 = vst [vmem:[#allocation2 + $0x38] sm:$0x1] %v4357_v6  ;;  %4201 = vst [vmem:[#allocation2 + $0x40] sm:$0xf] %v3898_v7  ;;  %v3629_v45 = vadd.f32 %v11828_v27, %v3586_v18  ;;  %v3587_v43 = vmul.f32 %v11822_v52, %v3482_v55  ;;  %v3904_v48 = vshll.u32 %v8787_v1, 16  ;;  %v3909_v46 = vshrl.u32 %v8788_v2, 16 }
 0x33b   : > { %4204 = vst [vmem:[#allocation2 + $0x44] sm:$0x1] %v4203_v39  ;;  %v3903_v17 = vrot.slane %v3901_v11, 7  ;;  %v3912_v29 = vshll.u32 %v8788_v2, 16  ;;  %v4209_v55 = vld [vmem:[#allocation2 + $0x50] sm:$0x1] }
 0x33c   : > { %v3665_v58 = vmax.f32 %v3629_v45, 0.0  ;;  %v3630_v41 = vadd.f32 %v11828_v27, %v3587_v43  ;;  %v3911_v62 = vrot.slane %v3909_v46, 7  ;;  %v10129_v6 = vld [vmem:[#allocation3 + $0x78] sm:$0xff]   ;;  %9018 = vmatpush3.bf16.msra.mxu1 %v10128_v54  ;;  %v10133_v46 = vld [vmem:[#allocation3 + $0xc0] sm:$0xff]  }
 0x33d   : > { %v3906_v24 = vor.u32 %v3904_v48, %v3903_v17  ;;  %v3309_v8 = vpop.f32.mrb[32].mxu0  ;;  %v3907_v7 = vrot.slane %v3903_v17, 4  ;;  %9019 = vmatprep.subr.bf16.mxu1 %v10129_v6 }
 0x33e   : > { %v4304_v56 = vld [vmem:[#allocation2 + $0x3c] sm:$0x1]  ;;  %v8789_v34 = vpack.c.bf16 %v3665_v58, %v3665_v58  ;;  %v3666_v38 = vmax.f32 %v3630_v41, 0.0  ;;  %v3487_v30 = vadd.f32 %v11765_v40, %v3309_v8  ;;  %v3311_v42 = vpop.f32.mrb[33].mxu0  ;;  %v3914_v39 = vor.u32 %v3912_v29, %v3911_v62  ;;  %v10130_v40 = vld [vmem:[#allocation3 + $0x38] sm:$0xff]  }
 0x33f   : > { %v4305_v1 = vsel %vm11848_vm8, 0, %v4304_v56  ;;  %v4206_v18 = vsel %vm11841_vm7, %v3906_v24, %v4205_v26  ;;  %v3312_v35 = vpop.f32.mrb[34].mxu0  ;;  %v3916_v11 = vrot.slane %v3911_v62, 4  ;;  %v4212_v29 = vld [vmem:[#allocation2 + $0x54] sm:$0xf] }
 0x340   : > { %4306 = vst [vmem:[#allocation2 + $0x3c] sm:$0x1] %v4305_v1  ;;  %4207 = vst [vmem:[#allocation2 + $0x48] sm:$0xf] %v4206_v18  ;;  %v3918_v12 = vshrl.u32 %v8789_v34, 16  ;;  %v3314_v2 = vpop.f32.mrb[35].mxu0  ;;  %v8790_v36 = vpack.c.bf16 %v3666_v38, %v3666_v38  ;;  %v3588_v48 = vmul.f32 %v11822_v52, %v3487_v30  ;;  %v3490_v26 = vadd.f32 %v11769_v25, %v3312_v35 }
 0x341   : > { %v3921_v43 = vshll.u32 %v8789_v34, 16  ;;  %v3915_v17 = vsel %vm11854_vm9, %v3907_v7, %v3914_v39  ;;  %v4210_v41 = vsel %vm11848_vm8, %v3916_v11, %v4209_v55  ;;  %9020 = vmatpush3.bf16.msra.mxu1 %v10130_v40  ;;  %v4216_v18 = vld [vmem:[#allocation2 + $0x5c] sm:$0x1] }
 0x342   : > { %v4359_v45 = vld [vmem:[#allocation2 + $0x44] sm:$0x1]  ;;  %v3920_v24 = vrot.slane %v3918_v12, 7  ;;  %4208 = vst [vmem:[#allocation2 + $0x4c] sm:$0xf] %v3915_v17  ;;  %v3926_v8 = vshrl.u32 %v8790_v36, 16  ;;  %v3631_v5 = vadd.f32 %v11828_v27, %v3588_v48  ;;  %v3589_v25 = vmul.f32 %v11822_v52, %v3490_v26  ;;  %9117 = vmatprep.subr.bf16.mxu1 %v10133_v46 }
 0x343   : > { %v4360_v58 = vsel %vm11873_vm10, 0, %v4359_v45  ;;  %4211 = vst [vmem:[#allocation2 + $0x50] sm:$0x1] %v4210_v41  ;;  %v3929_v34 = vshll.u32 %v8790_v36, 16 }
 0x344   : > { %4361 = vst [vmem:[#allocation2 + $0x44] sm:$0x1] %v4360_v58  ;;  %v3923_v56 = vor.u32 %v3921_v43, %v3920_v24  ;;  %v3928_v62 = vrot.slane %v3926_v8, 7  ;;  %v3667_v38 = vmax.f32 %v3631_v5, 0.0  ;;  %v3632_v30 = vadd.f32 %v11828_v27, %v3589_v25  ;;  %v4219_v8 = vld [vmem:[#allocation2 + $0x60] sm:$0xf] }
 0x345   : > { %v3317_v42 = vpop.f32.mrb[36].mxu0  ;;  %v3924_v54 = vrot.slane %v3920_v24, 4 }
 0x346   : > { %v4213_v1 = vsel %vm11841_vm7, %v3923_v56, %v4212_v29  ;;  %v3495_v55 = vadd.f32 %v11762_v49, %v3317_v42  ;;  %v3319_v35 = vpop.f32.mrb[37].mxu0  ;;  %v3931_v7 = vor.u32 %v3929_v34, %v3928_v62  ;;  %v3933_v39 = vrot.slane %v3928_v62, 4 }
 0x347   : > { %v4307_v6 = vld [vmem:[#allocation2 + $0x48] sm:$0x1]  ;;  %4214 = vst [vmem:[#allocation2 + $0x54] sm:$0xf] %v4213_v1  ;;  %v8791_v11 = vpack.c.bf16 %v3667_v38, %v3667_v38  ;;  %v3668_v12 = vmax.f32 %v3632_v30, 0.0  ;;  %v3320_v2 = vpop.f32.mrb[38].mxu0 }
 0x348   : > { %v4308_v40 = vsel %vm11848_vm8, 0, %v4307_v6  ;;  %v3590_v45 = vmul.f32 %v11822_v52, %v3495_v55  ;;  %v3498_v43 = vadd.f32 %v11767_v37, %v3320_v2  ;;  %v3322_v36 = vpop.f32.mrb[39].mxu0  ;;  %v3932_v49 = vsel %vm11854_vm9, %v3924_v54, %v3931_v7  ;;  %v4223_v7 = vld [vmem:[#allocation2 + $0x68] sm:$0x1] }
 0x349   : > { %4309 = vst [vmem:[#allocation2 + $0x48] sm:$0x1] %v4308_v40  ;;  %v4217_v48 = vsel %vm11848_vm8, %v3933_v39, %v4216_v18  ;;  %v3935_v26 = vshrl.u32 %v8791_v11, 16  ;;  %4215 = vst [vmem:[#allocation2 + $0x58] sm:$0xf] %v3932_v49  ;;  %v8792_v58 = vpack.c.bf16 %v3668_v12, %v3668_v12  ;;  %v3938_v29 = vshll.u32 %v8791_v11, 16 }
 0x34a   : > { %v4362_v46 = vld [vmem:[#allocation2 + $0x50] sm:$0x1]  ;;  %4218 = vst [vmem:[#allocation2 + $0x5c] sm:$0x1] %v4217_v48  ;;  %v3633_v17 = vadd.f32 %v11828_v27, %v3590_v45  ;;  %v3591_v41 = vmul.f32 %v11822_v52, %v3498_v43 }
 0x34b   : > { %v4363_v37 = vsel %vm11873_vm10, 0, %v4362_v46  ;;  %v3937_v24 = vrot.slane %v3935_v26, 7  ;;  %v3943_v5 = vshrl.u32 %v8792_v58, 16  ;;  %v3946_v34 = vshll.u32 %v8792_v58, 16 }
 0x34c   : > { %4364 = vst [vmem:[#allocation2 + $0x50] sm:$0x1] %v4363_v37  ;;  %v3669_v25 = vmax.f32 %v3633_v17, 0.0  ;;  %v3634_v56 = vadd.f32 %v11828_v27, %v3591_v41  ;;  %v4226_v41 = vld [vmem:[#allocation2 + $0x6c] sm:$0xf] }
 0x34d   : > { %v3940_v62 = vor.u32 %v3938_v29, %v3937_v24  ;;  %v3325_v38 = vpop.f32.mrb[40].mxu0  ;;  %v3945_v42 = vrot.slane %v3943_v5, 7  ;;  %v3941_v11 = vrot.slane %v3937_v24, 4 }
 0x34e   : > { %v4310_v30 = vld [vmem:[#allocation2 + $0x54] sm:$0x1]  ;;  %v8793_v54 = vpack.c.bf16 %v3669_v25, %v3669_v25  ;;  %v3670_v1 = vmax.f32 %v3634_v56, 0.0  ;;  %v3503_v18 = vadd.f32 %v11773_v23, %v3325_v38  ;;  %v3327_v55 = vpop.f32.mrb[41].mxu0 }
 0x34f   : > { %v4311_v35 = vsel %vm11848_vm8, 0, %v4310_v30  ;;  %v4220_v6 = vsel %vm11841_vm7, %v3940_v62, %v4219_v8  ;;  %v3328_v39 = vpop.f32.mrb[42].mxu0  ;;  %v3948_v12 = vor.u32 %v3946_v34, %v3945_v42  ;;  %v3950_v2 = vrot.slane %v3945_v42, 4  ;;  %v4230_v30 = vld [vmem:[#allocation2 + $0x74] sm:$0x1] }
 0x350   : > { %4312 = vst [vmem:[#allocation2 + $0x54] sm:$0x1] %v4311_v35  ;;  %4221 = vst [vmem:[#allocation2 + $0x60] sm:$0xf] %v4220_v6  ;;  %v3952_v40 = vshrl.u32 %v8793_v54, 16  ;;  %v3330_v45 = vpop.f32.mrb[43].mxu0  ;;  %v8794_v49 = vpack.c.bf16 %v3670_v1, %v3670_v1  ;;  %v3592_v23 = vmul.f32 %v11822_v52, %v3503_v18  ;;  %v3506_v48 = vadd.f32 %v11777_v59, %v3328_v39 }
 0x351   : > { %v4365_v43 = vld [vmem:[#allocation2 + $0x5c] sm:$0x1]  ;;  %v3955_v36 = vshll.u32 %v8793_v54, 16  ;;  %v3949_v46 = vsel %vm11854_vm9, %v3941_v11, %v3948_v12  ;;  %v4224_v58 = vsel %vm11848_vm8, %v3950_v2, %v4223_v7 }
 0x352   : > { %v4366_v26 = vsel %vm11873_vm10, 0, %v4365_v43  ;;  %v3954_v17 = vrot.slane %v3952_v40, 7  ;;  %4222 = vst [vmem:[#allocation2 + $0x64] sm:$0xf] %v3949_v46  ;;  %4225 = vst [vmem:[#allocation2 + $0x68] sm:$0x1] %v4224_v58  ;;  %v3635_v24 = vadd.f32 %v11828_v27, %v3592_v23  ;;  %v3593_v29 = vmul.f32 %v11822_v52, %v3506_v48 }
 0x353   : > { %4367 = vst [vmem:[#allocation2 + $0x5c] sm:$0x1] %v4366_v26  ;;  %v3960_v37 = vshrl.u32 %v8794_v49, 16  ;;  %v3963_v5 = vshll.u32 %v8794_v49, 16  ;;  %v4233_v46 = vld [vmem:[#allocation2 + $0x78] sm:$0xf] }
 0x354   : > { %v3957_v59 = vor.u32 %v3955_v36, %v3954_v17  ;;  %v3671_v25 = vmax.f32 %v3635_v24, 0.0  ;;  %v3636_v56 = vadd.f32 %v11828_v27, %v3593_v29  ;;  %v3958_v34 = vrot.slane %v3954_v17, 4 }
 0x355   : > { %v3962_v8 = vrot.slane %v3960_v37, 7  ;;  %v3333_v62 = vpop.f32.mrb[44].mxu0 }
 0x356   : > { %v4227_v38 = vsel %vm11841_vm7, %v3957_v59, %v4226_v41  ;;  %v3511_v42 = vadd.f32 %v11771_v14, %v3333_v62  ;;  %v3335_v54 = vpop.f32.mrb[45].mxu0  ;;  %v8795_v35 = vpack.c.bf16 %v3671_v25, %v3671_v25  ;;  %v3672_v6 = vmax.f32 %v3636_v56, 0.0 }
 0x357   : > { %v4313_v1 = vld [vmem:[#allocation2 + $0x60] sm:$0x1]  ;;  %4228 = vst [vmem:[#allocation2 + $0x6c] sm:$0xf] %v4227_v38  ;;  %v3965_v18 = vor.u32 %v3963_v5, %v3962_v8  ;;  %v3967_v55 = vrot.slane %v3962_v8, 4  ;;  %v3336_v7 = vpop.f32.mrb[46].mxu0 }
 0x358   : > { %v4314_v39 = vsel %vm11848_vm8, 0, %v4313_v1  ;;  %v3594_v11 = vmul.f32 %v11822_v52, %v3511_v42  ;;  %v3514_v12 = vadd.f32 %v11775_v19, %v3336_v7  ;;  %v3338_v2 = vpop.f32.mrb[47].mxu0  ;;  %v3969_v45 = vshrl.u32 %v8795_v35, 16 }
 0x359   : > { %4315 = vst [vmem:[#allocation2 + $0x60] sm:$0x1] %v4314_v39  ;;  %v3966_v14 = vsel %vm11854_vm9, %v3958_v34, %v3965_v18  ;;  %v4231_v40 = vsel %vm11848_vm8, %v3967_v55, %v4230_v30  ;;  %v4368_v43 = vld [vmem:[#allocation2 + $0x68] sm:$0x1]  ;;  %v8796_v36 = vpack.c.bf16 %v3672_v6, %v3672_v6  ;;  %v3972_v26 = vshll.u32 %v8795_v35, 16 }
 0x35a   : > { %4229 = vst [vmem:[#allocation2 + $0x70] sm:$0xf] %v3966_v14  ;;  %4232 = vst [vmem:[#allocation2 + $0x74] sm:$0x1] %v4231_v40  ;;  %v3637_v49 = vadd.f32 %v11828_v27, %v3594_v11  ;;  %v3595_v23 = vmul.f32 %v11822_v52, %v3514_v12  ;;  %v4369_v19 = vsel %vm11873_vm10, 0, %v4368_v43  ;;  %v3971_v48 = vrot.slane %v3969_v45, 7 }
 0x35b   : > { %4370 = vst [vmem:[#allocation2 + $0x68] sm:$0x1] %v4369_v19  ;;  %v3977_v58 = vshrl.u32 %v8796_v36, 16  ;;  %v3980_v24 = vshll.u32 %v8796_v36, 16  ;;  %v4237_v30 = vld [vmem:[#allocation2 + $0x80] sm:$0x1] }
 0x35c   : > { %v3673_v17 = vmax.f32 %v3637_v49, 0.0  ;;  %v3638_v41 = vadd.f32 %v11828_v27, %v3595_v23  ;;  %v3974_v37 = vor.u32 %v3972_v26, %v3971_v48  ;;  %v3975_v54 = vrot.slane %v3971_v48, 4  ;;  %v4240_v45 = vld [vmem:[#allocation2 + $0x84] sm:$0xf] }
 0x35d   : > { %v3341_v29 = vpop.f32.mrb[48].mxu0  ;;  %v3979_v8 = vrot.slane %v3977_v58, 7 }
 0x35e   : > { %v4316_v59 = vld [vmem:[#allocation2 + $0x6c] sm:$0x1]  ;;  %v8797_v5 = vpack.c.bf16 %v3673_v17, %v3673_v17  ;;  %v3674_v25 = vmax.f32 %v3638_v41, 0.0  ;;  %v3519_v56 = vadd.f32 %v11781_v63, %v3341_v29  ;;  %v3343_v62 = vpop.f32.mrb[49].mxu0  ;;  %v4234_v38 = vsel %vm11841_vm7, %v3974_v37, %v4233_v46 }
 0x35f   : > { %v4317_v34 = vsel %vm11848_vm8, 0, %v4316_v59  ;;  %v3344_v42 = vpop.f32.mrb[50].mxu0  ;;  %4235 = vst [vmem:[#allocation2 + $0x78] sm:$0xf] %v4234_v38  ;;  %v3982_v1 = vor.u32 %v3980_v24, %v3979_v8  ;;  %v3984_v18 = vrot.slane %v3979_v8, 4 }
 0x360   : > { %4318 = vst [vmem:[#allocation2 + $0x6c] sm:$0x1] %v4317_v34  ;;  %v3986_v55 = vshrl.u32 %v8797_v5, 16  ;;  %v3346_v35 = vpop.f32.mrb[51].mxu0  ;;  %v3989_v7 = vshll.u32 %v8797_v5, 16  ;;  %v8798_v39 = vpack.c.bf16 %v3674_v25, %v3674_v25  ;;  %v3596_v63 = vmul.f32 %v11822_v52, %v3519_v56 }
 0x361   : > { %v4371_v6 = vld [vmem:[#allocation2 + $0x74] sm:$0x1]  ;;  %v3522_v11 = vadd.f32 %v11785_v16, %v3344_v42  ;;  %v3983_v2 = vsel %vm11854_vm9, %v3975_v54, %v3982_v1  ;;  %v4238_v14 = vsel %vm11848_vm8, %v3984_v18, %v4237_v30  ;;  %v4244_v41 = vld [vmem:[#allocation2 + $0x8c] sm:$0x1] }
 0x362   : > { %v4372_v12 = vsel %vm11873_vm10, 0, %v4371_v6  ;;  %v3988_v40 = vrot.slane %v3986_v55, 7  ;;  %4236 = vst [vmem:[#allocation2 + $0x7c] sm:$0xf] %v3983_v2  ;;  %4239 = vst [vmem:[#allocation2 + $0x80] sm:$0x1] %v4238_v14  ;;  %v3639_v36 = vadd.f32 %v11828_v27, %v3596_v63 }
 0x363   : > { %4373 = vst [vmem:[#allocation2 + $0x74] sm:$0x1] %v4372_v12  ;;  %v3994_v43 = vshrl.u32 %v8798_v39, 16  ;;  %v3597_v49 = vmul.f32 %v11822_v52, %v3522_v11  ;;  %v3997_v19 = vshll.u32 %v8798_v39, 16  ;;  %v4247_v39 = vld [vmem:[#allocation2 + $0x90] sm:$0xf] }
 0x364   : > { %v3991_v16 = vor.u32 %v3989_v7, %v3988_v40  ;;  %v3675_v48 = vmax.f32 %v3639_v36, 0.0  ;;  %v3992_v58 = vrot.slane %v3988_v40, 4 }
 0x365   : > { %v3996_v23 = vrot.slane %v3994_v43, 7  ;;  %v3640_v26 = vadd.f32 %v11828_v27, %v3597_v49  ;;  %v3349_v46 = vpop.f32.mrb[52].mxu0 }
 0x366   : > { %v4241_v17 = vsel %vm11841_vm7, %v3991_v16, %v4240_v45  ;;  %v3527_v37 = vadd.f32 %v11779_v4, %v3349_v46  ;;  %v3351_v24 = vpop.f32.mrb[53].mxu0  ;;  %v4319_v29 = vld [vmem:[#allocation2 + $0x78] sm:$0x1]  ;;  %v8799_v5 = vpack.c.bf16 %v3675_v48, %v3675_v48 }
 0x367   : > { %4242 = vst [vmem:[#allocation2 + $0x84] sm:$0xf] %v4241_v17  ;;  %v3999_v59 = vor.u32 %v3997_v19, %v3996_v23  ;;  %v4001_v8 = vrot.slane %v3996_v23, 4  ;;  %v3676_v25 = vmax.f32 %v3640_v26, 0.0  ;;  %v3352_v56 = vpop.f32.mrb[54].mxu0  ;;  %v4320_v62 = vsel %vm11848_vm8, 0, %v4319_v29 }
 0x368   : > { %v3598_v34 = vmul.f32 %v11822_v52, %v3527_v37  ;;  %v3530_v38 = vadd.f32 %v11783_v20, %v3352_v56  ;;  %v3354_v30 = vpop.f32.mrb[55].mxu0  ;;  %4321 = vst [vmem:[#allocation2 + $0x78] sm:$0x1] %v4320_v62  ;;  %v4003_v54 = vshrl.u32 %v8799_v5, 16  ;;  %v4006_v7 = vshll.u32 %v8799_v5, 16 }
 0x369   : > { %v4000_v4 = vsel %vm11854_vm9, %v3992_v58, %v3999_v59  ;;  %v4245_v42 = vsel %vm11848_vm8, %v4001_v8, %v4244_v41  ;;  %v4374_v1 = vld [vmem:[#allocation2 + $0x80] sm:$0x1]  ;;  %v8800_v18 = vpack.c.bf16 %v3676_v25, %v3676_v25  ;;  %v4251_v26 = vld [vmem:[#allocation2 + $0x98] sm:$0x1] }
 0x36a   : > { %4243 = vst [vmem:[#allocation2 + $0x88] sm:$0xf] %v4000_v4  ;;  %4246 = vst [vmem:[#allocation2 + $0x8c] sm:$0x1] %v4245_v42  ;;  %v3641_v55 = vadd.f32 %v11828_v27, %v3598_v34  ;;  %v3599_v35 = vmul.f32 %v11822_v52, %v3530_v38  ;;  %v4375_v20 = vsel %vm11873_vm10, 0, %v4374_v1  ;;  %v4005_v6 = vrot.slane %v4003_v54, 7 }
 0x36b   : > { %4376 = vst [vmem:[#allocation2 + $0x80] sm:$0x1] %v4375_v20  ;;  %v4011_v63 = vshrl.u32 %v8800_v18, 16  ;;  %v4014_v14 = vshll.u32 %v8800_v18, 16  ;;  %v4254_v38 = vld [vmem:[#allocation2 + $0x9c] sm:$0xf] }
 0x36c   : > { %v3677_v11 = vmax.f32 %v3641_v55, 0.0  ;;  %v3642_v12 = vadd.f32 %v11828_v27, %v3599_v35  ;;  %v4008_v2 = vor.u32 %v4006_v7, %v4005_v6  ;;  %v4009_v58 = vrot.slane %v4005_v6, 4  ;;  %v4258_v7 = vld [vmem:[#allocation2 + $0xa4] sm:$0x1] }
 0x36d   : > { %v3357_v40 = vpop.f32.mrb[56].mxu0  ;;  %v4013_v43 = vrot.slane %v4011_v63, 7 }
 0x36e   : > { %v4322_v45 = vld [vmem:[#allocation2 + $0x84] sm:$0x1]  ;;  %v8801_v36 = vpack.c.bf16 %v3677_v11, %v3677_v11  ;;  %v3678_v49 = vmax.f32 %v3642_v12, 0.0  ;;  %v3535_v16 = vadd.f32 %v11789_v47, %v3357_v40  ;;  %v3359_v23 = vpop.f32.mrb[57].mxu0  ;;  %v4248_v48 = vsel %vm11841_vm7, %v4008_v2, %v4247_v39 }
 0x36f   : > { %v4323_v19 = vsel %vm11848_vm8, 0, %v4322_v45  ;;  %v3360_v46 = vpop.f32.mrb[58].mxu0  ;;  %4249 = vst [vmem:[#allocation2 + $0x90] sm:$0xf] %v4248_v48  ;;  %v4016_v17 = vor.u32 %v4014_v14, %v4013_v43  ;;  %v4018_v41 = vrot.slane %v4013_v43, 4 }
 0x370   : > { %4324 = vst [vmem:[#allocation2 + $0x84] sm:$0x1] %v4323_v19  ;;  %v4020_v37 = vshrl.u32 %v8801_v36, 16  ;;  %v3362_v24 = vpop.f32.mrb[59].mxu0  ;;  %v4023_v59 = vshll.u32 %v8801_v36, 16  ;;  %v8802_v8 = vpack.c.bf16 %v3678_v49, %v3678_v49  ;;  %v3600_v47 = vmul.f32 %v11822_v52, %v3535_v16 }
 0x371   : > { %v4377_v29 = vld [vmem:[#allocation2 + $0x8c] sm:$0x1]  ;;  %v3538_v5 = vadd.f32 %v11793_v10, %v3360_v46  ;;  %v4017_v56 = vsel %vm11854_vm9, %v4009_v58, %v4016_v17  ;;  %v4252_v62 = vsel %vm11848_vm8, %v4018_v41, %v4251_v26 }
 0x372   : > { %v4378_v25 = vsel %vm11873_vm10, 0, %v4377_v29  ;;  %v4022_v34 = vrot.slane %v4020_v37, 7  ;;  %4250 = vst [vmem:[#allocation2 + $0x94] sm:$0xf] %v4017_v56  ;;  %4253 = vst [vmem:[#allocation2 + $0x98] sm:$0x1] %v4252_v62  ;;  %v3643_v4 = vadd.f32 %v11828_v27, %v3600_v47 }
 0x373   : > { %4379 = vst [vmem:[#allocation2 + $0x8c] sm:$0x1] %v4378_v25  ;;  %v4028_v30 = vshrl.u32 %v8802_v8, 16  ;;  %v3601_v42 = vmul.f32 %v11822_v52, %v3538_v5  ;;  %v4031_v1 = vshll.u32 %v8802_v8, 16  ;;  %v4261_v37 = vld [vmem:[#allocation2 + $0xa8] sm:$0xf] }
 0x374   : > { %v4025_v10 = vor.u32 %v4023_v59, %v4022_v34  ;;  %v3679_v18 = vmax.f32 %v3643_v4, 0.0  ;;  %v4026_v20 = vrot.slane %v4022_v34, 4 }
 0x375   : > { %v4030_v54 = vrot.slane %v4028_v30, 7  ;;  %v3644_v55 = vadd.f32 %v11828_v27, %v3601_v42  ;;  %v3365_v35 = vpop.f32.mrb[60].mxu0 }
 0x376   : > { %v4255_v6 = vsel %vm11841_vm7, %v4025_v10, %v4254_v38  ;;  %v3543_v39 = vadd.f32 %v11787_v44, %v3365_v35  ;;  %v3367_v63 = vpop.f32.mrb[61].mxu0  ;;  %v4325_v11 = vld [vmem:[#allocation2 + $0x90] sm:$0x1]  ;;  %v8803_v14 = vpack.c.bf16 %v3679_v18, %v3679_v18 }
 0x377   : > { %4256 = vst [vmem:[#allocation2 + $0x9c] sm:$0xf] %v4255_v6  ;;  %v4033_v12 = vor.u32 %v4031_v1, %v4030_v54  ;;  %v4035_v2 = vrot.slane %v4030_v54, 4  ;;  %v3680_v40 = vmax.f32 %v3644_v55, 0.0  ;;  %v3368_v45 = vpop.f32.mrb[62].mxu0  ;;  %v4326_v43 = vsel %vm11848_vm8, 0, %v4325_v11 }
 0x378   : > { %v3602_v36 = vmul.f32 %v11822_v52, %v3543_v39  ;;  %v3546_v49 = vadd.f32 %v11791_v50, %v3368_v45  ;;  %v3370_v16 = vpop.f32.mrb[63].mxu0  ;;  %4327 = vst [vmem:[#allocation2 + $0x90] sm:$0x1] %v4326_v43  ;;  %v4037_v19 = vshrl.u32 %v8803_v14, 16  ;;  %v4040_v41 = vshll.u32 %v8803_v14, 16 }
 0x379   : > { %v4034_v44 = vsel %vm11854_vm9, %v4026_v20, %v4033_v12  ;;  %v4259_v23 = vsel %vm11848_vm8, %v4035_v2, %v4258_v7  ;;  %v4380_v48 = vld [vmem:[#allocation2 + $0x98] sm:$0x1]  ;;  %v8804_v26 = vpack.c.bf16 %v3680_v40, %v3680_v40  ;;  %v4265_v10 = vld [vmem:[#allocation2 + $0xb0] sm:$0x1]  ;;  %v4268_v40 = vld [vmem:[#allocation2 + $0xb4] sm:$0xf] }
 0x37a   : > { %4257 = vst [vmem:[#allocation2 + $0xa0] sm:$0xf] %v4034_v44  ;;  %4260 = vst [vmem:[#allocation2 + $0xa4] sm:$0x1] %v4259_v23  ;;  %v3645_v46 = vadd.f32 %v11828_v27, %v3602_v36  ;;  %v3603_v58 = vmul.f32 %v11822_v52, %v3546_v49  ;;  %v4381_v50 = vsel %vm11873_vm10, 0, %v4380_v48  ;;  %v4039_v17 = vrot.slane %v4037_v19, 7 }
 0x37b   : > { %4382 = vst [vmem:[#allocation2 + $0x98] sm:$0x1] %v4381_v50  ;;  %v4045_v24 = vshrl.u32 %v8804_v26, 16  ;;  %v4048_v47 = vshll.u32 %v8804_v26, 16 }
 0x37c   : > { %v3681_v29 = vmax.f32 %v3645_v46, 0.0  ;;  %v3646_v59 = vadd.f32 %v11828_v27, %v3603_v58  ;;  %v4042_v8 = vor.u32 %v4040_v41, %v4039_v17  ;;  %v4043_v1 = vrot.slane %v4039_v17, 4  ;;  %v4272_v46 = vld [vmem:[#allocation2 + $0xbc] sm:$0x1] }
 0x37d   : > { %v3373_v5 = vpop.f32.mrb[64].mxu0  ;;  %v4047_v56 = vrot.slane %v4045_v24, 7 }
 0x37e   : > { %v4328_v25 = vld [vmem:[#allocation2 + $0x9c] sm:$0x1]  ;;  %v8805_v62 = vpack.c.bf16 %v3681_v29, %v3681_v29  ;;  %v3682_v34 = vmax.f32 %v3646_v59, 0.0  ;;  %v3551_v38 = vadd.f32 %v11801_v57, %v3373_v5  ;;  %v3375_v30 = vpop.f32.mrb[65].mxu0  ;;  %v4262_v42 = vsel %vm11841_vm7, %v4042_v8, %v4261_v37 }
 0x37f   : > { %v4329_v4 = vsel %vm11848_vm8, 0, %v4328_v25  ;;  %v3376_v54 = vpop.f32.mrb[66].mxu0  ;;  %4263 = vst [vmem:[#allocation2 + $0xa8] sm:$0xf] %v4262_v42  ;;  %v4050_v18 = vor.u32 %v4048_v47, %v4047_v56  ;;  %v4052_v55 = vrot.slane %v4047_v56, 4 }
 0x380   : > { %4330 = vst [vmem:[#allocation2 + $0x9c] sm:$0x1] %v4329_v4  ;;  %v4054_v35 = vshrl.u32 %v8805_v62, 16  ;;  %v3378_v20 = vpop.f32.mrb[67].mxu0  ;;  %v4057_v7 = vshll.u32 %v8805_v62, 16  ;;  %v8806_v39 = vpack.c.bf16 %v3682_v34, %v3682_v34  ;;  %v3604_v57 = vmul.f32 %v11822_v52, %v3551_v38 }
 0x381   : > { %v4383_v6 = vld [vmem:[#allocation2 + $0xa4] sm:$0x1]  ;;  %v3554_v63 = vadd.f32 %v11805_v13, %v3376_v54  ;;  %v4051_v12 = vsel %vm11854_vm9, %v4043_v1, %v4050_v18  ;;  %v4266_v2 = vsel %vm11848_vm8, %v4052_v55, %v4265_v10  ;;  %v12056_v38 = vld [vmem:[%s13363_s3] ss:$0 sm:$0xff] }
 0x382   : > { %v4384_v11 = vsel %vm11873_vm10, 0, %v4383_v6  ;;  %v4056_v14 = vrot.slane %v4054_v35, 7  ;;  %4264 = vst [vmem:[#allocation2 + $0xac] sm:$0xf] %v4051_v12  ;;  %4267 = vst [vmem:[#allocation2 + $0xb0] sm:$0x1] %v4266_v2  ;;  %v3647_v43 = vadd.f32 %v11828_v27, %v3604_v57 }
 0x383   : > { %4385 = vst [vmem:[#allocation2 + $0xa4] sm:$0x1] %v4384_v11  ;;  %v4062_v45 = vshrl.u32 %v8806_v39, 16  ;;  %v3605_v36 = vmul.f32 %v11822_v52, %v3554_v63  ;;  %v4065_v16 = vshll.u32 %v8806_v39, 16  ;;  %v4275_v54 = vld [vmem:[#allocation2 + $0xc0] sm:$0xf] }
 0x384   : > { %v4059_v13 = vor.u32 %v4057_v7, %v4056_v14  ;;  %v3683_v44 = vmax.f32 %v3647_v43, 0.0  ;;  %v4060_v48 = vrot.slane %v4056_v14, 4  ;;  %v4279_v6 = vld [vmem:[#allocation2 + $0xc8] sm:$0x1] }
 0x385   : > { %v4064_v49 = vrot.slane %v4062_v45, 7  ;;  %v3648_v23 = vadd.f32 %v11828_v27, %v3605_v36  ;;  %v3381_v19 = vpop.f32.mrb[68].mxu0  ;;  %v12045_v27 = vld [vmem:[%s13362_s2] ss:$0 sm:$0xff] }
 0x386   : > { %v4269_v26 = vsel %vm11841_vm7, %v4059_v13, %v4268_v40  ;;  %v3559_v58 = vadd.f32 %v11797_v0, %v3381_v19  ;;  %v3383_v50 = vpop.f32.mrb[69].mxu0  ;;  %v4331_v17 = vld [vmem:[#allocation2 + $0xa8] sm:$0x1]  ;;  %v8807_v52 = vpack.c.bf16 %v3683_v44, %v3683_v44 }
 0x387   : > { %4270 = vst [vmem:[#allocation2 + $0xb4] sm:$0xf] %v4269_v26  ;;  %v4067_v41 = vor.u32 %v4065_v16, %v4064_v49  ;;  %v4069_v37 = vrot.slane %v4064_v49, 4  ;;  %v3684_v24 = vmax.f32 %v3648_v23, 0.0  ;;  %v3384_v29 = vpop.f32.mrb[70].mxu0  ;;  %v4332_v59 = vsel %vm11848_vm8, 0, %v4331_v17 }
 0x388   : > { %v3606_v8 = vmul.f32 %v12045_v27, %v3559_v58  ;;  %v3562_v0 = vadd.f32 %v11803_v53, %v3384_v29  ;;  %v3386_v47 = vpop.f32.mrb[71].mxu0  ;;  %4333 = vst [vmem:[#allocation2 + $0xa8] sm:$0x1] %v4332_v59  ;;  %v4071_v56 = vshrl.u32 %v8807_v52, 16  ;;  %v4074_v10 = vshll.u32 %v8807_v52, 16 }
 0x389   : > { %v4068_v5 = vsel %vm11854_vm9, %v4060_v48, %v4067_v41  ;;  %v4273_v25 = vsel %vm11848_vm8, %v4069_v37, %v4272_v46  ;;  %v4386_v62 = vld [vmem:[#allocation2 + $0xb0] sm:$0x1]  ;;  %v8808_v34 = vpack.c.bf16 %v3684_v24, %v3684_v24  ;;  %v4282_v41 = vld [vmem:[#allocation2 + $0xcc] sm:$0xf] }
 0x38a   : > { %4271 = vst [vmem:[#allocation2 + $0xb8] sm:$0xf] %v4068_v5  ;;  %4274 = vst [vmem:[#allocation2 + $0xbc] sm:$0x1] %v4273_v25  ;;  %v3649_v53 = vadd.f32 %v12056_v38, %v3606_v8  ;;  %v3607_v30 = vmul.f32 %v12045_v27, %v3562_v0  ;;  %v4387_v4 = vsel %vm11873_vm10, 0, %v4386_v62  ;;  %v4073_v42 = vrot.slane %v4071_v56, 7 }
 0x38b   : > { %4388 = vst [vmem:[#allocation2 + $0xb0] sm:$0x1] %v4387_v4  ;;  %v4079_v1 = vshrl.u32 %v8808_v34, 16  ;;  %v4082_v20 = vshll.u32 %v8808_v34, 16  ;;  %v4286_v34 = vld [vmem:[#allocation2 + $0xd4] sm:$0x1] }
 0x38c   : > { %v3685_v18 = vmax.f32 %v3649_v53, 0.0  ;;  %v3650_v55 = vadd.f32 %v12056_v38, %v3607_v30  ;;  %v4076_v35 = vor.u32 %v4074_v10, %v4073_v42  ;;  %v4077_v40 = vrot.slane %v4073_v42, 4 }
 0x38d   : > { %v9495_v7 = vpop.f32.mrb[72].mxu0  ;;  %v4081_v57 = vrot.slane %v4079_v1, 7 }
 0x38e   : > { %v4334_v39 = vld [vmem:[#allocation2 + $0xb4] sm:$0x1]  ;;  %v8809_v63 = vpack.c.bf16 %v3685_v18, %v3685_v18  ;;  %v3686_v11 = vmax.f32 %v3650_v55, 0.0  ;;  %v3431_v12 = vadd.f32 %v9495_v7, %v11807_v9  ;;  %v3422_v2 = vpop.f32.mrb[73].mxu0  ;;  %v4276_v45 = vsel %vm11841_vm7, %v4076_v35, %v4275_v54 }
 0x38f   : > { %v4335_v14 = vsel %vm11848_vm8, 0, %v4334_v39  ;;  %v3423_v43 = vadd.f32 %v3422_v2, %v11795_v28  ;;  %v9496_v36 = vpop.f32.mrb[74].mxu0  ;;  %4277 = vst [vmem:[#allocation2 + $0xc0] sm:$0xf] %v4276_v45  ;;  %v4084_v13 = vor.u32 %v4082_v20, %v4081_v57  ;;  %v4086_v49 = vrot.slane %v4081_v57, 4 }
 0x390   : > { %4336 = vst [vmem:[#allocation2 + $0xb4] sm:$0x1] %v4335_v14  ;;  %v4088_v16 = vshrl.u32 %v8809_v63, 16  ;;  %v4091_v44 = vshll.u32 %v8809_v63, 16  ;;  %v3425_v23 = vpop.f32.mrb[75].mxu0  ;;  %v8810_v9 = vpack.c.bf16 %v3686_v11, %v3686_v11  ;;  %v3574_v48 = vmul.f32 %v12045_v27, %v3431_v12 }
 0x391   : > { %v4389_v19 = vld [vmem:[#allocation2 + $0xbc] sm:$0x1]  ;;  %v3572_v26 = vmul.f32 %v12045_v27, %v3423_v43  ;;  %v3434_v46 = vadd.f32 %v9496_v36, %v11809_v15  ;;  %v4085_v28 = vsel %vm11854_vm9, %v4077_v40, %v4084_v13  ;;  %v4280_v50 = vsel %vm11848_vm8, %v4086_v49, %v4279_v6 }
 0x392   : > { %v4390_v58 = vsel %vm11873_vm10, 0, %v4389_v19  ;;  %v4090_v17 = vrot.slane %v4088_v16, 7  ;;  %4278 = vst [vmem:[#allocation2 + $0xc4] sm:$0xf] %v4085_v28  ;;  %4281 = vst [vmem:[#allocation2 + $0xc8] sm:$0x1] %v4280_v50  ;;  %v3617_v52 = vadd.f32 %v12056_v38, %v3574_v48  ;;  %v3426_v8 = vadd.f32 %v3425_v23, %v11799_v31 }
 0x393   : > { %4391 = vst [vmem:[#allocation2 + $0xbc] sm:$0x1] %v4390_v58  ;;  %v4096_v37 = vshrl.u32 %v8810_v9, 16  ;;  %v3615_v24 = vadd.f32 %v12056_v38, %v3572_v26  ;;  %v4099_v29 = vshll.u32 %v8810_v9, 16  ;;  %v3575_v59 = vmul.f32 %v12045_v27, %v3434_v46  ;;  %v4161_v58 = vld [vmem:[#allocation2] sm:$0xf] }
 0x394   : > { %v4093_v15 = vor.u32 %v4091_v44, %v4090_v17  ;;  %v4094_v0 = vrot.slane %v4090_v17, 4  ;;  %v3653_v5 = vmax.f32 %v3617_v52, 0.0  ;;  %v3573_v30 = vmul.f32 %v12045_v27, %v3426_v8  ;;  %v4170_v44 = vld [vmem:[#allocation2 + $0xc] sm:$0xf] }
 0x395   : > { %v4098_v47 = vrot.slane %v4096_v37, 7  ;;  %v3651_v25 = vmax.f32 %v3615_v24, 0.0  ;;  %v9499_v56 = vpop.f32.mrb[76].mxu0  ;;  %v3618_v53 = vadd.f32 %v12056_v38, %v3575_v59  ;;  %v13394_v36 = vmov 0  }
 0x396   : > { %v4283_v62 = vsel %vm11841_vm7, %v4093_v15, %v4282_v41  ;;  %v3447_v4 = vadd.f32 %v9499_v56, %v11815_v61  ;;  %v3438_v42 = vpop.f32.mrb[77].mxu0  ;;  %v4337_v10 = vld [vmem:[#allocation2 + $0xc0] sm:$0x1]  ;;  %v8777_v1 = vpack.c.bf16 %v3653_v5, %v3653_v5  ;;  %v3616_v6 = vadd.f32 %v12056_v38, %v3573_v30 }
 0x397   : > { %4284 = vst [vmem:[#allocation2 + $0xcc] sm:$0xf] %v4283_v62  ;;  %v4101_v54 = vor.u32 %v4099_v29, %v4098_v47  ;;  %v4103_v31 = vrot.slane %v4098_v47, 4  ;;  %v8775_v18 = vpack.c.bf16 %v3651_v25, %v3651_v25  ;;  %v9500_v55 = vpop.f32.mrb[78].mxu0  ;;  %v4338_v35 = vsel %vm11848_vm8, 0, %v4337_v10 }
 0x398   : > { %v3654_v20 = vmax.f32 %v3618_v53, 0.0  ;;  %v3578_v7 = vmul.f32 %v12045_v27, %v3447_v4  ;;  %v12091_v39 = vpop.f32.mrb[79].mxu0  ;;  %4339 = vst [vmem:[#allocation2 + $0xc0] sm:$0x1] %v4338_v35  ;;  %v3816_v63 = vshrl.u32 %v8777_v1, 16  ;;  %v3819_v11 = vshll.u32 %v8777_v1, 16 }
 0x399   : > { %v4102_v61 = vsel %vm11854_vm9, %v4094_v0, %v4101_v54  ;;  %v4287_v57 = vsel %vm11848_vm8, %v4103_v31, %v4286_v34  ;;  %v4392_v12 = vld [vmem:[#allocation2 + $0xc8] sm:$0x1]  ;;  %v3799_v2 = vshrl.u32 %v8775_v18, 16  ;;  %v3802_v14 = vshll.u32 %v8775_v18, 16  ;;  %v4174_v29 = vld [vmem:[#allocation2 + $0x14] sm:$0x1] }
 0x39a   : > { %4285 = vst [vmem:[#allocation2 + $0xd0] sm:$0xf] %v4102_v61  ;;  %4288 = vst [vmem:[#allocation2 + $0xd4] sm:$0x1] %v4287_v57  ;;  %v8778_v40 = vpack.c.bf16 %v3654_v20, %v3654_v20  ;;  %v3652_v45 = vmax.f32 %v3616_v6, 0.0  ;;  %v4393_v43 = vsel %vm11873_vm10, 0, %v4392_v12  ;;  %v3621_v49 = vadd.f32 %v12056_v38, %v3578_v7 }
 0x39b   : > { %4407 = vst [vmem:[#allocation2 + $0xd0] sm:$0xf] %v13394_v36  ;;  %v3818_v13 = vrot.slane %v3816_v63, 7  ;;  %v3439_v16 = vadd.f32 %v3438_v42, %v11811_v60  ;;  %4394 = vst [vmem:[#allocation2 + $0xc8] sm:$0x1] %v4393_v43  ;;  %v3801_v23 = vrot.slane %v3799_v2, 7  ;;  %v3450_v30 = vadd.f32 %v9500_v55, %v11817_v33 }
 0x39c   : > { %v3824_v19 = vshrl.u32 %v8778_v40, 16  ;;  %v3827_v9 = vshll.u32 %v8778_v40, 16  ;;  %v8776_v48 = vpack.c.bf16 %v3652_v45, %v3652_v45  ;;  %v3657_v28 = vmax.f32 %v3621_v49, 0.0  ;;  %v4167_v31 = vld [vmem:[#allocation2 + $0x8] sm:$0x1] }
 0x39d   : > { %v3821_v26 = vor.u32 %v3819_v11, %v3818_v13  ;;  %v3822_v46 = vrot.slane %v3818_v13, 4  ;;  %v3576_v50 = vmul.f32 %v12045_v27, %v3439_v16  ;;  %v3804_v41 = vor.u32 %v3802_v14, %v3801_v23  ;;  %v4184_v20 = vld [vmem:[#allocation2 + $0x24] sm:$0xf]  ;;  %v4177_v16 = vld [vmem:[#allocation2 + $0x18] sm:$0xf] }
 0x39e   : > { %v4340_v17 = vld [vmem:[#allocation2 + $0xcc] sm:$0x1]  ;;  %v3805_v37 = vrot.slane %v3801_v23, 4  ;;  %v3826_v52 = vrot.slane %v3824_v19, 7  ;;  %v3807_v24 = vshrl.u32 %v8776_v48, 16  ;;  %v3810_v59 = vshll.u32 %v8776_v48, 16 }
 0x39f   : > { %v4341_v60 = vsel %vm11848_vm8, 0, %v4340_v17  ;;  %v4171_v15 = vsel %vm11841_vm7, %v3821_v26, %v4170_v44  ;;  %v8781_v8 = vpack.c.bf16 %v3657_v28, %v3657_v28  ;;  %v4162_v0 = vsel %vm11841_vm7, %v3804_v41, %v4161_v58  ;;  %v4188_v58 = vld [vmem:[#allocation2 + $0x2c] sm:$0x1] }
 0x3a0   : > { %4342 = vst [vmem:[#allocation2 + $0xcc] sm:$0x1] %v4341_v60  ;;  %4172 = vst [vmem:[#allocation2 + $0xc] sm:$0xf] %v4171_v15  ;;  %v3829_v47 = vor.u32 %v3827_v9, %v3826_v52  ;;  %v3831_v5 = vrot.slane %v3826_v52, 4  ;;  %v3809_v25 = vrot.slane %v3807_v24, 7  ;;  %v3619_v53 = vadd.f32 %v12056_v38, %v3576_v50 }
 0x3a1   : > { %4406 = vst [vmem:[#allocation2 + $0xcc] sm:$0xf] %v13394_v36  ;;  %v4395_v56 = vld [vmem:[#allocation2 + $0xd4] sm:$0x1]  ;;  %4163 = vst [vmem:[#allocation2] sm:$0xf] %v4162_v0  ;;  %v3579_v33 = vmul.f32 %v12045_v27, %v3450_v30  ;;  %v3442_v6 = vadd.f32 %v12091_v39, %v11813_v21 }
 0x3a2   : > { %v3850_v62 = vshrl.u32 %v8781_v8, 16  ;;  %v3853_v34 = vshll.u32 %v8781_v8, 16  ;;  %v4396_v4 = vsel %vm11873_vm10, 0, %v4395_v56  ;;  %v3830_v42 = vsel %vm11854_vm9, %v3822_v46, %v3829_v47 }
 0x3a3   : > { %v4175_v10 = vsel %vm11848_vm8, %v3831_v5, %v4174_v29  ;;  %v3812_v54 = vor.u32 %v3810_v59, %v3809_v25  ;;  %4397 = vst [vmem:[#allocation2 + $0xd4] sm:$0x1] %v4396_v4  ;;  %4173 = vst [vmem:[#allocation2 + $0x10] sm:$0xf] %v3830_v42  ;;  %v3814_v1 = vrot.slane %v3809_v25, 4  ;;  %v3655_v35 = vmax.f32 %v3619_v53, 0.0 }
 0x3a4   : > { %4176 = vst [vmem:[#allocation2 + $0x14] sm:$0x1] %v4175_v10  ;;  %v12118_v18 = vrot.slane %v3850_v62, 7  ;;  %4408 = vst [vmem:[#allocation2 + $0xd4] sm:$0x1] %v13394_v36  ;;  %v3622_v63 = vadd.f32 %v12056_v38, %v3579_v33  ;;  %v3577_v11 = vmul.f32 %v12045_v27, %v3442_v6 }
 0x3a5   : > { %v3813_v55 = vsel %vm11854_vm9, %v3805_v37, %v3812_v54  ;;  %v4168_v7 = vsel %vm11848_vm8, %v3814_v1, %v4167_v31  ;;  %v8779_v57 = vpack.c.bf16 %v3655_v35, %v3655_v35  ;;  %v4181_v5 = vld [vmem:[#allocation2 + $0x20] sm:$0x1] }
 0x3a6   : > { %4164 = vst [vmem:[#allocation2 + $0x4] sm:$0xf] %v3813_v55  ;;  %v3855_v61 = vor.u32 %v3853_v34, %v12118_v18  ;;  %4169 = vst [vmem:[#allocation2 + $0x8] sm:$0x1] %v4168_v7  ;;  %v3658_v40 = vmax.f32 %v3622_v63, 0.0  ;;  %v3620_v45 = vadd.f32 %v12056_v38, %v3577_v11  ;;  %v3856_v52 = vrot.slane %v12118_v18, 4 }
 0x3a7   : > { %4403 = vst [vmem:[#allocation2 + $0x4] sm:$0xf] %v13394_v36  ;;  %v4292_v12 = vld [vmem:[#allocation2 + $0xc] sm:$0x1]  ;;  %v3833_v14 = vshrl.u32 %v8779_v57, 16  ;;  %v3836_v49 = vshll.u32 %v8779_v57, 16 }
 0x3a8   : > { %v4185_v2 = vsel %vm11841_vm7, %v3855_v61, %v4184_v20  ;;  %v4293_v21 = vsel %vm11848_vm8, 0, %v4292_v12  ;;  %v4289_v39 = vld [vmem:[#allocation2] sm:$0x1]  ;;  %v8782_v44 = vpack.c.bf16 %v3658_v40, %v3658_v40  ;;  %v3656_v23 = vmax.f32 %v3620_v45, 0.0  ;;  %v4458_v20 = vld [vmem:[#allocation2 + $0xc] sm:$0xe] }
 0x3a9   : > { %4186 = vst [vmem:[#allocation2 + $0x24] sm:$0xf] %v4185_v2  ;;  %4294 = vst [vmem:[#allocation2 + $0xc] sm:$0x1] %v4293_v21  ;;  %v4290_v43 = vsel %vm11848_vm8, 0, %v4289_v39  ;;  %v3835_v13 = vrot.slane %v3833_v14, 7 }
 0x3aa   : > { %4291 = vst [vmem:[#allocation2] sm:$0x1] %v4290_v43  ;;  %v3858_v48 = vshrl.u32 %v8782_v44, 16  ;;  %v8780_v38 = vpack.c.bf16 %v3656_v23, %v3656_v23  ;;  %v3861_v17 = vshll.u32 %v8782_v44, 16  ;;  %v4412_v37 = vld [vmem:[#allocation2 + $0x10] sm:$0xf] }
 0x3ab   : > { %v4347_v27 = vld [vmem:[#allocation2 + $0x14] sm:$0x1]  ;;  %4402 = vst [vmem:[#allocation2] sm:$0xf] %v13394_v36  ;;  %v3838_v9 = vor.u32 %v3836_v49, %v3835_v13  ;;  %v3839_v47 = vrot.slane %v3835_v13, 4  ;;  %v8505_v61 = vcombine.low %v4458_v20, %v4412_v37  ;;  %v10136_v49 = vld [vmem:[#allocation3 + $0x80] sm:$0xff]  }
 0x3ac   : > { %v4348_v19 = vsel %vm11873_vm10, 0, %v4347_v27  ;;  %v3860_v50 = vrot.slane %v3858_v48, 7  ;;  %v3841_v41 = vshrl.u32 %v8780_v38, 16  ;;  %v3844_v60 = vshll.u32 %v8780_v38, 16  ;;  %v10157_v20 = vld [vmem:[#allocation3 + $0xe0] sm:$0xff]  }
 0x3ad   : > { %4349 = vst [vmem:[#allocation2 + $0x14] sm:$0x1] %v4348_v19  ;;  %v4344_v26 = vld [vmem:[#allocation2 + $0x8] sm:$0x1]  ;;  %v4178_v46 = vsel %vm11841_vm7, %v3838_v9, %v4177_v16  ;;  %v5006_v16 = vrot.slane %v8505_v61, 1  ;;  %v10139_v19 = vld [vmem:[#allocation3 + $0xc8] sm:$0xff]  }
 0x3ae   : > { %v4345_v28 = vsel %vm11873_vm10, 0, %v4344_v26  ;;  %4179 = vst [vmem:[#allocation2 + $0x18] sm:$0xf] %v4178_v46  ;;  %v4410_v15 = vld [vmem:[#allocation2 + $0x4] sm:$0xf]  ;;  %v3863_v29 = vor.u32 %v3861_v17, %v3860_v50  ;;  %v3865_v59 = vrot.slane %v3860_v50, 4 }
 0x3af   : > { %4346 = vst [vmem:[#allocation2 + $0x8] sm:$0x1] %v4345_v28  ;;  %v3843_v8 = vrot.slane %v3841_v41, 7  ;;  %v10142_v50 = vld [vmem:[#allocation3 + $0x88] sm:$0xff]   ;;  %v10145_v41 = vld [vmem:[#allocation3 + $0xd0] sm:$0xff]  }
 0x3b0   : > { %v4298_v24 = vld [vmem:[#allocation2 + $0x24] sm:$0x1]  ;;  %4404 = vst [vmem:[#allocation2 + $0x8] sm:$0x1] %v13394_v36  ;;  %v4411_v0 = vld [vmem:[#allocation2 + $0xc] sm:$0xf]  ;;  %v3864_v56 = vsel %vm11854_vm9, %v3856_v52, %v3863_v29  ;;  %v4189_v62 = vsel %vm11848_vm8, %v3865_v59, %v4188_v58 }
 0x3b1   : > { %v4299_v22 = vsel %vm11848_vm8, 0, %v4298_v24  ;;  %v12150_v25 = vcombine.low %v4411_v0, %v4412_v37  ;;  %v3846_v34 = vor.u32 %v3844_v60, %v3843_v8  ;;  %v3848_v36 = vrot.slane %v3843_v8, 4  ;;  %4187 = vst [vmem:[#allocation2 + $0x28] sm:$0xf] %v3864_v56  ;;  %4190 = vst [vmem:[#allocation2 + $0x2c] sm:$0x1] %v4189_v62 }
 0x3b2   : > { %4300 = vst [vmem:[#allocation2 + $0x24] sm:$0x1] %v4299_v22  ;;  %v4409_v53 = vld [vmem:[#allocation2] sm:$0xf]  ;;  %v4460_v52 = vld [vmem:[#allocation2 + $0x24] sm:$0xe] }
 0x3b3   : > { %v8472_v30 = vcombine.low %v4409_v53, %v4410_v15  ;;  %v3847_v42 = vsel %vm11854_vm9, %v3839_v47, %v3846_v34  ;;  %v4182_v10 = vsel %vm11848_vm8, %v3848_v36, %v4181_v5  ;;  %v4762_v54 = vshll.u32 %v12150_v25, 16  ;;  %v4457_v11 = vld [vmem:[#allocation2] sm:$0xe]  ;;  %v4417_v60 = vld [vmem:[#allocation2 + $0x30] sm:$0xf]  ;;  %v10148_v0 = vld [vmem:[#allocation3 + $0x90] sm:$0xff]  }
 0x3b4   : > { %v10135_v4 = vld [vmem:[#allocation2 + $0x14] ss:$0 sps:$4 sm:$0x11]   ;;  %4180 = vst [vmem:[#allocation2 + $0x1c] sm:$0xf] %v3847_v42  ;;  %v4760_v7 = vshrl.u32 %v12150_v25, 16  ;;  %v8504_v14 = vcombine.low %v4457_v11, %v4410_v15 }
 0x3b5   : > { %v4295_v31 = vld [vmem:[#allocation2 + $0x18] sm:$0x1]  ;;  %4183 = vst [vmem:[#allocation2 + $0x20] sm:$0x1] %v4182_v10  ;;  %v4748_v1 = vshrl.u32 %v8472_v30, 16  ;;  %v4750_v18 = vshll.u32 %v8472_v30, 16 }
 0x3b6   : > { %v4296_v35 = vsel %vm11848_vm8, 0, %v4295_v31  ;;  %v4764_v33 = vrot.slane %v4762_v54, 1  ;;  %v4767_v55 = vshll.u32 %v10135_v4, 16  ;;  %v5007_v43 = vrot.slane %v10135_v4, 1  ;;  %v4459_v37 = vld [vmem:[#allocation2 + $0x18] sm:$0xe] }
 0x3b7   : > { %4297 = vst [vmem:[#allocation2 + $0x18] sm:$0x1] %v4296_v35  ;;  %v10132_v6 = vld [vmem:[#allocation2 + $0x8] ss:$0 sps:$4 sm:$0x11]   ;;  %v4752_v51 = vrot.slane %v4750_v18, 1 }
 0x3b8   : > { %v4755_v63 = vshll.u32 %v10132_v6, 16  ;;  %v4353_v12 = vld [vmem:[#allocation2 + $0x2c] sm:$0x1]  ;;  %v4765_v2 = vor.u32 %v4764_v33, %v4760_v7  ;;  %v5004_v21 = vrot.slane %v10132_v6, 1  ;;  %v4769_v40 = vrot.slane %v4767_v55, 1  ;;  %v10151_v47 = vld [vmem:[#allocation3 + $0xd8] sm:$0xff]  }
 0x3b9   : > { %v4753_v57 = vor.u32 %v4752_v51, %v4748_v1  ;;  %v4354_v3 = vsel %vm11873_vm10, 0, %v4353_v12  ;;  %v4415_v45 = vld [vmem:[#allocation2 + $0x24] sm:$0xf]  ;;  %v5003_v27 = vrot.slane %v8504_v14, 1  ;;  %v4416_v9 = vld [vmem:[#allocation2 + $0x28] sm:$0xf]  ;;  %v12175_v58 = vsel %vm987_vm1, %v5006_v16, %v5007_v43 }
 0x3ba   : > { %v4757_v39 = vrot.slane %v4755_v63, 1  ;;  %4355 = vst [vmem:[#allocation2 + $0x2c] sm:$0x1] %v4354_v3  ;;  %v12169_v26 = vcombine.low %v4415_v45, %v4416_v9  ;;  %v4770_v32 = vsel %vm698_vm0, %v4765_v2, %v4769_v40  ;;  %v12179_v15 = vld [vmem:[#allocation2 + $0x34] sm:$0xf]  ;;  %v8507_v29 = vcombine.low %v4460_v52, %v4416_v9  ;;  %v10163_v2 = vld [vmem:[#allocation3 + $0xe8] sm:$0xff]  }
 0x3bb   : > { %v4414_v38 = vld [vmem:[#allocation2 + $0x1c] sm:$0xf]  ;;  %v12172_v46 = vsel %vm987_vm1, %v5003_v27, %v5004_v21  ;;  %v12182_v62 = vcombine.low %v4417_v60, %v12179_v15  ;;  %v12185_v31 = vld [vmem:[#allocation2 + $0x38] ss:$0 sps:$4 sm:$0x11]   ;;  %v10154_v1 = vld [vmem:[#allocation3 + $0x98] sm:$0xff]  }
 0x3bc   : > { %v4350_v13 = vld [vmem:[#allocation2 + $0x20] sm:$0x1]  ;;  %v4758_v23 = vsel %vm698_vm0, %v4753_v57, %v4757_v39  ;;  %v4786_v24 = vshll.u32 %v12169_v26, 16  ;;  %v8506_v22 = vcombine.low %v4459_v37, %v4414_v38  ;;  %v5012_v53 = vrot.slane %v8507_v29, 1  ;;  %v4419_v61 = vld [vmem:[#allocation2 + $0x3c] sm:$0xf] }
 0x3bd   : > { %v4351_v44 = vsel %vm11873_vm10, 0, %v4350_v13  ;;  %6603 = vmatprep.mubr.bf16.mxu1 %v4758_v23  ;;  %v4784_v33 = vshrl.u32 %v12169_v26, 16  ;;  %v4798_v55 = vshll.u32 %v12182_v62, 16  ;;  %v10160_v57 = vld [vmem:[#allocation3 + $0xa0] sm:$0xff]   ;;  %v4803_v11 = vshll.u32 %v12185_v31, 16  ;;  %v10166_v40 = vld [vmem:[#allocation3 + $0xa8] sm:$0xff]  }
 0x3be   : > { %4352 = vst [vmem:[#allocation2 + $0x20] sm:$0x1] %v4351_v44  ;;  %v4413_v48 = vld [vmem:[#allocation2 + $0x18] sm:$0xf]  ;;  %6604 = vmatmul.mubr.bf16.vlgmr.msra.gmra.mrb[28].mxu1 %v8472_v30  ;;  %v4788_v34 = vrot.slane %v4786_v24, 1  ;;  %v5009_v36 = vrot.slane %v8506_v22, 1 }
 0x3bf   : > { %v8474_v28 = vcombine.low %v4413_v48, %v4414_v38  ;;  %6611 = vmatprep.mubr.bf16.mxu1 %v4770_v32  ;;  %9118 = vmatpush3.bf16.msra.mxu1 %v10136_v49  ;;  %v4800_v63 = vrot.slane %v4798_v55, 1  ;;  %v12197_v12 = vld [vmem:[#allocation2 + $0x40] sm:$0xf]  ;;  %v4796_v3 = vshrl.u32 %v12182_v62, 16  ;;  %v4805_v49 = vrot.slane %v4803_v11, 1  ;;  %v10169_v27 = vld [vmem:[#allocation3 + $0xf0] sm:$0xff]  }
 0x3c0   : > { %9119 = vmatprep.subr.bf16.mxu1 %v10139_v19  ;;  %v4789_v51 = vor.u32 %v4788_v34, %v4784_v33  ;;  %v12200_v14 = vcombine.low %v4419_v61, %v12197_v12  ;;  %v12204_v39 = vld [vmem:[#allocation2 + $0x44] ss:$0 sps:$4 sm:$0x11]   ;;  %v12206_v45 = vld [vmem:[#allocation2 + $0xa0] sm:$0xf]  ;;  %v10172_v32 = vld [vmem:[#allocation3 + $0xb0] sm:$0xff]  }
 0x3c1   : > { %v4774_v17 = vshll.u32 %v8474_v28, 16  ;;  %v10141_v8 = vld [vmem:[#allocation2 + $0x2c] ss:$0 sps:$4 sm:$0x11]   ;;  %v4772_v56 = vshrl.u32 %v8474_v28, 16  ;;  %v4801_v13 = vor.u32 %v4800_v63, %v4796_v3  ;;  %v10175_v52 = vld [vmem:[#allocation3 + $0xf8] sm:$0xff]  }
 0x3c2   : > { %v5013_v30 = vrot.slane %v10141_v8, 1  ;;  %v4791_v10 = vshll.u32 %v10141_v8, 16  ;;  %v12208_v43 = vld [vmem:[#allocation2 + $0xa4] ss:$0 sps:$4 sm:$0x11]   ;;  %v4810_v44 = vshll.u32 %v12200_v14, 16 }
 0x3c3   : > { %v4776_v59 = vrot.slane %v4774_v17, 1  ;;  %9120 = vmatpush3.bf16.msra.mxu1 %v10142_v50  ;;  %v4470_v16 = vld [vmem:[#allocation2 + $0x9c] sm:$0xe]  ;;  %v12211_v23 = vld [vmem:[#allocation2 + $0xac] sm:$0xf]  ;;  %v5043_v50 = vrot.slane %v12208_v43, 1 }
 0x3c4   : > { %9121 = vmatprep.subr.bf16.mxu1 %v10145_v41  ;;  %v12188_v18 = vsel %vm987_vm1, %v5012_v53, %v5013_v30  ;;  %v4793_v7 = vrot.slane %v4791_v10, 1  ;;  %v12213_v19 = vld [vmem:[#allocation2 + $0xb0] ss:$0 sps:$4 sm:$0x11]   ;;  %v4421_v9 = vld [vmem:[#allocation2 + $0x48] sm:$0xf]  ;;  %v8517_v38 = vcombine.low %v4470_v16, %v12206_v45  ;;  %v4806_v41 = vsel %vm698_vm0, %v4801_v13, %v4805_v49 }
 0x3c5   : > { %v10138_v5 = vld [vmem:[#allocation2 + $0x20] ss:$0 sps:$4 sm:$0x11]   ;;  %v4777_v4 = vor.u32 %v4776_v59, %v4772_v56  ;;  %v12215_v48 = vld [vmem:[#allocation2 + $0xbc] ss:$0 sps:$4 sm:$0x11]  }
 0x3c6   : > { %6612 = vmatmul.mubr.bf16.gmra.mrb[32].mxu1 %v12150_v25  ;;  %v4779_v42 = vshll.u32 %v10138_v5, 16  ;;  %v5010_v54 = vrot.slane %v10138_v5, 1  ;;  %v4794_v21 = vsel %vm698_vm0, %v4789_v51, %v4793_v7  ;;  %v4471_v17 = vld [vmem:[#allocation2 + $0xa8] sm:$0xe]  ;;  %v12222_v37 = vld [vmem:[#allocation2 + $0x4c] sm:$0xf] }
 0x3c7   : > { %9122 = vmatpush3.bf16.msra.mxu1 %v10148_v0  ;;  %v5042_v24 = vrot.slane %v8517_v38, 1  ;;  %v8518_v60 = vcombine.low %v4471_v17, %v12211_v23  ;;  %v4812_v22 = vrot.slane %v4810_v44, 1  ;;  %v4815_v29 = vshll.u32 %v12204_v39, 16  ;;  %v4472_v0 = vld [vmem:[#allocation2 + $0xb4] sm:$0xe]  ;;  %v10182_v30 = vld [vmem:[#allocation3 + $0x140] sm:$0xff]  }
 0x3c8   : > { %v4781_v35 = vrot.slane %v4779_v42, 1  ;;  %9123 = vmatprep.subr.bf16.mxu1 %v10151_v47  ;;  %v12193_v25 = vsel %vm987_vm1, %v5009_v36, %v5010_v54  ;;  %v8478_v59 = vcombine.low %v4421_v9, %v12222_v37  ;;  %v5046_v8 = vrot.slane %v12213_v19, 1  ;;  %v10178_v36 = vld [vmem:[#allocation3 + $0xb8] sm:$0xff]   ;;  %v12249_v11 = vld [vmem:[#allocation2 + $0x5c] ss:$0 sps:$4 sm:$0x11]  }
 0x3c9   : > { %v12230_v47 = vsel %vm987_vm1, %v5042_v24, %v5043_v50  ;;  %v5045_v5 = vrot.slane %v8518_v60, 1  ;;  %v5049_v34 = vrot.slane %v12215_v48, 1  ;;  %v4808_v53 = vshrl.u32 %v12200_v14, 16  ;;  %v4423_v33 = vld [vmem:[#allocation2 + $0x54] sm:$0xf] }
 0x3ca   : > { %v4782_v6 = vsel %vm698_vm0, %v4777_v4, %v4781_v35  ;;  %13395 = vst [vmem:[#allocation9_spill] sm:$0xff] %v12230_v47  ;;  %v4817_v54 = vrot.slane %v4815_v29, 1  ;;  %v4820_v61 = vshrl.u32 %v8478_v59, 16  ;;  %v12251_v3 = vld [vmem:[#allocation2 + $0x64] sm:$0xf]  ;;  %v4839_v13 = vshll.u32 %v12249_v11, 16 }
 0x3cb   : > { %6619 = vmatprep.mubr.bf16.mxu1 %v4782_v6  ;;  %9124 = vmatpush3.bf16.msra.mxu1 %v10154_v1  ;;  %v12236_v4 = vsel %vm987_vm1, %v5045_v5, %v5046_v8  ;;  %v4813_v10 = vor.u32 %v4812_v22, %v4808_v53  ;;  %v4822_v1 = vshll.u32 %v8478_v59, 16  ;;  %v12257_v16 = vld [vmem:[#allocation2 + $0x68] ss:$0 sps:$4 sm:$0x11]   ;;  %v12259_v50 = vld [vmem:[#allocation2 + $0x70] sm:$0xf] }
 0x3cc   : > { %9125 = vmatprep.subr.bf16.mxu1 %v10157_v20  ;;  %13396 = vst [vmem:[#allocation10_spill] sm:$0xff] %v12236_v4  ;;  %v12244_v20 = vld [vmem:[#allocation2 + $0x58] sm:$0xf]  ;;  %v4841_v9 = vrot.slane %v4839_v13, 1 }
 0x3cd   : > { %v4818_v6 = vsel %vm698_vm0, %v4813_v10, %v4817_v54  ;;  %v4824_v51 = vrot.slane %v4822_v1, 1  ;;  %v8479_v7 = vcombine.low %v4423_v33, %v12244_v20  ;;  %v12264_v60 = vld [vmem:[#allocation2 + $0x74] ss:$0 sps:$4 sm:$0x11]   ;;  %v4542_v1 = vld [vmem:[#allocation2 + $0x28] sm:$0xf] }
 0x3ce   : > { %6620 = vmatmul.mubr.bf16.gmra.mrb[36].mxu1 %v8474_v28  ;;  %v12218_v28 = vld [vmem:[#allocation2 + $0xb8] sm:$0xf]  ;;  %v12271_v10 = vld [vmem:[#allocation2 + $0x80] ss:$0 sps:$4 sm:$0x11]  }
 0x3cf   : > { %6627 = vmatprep.mubr.bf16.mxu1 %v4794_v21  ;;  %9126 = vmatpush3.bf16.msra.mxu1 %v10160_v57  ;;  %v8519_v56 = vcombine.low %v4472_v0, %v12218_v28  ;;  %v4825_v63 = vor.u32 %v4824_v51, %v4820_v61  ;;  %v4425_v21 = vld [vmem:[#allocation2 + $0x60] sm:$0xf]  ;;  %v4429_v0 = vld [vmem:[#allocation2 + $0x78] sm:$0xf]  ;;  %v12274_v61 = vld [vmem:[#allocation2 + $0x88] sm:$0xf] }
 0x3d0   : > { %9127 = vmatprep.subr.bf16.mxu1 %v10163_v2  ;;  %v4834_v2 = vshll.u32 %v8479_v7, 16  ;;  %v8480_v49 = vcombine.low %v4425_v21, %v12251_v3  ;;  %v10279_v33 = vld [vmem:[#allocation2 + $0x2c] ss:$0 sps:$4 sm:$0x11]  }
 0x3d1   : > { %v5048_v42 = vrot.slane %v8519_v56, 1  ;;  %v4863_v56 = vshll.u32 %v12264_v60, 16  ;;  %v5935_v21 = vrot.slane %v10279_v33, 1 }
 0x3d2   : > { %v4846_v38 = vshll.u32 %v8480_v49, 16  ;;  %v4844_v24 = vshrl.u32 %v8480_v49, 16 }
 0x3d3   : > { %9128 = vmatpush3.bf16.msra.mxu1 %v10166_v40  ;;  %v12241_v35 = vsel %vm987_vm1, %v5048_v42, %v5049_v34  ;;  %v12267_v34 = vld [vmem:[#allocation2 + $0x7c] sm:$0xf]  ;;  %v4865_v42 = vrot.slane %v4863_v56, 1 }
 0x3d4   : > { %9129 = vmatprep.subr.bf16.mxu1 %v10169_v27  ;;  %13397 = vst [vmem:[#allocation11_spill] sm:$0xff] %v12241_v35  ;;  %v4832_v27 = vshrl.u32 %v8479_v7, 16  ;;  %v4589_v35 = vld [vmem:[#allocation2 + $0x30] sm:$0xe] }
 0x3d6   : > { %6628 = vmatmul.mubr.bf16.gmra.mrb[40].mxu1 %v12169_v26  ;;  %v12238_v26 = vld [vmem:[#allocation2 + $0x50] ss:$0 sps:$4 sm:$0x11]  }
 0x3d7   : > { %6635 = vmatprep.mubr.bf16.mxu1 %v4806_v41  ;;  %9130 = vmatpush3.bf16.msra.mxu1 %v10172_v32  ;;  %v4827_v55 = vshll.u32 %v12238_v26, 16  ;;  %v4427_v32 = vld [vmem:[#allocation2 + $0x6c] sm:$0xf]  ;;  %v4848_v41 = vrot.slane %v4846_v38, 1 }
 0x3d8   : > { %9131 = vmatprep.subr.bf16.mxu1 %v10175_v52  ;;  %v8481_v17 = vcombine.low %v4427_v32, %v12259_v50  ;;  %v4851_v52 = vshll.u32 %v12257_v16, 16  ;;  %v4433_v32 = vld [vmem:[#allocation2 + $0x90] sm:$0xf] }
 0x3d9   : > { %v4829_v57 = vrot.slane %v4827_v55, 1  ;;  %v4849_v29 = vor.u32 %v4848_v41, %v4844_v24  ;;  %v4431_v55 = vld [vmem:[#allocation2 + $0x84] sm:$0xf] }
 0x3da   : > { %v4858_v22 = vshll.u32 %v8481_v17, 16  ;;  %v4853_v8 = vrot.slane %v4851_v52, 1  ;;  %v4856_v53 = vshrl.u32 %v8481_v17, 16 }
 0x3db   : > { %9132 = vmatpush3.bf16.msra.mxu1 %v10178_v36  ;;  %v4830_v40 = vsel %vm698_vm0, %v4825_v63, %v4829_v57  ;;  %v8482_v36 = vcombine.low %v4429_v0, %v12267_v34  ;;  %v4875_v63 = vshll.u32 %v12271_v10, 16  ;;  %v12290_v0 = vld [vmem:[#allocation2 + $0x98] ss:$0 sps:$4 sm:$0x11]  }
 0x3dc   : > { %9229 = vmatprep.subr.bf16.mxu1 %v10182_v30  ;;  %v4860_v5 = vrot.slane %v4858_v22, 1  ;;  %v4435_v22 = vld [vmem:[#allocation2 + $0x9c] sm:$0xf]  ;;  %13400 = vst [vmem:[#allocation14_spill] sm:$0xff] %v12290_v0  ;;  %v4899_v33 = vshll.u32 %v12290_v0, 16 }
 0x3dd   : > { %v4870_v54 = vshll.u32 %v8482_v36, 16  ;;  %v4556_v0 = vld [vmem:[#allocation2 + $0x7c] sm:$0xf] }
 0x3de   : > { %6636 = vmatmul.mubr.bf16.gmra.mrb[44].mxu1 %v12182_v62  ;;  %v4836_v62 = vrot.slane %v4834_v2, 1  ;;  %v4861_v30 = vor.u32 %v4860_v5, %v4856_v53  ;;  %v8483_v2 = vcombine.low %v4431_v55, %v12274_v61  ;;  %v4439_v53 = vld [vmem:[#allocation2 + $0xb4] sm:$0xf] }
 0x3df   : > { %6643 = vmatprep.mubr.bf16.mxu1 %v4818_v6  ;;  %v4588_v6 = vld [vmem:[#allocation2 + $0x24] sm:$0xe]  ;;  %v4872_v57 = vrot.slane %v4870_v54, 1 }
 0x3e0   : > { %v4837_v44 = vor.u32 %v4836_v62, %v4832_v27  ;;  %v4866_v51 = vsel %vm698_vm0, %v4861_v30, %v4865_v42  ;;  %v4868_v62 = vshrl.u32 %v8482_v36, 16  ;;  %v4882_v38 = vshll.u32 %v8483_v2, 16 }
 0x3e1   : > { %v12300_v42 = vcombine.low %v4439_v53, %v12218_v28  ;;  %v10291_v53 = vld [vmem:[#allocation2 + $0x5c] ss:$0 sps:$4 sm:$0x11]  }
 0x3e2   : > { %v4873_v27 = vor.u32 %v4872_v57, %v4868_v62  ;;  %v4884_v41 = vrot.slane %v4882_v38, 1 }
 0x3e3   : > { %v4930_v28 = vshll.u32 %v12300_v42, 16 }
 0x3e5   : > { %v12312_v38 = vrot.slane %v4930_v28, 1 }
 0x3e6   : > { %6644 = vmatmul.mubr.bf16.gmra.mrb[48].mxu1 %v12200_v14  ;;  %v4842_v14 = vsel %vm698_vm0, %v4837_v44, %v4841_v9  ;;  %v4877_v44 = vrot.slane %v4875_v63, 1  ;;  %v12281_v9 = vld [vmem:[#allocation2 + $0x8c] ss:$0 sps:$4 sm:$0x11]  }
 0x3e7   : > { %6651 = vmatprep.mubr.bf16.mxu1 %v4830_v40  ;;  %v4887_v52 = vshll.u32 %v12281_v9, 16 }
 0x3e9   : > { %v4889_v56 = vrot.slane %v4887_v52, 1  ;;  %v4592_v52 = vld [vmem:[#allocation2 + $0x54] sm:$0xe] }
 0x3ee   : > { %6652 = vmatmul.mubr.bf16.gmra.mrb[52].mxu1 %v8478_v59  ;;  %v4854_v59 = vsel %vm698_vm0, %v4849_v29, %v4853_v8  ;;  %v4880_v29 = vshrl.u32 %v8483_v2, 16  ;;  %v4437_v8 = vld [vmem:[#allocation2 + $0xa8] sm:$0xf] }
 0x3ef   : > { %6659 = vmatprep.mubr.bf16.mxu1 %v4842_v14  ;;  %v12283_v14 = vld [vmem:[#allocation2 + $0x94] sm:$0xf]  ;;  %v12297_v30 = vcombine.low %v4437_v8, %v12211_v23  ;;  %v4923_v23 = vshll.u32 %v12213_v19, 16 }
 0x3f0   : > { %13399 = vst [vmem:[#allocation13_spill] sm:$0xff] %v12283_v14  ;;  %v12288_v24 = vcombine.low %v4433_v32, %v12283_v14  ;;  %v4885_v5 = vor.u32 %v4884_v41, %v4880_v29  ;;  %v12314_v32 = vld [vmem:[#allocation2 + $0x44] ss:$0 sps:$4 sm:$0x11]   ;;  %v4558_v29 = vld [vmem:[#allocation2 + $0x88] sm:$0xf] }
 0x3f1   : > { %v4916_v62 = vshrl.u32 %v12297_v30, 16 }
 0x3f2   : > { %v4890_v54 = vsel %vm698_vm0, %v4885_v5, %v4889_v56  ;;  %v4540_v5 = vld [vmem:[#allocation2 + $0x1c] sm:$0xf]  ;;  %v10276_v56 = vld [vmem:[#allocation2 + $0x20] ss:$0 sps:$4 sm:$0x11]  }
 0x3f6   : > { %6660 = vmatmul.mubr.bf16.gmra.mrb[56].mxu1 %v8479_v7  ;;  %v8601_v7 = vcombine.low %v4588_v6, %v4542_v1  ;;  %v4911_v6 = vshll.u32 %v12208_v43, 16  ;;  %v4590_v43 = vld [vmem:[#allocation2 + $0x3c] sm:$0xe] }
 0x3f7   : > { %6667 = vmatprep.mubr.bf16.mxu1 %v4854_v59  ;;  %v4894_v59 = vshll.u32 %v12288_v24, 16 }
 0x3f8   : > { %v5934_v40 = vrot.slane %v8601_v7, 1 }
 0x3f9   : > { %v4896_v1 = vrot.slane %v4894_v59, 1 }
 0x3fa   : > { %v12279_v13 = vsel %vm987_vm1, %v5934_v40, %v5935_v21  ;;  %v4913_v21 = vrot.slane %v4911_v6, 1  ;;  %v4596_v6 = vld [vmem:[#allocation2 + $0x84] sm:$0xe] }
 0x3fb   : > { %13398 = vst [vmem:[#allocation12_spill] sm:$0xff] %v12279_v13  ;;  %v8609_v28 = vcombine.low %v4596_v6, %v4558_v29  ;;  %v4587_v29 = vld [vmem:[#allocation2 + $0x18] sm:$0xe]  ;;  %v10300_v6 = vld [vmem:[#allocation2 + $0x80] ss:$0 sps:$4 sm:$0x11]  }
 0x3fc   : > { %v5932_v13 = vrot.slane %v10276_v56, 1 }
 0x3fe   : > { %6668 = vmatmul.mubr.bf16.gmra.mrb[60].mxu1 %v8480_v49  ;;  %v4878_v49 = vsel %vm698_vm0, %v4873_v27, %v4877_v44  ;;  %v4925_v27 = vrot.slane %v4923_v23, 1  ;;  %v4546_v44 = vld [vmem:[#allocation2 + $0x40] sm:$0xf]  ;;  %v12317_v23 = vld [vmem:[#allocation2 + $0x8c] ss:$0 sps:$4 sm:$0x11]  }
 0x3ff   : > { %6675 = vmatprep.mubr.bf16.mxu1 %v4866_v51  ;;  %v4892_v51 = vshrl.u32 %v12288_v24, 16  ;;  %v8603_v59 = vcombine.low %v4590_v43, %v4546_v44  ;;  %v5941_v43 = vrot.slane %v12314_v32, 1  ;;  %v5959_v32 = vrot.slane %v12317_v23, 1 }
 0x401   : > { %v4897_v7 = vor.u32 %v4896_v1, %v4892_v51  ;;  %v10282_v1 = vld [vmem:[#allocation2 + $0x38] ss:$0 sps:$4 sm:$0x11]   ;;  %v10297_v51 = vld [vmem:[#allocation2 + $0x74] ss:$0 sps:$4 sm:$0x11]  }
 0x402   : > { %v5940_v44 = vrot.slane %v8603_v59, 1  ;;  %v5953_v47 = vrot.slane %v10297_v51, 1  ;;  %v5938_v14 = vrot.slane %v10282_v1, 1  ;;  %v4593_v1 = vld [vmem:[#allocation2 + $0x60] sm:$0xe] }
 0x406   : > { %6676 = vmatmul.mubr.bf16.gmra.mrb[64].mxu1 %v8481_v17  ;;  %v12294_v17 = vcombine.low %v4435_v22, %v12206_v45  ;;  %v4918_v45 = vshll.u32 %v12297_v30, 16  ;;  %v4554_v22 = vld [vmem:[#allocation2 + $0x70] sm:$0xf] }
 0x407   : > { %6683 = vmatprep.mubr.bf16.mxu1 %v4878_v49  ;;  %v4550_v49 = vld [vmem:[#allocation2 + $0x58] sm:$0xf] }
 0x408   : > { %v4906_v55 = vshll.u32 %v12294_v17, 16  ;;  %v4904_v63 = vshrl.u32 %v12294_v17, 16  ;;  %v4920_v40 = vrot.slane %v4918_v45, 1  ;;  %v4562_v45 = vld [vmem:[#allocation2 + $0xa0] sm:$0xf] }
 0x40a   : > { %v4908_v57 = vrot.slane %v4906_v55, 1  ;;  %v4921_v8 = vor.u32 %v4920_v40, %v4916_v62  ;;  %v4594_v55 = vld [vmem:[#allocation2 + $0x6c] sm:$0xe]  ;;  %v12323_v40 = vld [vmem:[#allocation2 + $0xa4] ss:$0 sps:$4 sm:$0x11]  }
 0x40c   : > { %v4909_v41 = vor.u32 %v4908_v57, %v4904_v63  ;;  %v12321_v57 = vld [vmem:[#allocation2 + $0x50] ss:$0 sps:$4 sm:$0x11]   ;;  %v4598_v63 = vld [vmem:[#allocation2 + $0x9c] sm:$0xe]  ;;  %v12326_v62 = vsel %vm698_vm0, %v4921_v8, %v4925_v27  ;;  %v5958_v27 = vrot.slane %v8609_v28, 1  ;;  %v12333_v28 = vsel %vm987_vm1, %v5940_v44, %v5941_v43 }
 0x40d   : > { %v10315_v8 = vld [vmem:[#allocation2 + $0xbc] ss:$0 sps:$4 sm:$0x11]   ;;  %13401 = vst [vmem:[#allocation15_spill] sm:$0xff] %v12333_v28  ;;  %v4595_v44 = vld [vmem:[#allocation2 + $0x78] sm:$0xe] }
 0x40e   : > { %6684 = vmatmul.mubr.bf16.gmra.mrb[68].mxu1 %v8482_v36  ;;  %v4901_v36 = vrot.slane %v4899_v33, 1  ;;  %v8605_v33 = vcombine.low %v4592_v52, %v4550_v49  ;;  %v4548_v49 = vld [vmem:[#allocation2 + $0x4c] sm:$0xf]  ;;  %v8611_v52 = vcombine.low %v4598_v63, %v4562_v45  ;;  %v10306_v45 = vld [vmem:[#allocation2 + $0x98] ss:$0 sps:$4 sm:$0x11]  }
 0x40f   : > { %6691 = vmatprep.mubr.bf16.mxu1 %v4890_v54  ;;  %v4544_v54 = vld [vmem:[#allocation2 + $0x34] sm:$0xf]  ;;  %v5965_v63 = vrot.slane %v12323_v40, 1  ;;  %v5944_v40 = vrot.slane %v12321_v57, 1  ;;  %v4564_v43 = vld [vmem:[#allocation2 + $0xac] sm:$0xf] }
 0x410   : > { %v4902_v19 = vsel %vm698_vm0, %v4897_v7, %v4901_v36  ;;  %v4914_v7 = vsel %vm698_vm0, %v4909_v41, %v4913_v21  ;;  %v5947_v21 = vrot.slane %v10291_v53, 1  ;;  %v4552_v41 = vld [vmem:[#allocation2 + $0x64] sm:$0xf]  ;;  %v8600_v36 = vcombine.low %v4587_v29, %v4540_v5  ;;  %v4560_v5 = vld [vmem:[#allocation2 + $0x94] sm:$0xf] }
 0x411   : > { %v8602_v59 = vcombine.low %v4589_v35, %v4544_v54  ;;  %v5964_v56 = vrot.slane %v8611_v52, 1  ;;  %v10312_v29 = vld [vmem:[#allocation2 + $0xb0] ss:$0 sps:$4 sm:$0x11]   ;;  %v4591_v35 = vld [vmem:[#allocation2 + $0x48] sm:$0xe] }
 0x412   : > { %v5931_v53 = vrot.slane %v8600_v36, 1  ;;  %v10318_v54 = vld [vmem:[#allocation2 + $0xc8] ss:$0 sps:$4 sm:$0x11]   ;;  %v8604_v23 = vcombine.low %v4591_v35, %v4548_v49  ;;  %v5956_v49 = vrot.slane %v10300_v6, 1 }
 0x413   : > { %v5937_v51 = vrot.slane %v8602_v59, 1  ;;  %v4568_v35 = vld [vmem:[#allocation2 + $0xc4] sm:$0xf] }
 0x415   : > { %v12343_v52 = vsel %vm987_vm1, %v5937_v51, %v5938_v14  ;;  %v12355_v51 = vsel %vm987_vm1, %v5964_v56, %v5965_v63 }
 0x416   : > { %6692 = vmatmul.mubr.bf16.gmra.mrb[72].mxu1 %v8483_v2  ;;  %v8607_v2 = vcombine.low %v4594_v55, %v4554_v22  ;;  %v4566_v22 = vld [vmem:[#allocation2 + $0xb8] sm:$0xf]  ;;  %v5946_v55 = vrot.slane %v8605_v33, 1  ;;  %v4600_v33 = vld [vmem:[#allocation2 + $0xb4] sm:$0xe]  ;;  %13406 = vst [vmem:[#allocation20_spill] sm:$0xff] %v12355_v51 }
 0x417   : > { %6699 = vmatprep.mubr.bf16.mxu1 %v4902_v19  ;;  %v10294_v19 = vld [vmem:[#allocation2 + $0x68] ss:$0 sps:$4 sm:$0x11]  }
 0x418   : > { %v5952_v4 = vrot.slane %v8607_v2, 1  ;;  %v8613_v2 = vcombine.low %v4600_v33, %v4566_v22  ;;  %v12340_v36 = vsel %vm987_vm1, %v5946_v55, %v5947_v21  ;;  %v8606_v22 = vcombine.low %v4593_v1, %v4552_v41  ;;  %v13418_v51 = vld [vmem:[#allocation11_spill] sm:$0xff] }
 0x419   : > { %13402 = vst [vmem:[#allocation16_spill] sm:$0xff] %v12340_v36  ;;  %v5950_v59 = vrot.slane %v10294_v19, 1  ;;  %v5943_v33 = vrot.slane %v8604_v23, 1  ;;  %v12349_v21 = vsel %vm987_vm1, %v5958_v27, %v5959_v32  ;;  %v5962_v41 = vrot.slane %v10306_v45, 1  ;;  %v4601_v23 = vld [vmem:[#allocation2 + $0xc0] sm:$0xe] }
 0x41a   : > { %v12346_v28 = vsel %vm987_vm1, %v5952_v4, %v5953_v47  ;;  %v5970_v57 = vrot.slane %v8613_v2, 1  ;;  %v5949_v55 = vrot.slane %v8606_v22, 1  ;;  %13404 = vst [vmem:[#allocation18_spill] sm:$0xff] %v12349_v21  ;;  %v4599_v47 = vld [vmem:[#allocation2 + $0xa8] sm:$0xe]  ;;  %v5968_v2 = vrot.slane %v10312_v29, 1 }
 0x41b   : > { %13403 = vst [vmem:[#allocation17_spill] sm:$0xff] %v12346_v28  ;;  %v12352_v14 = vsel %vm987_vm1, %v5943_v33, %v5944_v40  ;;  %v8612_v6 = vcombine.low %v4599_v47, %v4564_v43  ;;  %v8614_v45 = vcombine.low %v4601_v23, %v4568_v35  ;;  %v4928_v40 = vshrl.u32 %v12300_v42, 16  ;;  %v12390_v33 = vld [vmem:[#allocation2 + $0x1c] sm:$0xf]  ;;  %v12397_v35 = vld [vmem:[#allocation2 + $0x28] sm:$0xf] }
 0x41c   : > { %13405 = vst [vmem:[#allocation19_spill] sm:$0xff] %v12352_v14  ;;  %v12358_v4 = vsel %vm987_vm1, %v5949_v55, %v5950_v59  ;;  %v13412_v22 = vshll.u32 %v12215_v48, 16  ;;  %v4476_v48 = vld [vmem:[#allocation2 + $0x18] sm:$0xf]  ;;  %v10206_v55 = vld [vmem:[#allocation3 + $0x158] sm:$0xff]   ;;  %v10230_v23 = vld [vmem:[#allocation3 + $0x170] sm:$0xff]  }
 0x41d   : > { %13407 = vst [vmem:[#allocation21_spill] sm:$0xff] %v12358_v4  ;;  %v5967_v56 = vrot.slane %v8612_v6, 1  ;;  %v5973_v29 = vrot.slane %v8614_v45, 1  ;;  %v10217_v47 = vld [vmem:[#allocation3 + $0x120] sm:$0xff]   ;;  %v10222_v6 = vld [vmem:[#allocation3 + $0x168] sm:$0xff]  }
 0x41e   : > { %6700 = vmatmul.mubr.bf16.gmra.mrb[76].mxu1 %v12288_v24  ;;  %v12336_v24 = vsel %vm987_vm1, %v5931_v53, %v5932_v13  ;;  %v8608_v13 = vcombine.low %v4595_v44, %v4556_v0  ;;  %v4597_v53 = vld [vmem:[#allocation2 + $0x90] sm:$0xe]  ;;  %v4482_v45 = vld [vmem:[#allocation2 + $0x3c] sm:$0xf] }
 0x41f   : > { %6707 = vmatprep.mubr.bf16.mxu1 %v4914_v7  ;;  %v5971_v7 = vrot.slane %v10315_v8, 1  ;;  %v8610_v8 = vcombine.low %v4597_v53, %v4560_v5  ;;  %v5974_v5 = vrot.slane %v10318_v54, 1  ;;  %v12373_v1 = vsel %vm987_vm1, %v5967_v56, %v5968_v2  ;;  %v4474_v54 = vld [vmem:[#allocation2 + $0xc] sm:$0xf]  ;;  %v12383_v44 = vld [vmem:[#allocation2 + $0x10] sm:$0xf] }
 0x420   : > { %v5955_v19 = vrot.slane %v8608_v13, 1  ;;  %13411 = vst [vmem:[#allocation25_spill] sm:$0xff] %v12373_v1  ;;  %v12386_v43 = vcombine.low %v4474_v54, %v12383_v44  ;;  %v10190_v13 = vld [vmem:[#allocation3 + $0x148] sm:$0xff]   ;;  %v10198_v53 = vld [vmem:[#allocation3 + $0x150] sm:$0xff]  }
 0x421   : > { %v5961_v0 = vrot.slane %v8610_v8, 1  ;;  %v12365_v32 = vsel %vm987_vm1, %v5970_v57, %v5971_v7  ;;  %v4937_v7 = vrot.slane %v13412_v22, 1  ;;  %v12379_v59 = vsel %vm987_vm1, %v5973_v29, %v5974_v5  ;;  %v4478_v57 = vld [vmem:[#allocation2 + $0x24] sm:$0xf]  ;;  %v10233_v5 = vld [vmem:[#allocation3 + $0x130] sm:$0xff]   ;;  %v10241_v22 = vld [vmem:[#allocation3 + $0x138] sm:$0xff]  }
 0x422   : > { %v12362_v27 = vsel %vm987_vm1, %v5955_v19, %v5956_v49  ;;  %13409 = vst [vmem:[#allocation23_spill] sm:$0xff] %v12365_v32  ;;  %13413 = vst [vmem:[#allocation26_spill] sm:$0xff] %v12379_v59  ;;  %v10193_v49 = vld [vmem:[#allocation3 + $0x108] sm:$0xff]   ;;  %v12400_v8 = vcombine.low %v4478_v57, %v12397_v35  ;;  %v10214_v19 = vld [vmem:[#allocation3 + $0x160] sm:$0xff]  }
 0x423   : > { %13408 = vst [vmem:[#allocation22_spill] sm:$0xff] %v12362_v27  ;;  %v12369_v63 = vsel %vm987_vm1, %v5961_v0, %v5962_v41  ;;  %v4480_v41 = vld [vmem:[#allocation2 + $0x30] sm:$0xf]  ;;  %v12404_v0 = vld [vmem:[#allocation2 + $0x34] sm:$0xf] }
 0x424   : > { %13410 = vst [vmem:[#allocation24_spill] sm:$0xff] %v12369_v63  ;;  %v12407_v2 = vcombine.low %v4480_v41, %v12404_v0  ;;  %v12411_v56 = vld [vmem:[#allocation2 + $0x40] sm:$0xf]  ;;  %v4484_v54 = vld [vmem:[#allocation2 + $0x48] sm:$0xf] }
 0x425   : > { %v12414_v29 = vcombine.low %v4482_v45, %v12411_v56  ;;  %v4464_v45 = vld [vmem:[#allocation2 + $0x54] sm:$0xe]  ;;  %v10245_v21 = vld [vmem:[#allocation2 + $0x20] ss:$0 sps:$4 sm:$0x11]  }
 0x426   : > { %6708 = vmatmul.mubr.bf16.gmra.mrb[80].mxu1 %v12294_v17  ;;  %v4933_v17 = vor.u32 %v12312_v38, %v4928_v40  ;;  %v10185_v38 = vld [vmem:[#allocation3 + $0x100] sm:$0xff]   ;;  %v10238_v40 = vld [vmem:[#allocation3 + $0x178] sm:$0xff]  }
 0x427   : > { %6715 = vmatprep.mubr.bf16.mxu1 %v12326_v62 }
 0x428   : > { %v4938_v62 = vsel %vm698_vm0, %v4933_v17, %v4937_v7  ;;  %v4461_v17 = vld [vmem:[#allocation2 + $0x30] sm:$0xe]  ;;  %v10244_v7 = vld [vmem:[#allocation3 + $0x1c0] sm:$0xff]  }
 0x42e   : > { %6716 = vmatmul.mubr.bf16.gmra.mrb[84].mxu1 %v12297_v30  ;;  %v12393_v30 = vcombine.low %v4476_v48, %v12390_v33 }
 0x42f   : > { %6723 = vmatprep.mubr.bf16.mxu1 %v4938_v62  ;;  %v5016_v62 = vrot.slane %v12185_v31, 1  ;;  %v4486_v31 = vld [vmem:[#allocation2 + $0x54] sm:$0xf] }
 0x436   : > { %6724 = vmatmul.mubr.bf16.gmra.mrb[88].mxu1 %v12300_v42  ;;  %v10201_v42 = vld [vmem:[#allocation3 + $0x110] sm:$0xff]  }
 0x437   : > { %6764 = vmatprep.mubr.bf16.mxu1 %v12386_v43 }
 0x43e   : > { %6765 = vmatmul.mubr.bf16.vlgmr.msra.gmra.mrb[92].mxu1 %v12172_v46  ;;  %v10209_v46 = vld [vmem:[#allocation3 + $0x118] sm:$0xff]  }
 0x43f   : > { %6772 = vmatprep.mubr.bf16.mxu1 %v12393_v30  ;;  %9230 = vmatpush3.bf16.msra.mxu1 %v10185_v38  ;;  %v12420_v38 = vld [vmem:[#allocation2 + $0x4c] sm:$0xf] }
 0x440   : > { %9231 = vmatprep.subr.bf16.mxu1 %v10190_v13 }
 0x443   : > { %9232 = vmatpush3.bf16.msra.mxu1 %v10193_v49  ;;  %v4462_v49 = vld [vmem:[#allocation2 + $0x3c] sm:$0xe] }
 0x444   : > { %9233 = vmatprep.subr.bf16.mxu1 %v10198_v53  ;;  %v5019_v53 = vrot.slane %v12204_v39, 1  ;;  %v12438_v39 = vld [vmem:[#allocation2 + $0x64] sm:$0xf] }
 0x446   : > { %6773 = vmatmul.mubr.bf16.gmra.mrb[96].mxu1 %v12175_v58  ;;  %v10225_v58 = vld [vmem:[#allocation3 + $0x128] sm:$0xff]  }
 0x447   : > { %6780 = vmatprep.mubr.bf16.mxu1 %v12400_v8  ;;  %9234 = vmatpush3.bf16.msra.mxu1 %v10201_v42  ;;  %v12429_v42 = vld [vmem:[#allocation2 + $0x58] sm:$0xf] }
 0x448   : > { %9235 = vmatprep.subr.bf16.mxu1 %v10206_v55 }
 0x44b   : > { %9236 = vmatpush3.bf16.msra.mxu1 %v10209_v46  ;;  %v12433_v46 = vcombine.low %v4486_v31, %v12429_v42  ;;  %v5031_v31 = vrot.slane %v12264_v60, 1  ;;  %v12474_v60 = vld [vmem:[#allocation2 + $0x94] sm:$0xf] }
 0x44c   : > { %9237 = vmatprep.subr.bf16.mxu1 %v10214_v19  ;;  %v4463_v19 = vld [vmem:[#allocation2 + $0x48] sm:$0xe] }
 0x44d   : > { %v8510_v41 = vcombine.low %v4463_v19, %v12222_v37  ;;  %v4490_v37 = vld [vmem:[#allocation2 + $0x6c] sm:$0xf] }
 0x44e   : > { %6781 = vmatmul.mubr.bf16.gmra.mrb[100].mxu1 %v12193_v25  ;;  %v8508_v25 = vcombine.low %v4461_v17, %v12179_v15  ;;  %v8509_v15 = vcombine.low %v4462_v49, %v12197_v12  ;;  %v4488_v12 = vld [vmem:[#allocation2 + $0x60] sm:$0xf] }
 0x44f   : > { %6788 = vmatprep.mubr.bf16.mxu1 %v12407_v2  ;;  %9238 = vmatpush3.bf16.msra.mxu1 %v10217_v47  ;;  %v5022_v47 = vrot.slane %v12238_v26, 1  ;;  %v12447_v26 = vld [vmem:[#allocation2 + $0x70] sm:$0xf] }
 0x450   : > { %9239 = vmatprep.subr.bf16.mxu1 %v10222_v6  ;;  %v5015_v48 = vrot.slane %v8508_v25, 1  ;;  %v5018_v57 = vrot.slane %v8509_v15, 1  ;;  %v5021_v6 = vrot.slane %v8510_v41, 1  ;;  %v4466_v15 = vld [vmem:[#allocation2 + $0x6c] sm:$0xe] }
 0x451   : > { %v4467_v41 = vld [vmem:[#allocation2 + $0x78] sm:$0xe] }
 0x452   : > { %v5017_v13 = vsel %vm987_vm1, %v5015_v48, %v5016_v62  ;;  %v5020_v55 = vsel %vm987_vm1, %v5018_v57, %v5019_v53  ;;  %v8513_v53 = vcombine.low %v4466_v15, %v12259_v50  ;;  %v4496_v50 = vld [vmem:[#allocation2 + $0x90] sm:$0xf] }
 0x453   : > { %9240 = vmatpush3.bf16.msra.mxu1 %v10225_v58  ;;  %v5023_v58 = vsel %vm987_vm1, %v5021_v6, %v5022_v47  ;;  %v8514_v47 = vcombine.low %v4467_v41, %v12267_v34  ;;  %v5037_v34 = vrot.slane %v12281_v9, 1  ;;  %v13414_v9 = vld [vmem:[#allocation13_spill] sm:$0xff]  ;;  %v4500_v41 = vld [vmem:[#allocation2 + $0xa8] sm:$0xf] }
 0x454   : > { %9241 = vmatprep.subr.bf16.mxu1 %v10230_v23  ;;  %v12442_v23 = vcombine.low %v4488_v12, %v12438_v39  ;;  %v5030_v57 = vrot.slane %v8513_v53, 1  ;;  %v5034_v12 = vrot.slane %v12271_v10, 1  ;;  %v4498_v10 = vld [vmem:[#allocation2 + $0x9c] sm:$0xf] }
 0x455   : > { %v5033_v6 = vrot.slane %v8514_v47, 1 }
 0x456   : > { %6789 = vmatmul.mubr.bf16.gmra.mrb[104].mxu1 %v12188_v18  ;;  %v12424_v18 = vcombine.low %v4484_v54, %v12420_v38  ;;  %v5028_v54 = vrot.slane %v12257_v16, 1  ;;  %v12465_v16 = vld [vmem:[#allocation2 + $0x88] sm:$0xf] }
 0x457   : > { %6796 = vmatprep.mubr.bf16.mxu1 %v12414_v29  ;;  %9242 = vmatpush3.bf16.msra.mxu1 %v10233_v5  ;;  %v8511_v5 = vcombine.low %v4464_v45, %v12244_v20  ;;  %v4492_v20 = vld [vmem:[#allocation2 + $0x78] sm:$0xf]  ;;  %v12478_v45 = vcombine.low %v4496_v50, %v12474_v60 }
 0x458   : > { %9243 = vmatprep.subr.bf16.mxu1 %v10238_v40  ;;  %v5025_v40 = vrot.slane %v12249_v11, 1  ;;  %v12456_v11 = vld [vmem:[#allocation2 + $0x7c] sm:$0xf] }
 0x459   : > { %v5024_v17 = vrot.slane %v8511_v5, 1  ;;  %v12460_v49 = vcombine.low %v4492_v20, %v12456_v11  ;;  %v4468_v5 = vld [vmem:[#allocation2 + $0x84] sm:$0xe]  ;;  %v12485_v20 = vld [vmem:[#allocation2 + $0xa0] sm:$0xf] }
 0x45a   : > { %v12491_v15 = vcombine.low %v4498_v10, %v12485_v20  ;;  %v4502_v10 = vld [vmem:[#allocation2 + $0xb4] sm:$0xf] }
 0x45b   : > { %9244 = vmatpush3.bf16.msra.mxu1 %v10241_v22  ;;  %v5026_v25 = vsel %vm987_vm1, %v5024_v17, %v5025_v40  ;;  %v12451_v22 = vcombine.low %v4490_v37, %v12447_v26  ;;  %v8515_v40 = vcombine.low %v4468_v5, %v12274_v61  ;;  %v4469_v61 = vld [vmem:[#allocation2 + $0x90] sm:$0xe] }
 0x45c   : > { %9341 = vmatprep.subr.bf16.mxu1 %v10244_v7  ;;  %v4465_v7 = vld [vmem:[#allocation2 + $0x60] sm:$0xe]  ;;  %v8516_v53 = vcombine.low %v4469_v61, %v13414_v9 }
 0x45d   : > { %v8512_v62 = vcombine.low %v4465_v7, %v12251_v3  ;;  %v4494_v3 = vld [vmem:[#allocation2 + $0x84] sm:$0xf] }
 0x45e   : > { %6797 = vmatmul.mubr.bf16.gmra.mrb[108].mxu1 %v5017_v13  ;;  %v12469_v19 = vcombine.low %v4494_v3, %v12465_v16  ;;  %v13415_v3 = vld [vmem:[#allocation14_spill] sm:$0xff]  ;;  %v5039_v50 = vrot.slane %v8516_v53, 1  ;;  %v13416_v53 = vld [vmem:[#allocation9_spill] sm:$0xff] }
 0x45f   : > { %6804 = vmatprep.mubr.bf16.mxu1 %v12424_v18  ;;  %v5027_v48 = vrot.slane %v8512_v62, 1  ;;  %v5036_v62 = vrot.slane %v8515_v40, 1 }
 0x461   : > { %v5029_v13 = vsel %vm987_vm1, %v5027_v48, %v5028_v54 }
 0x466   : > { %6805 = vmatmul.mubr.bf16.gmra.mrb[112].mxu1 %v5020_v55  ;;  %v5032_v55 = vsel %vm987_vm1, %v5030_v57, %v5031_v31  ;;  %v5040_v57 = vrot.slane %v13415_v3, 1 }
 0x467   : > { %6812 = vmatprep.mubr.bf16.mxu1 %v12433_v46 }
 0x468   : > { %v5041_v40 = vsel %vm987_vm1, %v5039_v50, %v5040_v57  ;;  %v4504_v57 = vld [vmem:[#allocation2 + $0xc0] sm:$0xf]  ;;  %v12520_v50 = vld [vmem:[#allocation2 + $0xc4] sm:$0xf] }
 0x46e   : > { %6813 = vmatmul.mubr.bf16.gmra.mrb[116].mxu1 %v5023_v58  ;;  %v5035_v58 = vsel %vm987_vm1, %v5033_v6, %v5034_v12 }
 0x46f   : > { %6820 = vmatprep.mubr.bf16.mxu1 %v12442_v23 }
 0x476   : > { %6821 = vmatmul.mubr.bf16.gmra.mrb[120].mxu1 %v5026_v25 }
 0x477   : > { %6828 = vmatprep.mubr.bf16.mxu1 %v12451_v22 }
 0x47e   : > { %6829 = vmatmul.mubr.bf16.gmra.mrb[124].mxu1 %v5029_v13  ;;  %v5038_v13 = vsel %vm987_vm1, %v5036_v62, %v5037_v34 }
 0x47f   : > { %6836 = vmatprep.mubr.bf16.mxu1 %v12460_v49 }
 0x486   : > { %6837 = vmatmul.mubr.bf16.gmra.mrb[128].mxu1 %v5032_v55 }
 0x487   : > { %6844 = vmatprep.mubr.bf16.mxu1 %v12469_v19 }
 0x48e   : > { %6845 = vmatmul.mubr.bf16.gmra.mrb[132].mxu1 %v5035_v58  ;;  %v12498_v58 = vld [vmem:[#allocation2 + $0xac] sm:$0xf] }
 0x48f   : > { %6852 = vmatprep.mubr.bf16.mxu1 %v12478_v45 }
 0x491   : > { %v9021_v37 = vpop.f32.mrb[28].mxu1 }
 0x492   : > { %v9022_v17 = vpop.f32.mrb[29].mxu1 }
 0x493   : > { %v12483_v25 = vadd.f32 %v9022_v17, %v9021_v37  ;;  %v9024_v7 = vpop.f32.mrb[30].mxu1  ;;  %v12504_v37 = vcombine.low %v4500_v41, %v12498_v58 }
 0x494   : > { %v9025_v54 = vpop.f32.mrb[31].mxu1 }
 0x495   : > { %v12487_v48 = vadd.f32 %v9025_v54, %v9024_v7 }
 0x496   : > { %6853 = vmatmul.mubr.bf16.gmra.mrb[136].mxu1 %v5038_v13  ;;  %v12509_v13 = vld [vmem:[#allocation2 + $0xb8] sm:$0xf] }
 0x497   : > { %6860 = vmatprep.mubr.bf16.mxu1 %v12491_v15  ;;  %v12514_v9 = vcombine.low %v4502_v10, %v12509_v13  ;;  %v4522_v10 = vld [vmem:[#allocation2 + $0xc] sm:$0xe] }
 0x499   : > { %v9027_v31 = vpop.f32.mrb[32].mxu1 }
 0x49a   : > { %v9028_v55 = vpop.f32.mrb[33].mxu1 }
 0x49b   : > { %v12496_v47 = vadd.f32 %v9028_v55, %v9027_v31  ;;  %v9030_v12 = vpop.f32.mrb[34].mxu1 }
 0x49c   : > { %v9031_v6 = vpop.f32.mrb[35].mxu1 }
 0x49d   : > { %v12500_v5 = vadd.f32 %v9031_v6, %v9030_v12 }
 0x49e   : > { %6861 = vmatmul.mubr.bf16.gmra.mrb[140].mxu1 %v5041_v40  ;;  %v12525_v40 = vcombine.low %v4504_v57, %v12520_v50 }
 0x49f   : > { %6868 = vmatprep.mubr.bf16.mxu1 %v12504_v37 }
 0x4a1   : > { %v9033_v34 = vpop.f32.mrb[36].mxu1 }
 0x4a2   : > { %v9034_v17 = vpop.f32.mrb[37].mxu1 }
 0x4a3   : > { %v12507_v7 = vadd.f32 %v9034_v17, %v9033_v34  ;;  %v9036_v62 = vpop.f32.mrb[38].mxu1  ;;  %v13417_v34 = vld [vmem:[#allocation10_spill] sm:$0xff]  ;;  %v10243_v17 = vld [vmem:[#allocation2 + $0x14] ss:$0 sps:$4 sm:$0x11]  }
 0x4a4   : > { %v9037_v54 = vpop.f32.mrb[39].mxu1 }
 0x4a5   : > { %v12511_v61 = vadd.f32 %v9037_v54, %v9036_v62  ;;  %v8552_v62 = vcombine.low %v4522_v10, %v12383_v44  ;;  %v5214_v54 = vshll.u32 %v12386_v43, 16  ;;  %v5212_v44 = vshrl.u32 %v12386_v43, 16  ;;  %v4523_v10 = vld [vmem:[#allocation2 + $0x18] sm:$0xe] }
 0x4a6   : > { %6869 = vmatmul.mubr.bf16.gmra.mrb[144].mxu1 %v13416_v53  ;;  %v8553_v27 = vcombine.low %v4523_v10, %v12390_v33  ;;  %v5231_v33 = vshll.u32 %v10245_v21, 16 }
 0x4a7   : > { %6876 = vmatprep.mubr.bf16.mxu1 %v12514_v9  ;;  %v5467_v32 = vrot.slane %v8552_v62, 1  ;;  %v5216_v57 = vrot.slane %v5214_v54, 1 }
 0x4a9   : > { %v9039_v31 = vpop.f32.mrb[40].mxu1  ;;  %v5217_v28 = vor.u32 %v5216_v57, %v5212_v44  ;;  %v10247_v57 = vld [vmem:[#allocation2 + $0x2c] ss:$0 sps:$4 sm:$0x11]   ;;  %v5224_v44 = vshrl.u32 %v12393_v30, 16 }
 0x4aa   : > { %v9040_v3 = vpop.f32.mrb[41].mxu1 }
 0x4ab   : > { %v12518_v55 = vadd.f32 %v9040_v3, %v9039_v31  ;;  %v9042_v41 = vpop.f32.mrb[42].mxu1  ;;  %v5468_v3 = vrot.slane %v10243_v17, 1 }
 0x4ac   : > { %v9043_v12 = vpop.f32.mrb[43].mxu1 }
 0x4ad   : > { %v12522_v6 = vadd.f32 %v9043_v12, %v9042_v41  ;;  %v5469_v63 = vsel %vm987_vm1, %v5467_v32, %v5468_v3  ;;  %v5470_v32 = vrot.slane %v8553_v27, 1  ;;  %v10248_v3 = vld [vmem:[#allocation3 + $0x1c8] sm:$0xff]   ;;  %v10252_v27 = vld [vmem:[#allocation3 + $0x1d0] sm:$0xff]  }
 0x4ae   : > { %6877 = vmatmul.mubr.bf16.gmra.mrb[148].mxu1 %v13417_v34  ;;  %v5219_v34 = vshll.u32 %v10243_v17, 16 }
 0x4af   : > { %6884 = vmatprep.mubr.bf16.mxu1 %v12525_v40 }
 0x4b0   : > { %v5221_v62 = vrot.slane %v5219_v34, 1  ;;  %v4524_v34 = vld [vmem:[#allocation2 + $0x24] sm:$0xe] }
 0x4b1   : > { %v9045_v53 = vpop.f32.mrb[44].mxu1 }
 0x4b2   : > { %v9046_v31 = vpop.f32.mrb[45].mxu1 }
 0x4b3   : > { %v12531_v59 = vadd.f32 %v9046_v31, %v9045_v53  ;;  %v9048_v41 = vpop.f32.mrb[46].mxu1  ;;  %v5226_v53 = vshll.u32 %v12393_v30, 16  ;;  %v10256_v30 = vld [vmem:[#allocation3 + $0x1d8] sm:$0xff]  }
 0x4b4   : > { %v9049_v12 = vpop.f32.mrb[47].mxu1 }
 0x4b5   : > { %v12533_v1 = vadd.f32 %v9049_v12, %v9048_v41  ;;  %v5471_v41 = vrot.slane %v10245_v21, 1  ;;  %v5228_v43 = vrot.slane %v5226_v53, 1  ;;  %v5233_v53 = vrot.slane %v5231_v33, 1  ;;  %v10249_v33 = vld [vmem:[#allocation2 + $0x38] ss:$0 sps:$4 sm:$0x11]  }
 0x4b6   : > { %6885 = vmatmul.mubr.bf16.gmra.mrb[152].mxu1 %v13418_v51  ;;  %v10246_v51 = vld [vmem:[#allocation3 + $0x180] sm:$0xff]  }
 0x4b7   : > { %6925 = vmatprep.mubr.bf16.mxu1 %v5469_v63  ;;  %v5222_v63 = vsel %vm698_vm0, %v5217_v28, %v5221_v62  ;;  %v5472_v10 = vsel %vm987_vm1, %v5470_v32, %v5471_v41  ;;  %v5229_v28 = vor.u32 %v5228_v43, %v5224_v44  ;;  %v5474_v62 = vrot.slane %v10247_v57, 1  ;;  %v10254_v32 = vld [vmem:[#allocation3 + $0x190] sm:$0xff]   ;;  %v4525_v44 = vld [vmem:[#allocation2 + $0x30] sm:$0xe] }
 0x4b9   : > { %v9051_v31 = vpop.f32.mrb[48].mxu1 }
 0x4ba   : > { %v9052_v54 = vpop.f32.mrb[49].mxu1 }
 0x4bb   : > { %v12540_v12 = vadd.f32 %v9052_v54, %v9051_v31  ;;  %v9054_v17 = vpop.f32.mrb[50].mxu1  ;;  %v10250_v31 = vld [vmem:[#allocation3 + $0x188] sm:$0xff]   ;;  %v8554_v54 = vcombine.low %v4524_v34, %v12397_v35  ;;  %v5234_v35 = vsel %vm698_vm0, %v5229_v28, %v5233_v53  ;;  %v5243_v34 = vshll.u32 %v10247_v57, 16 }
 0x4bc   : > { %v9055_v4 = vpop.f32.mrb[51].mxu1  ;;  %v5477_v53 = vrot.slane %v10249_v33, 1 }
 0x4bd   : > { %v12542_v36 = vadd.f32 %v9055_v4, %v9054_v17  ;;  %v5238_v4 = vshll.u32 %v12400_v8, 16 }
 0x4be   : > { %6926 = vmatmul.mubr.bf16.vlgmr.msra.gmra.mrb[156].mxu1 %v5222_v63 }
 0x4bf   : > { %6933 = vmatprep.mubr.bf16.mxu1 %v5472_v10  ;;  %9342 = vmatpush3.bf16.msra.mxu1 %v10246_v51  ;;  %v5473_v10 = vrot.slane %v8554_v54, 1  ;;  %v8555_v54 = vcombine.low %v4525_v44, %v12404_v0  ;;  %v5255_v44 = vshll.u32 %v10249_v33, 16 }
 0x4c0   : > { %9343 = vmatprep.subr.bf16.mxu1 %v10248_v3  ;;  %v5240_v3 = vrot.slane %v5238_v4, 1  ;;  %v5245_v4 = vrot.slane %v5243_v34, 1  ;;  %v10251_v34 = vld [vmem:[#allocation2 + $0x44] ss:$0 sps:$4 sm:$0x11]  }
 0x4c1   : > { %v9057_v17 = vpop.f32.mrb[52].mxu1  ;;  %v5475_v43 = vsel %vm987_vm1, %v5473_v10, %v5474_v62  ;;  %v10262_v10 = vld [vmem:[#allocation3 + $0x1a0] sm:$0xff]  }
 0x4c2   : > { %v9058_v21 = vpop.f32.mrb[53].mxu1 }
 0x4c3   : > { %v12549_v63 = vadd.f32 %v9058_v21, %v9057_v17  ;;  %v9060_v41 = vpop.f32.mrb[54].mxu1  ;;  %9344 = vmatpush3.bf16.msra.mxu1 %v10250_v31  ;;  %v5236_v17 = vshrl.u32 %v12400_v8, 16  ;;  %v10258_v31 = vld [vmem:[#allocation3 + $0x198] sm:$0xff]   ;;  %v5250_v21 = vshll.u32 %v12407_v2, 16  ;;  %v5476_v8 = vrot.slane %v8555_v54, 1 }
 0x4c4   : > { %v9061_v51 = vpop.f32.mrb[55].mxu1  ;;  %9345 = vmatprep.subr.bf16.mxu1 %v10252_v27  ;;  %v10260_v27 = vld [vmem:[#allocation3 + $0x1e0] sm:$0xff]  }
 0x4c5   : > { %v12551_v14 = vadd.f32 %v9061_v51, %v9060_v41  ;;  %v5241_v28 = vor.u32 %v5240_v3, %v5236_v17  ;;  %v5478_v3 = vsel %vm987_vm1, %v5476_v8, %v5477_v53  ;;  %v4526_v17 = vld [vmem:[#allocation2 + $0x3c] sm:$0xe]  ;;  %v10270_v8 = vld [vmem:[#allocation3 + $0x1b0] sm:$0xff]  }
 0x4c6   : > { %6934 = vmatmul.mubr.bf16.gmra.mrb[160].mxu1 %v5234_v35  ;;  %v8556_v54 = vcombine.low %v4526_v17, %v12411_v56  ;;  %v5267_v17 = vshll.u32 %v10251_v34, 16 }
 0x4c7   : > { %6941 = vmatprep.mubr.bf16.mxu1 %v5475_v43  ;;  %9346 = vmatpush3.bf16.msra.mxu1 %v10254_v32  ;;  %v10264_v32 = vld [vmem:[#allocation3 + $0x1e8] sm:$0xff]   ;;  %v5246_v0 = vsel %vm698_vm0, %v5241_v28, %v5245_v4  ;;  %v5480_v4 = vrot.slane %v10251_v34, 1 }
 0x4c8   : > { %9347 = vmatprep.subr.bf16.mxu1 %v10256_v30  ;;  %v5252_v30 = vrot.slane %v5250_v21, 1  ;;  %v5257_v21 = vrot.slane %v5255_v44, 1  ;;  %v10253_v44 = vld [vmem:[#allocation2 + $0x50] ss:$0 sps:$4 sm:$0x11]   ;;  %v5269_v34 = vrot.slane %v5267_v17, 1 }
 0x4c9   : > { %v9063_v41 = vpop.f32.mrb[56].mxu1  ;;  %v10255_v17 = vld [vmem:[#allocation2 + $0x5c] ss:$0 sps:$4 sm:$0x11]  }
 0x4ca   : > { %v9064_v57 = vpop.f32.mrb[57].mxu1 }
 0x4cb   : > { %v12558_v51 = vadd.f32 %v9064_v57, %v9063_v41  ;;  %v9066_v62 = vpop.f32.mrb[58].mxu1  ;;  %9348 = vmatpush3.bf16.msra.mxu1 %v10258_v31  ;;  %v5248_v41 = vshrl.u32 %v12407_v2, 16  ;;  %v10266_v31 = vld [vmem:[#allocation3 + $0x1a8] sm:$0xff]   ;;  %v5262_v57 = vshll.u32 %v12414_v29, 16  ;;  %v5479_v2 = vrot.slane %v8556_v54, 1 }
 0x4cc   : > { %v9067_v35 = vpop.f32.mrb[59].mxu1  ;;  %9349 = vmatprep.subr.bf16.mxu1 %v10260_v27  ;;  %v10268_v27 = vld [vmem:[#allocation3 + $0x1f0] sm:$0xff]  }
 0x4cd   : > { %v12560_v43 = vadd.f32 %v9067_v35, %v9066_v62  ;;  %v5253_v28 = vor.u32 %v5252_v30, %v5248_v41  ;;  %v5481_v30 = vsel %vm987_vm1, %v5479_v2, %v5480_v4  ;;  %v4527_v41 = vld [vmem:[#allocation2 + $0x48] sm:$0xe] }
 0x4ce   : > { %6942 = vmatmul.mubr.bf16.gmra.mrb[164].mxu1 %v5246_v0  ;;  %v8557_v54 = vcombine.low %v4527_v41, %v12420_v38  ;;  %v5272_v41 = vshrl.u32 %v12424_v18, 16 }
 0x4cf   : > { %6949 = vmatprep.mubr.bf16.mxu1 %v5478_v3  ;;  %9350 = vmatpush3.bf16.msra.mxu1 %v10262_v10  ;;  %v10272_v10 = vld [vmem:[#allocation3 + $0x1f8] sm:$0xff]   ;;  %v5258_v56 = vsel %vm698_vm0, %v5253_v28, %v5257_v21 }
 0x4d0   : > { %9351 = vmatprep.subr.bf16.mxu1 %v10264_v32  ;;  %v5264_v32 = vrot.slane %v5262_v57, 1 }
 0x4d1   : > { %v9069_v62 = vpop.f32.mrb[60].mxu1 }
 0x4d2   : > { %v9070_v33 = vpop.f32.mrb[61].mxu1 }
 0x4d3   : > { %v12567_v35 = vadd.f32 %v9070_v33, %v9069_v62  ;;  %v9072_v53 = vpop.f32.mrb[62].mxu1  ;;  %9352 = vmatpush3.bf16.msra.mxu1 %v10266_v31  ;;  %v5260_v62 = vshrl.u32 %v12414_v29, 16  ;;  %v10274_v31 = vld [vmem:[#allocation3 + $0x1b8] sm:$0xff]   ;;  %v5274_v33 = vshll.u32 %v12424_v18, 16  ;;  %v5482_v29 = vrot.slane %v8557_v54, 1 }
 0x4d4   : > { %v9073_v0 = vpop.f32.mrb[63].mxu1  ;;  %9353 = vmatprep.subr.bf16.mxu1 %v10268_v27  ;;  %v12575_v27 = vld [vmem:[#allocation3 + $0x200] sm:$0xff]   ;;  %v5291_v18 = vshll.u32 %v10255_v17, 16 }
 0x4d5   : > { %v12569_v3 = vadd.f32 %v9073_v0, %v9072_v53  ;;  %v5265_v57 = vor.u32 %v5264_v32, %v5260_v62  ;;  %v5483_v53 = vrot.slane %v10253_v44, 1 }
 0x4d6   : > { %6950 = vmatmul.mubr.bf16.gmra.mrb[168].mxu1 %v5258_v56  ;;  %v5279_v56 = vshll.u32 %v10253_v44, 16 }
 0x4d7   : > { %6957 = vmatprep.mubr.bf16.mxu1 %v5481_v30  ;;  %9354 = vmatpush3.bf16.msra.mxu1 %v10270_v8  ;;  %v5270_v38 = vsel %vm698_vm0, %v5265_v57, %v5269_v34  ;;  %v5484_v32 = vsel %vm987_vm1, %v5482_v29, %v5483_v53  ;;  %v4528_v30 = vld [vmem:[#allocation2 + $0x54] sm:$0xe] }
 0x4d8   : > { %9355 = vmatprep.subr.bf16.mxu1 %v10272_v10  ;;  %v5276_v10 = vrot.slane %v5274_v33, 1  ;;  %v8558_v62 = vcombine.low %v4528_v30, %v12429_v42  ;;  %v4529_v30 = vld [vmem:[#allocation2 + $0x60] sm:$0xe] }
 0x4d9   : > { %v9075_v28 = vpop.f32.mrb[64].mxu1 }
 0x4da   : > { %v9076_v21 = vpop.f32.mrb[65].mxu1  ;;  %v5485_v34 = vrot.slane %v8558_v62, 1 }
 0x4db   : > { %v12578_v4 = vadd.f32 %v9076_v21, %v9075_v28  ;;  %v9078_v0 = vpop.f32.mrb[66].mxu1  ;;  %9356 = vmatpush3.bf16.msra.mxu1 %v10274_v31  ;;  %v5286_v31 = vshll.u32 %v12433_v46, 16  ;;  %v5277_v28 = vor.u32 %v5276_v10, %v5272_v41  ;;  %v5281_v21 = vrot.slane %v5279_v56, 1 }
 0x4dc   : > { %v9079_v2 = vpop.f32.mrb[67].mxu1  ;;  %9529 = vmatprep.subr.bf16.mxu1 %v12575_v27  ;;  %v5284_v10 = vshrl.u32 %v12433_v46, 16  ;;  %v8559_v56 = vcombine.low %v4529_v30, %v12438_v39  ;;  %v5298_v41 = vshll.u32 %v12442_v23, 16  ;;  %v4530_v30 = vld [vmem:[#allocation2 + $0x6c] sm:$0xe] }
 0x4dd   : > { %v12581_v8 = vadd.f32 %v9079_v2, %v9078_v0  ;;  %v5486_v2 = vrot.slane %v10255_v17, 1  ;;  %v5282_v29 = vsel %vm698_vm0, %v5277_v28, %v5281_v21 }
 0x4de   : > { %6958 = vmatmul.mubr.bf16.gmra.mrb[172].mxu1 %v5270_v38  ;;  %v5288_v38 = vrot.slane %v5286_v31, 1  ;;  %v5488_v21 = vrot.slane %v8559_v56, 1 }
 0x4df   : > { %6965 = vmatprep.mubr.bf16.mxu1 %v5484_v32  ;;  %v5487_v42 = vsel %vm987_vm1, %v5485_v34, %v5486_v2  ;;  %v10257_v32 = vld [vmem:[#allocation2 + $0x68] ss:$0 sps:$4 sm:$0x11]  }
 0x4e0   : > { %v5289_v62 = vor.u32 %v5288_v38, %v5284_v10  ;;  %v5303_v46 = vshll.u32 %v10257_v32, 16  ;;  %v5296_v38 = vshrl.u32 %v12442_v23, 16  ;;  %v5310_v10 = vshll.u32 %v12451_v22, 16 }
 0x4e1   : > { %v9081_v54 = vpop.f32.mrb[68].mxu1 }
 0x4e2   : > { %v9082_v0 = vpop.f32.mrb[69].mxu1 }
 0x4e3   : > { %v12588_v57 = vadd.f32 %v9082_v0, %v9081_v54  ;;  %v9084_v44 = vpop.f32.mrb[70].mxu1  ;;  %v5293_v0 = vrot.slane %v5291_v18, 1  ;;  %v8560_v18 = vcombine.low %v4530_v30, %v12447_v26  ;;  %v4531_v30 = vld [vmem:[#allocation2 + $0x78] sm:$0xe] }
 0x4e4   : > { %v9085_v33 = vpop.f32.mrb[71].mxu1 }
 0x4e5   : > { %v12590_v53 = vadd.f32 %v9085_v33, %v9084_v44  ;;  %v5489_v33 = vrot.slane %v10257_v32, 1  ;;  %v5294_v34 = vsel %vm698_vm0, %v5289_v62, %v5293_v0  ;;  %v5491_v0 = vrot.slane %v8560_v18, 1 }
 0x4e6   : > { %6966 = vmatmul.mubr.bf16.gmra.mrb[176].mxu1 %v5282_v29  ;;  %v5300_v29 = vrot.slane %v5298_v41, 1 }
 0x4e7   : > { %6973 = vmatprep.mubr.bf16.mxu1 %v5487_v42  ;;  %v5490_v39 = vsel %vm987_vm1, %v5488_v21, %v5489_v33  ;;  %v10259_v42 = vld [vmem:[#allocation2 + $0x74] ss:$0 sps:$4 sm:$0x11]  }
 0x4e8   : > { %v5301_v56 = vor.u32 %v5300_v29, %v5296_v38  ;;  %v5315_v23 = vshll.u32 %v10259_v42, 16  ;;  %v5308_v29 = vshrl.u32 %v12451_v22, 16  ;;  %v5322_v38 = vshll.u32 %v12460_v49, 16 }
 0x4e9   : > { %v9087_v54 = vpop.f32.mrb[72].mxu1 }
 0x4ea   : > { %v9088_v44 = vpop.f32.mrb[73].mxu1 }
 0x4eb   : > { %v12597_v28 = vadd.f32 %v9088_v44, %v9087_v54  ;;  %v9090_v17 = vpop.f32.mrb[74].mxu1  ;;  %v5305_v44 = vrot.slane %v5303_v46, 1  ;;  %v8561_v46 = vcombine.low %v4531_v30, %v12456_v11  ;;  %v4532_v30 = vld [vmem:[#allocation2 + $0x84] sm:$0xe] }
 0x4ec   : > { %v9091_v31 = vpop.f32.mrb[75].mxu1 }
 0x4ed   : > { %v12599_v2 = vadd.f32 %v9091_v31, %v9090_v17  ;;  %v5492_v31 = vrot.slane %v10259_v42, 1  ;;  %v5306_v21 = vsel %vm698_vm0, %v5301_v56, %v5305_v44  ;;  %v5494_v44 = vrot.slane %v8561_v46, 1 }
 0x4ee   : > { %6974 = vmatmul.mubr.bf16.gmra.mrb[180].mxu1 %v5294_v34  ;;  %v5312_v34 = vrot.slane %v5310_v10, 1 }
 0x4ef   : > { %6981 = vmatprep.mubr.bf16.mxu1 %v5490_v39  ;;  %v5493_v26 = vsel %vm987_vm1, %v5491_v0, %v5492_v31  ;;  %v10261_v39 = vld [vmem:[#allocation2 + $0x80] ss:$0 sps:$4 sm:$0x11]  }
 0x4f0   : > { %v5313_v18 = vor.u32 %v5312_v34, %v5308_v29  ;;  %v5327_v22 = vshll.u32 %v10261_v39, 16  ;;  %v5320_v34 = vshrl.u32 %v12460_v49, 16  ;;  %v5334_v29 = vshll.u32 %v12469_v19, 16 }
 0x4f1   : > { %v9093_v54 = vpop.f32.mrb[76].mxu1 }
 0x4f2   : > { %v9094_v17 = vpop.f32.mrb[77].mxu1 }
 0x4f3   : > { %v12606_v62 = vadd.f32 %v9094_v17, %v9093_v54  ;;  %v9096_v32 = vpop.f32.mrb[78].mxu1  ;;  %v5317_v17 = vrot.slane %v5315_v23, 1  ;;  %v8562_v23 = vcombine.low %v4532_v30, %v12465_v16  ;;  %v4533_v30 = vld [vmem:[#allocation2 + $0x90] sm:$0xe] }
 0x4f4   : > { %v9097_v41 = vpop.f32.mrb[79].mxu1 }
 0x4f5   : > { %v12608_v33 = vadd.f32 %v9097_v41, %v9096_v32  ;;  %v5495_v41 = vrot.slane %v10261_v39, 1  ;;  %v5318_v0 = vsel %vm698_vm0, %v5313_v18, %v5317_v17  ;;  %v5497_v17 = vrot.slane %v8562_v23, 1 }
 0x4f6   : > { %6982 = vmatmul.mubr.bf16.gmra.mrb[184].mxu1 %v5306_v21  ;;  %v5324_v21 = vrot.slane %v5322_v38, 1 }
 0x4f7   : > { %6989 = vmatprep.mubr.bf16.mxu1 %v5493_v26  ;;  %v5496_v11 = vsel %vm987_vm1, %v5494_v44, %v5495_v41  ;;  %v10263_v26 = vld [vmem:[#allocation2 + $0x8c] ss:$0 sps:$4 sm:$0x11]  }
 0x4f8   : > { %v5325_v46 = vor.u32 %v5324_v21, %v5320_v34  ;;  %v5339_v49 = vshll.u32 %v10263_v26, 16  ;;  %v5332_v21 = vshrl.u32 %v12469_v19, 16  ;;  %v5346_v34 = vshll.u32 %v12478_v45, 16 }
 0x4f9   : > { %v9099_v54 = vpop.f32.mrb[80].mxu1 }
 0x4fa   : > { %v9100_v32 = vpop.f32.mrb[81].mxu1 }
 0x4fb   : > { %v12615_v56 = vadd.f32 %v9100_v32, %v9099_v54  ;;  %v9102_v42 = vpop.f32.mrb[82].mxu1  ;;  %v5329_v32 = vrot.slane %v5327_v22, 1  ;;  %v8563_v22 = vcombine.low %v4533_v30, %v12474_v60  ;;  %v4534_v30 = vld [vmem:[#allocation2 + $0x9c] sm:$0xe] }
 0x4fc   : > { %v9103_v10 = vpop.f32.mrb[83].mxu1 }
 0x4fd   : > { %v12617_v31 = vadd.f32 %v9103_v10, %v9102_v42  ;;  %v5498_v10 = vrot.slane %v10263_v26, 1  ;;  %v5330_v44 = vsel %vm698_vm0, %v5325_v46, %v5329_v32  ;;  %v5500_v32 = vrot.slane %v8563_v22, 1 }
 0x4fe   : > { %6990 = vmatmul.mubr.bf16.gmra.mrb[188].mxu1 %v5318_v0  ;;  %v5336_v0 = vrot.slane %v5334_v29, 1 }
 0x4ff   : > { %6997 = vmatprep.mubr.bf16.mxu1 %v5496_v11  ;;  %v5499_v16 = vsel %vm987_vm1, %v5497_v17, %v5498_v10  ;;  %v10265_v11 = vld [vmem:[#allocation2 + $0x98] ss:$0 sps:$4 sm:$0x11]  }
 0x500   : > { %v5337_v23 = vor.u32 %v5336_v0, %v5332_v21  ;;  %v5351_v19 = vshll.u32 %v10265_v11, 16  ;;  %v5344_v0 = vshrl.u32 %v12478_v45, 16  ;;  %v8564_v21 = vcombine.low %v4534_v30, %v12485_v20  ;;  %v10269_v30 = vld [vmem:[#allocation2 + $0xb0] ss:$0 sps:$4 sm:$0x11]  }
 0x501   : > { %v9105_v54 = vpop.f32.mrb[84].mxu1 }
 0x502   : > { %v9106_v42 = vpop.f32.mrb[85].mxu1 }
 0x503   : > { %v12624_v18 = vadd.f32 %v9106_v42, %v9105_v54  ;;  %v9108_v39 = vpop.f32.mrb[86].mxu1  ;;  %v5341_v42 = vrot.slane %v5339_v49, 1  ;;  %v5358_v49 = vshll.u32 %v12491_v15, 16 }
 0x504   : > { %v9109_v38 = vpop.f32.mrb[87].mxu1 }
 0x505   : > { %v12626_v41 = vadd.f32 %v9109_v38, %v9108_v39  ;;  %v5501_v38 = vrot.slane %v10265_v11, 1  ;;  %v5342_v17 = vsel %vm698_vm0, %v5337_v23, %v5341_v42  ;;  %v5503_v42 = vrot.slane %v8564_v21, 1 }
 0x506   : > { %6998 = vmatmul.mubr.bf16.gmra.mrb[192].mxu1 %v5330_v44  ;;  %v5348_v44 = vrot.slane %v5346_v34, 1 }
 0x507   : > { %7005 = vmatprep.mubr.bf16.mxu1 %v5499_v16  ;;  %v5502_v60 = vsel %vm987_vm1, %v5500_v32, %v5501_v38  ;;  %v10267_v16 = vld [vmem:[#allocation2 + $0xa4] ss:$0 sps:$4 sm:$0x11]  }
 0x508   : > { %v5349_v22 = vor.u32 %v5348_v44, %v5344_v0  ;;  %v4535_v44 = vld [vmem:[#allocation2 + $0xa8] sm:$0xe]  ;;  %v5356_v0 = vshrl.u32 %v12491_v15, 16 }
 0x509   : > { %v9111_v54 = vpop.f32.mrb[88].mxu1 }
 0x50a   : > { %v9112_v39 = vpop.f32.mrb[89].mxu1 }
 0x50b   : > { %v12633_v46 = vadd.f32 %v9112_v39, %v9111_v54  ;;  %v9114_v26 = vpop.f32.mrb[90].mxu1  ;;  %v5353_v39 = vrot.slane %v5351_v19, 1 }
 0x50c   : > { %v9115_v29 = vpop.f32.mrb[91].mxu1 }
 0x50d   : > { %v12635_v10 = vadd.f32 %v9115_v29, %v9114_v26  ;;  %v5504_v29 = vrot.slane %v10267_v16, 1  ;;  %v5354_v45 = vsel %vm698_vm0, %v5349_v22, %v5353_v39 }
 0x50e   : > { %7006 = vmatmul.mubr.bf16.gmra.mrb[196].mxu1 %v5342_v17  ;;  %v5360_v17 = vrot.slane %v5358_v49, 1  ;;  %v5370_v49 = vshll.u32 %v12504_v37, 16 }
 0x50f   : > { %7013 = vmatprep.mubr.bf16.mxu1 %v5502_v60  ;;  %v5363_v60 = vshll.u32 %v10267_v16, 16  ;;  %v5505_v20 = vsel %vm987_vm1, %v5503_v42, %v5504_v29  ;;  %v5507_v16 = vrot.slane %v10269_v30, 1 }
 0x511   : > { %v9133_v54 = vpop.f32.mrb[92].mxu1 }
 0x512   : > { %v9134_v26 = vpop.f32.mrb[93].mxu1 }
 0x513   : > { %v9135_v23 = vadd.f32 %v9134_v26, %v9133_v54  ;;  %v9136_v34 = vpop.f32.mrb[94].mxu1  ;;  %v5361_v54 = vor.u32 %v5360_v17, %v5356_v0  ;;  %v5365_v26 = vrot.slane %v5363_v60, 1  ;;  %v4536_v17 = vld [vmem:[#allocation2 + $0xb4] sm:$0xe] }
 0x514   : > { %v9137_v11 = vpop.f32.mrb[95].mxu1 }
 0x515   : > { %v12643_v38 = vadd.f32 %v9135_v23, %v12483_v25  ;;  %v9138_v32 = vadd.f32 %v9137_v11, %v9136_v34  ;;  %v8565_v25 = vcombine.low %v4535_v44, %v12498_v58  ;;  %v5372_v11 = vrot.slane %v5370_v49, 1 }
 0x516   : > { %7014 = vmatmul.mubr.bf16.gmra.mrb[200].mxu1 %v5354_v45  ;;  %v5366_v15 = vsel %vm698_vm0, %v5361_v54, %v5365_v26  ;;  %v10271_v45 = vld [vmem:[#allocation2 + $0xbc] ss:$0 sps:$4 sm:$0x11]   ;;  %v5382_v44 = vshll.u32 %v12514_v9, 16 }
 0x517   : > { %v12648_v19 = vadd.f32 %v9138_v32, %v12487_v48  ;;  %7021 = vmatprep.mubr.bf16.mxu1 %v5505_v20  ;;  %v5506_v34 = vrot.slane %v8565_v25, 1  ;;  %v5375_v32 = vshll.u32 %v10269_v30, 16  ;;  %v5368_v20 = vshrl.u32 %v12504_v37, 16 }
 0x518   : > { %v5510_v30 = vrot.slane %v10271_v45, 1 }
 0x519   : > { %v9139_v21 = vpop.f32.mrb[96].mxu1  ;;  %v5508_v58 = vsel %vm987_vm1, %v5506_v34, %v5507_v16  ;;  %v5373_v49 = vor.u32 %v5372_v11, %v5368_v20  ;;  %v5377_v25 = vrot.slane %v5375_v32, 1  ;;  %v5387_v34 = vshll.u32 %v10271_v45, 16  ;;  %v10273_v11 = vld [vmem:[#allocation2 + $0xc8] ss:$0 sps:$4 sm:$0x11]  }
 0x51a   : > { %v9140_v22 = vpop.f32.mrb[97].mxu1  ;;  %v4537_v32 = vld [vmem:[#allocation2 + $0xc0] sm:$0xe] }
 0x51b   : > { %v9141_v39 = vadd.f32 %v9140_v22, %v9139_v21  ;;  %v9142_v23 = vpop.f32.mrb[98].mxu1  ;;  %v4539_v22 = vld [vmem:[#allocation2 + $0x18] sm:$0xf]  ;;  %v5378_v37 = vsel %vm698_vm0, %v5373_v49, %v5377_v25  ;;  %v8567_v20 = vcombine.low %v4537_v32, %v12520_v50  ;;  %v5513_v49 = vrot.slane %v10273_v11, 1 }
 0x51c   : > { %v9143_v29 = vpop.f32.mrb[99].mxu1  ;;  %v5399_v50 = vshll.u32 %v10273_v11, 16 }
 0x51d   : > { %v12654_v48 = vadd.f32 %v9141_v39, %v12496_v47  ;;  %v9144_v42 = vadd.f32 %v9143_v29, %v9142_v23  ;;  %v8566_v47 = vcombine.low %v4536_v17, %v12509_v13  ;;  %v5384_v23 = vrot.slane %v5382_v44, 1 }
 0x51e   : > { %7022 = vmatmul.mubr.bf16.gmra.mrb[204].mxu1 %v5366_v15  ;;  %v5380_v17 = vshrl.u32 %v12514_v9, 16  ;;  %v5401_v11 = vrot.slane %v5399_v50, 1 }
 0x51f   : > { %v12659_v60 = vadd.f32 %v9144_v42, %v12500_v5  ;;  %7029 = vmatprep.mubr.bf16.mxu1 %v5508_v58  ;;  %v5509_v39 = vrot.slane %v8566_v47, 1  ;;  %v10348_v42 = vld [vmem:[#allocation2 + $0x1c] sm:$0xf]  ;;  %v5389_v47 = vrot.slane %v5387_v34, 1 }
 0x520   : > { %v12669_v15 = vcombine.low %v4539_v22, %v10348_v42  ;;  %v5385_v45 = vor.u32 %v5384_v23, %v5380_v17 }
 0x521   : > { %v9145_v0 = vpop.f32.mrb[100].mxu1  ;;  %v5511_v13 = vsel %vm987_vm1, %v5509_v39, %v5510_v30 }
 0x522   : > { %v9146_v21 = vpop.f32.mrb[101].mxu1  ;;  %v5678_v25 = vshll.u32 %v12669_v15, 16  ;;  %v5390_v39 = vsel %vm698_vm0, %v5385_v45, %v5389_v47  ;;  %v5676_v17 = vshrl.u32 %v12669_v15, 16 }
 0x523   : > { %v9147_v54 = vadd.f32 %v9146_v21, %v9145_v0  ;;  %v9148_v26 = vpop.f32.mrb[102].mxu1 }
 0x524   : > { %v9149_v16 = vpop.f32.mrb[103].mxu1 }
 0x525   : > { %v12665_v5 = vadd.f32 %v9147_v54, %v12507_v7  ;;  %v9150_v29 = vadd.f32 %v9149_v16, %v9148_v26  ;;  %v5394_v7 = vshll.u32 %v12525_v40, 16  ;;  %v4541_v54 = vld [vmem:[#allocation2 + $0x24] sm:$0xf] }
 0x526   : > { %7030 = vmatmul.mubr.bf16.gmra.mrb[208].mxu1 %v5378_v37  ;;  %v10349_v37 = vld [vmem:[#allocation2 + $0x20] ss:$0 sps:$4 sm:$0x11]  }
 0x527   : > { %v12672_v58 = vadd.f32 %v9150_v29, %v12511_v61  ;;  %7037 = vmatprep.mubr.bf16.mxu1 %v5511_v13  ;;  %v5512_v61 = vrot.slane %v8567_v20, 1  ;;  %v5396_v22 = vrot.slane %v5394_v7, 1  ;;  %v5680_v29 = vrot.slane %v5678_v25, 1  ;;  %v10350_v13 = vld [vmem:[#allocation2 + $0x28] sm:$0xf] }
 0x528   : > { %v5683_v34 = vshll.u32 %v10349_v37, 16  ;;  %v12683_v42 = vcombine.low %v4541_v54, %v10350_v13 }
 0x529   : > { %v9151_v44 = vpop.f32.mrb[104].mxu1  ;;  %v5514_v23 = vsel %vm987_vm1, %v5512_v61, %v5513_v49  ;;  %v5681_v45 = vor.u32 %v5680_v29, %v5676_v17 }
 0x52a   : > { %v9152_v0 = vpop.f32.mrb[105].mxu1  ;;  %v5685_v47 = vrot.slane %v5683_v34, 1  ;;  %v5688_v29 = vshrl.u32 %v12683_v42, 16 }
 0x52b   : > { %v9153_v21 = vadd.f32 %v9152_v0, %v9151_v44  ;;  %v9154_v30 = vpop.f32.mrb[106].mxu1  ;;  %v5690_v0 = vshll.u32 %v12683_v42, 16 }
 0x52c   : > { %v9155_v26 = vpop.f32.mrb[107].mxu1 }
 0x52d   : > { %v12679_v16 = vadd.f32 %v9153_v21, %v12518_v55  ;;  %v9156_v9 = vadd.f32 %v9155_v26, %v9154_v30  ;;  %v5392_v55 = vshrl.u32 %v12525_v40, 16  ;;  %v4543_v21 = vld [vmem:[#allocation2 + $0x30] sm:$0xf]  ;;  %v5686_v26 = vsel %vm698_vm0, %v5681_v45, %v5685_v47 }
 0x52e   : > { %7038 = vmatmul.mubr.bf16.gmra.mrb[212].mxu1 %v5390_v39  ;;  %v5692_v61 = vrot.slane %v5690_v0, 1  ;;  %v10352_v39 = vld [vmem:[#allocation2 + $0x34] sm:$0xf] }
 0x52f   : > { %v12686_v32 = vadd.f32 %v9156_v9, %v12522_v6  ;;  %7045 = vmatprep.mubr.bf16.mxu1 %v5514_v23  ;;  %v5397_v20 = vor.u32 %v5396_v22, %v5392_v55  ;;  %v10351_v22 = vld [vmem:[#allocation2 + $0x2c] ss:$0 sps:$4 sm:$0x11]   ;;  %v12696_v50 = vcombine.low %v4543_v21, %v10352_v39  ;;  %v10354_v21 = vld [vmem:[#allocation2 + $0x40] sm:$0xf] }
 0x530   : > { %v5695_v9 = vshll.u32 %v10351_v22, 16  ;;  %v5693_v34 = vor.u32 %v5692_v61, %v5688_v29 }
 0x531   : > { %v9157_v7 = vpop.f32.mrb[108].mxu1  ;;  %v5402_v40 = vsel %vm698_vm0, %v5397_v20, %v5401_v11  ;;  %v5702_v55 = vshll.u32 %v12696_v50, 16  ;;  %v4545_v20 = vld [vmem:[#allocation2 + $0x3c] sm:$0xf] }
 0x532   : > { %v9158_v44 = vpop.f32.mrb[109].mxu1  ;;  %v5697_v13 = vrot.slane %v5695_v9, 1 }
 0x533   : > { %v9159_v49 = vadd.f32 %v9158_v44, %v9157_v7  ;;  %v9160_v25 = vpop.f32.mrb[110].mxu1  ;;  %v10283_v44 = vld [vmem:[#allocation3 + $0x208] sm:$0xff]   ;;  %v5704_v0 = vrot.slane %v5702_v55, 1 }
 0x534   : > { %v9161_v30 = vpop.f32.mrb[111].mxu1 }
 0x535   : > { %v12692_v6 = vadd.f32 %v9159_v49, %v12531_v59  ;;  %v9162_v54 = vadd.f32 %v9161_v30, %v9160_v25  ;;  %v10353_v49 = vld [vmem:[#allocation2 + $0x38] ss:$0 sps:$4 sm:$0x11]   ;;  %v12708_v30 = vcombine.low %v4545_v20, %v10354_v21  ;;  %v10356_v20 = vld [vmem:[#allocation2 + $0x4c] sm:$0xf] }
 0x536   : > { %7046 = vmatmul.mubr.bf16.gmra.mrb[216].mxu1 %v5402_v40  ;;  %v5707_v25 = vshll.u32 %v10353_v49, 16  ;;  %v10289_v40 = vld [vmem:[#allocation3 + $0x210] sm:$0xff]  }
 0x537   : > { %v12699_v23 = vadd.f32 %v9162_v54, %v12533_v1  ;;  %7086 = vmatprep.mubr.bf16.mxu1 %v5686_v26  ;;  %v5698_v1 = vsel %vm698_vm0, %v5693_v34, %v5697_v13  ;;  %v5714_v9 = vshll.u32 %v12708_v30, 16 }
 0x538   : > { %v5709_v22 = vrot.slane %v5707_v25, 1 }
 0x539   : > { %v9163_v59 = vpop.f32.mrb[112].mxu1  ;;  %v5716_v55 = vrot.slane %v5714_v9, 1 }
 0x53a   : > { %v9164_v37 = vpop.f32.mrb[113].mxu1 }
 0x53b   : > { %v9165_v17 = vadd.f32 %v9164_v37, %v9163_v59  ;;  %v9166_v7 = vpop.f32.mrb[114].mxu1  ;;  %v4547_v59 = vld [vmem:[#allocation2 + $0x48] sm:$0xf] }
 0x53c   : > { %v9167_v11 = vpop.f32.mrb[115].mxu1 }
 0x53d   : > { %v12704_v45 = vadd.f32 %v9165_v17, %v12540_v12  ;;  %v9168_v47 = vadd.f32 %v9167_v11, %v9166_v7  ;;  %v5700_v12 = vshrl.u32 %v12696_v50, 16  ;;  %v10355_v17 = vld [vmem:[#allocation2 + $0x44] ss:$0 sps:$4 sm:$0x11]   ;;  %v12721_v11 = vcombine.low %v4547_v59, %v10356_v20  ;;  %v10358_v59 = vld [vmem:[#allocation2 + $0x58] sm:$0xf] }
 0x53e   : > { %7087 = vmatmul.mubr.bf16.vlgmr.msra.gmra.mrb[220].mxu1 %v12669_v15  ;;  %v5719_v7 = vshll.u32 %v10355_v17, 16 }
 0x53f   : > { %v12711_v54 = vadd.f32 %v9168_v47, %v12542_v36  ;;  %7094 = vmatprep.mubr.bf16.mxu1 %v5698_v1  ;;  %9530 = vmatpush3.bf16.msra.mxu1 %v12575_v27  ;;  %v5705_v61 = vor.u32 %v5704_v0, %v5700_v12  ;;  %v10295_v36 = vld [vmem:[#allocation3 + $0x218] sm:$0xff]   ;;  %v5712_v47 = vshrl.u32 %v12708_v30, 16  ;;  %v5726_v25 = vshll.u32 %v12721_v11, 16 }
 0x540   : > { %9531 = vmatprep.subr.bf16.mxu1 %v10283_v44  ;;  %v5721_v49 = vrot.slane %v5719_v7, 1 }
 0x541   : > { %v9169_v26 = vpop.f32.mrb[116].mxu1  ;;  %v5710_v13 = vsel %vm698_vm0, %v5705_v61, %v5709_v22  ;;  %v5728_v9 = vrot.slane %v5726_v25, 1 }
 0x542   : > { %v9170_v15 = vpop.f32.mrb[117].mxu1 }
 0x543   : > { %v9171_v39 = vadd.f32 %v9170_v15, %v9169_v26  ;;  %v9172_v29 = vpop.f32.mrb[118].mxu1  ;;  %9532 = vmatpush3.bf16.msra.mxu1 %v10283_v44  ;;  %v4549_v26 = vld [vmem:[#allocation2 + $0x54] sm:$0xf] }
 0x544   : > { %v9173_v37 = vpop.f32.mrb[119].mxu1  ;;  %9533 = vmatprep.subr.bf16.mxu1 %v10289_v40 }
 0x545   : > { %v12717_v34 = vadd.f32 %v9171_v39, %v12549_v63  ;;  %v9174_v27 = vadd.f32 %v9173_v37, %v9172_v29  ;;  %v10301_v63 = vld [vmem:[#allocation3 + $0x220] sm:$0xff]   ;;  %v10357_v39 = vld [vmem:[#allocation2 + $0x50] ss:$0 sps:$4 sm:$0x11]   ;;  %v12733_v37 = vcombine.low %v4549_v26, %v10358_v59  ;;  %v10360_v26 = vld [vmem:[#allocation2 + $0x64] sm:$0xf] }
 0x546   : > { %7095 = vmatmul.mubr.bf16.gmra.mrb[224].mxu1 %v12683_v42  ;;  %v5717_v42 = vor.u32 %v5716_v55, %v5712_v47  ;;  %v5731_v29 = vshll.u32 %v10357_v39, 16 }
 0x547   : > { %v12724_v44 = vadd.f32 %v9174_v27, %v12551_v14  ;;  %7102 = vmatprep.mubr.bf16.mxu1 %v5710_v13  ;;  %9534 = vmatpush3.bf16.msra.mxu1 %v10289_v40  ;;  %v10307_v14 = vld [vmem:[#allocation3 + $0x228] sm:$0xff]   ;;  %v5738_v7 = vshll.u32 %v12733_v37, 16 }
 0x548   : > { %9535 = vmatprep.subr.bf16.mxu1 %v10295_v36  ;;  %v5722_v22 = vsel %vm698_vm0, %v5717_v42, %v5721_v49  ;;  %v5733_v17 = vrot.slane %v5731_v29, 1 }
 0x549   : > { %v9175_v1 = vpop.f32.mrb[120].mxu1  ;;  %v5740_v25 = vrot.slane %v5738_v7, 1 }
 0x54a   : > { %v9176_v0 = vpop.f32.mrb[121].mxu1 }
 0x54b   : > { %v9177_v21 = vadd.f32 %v9176_v0, %v9175_v1  ;;  %v9178_v12 = vpop.f32.mrb[122].mxu1  ;;  %9536 = vmatpush3.bf16.msra.mxu1 %v10295_v36  ;;  %v5724_v36 = vshrl.u32 %v12721_v11, 16  ;;  %v4551_v1 = vld [vmem:[#allocation2 + $0x60] sm:$0xf] }
 0x54c   : > { %v9179_v15 = vpop.f32.mrb[123].mxu1  ;;  %9537 = vmatprep.subr.bf16.mxu1 %v10301_v63 }
 0x54d   : > { %v12729_v61 = vadd.f32 %v9177_v21, %v12558_v51  ;;  %v9180_v40 = vadd.f32 %v9179_v15, %v9178_v12  ;;  %v10313_v51 = vld [vmem:[#allocation3 + $0x230] sm:$0xff]   ;;  %v10359_v21 = vld [vmem:[#allocation2 + $0x5c] ss:$0 sps:$4 sm:$0x11]   ;;  %v8574_v15 = vcombine.low %v4551_v1, %v10360_v26 }
 0x54e   : > { %7103 = vmatmul.mubr.bf16.gmra.mrb[228].mxu1 %v12696_v50  ;;  %v5729_v50 = vor.u32 %v5728_v9, %v5724_v36  ;;  %v5743_v12 = vshll.u32 %v10359_v21, 16  ;;  %v4553_v36 = vld [vmem:[#allocation2 + $0x6c] sm:$0xf] }
 0x54f   : > { %v12736_v27 = vadd.f32 %v9180_v40, %v12560_v43  ;;  %7110 = vmatprep.mubr.bf16.mxu1 %v5722_v22  ;;  %9538 = vmatpush3.bf16.msra.mxu1 %v10301_v63  ;;  %v10319_v43 = vld [vmem:[#allocation3 + $0x238] sm:$0xff]  }
 0x550   : > { %9539 = vmatprep.subr.bf16.mxu1 %v10307_v14  ;;  %v5734_v49 = vsel %vm698_vm0, %v5729_v50, %v5733_v17  ;;  %v5745_v39 = vrot.slane %v5743_v12, 1  ;;  %v10361_v17 = vld [vmem:[#allocation2 + $0x68] ss:$0 sps:$4 sm:$0x11]   ;;  %v4555_v12 = vld [vmem:[#allocation2 + $0x78] sm:$0xf] }
 0x551   : > { %v9181_v13 = vpop.f32.mrb[124].mxu1  ;;  %v5755_v7 = vshll.u32 %v10361_v17, 16 }
 0x552   : > { %v9182_v55 = vpop.f32.mrb[125].mxu1 }
 0x553   : > { %v9183_v20 = vadd.f32 %v9182_v55, %v9181_v13  ;;  %v9184_v47 = vpop.f32.mrb[126].mxu1  ;;  %9540 = vmatpush3.bf16.msra.mxu1 %v10307_v14  ;;  %v5736_v14 = vshrl.u32 %v12733_v37, 16 }
 0x554   : > { %v9185_v0 = vpop.f32.mrb[127].mxu1  ;;  %9541 = vmatprep.subr.bf16.mxu1 %v10313_v51 }
 0x555   : > { %v12741_v42 = vadd.f32 %v9183_v20, %v12567_v35  ;;  %v9186_v63 = vadd.f32 %v9185_v0, %v9184_v47  ;;  %v5741_v9 = vor.u32 %v5740_v25, %v5736_v14  ;;  %v10362_v20 = vld [vmem:[#allocation2 + $0x70] sm:$0xf]  ;;  %v5748_v0 = vshrl.u32 %v8574_v15, 16 }
 0x556   : > { %7111 = vmatmul.mubr.bf16.gmra.mrb[232].mxu1 %v12708_v30  ;;  %v5750_v30 = vshll.u32 %v8574_v15, 16  ;;  %v12754_v47 = vcombine.low %v4553_v36, %v10362_v20 }
 0x557   : > { %v12746_v40 = vadd.f32 %v9186_v63, %v12569_v3  ;;  %7118 = vmatprep.mubr.bf16.mxu1 %v5734_v49  ;;  %9542 = vmatpush3.bf16.msra.mxu1 %v10313_v51  ;;  %v5746_v51 = vsel %vm698_vm0, %v5741_v9, %v5745_v39  ;;  %v5757_v49 = vrot.slane %v5755_v7, 1  ;;  %v10363_v9 = vld [vmem:[#allocation2 + $0x74] ss:$0 sps:$4 sm:$0x11]   ;;  %v4557_v7 = vld [vmem:[#allocation2 + $0x84] sm:$0xf] }
 0x558   : > { %9543 = vmatprep.subr.bf16.mxu1 %v10319_v43  ;;  %v5752_v50 = vrot.slane %v5750_v30, 1  ;;  %v5762_v25 = vshll.u32 %v12754_v47, 16  ;;  %v5767_v39 = vshll.u32 %v10363_v9, 16  ;;  %v10364_v30 = vld [vmem:[#allocation2 + $0x7c] sm:$0xf]  ;;  %v5760_v36 = vshrl.u32 %v12754_v47, 16 }
 0x559   : > { %v9187_v35 = vpop.f32.mrb[128].mxu1 }
 0x55a   : > { %v9188_v22 = vpop.f32.mrb[129].mxu1 }
 0x55b   : > { %v9189_v29 = vadd.f32 %v9188_v22, %v9187_v35  ;;  %v9190_v59 = vpop.f32.mrb[130].mxu1  ;;  %9544 = vmatpush3.bf16.msra.mxu1 %v10319_v43  ;;  %v5764_v22 = vrot.slane %v5762_v25, 1 }
 0x55c   : > { %v9191_v13 = vpop.f32.mrb[131].mxu1 }
 0x55d   : > { %v12750_v55 = vadd.f32 %v9189_v29, %v12578_v4  ;;  %v9192_v3 = vadd.f32 %v9191_v13, %v9190_v59  ;;  %v5753_v4 = vor.u32 %v5752_v50, %v5748_v0  ;;  %v12765_v29 = vcombine.low %v4555_v12, %v10364_v30  ;;  %v4602_v0 = vld [vmem:[#allocation2 + $0xcc] sm:$0xe]  ;;  %v12778_v12 = vld [vmem:[#allocation2 + $0xd0] sm:$0xf] }
 0x55e   : > { %7119 = vmatmul.mubr.bf16.gmra.mrb[236].mxu1 %v12721_v11 }
 0x55f   : > { %v12757_v1 = vadd.f32 %v9192_v3, %v12581_v8  ;;  %7126 = vmatprep.mubr.bf16.mxu1 %v5746_v51  ;;  %v5758_v8 = vsel %vm698_vm0, %v5753_v4, %v5757_v49  ;;  %v5765_v3 = vor.u32 %v5764_v22, %v5760_v36  ;;  %v5769_v51 = vrot.slane %v5767_v39, 1  ;;  %v10365_v49 = vld [vmem:[#allocation2 + $0x80] ss:$0 sps:$4 sm:$0x11]  }
 0x560   : > { %v5779_v25 = vshll.u32 %v10365_v49, 16 }
 0x561   : > { %v9193_v43 = vpop.f32.mrb[132].mxu1 }
 0x562   : > { %v9194_v63 = vpop.f32.mrb[133].mxu1  ;;  %v5781_v39 = vrot.slane %v5779_v25, 1 }
 0x563   : > { %v9195_v11 = vadd.f32 %v9194_v63, %v9193_v43  ;;  %v9196_v21 = vpop.f32.mrb[134].mxu1 }
 0x564   : > { %v9197_v26 = vpop.f32.mrb[135].mxu1 }
 0x565   : > { %v12761_v14 = vadd.f32 %v9195_v11, %v12588_v57  ;;  %v9198_v35 = vadd.f32 %v9197_v26, %v9196_v21  ;;  %v10366_v11 = vld [vmem:[#allocation2 + $0x88] sm:$0xf] }
 0x566   : > { %7127 = vmatmul.mubr.bf16.gmra.mrb[240].mxu1 %v12733_v37  ;;  %v5774_v37 = vshll.u32 %v12765_v29, 16  ;;  %v12776_v21 = vcombine.low %v4557_v7, %v10366_v11 }
 0x567   : > { %v12768_v59 = vadd.f32 %v9198_v35, %v12590_v53  ;;  %7134 = vmatprep.mubr.bf16.mxu1 %v5758_v8  ;;  %v5770_v53 = vsel %vm698_vm0, %v5765_v3, %v5769_v51  ;;  %v8615_v35 = vcombine.low %v4602_v0, %v12778_v12 }
 0x568   : > { %v5776_v4 = vrot.slane %v5774_v37, 1  ;;  %v5786_v30 = vshll.u32 %v12776_v21, 16 }
 0x569   : > { %v9199_v13 = vpop.f32.mrb[136].mxu1  ;;  %v5976_v3 = vrot.slane %v8615_v35, 1 }
 0x56a   : > { %v9200_v57 = vpop.f32.mrb[137].mxu1  ;;  %v5788_v7 = vrot.slane %v5786_v30, 1 }
 0x56b   : > { %v9201_v50 = vadd.f32 %v9200_v57, %v9199_v13  ;;  %v9202_v17 = vpop.f32.mrb[138].mxu1  ;;  %v4559_v57 = vld [vmem:[#allocation2 + $0x90] sm:$0xf] }
 0x56c   : > { %v9203_v20 = vpop.f32.mrb[139].mxu1 }
 0x56d   : > { %v12773_v43 = vadd.f32 %v9201_v50, %v12597_v28  ;;  %v9204_v63 = vadd.f32 %v9203_v20, %v9202_v17  ;;  %v5772_v28 = vshrl.u32 %v12765_v29, 16  ;;  %v10367_v20 = vld [vmem:[#allocation2 + $0x8c] ss:$0 sps:$4 sm:$0x11]  }
 0x56e   : > { %7135 = vmatmul.mubr.bf16.gmra.mrb[244].mxu1 %v8574_v15  ;;  %v12785_v15 = vld [vmem:[#allocation2 + $0xd4] ss:$0 sps:$4 sm:$0x11]   ;;  %v5791_v0 = vshll.u32 %v10367_v20, 16 }
 0x56f   : > { %v12781_v26 = vadd.f32 %v9204_v63, %v12599_v2  ;;  %7142 = vmatprep.mubr.bf16.mxu1 %v5770_v53  ;;  %v5777_v9 = vor.u32 %v5776_v4, %v5772_v28  ;;  %v5977_v2 = vrot.slane %v12785_v15, 1  ;;  %v10368_v63 = vld [vmem:[#allocation2 + $0x94] sm:$0xf] }
 0x570   : > { %v8578_v53 = vcombine.low %v4559_v57, %v10368_v63  ;;  %v10369_v57 = vld [vmem:[#allocation2 + $0x98] ss:$0 sps:$4 sm:$0x11]  }
 0x571   : > { %v9205_v8 = vpop.f32.mrb[140].mxu1  ;;  %v5782_v17 = vsel %vm698_vm0, %v5777_v9, %v5781_v39  ;;  %v12798_v49 = vsel %vm987_vm1, %v5976_v3, %v5977_v2  ;;  %v4561_v9 = vld [vmem:[#allocation2 + $0x9c] sm:$0xf]  ;;  %v5803_v3 = vshll.u32 %v10369_v57, 16  ;;  %v10370_v2 = vld [vmem:[#allocation2 + $0xa0] sm:$0xf] }
 0x572   : > { %v9206_v22 = vpop.f32.mrb[141].mxu1  ;;  %v5798_v28 = vshll.u32 %v8578_v53, 16 }
 0x573   : > { %v9207_v36 = vadd.f32 %v9206_v22, %v9205_v8  ;;  %v9208_v13 = vpop.f32.mrb[142].mxu1 }
 0x574   : > { %v9209_v51 = vpop.f32.mrb[143].mxu1 }
 0x575   : > { %v12790_v37 = vadd.f32 %v9207_v36, %v12606_v62  ;;  %v9210_v50 = vadd.f32 %v9209_v51, %v9208_v13  ;;  %v5784_v62 = vshrl.u32 %v12776_v21, 16  ;;  %v5800_v13 = vrot.slane %v5798_v28, 1 }
 0x576   : > { %7143 = vmatmul.mubr.bf16.gmra.mrb[248].mxu1 %v12754_v47  ;;  %v5793_v47 = vrot.slane %v5791_v0, 1  ;;  %v8579_v51 = vcombine.low %v4561_v9, %v10370_v2  ;;  %v10372_v9 = vld [vmem:[#allocation2 + $0xac] sm:$0xf] }
 0x577   : > { %v12795_v4 = vadd.f32 %v9210_v50, %v12608_v33  ;;  %7150 = vmatprep.mubr.bf16.mxu1 %v5782_v17  ;;  %v5789_v35 = vor.u32 %v5788_v7, %v5784_v62  ;;  %v5796_v17 = vshrl.u32 %v8578_v53, 16 }
 0x578   : > { %v5810_v63 = vshll.u32 %v8579_v51, 16 }
 0x579   : > { %v9211_v25 = vpop.f32.mrb[144].mxu1  ;;  %v5794_v36 = vsel %vm698_vm0, %v5789_v35, %v5793_v47  ;;  %v5801_v0 = vor.u32 %v5800_v13, %v5796_v17 }
 0x57a   : > { %v9212_v11 = vpop.f32.mrb[145].mxu1  ;;  %v5812_v28 = vrot.slane %v5810_v63, 1 }
 0x57b   : > { %v9213_v8 = vadd.f32 %v9212_v11, %v9211_v25  ;;  %v9214_v22 = vpop.f32.mrb[146].mxu1 }
 0x57c   : > { %v9215_v39 = vpop.f32.mrb[147].mxu1 }
 0x57d   : > { %v12802_v30 = vadd.f32 %v9213_v8, %v12615_v56  ;;  %v9216_v33 = vadd.f32 %v9215_v39, %v9214_v22  ;;  %v5805_v56 = vrot.slane %v5803_v3, 1  ;;  %v10371_v8 = vld [vmem:[#allocation2 + $0xa4] ss:$0 sps:$4 sm:$0x11]  }
 0x57e   : > { %7151 = vmatmul.mubr.bf16.gmra.mrb[252].mxu1 %v12765_v29  ;;  %v4563_v29 = vld [vmem:[#allocation2 + $0xa8] sm:$0xf]  ;;  %v5815_v22 = vshll.u32 %v10371_v8, 16 }
 0x57f   : > { %v12807_v50 = vadd.f32 %v9216_v33, %v12617_v31  ;;  %7158 = vmatprep.mubr.bf16.mxu1 %v5794_v36  ;;  %v5806_v31 = vsel %vm698_vm0, %v5801_v0, %v5805_v56  ;;  %v8580_v39 = vcombine.low %v4563_v29, %v10372_v9  ;;  %v5808_v36 = vshrl.u32 %v8579_v51, 16  ;;  %v10374_v29 = vld [vmem:[#allocation2 + $0xb8] sm:$0xf] }
 0x581   : > { %v9217_v7 = vpop.f32.mrb[148].mxu1  ;;  %v5813_v3 = vor.u32 %v5812_v28, %v5808_v36  ;;  %v5822_v2 = vshll.u32 %v8580_v39, 16 }
 0x582   : > { %v9218_v20 = vpop.f32.mrb[149].mxu1 }
 0x583   : > { %v9219_v62 = vadd.f32 %v9218_v20, %v9217_v7  ;;  %v9220_v25 = vpop.f32.mrb[150].mxu1 }
 0x584   : > { %v9221_v11 = vpop.f32.mrb[151].mxu1 }
 0x585   : > { %v12810_v35 = vadd.f32 %v9219_v62, %v12624_v18  ;;  %v9222_v47 = vadd.f32 %v9221_v11, %v9220_v25  ;;  %v5817_v18 = vrot.slane %v5815_v22, 1  ;;  %v10373_v62 = vld [vmem:[#allocation2 + $0xb0] ss:$0 sps:$4 sm:$0x11]  }
 0x586   : > { %7159 = vmatmul.mubr.bf16.gmra.mrb[0].mxu1 %v12776_v21  ;;  %v4565_v21 = vld [vmem:[#allocation2 + $0xb4] sm:$0xf]  ;;  %v5827_v25 = vshll.u32 %v10373_v62, 16  ;;  %v4569_v62 = vld [vmem:[#allocation2 + $0xcc] sm:$0xf] }
 0x587   : > { %v12815_v33 = vadd.f32 %v9222_v47, %v12626_v41  ;;  %7166 = vmatprep.mubr.bf16.mxu1 %v5806_v31  ;;  %v5818_v63 = vsel %vm698_vm0, %v5813_v3, %v5817_v18  ;;  %v5824_v41 = vrot.slane %v5822_v2, 1  ;;  %v8581_v11 = vcombine.low %v4565_v21, %v10374_v29  ;;  %v10376_v21 = vld [vmem:[#allocation2 + $0xc4] sm:$0xf] }
 0x588   : > { %v5820_v31 = vshrl.u32 %v8580_v39, 16  ;;  %v5829_v9 = vrot.slane %v5827_v25, 1 }
 0x589   : > { %v9223_v13 = vpop.f32.mrb[152].mxu1 }
 0x58a   : > { %v9224_v57 = vpop.f32.mrb[153].mxu1  ;;  %v5825_v22 = vor.u32 %v5824_v41, %v5820_v31 }
 0x58b   : > { %v9225_v17 = vadd.f32 %v9224_v57, %v9223_v13  ;;  %v9226_v7 = vpop.f32.mrb[154].mxu1 }
 0x58c   : > { %v9227_v20 = vpop.f32.mrb[155].mxu1  ;;  %v5830_v2 = vsel %vm698_vm0, %v5825_v22, %v5829_v9  ;;  %v8583_v22 = vcombine.low %v4569_v62, %v12778_v12  ;;  %v5863_v62 = vshll.u32 %v12785_v15, 16 }
 0x58d   : > { %v12818_v0 = vadd.f32 %v9225_v17, %v12633_v46  ;;  %v9228_v56 = vadd.f32 %v9227_v20, %v9226_v7  ;;  %v5834_v46 = vshll.u32 %v8581_v11, 16  ;;  %v10375_v17 = vld [vmem:[#allocation2 + $0xbc] ss:$0 sps:$4 sm:$0x11]  }
 0x58e   : > { %7167 = vmatmul.mubr.bf16.gmra.mrb[4].mxu1 %v8578_v53  ;;  %v4567_v53 = vld [vmem:[#allocation2 + $0xc0] sm:$0xf]  ;;  %v5839_v7 = vshll.u32 %v10375_v17, 16 }
 0x58f   : > { %v12822_v47 = vadd.f32 %v9228_v56, %v12635_v10  ;;  %7174 = vmatprep.mubr.bf16.mxu1 %v5818_v63  ;;  %v5836_v10 = vrot.slane %v5834_v46, 1  ;;  %v8582_v20 = vcombine.low %v4567_v53, %v10376_v21  ;;  %v5832_v63 = vshrl.u32 %v8581_v11, 16 }
 0x591   : > { %v9245_v28 = vpop.f32.mrb[156].mxu1  ;;  %v5837_v29 = vor.u32 %v5836_v10, %v5832_v63  ;;  %v5846_v31 = vshll.u32 %v8582_v20, 16 }
 0x592   : > { %v9246_v8 = vpop.f32.mrb[157].mxu1 }
 0x593   : > { %v9247_v36 = vadd.f32 %v9246_v8, %v9245_v28  ;;  %v9248_v13 = vpop.f32.mrb[158].mxu1 }
 0x594   : > { %v9249_v57 = vpop.f32.mrb[159].mxu1 }
 0x595   : > { %v12825_v3 = vadd.f32 %v9247_v36, %v12643_v38  ;;  %v9250_v18 = vadd.f32 %v9249_v57, %v9248_v13  ;;  %v5841_v38 = vrot.slane %v5839_v7, 1  ;;  %v5848_v36 = vrot.slane %v5846_v31, 1  ;;  %v10377_v13 = vld [vmem:[#allocation2 + $0xc8] ss:$0 sps:$4 sm:$0x11]  }
 0x596   : > { %7175 = vmatmul.mubr.bf16.gmra.mrb[8].mxu1 %v8579_v51  ;;  %v5851_v53 = vshll.u32 %v10377_v13, 16 }
 0x597   : > { %v12829_v56 = vadd.f32 %v9250_v18, %v12648_v19  ;;  %7182 = vmatprep.mubr.bf16.mxu1 %v5830_v2  ;;  %v5842_v19 = vsel %vm698_vm0, %v5837_v29, %v5841_v38  ;;  %v5844_v18 = vshrl.u32 %v8582_v20, 16  ;;  %v5858_v2 = vshll.u32 %v8583_v22, 16 }
 0x598   : > { %v5853_v12 = vrot.slane %v5851_v53, 1 }
 0x599   : > { %v9251_v41 = vpop.f32.mrb[160].mxu1  ;;  %v5849_v7 = vor.u32 %v5848_v36, %v5844_v18 }
 0x59a   : > { %v9252_v25 = vpop.f32.mrb[161].mxu1 }
 0x59b   : > { %v9253_v28 = vadd.f32 %v9252_v25, %v9251_v41  ;;  %v9254_v51 = vpop.f32.mrb[162].mxu1  ;;  %v5856_v41 = vshrl.u32 %v8583_v22, 16 }
 0x59c   : > { %v9255_v8 = vpop.f32.mrb[163].mxu1 }
 0x59d   : > { %v12833_v9 = vadd.f32 %v9253_v28, %v12654_v48  ;;  %v9256_v46 = vadd.f32 %v9255_v8, %v9254_v51  ;;  %v5865_v28 = vrot.slane %v5863_v62, 1 }
 0x59e   : > { %7183 = vmatmul.mubr.bf16.gmra.mrb[12].mxu1 %v8580_v39  ;;  %v5860_v39 = vrot.slane %v5858_v2, 1 }
 0x59f   : > { %v12837_v57 = vadd.f32 %v9256_v46, %v12659_v60  ;;  %7190 = vmatprep.mubr.bf16.mxu1 %v5842_v19  ;;  %v5854_v60 = vsel %vm698_vm0, %v5849_v7, %v5853_v12 }
 0x5a0   : > { %v5861_v31 = vor.u32 %v5860_v39, %v5856_v41  ;;  %v13419_v39 = vld [vmem:[#allocation12_spill] sm:$0xff] }
 0x5a1   : > { %v9257_v10 = vpop.f32.mrb[164].mxu1 }
 0x5a2   : > { %v9258_v17 = vpop.f32.mrb[165].mxu1  ;;  %v5866_v15 = vsel %vm698_vm0, %v5861_v31, %v5865_v28  ;;  %v13420_v28 = vld [vmem:[#allocation15_spill] sm:$0xff] }
 0x5a3   : > { %v9259_v21 = vadd.f32 %v9258_v17, %v9257_v10  ;;  %v9260_v48 = vpop.f32.mrb[166].mxu1 }
 0x5a4   : > { %v9261_v63 = vpop.f32.mrb[167].mxu1 }
 0x5a5   : > { %v12841_v25 = vadd.f32 %v9259_v21, %v12665_v5  ;;  %v9262_v29 = vadd.f32 %v9261_v63, %v9260_v48 }
 0x5a6   : > { %7191 = vmatmul.mubr.bf16.gmra.mrb[16].mxu1 %v8581_v11 }
 0x5a7   : > { %v12845_v38 = vadd.f32 %v9262_v29, %v12672_v58  ;;  %7198 = vmatprep.mubr.bf16.mxu1 %v5854_v60 }
 0x5a9   : > { %v9263_v51 = vpop.f32.mrb[168].mxu1 }
 0x5aa   : > { %v9264_v8 = vpop.f32.mrb[169].mxu1 }
 0x5ab   : > { %v9265_v46 = vadd.f32 %v9264_v8, %v9263_v51  ;;  %v9266_v19 = vpop.f32.mrb[170].mxu1  ;;  %v13421_v51 = vld [vmem:[#allocation19_spill] sm:$0xff] }
 0x5ac   : > { %v9267_v36 = vpop.f32.mrb[171].mxu1 }
 0x5ad   : > { %v12849_v5 = vadd.f32 %v9265_v46, %v12679_v16  ;;  %v9268_v13 = vadd.f32 %v9267_v36, %v9266_v19 }
 0x5ae   : > { %7199 = vmatmul.mubr.bf16.gmra.mrb[20].mxu1 %v8582_v20 }
 0x5af   : > { %v12852_v11 = vadd.f32 %v9268_v13, %v12686_v32  ;;  %7206 = vmatprep.mubr.bf16.mxu1 %v5866_v15  ;;  %v13422_v13 = vld [vmem:[#allocation16_spill] sm:$0xff] }
 0x5b1   : > { %v9269_v58 = vpop.f32.mrb[172].mxu1 }
 0x5b2   : > { %v9270_v53 = vpop.f32.mrb[173].mxu1 }
 0x5b3   : > { %v9271_v18 = vadd.f32 %v9270_v53, %v9269_v58  ;;  %v9272_v2 = vpop.f32.mrb[174].mxu1  ;;  %v13423_v58 = vld [vmem:[#allocation21_spill] sm:$0xff] }
 0x5b4   : > { %v9273_v10 = vpop.f32.mrb[175].mxu1 }
 0x5b5   : > { %v12855_v17 = vadd.f32 %v9271_v18, %v12692_v6  ;;  %v9274_v7 = vadd.f32 %v9273_v10, %v9272_v2 }
 0x5b6   : > { %7207 = vmatmul.mubr.bf16.gmra.mrb[24].mxu1 %v8583_v22 }
 0x5b7   : > { %v12858_v12 = vadd.f32 %v9274_v7, %v12699_v23  ;;  %9545 = vmatprep.mubr.bf16.mxu1 %v12336_v24 }
 0x5b9   : > { %v9275_v16 = vpop.f32.mrb[176].mxu1 }
 0x5ba   : > { %v9276_v20 = vpop.f32.mrb[177].mxu1 }
 0x5bb   : > { %v9277_v32 = vadd.f32 %v9276_v20, %v9275_v16  ;;  %v9278_v21 = vpop.f32.mrb[178].mxu1  ;;  %v13424_v20 = vld [vmem:[#allocation17_spill] sm:$0xff] }
 0x5bc   : > { %v9279_v48 = vpop.f32.mrb[179].mxu1 }
 0x5bd   : > { %v12862_v63 = vadd.f32 %v9277_v32, %v12704_v45  ;;  %v9280_v41 = vadd.f32 %v9279_v48, %v9278_v21  ;;  %v13425_v32 = vld [vmem:[#allocation22_spill] sm:$0xff] }
 0x5be   : > { %9546 = vmatmul.mubr.bf16.vlgmr.msra.gmra.mrb[28].mxu1 %v13419_v39 }
 0x5bf   : > { %v12866_v6 = vadd.f32 %v9280_v41, %v12711_v54  ;;  %9549 = vmatprep.mubr.bf16.mxu1 %v12343_v52 }
 0x5c1   : > { %v9281_v23 = vpop.f32.mrb[180].mxu1 }
 0x5c2   : > { %v9282_v22 = vpop.f32.mrb[181].mxu1 }
 0x5c3   : > { %v9283_v62 = vadd.f32 %v9282_v22, %v9281_v23  ;;  %v9284_v24 = vpop.f32.mrb[182].mxu1 }
 0x5c4   : > { %v9285_v29 = vpop.f32.mrb[183].mxu1 }
 0x5c5   : > { %v12870_v60 = vadd.f32 %v9283_v62, %v12717_v34  ;;  %v9286_v31 = vadd.f32 %v9285_v29, %v9284_v24  ;;  %v13426_v62 = vld [vmem:[#allocation18_spill] sm:$0xff]  ;;  %v13427_v24 = vld [vmem:[#allocation24_spill] sm:$0xff] }
 0x5c6   : > { %9550 = vmatmul.mubr.bf16.gmra.mrb[32].mxu1 %v13420_v28 }
 0x5c7   : > { %v12874_v45 = vadd.f32 %v9286_v31, %v12724_v44  ;;  %9553 = vmatprep.mubr.bf16.mxu1 %v13421_v51 }
 0x5c9   : > { %v9287_v54 = vpop.f32.mrb[184].mxu1 }
 0x5ca   : > { %v9288_v8 = vpop.f32.mrb[185].mxu1 }
 0x5cb   : > { %v9289_v46 = vadd.f32 %v9288_v8, %v9287_v54  ;;  %v9290_v52 = vpop.f32.mrb[186].mxu1 }
 0x5cc   : > { %v9291_v19 = vpop.f32.mrb[187].mxu1 }
 0x5cd   : > { %v12878_v36 = vadd.f32 %v9289_v46, %v12729_v61  ;;  %v9292_v15 = vadd.f32 %v9291_v19, %v9290_v52  ;;  %v13428_v46 = vld [vmem:[#allocation20_spill] sm:$0xff]  ;;  %v13429_v52 = vld [vmem:[#allocation25_spill] sm:$0xff] }
 0x5ce   : > { %9554 = vmatmul.mubr.bf16.gmra.mrb[36].mxu1 %v13422_v13 }
 0x5cf   : > { %v12882_v34 = vadd.f32 %v9292_v15, %v12736_v27  ;;  %9557 = vmatprep.mubr.bf16.mxu1 %v13423_v58 }
 0x5d1   : > { %v9293_v44 = vpop.f32.mrb[188].mxu1 }
 0x5d2   : > { %v9294_v53 = vpop.f32.mrb[189].mxu1 }
 0x5d3   : > { %v9295_v18 = vadd.f32 %v9294_v53, %v9293_v44  ;;  %v9296_v2 = vpop.f32.mrb[190].mxu1 }
 0x5d4   : > { %v9297_v10 = vpop.f32.mrb[191].mxu1 }
 0x5d5   : > { %v12886_v7 = vadd.f32 %v9295_v18, %v12741_v42  ;;  %v9298_v16 = vadd.f32 %v9297_v10, %v9296_v2  ;;  %v13430_v18 = vld [vmem:[#allocation23_spill] sm:$0xff]  ;;  %v13431_v2 = vld [vmem:[#allocation26_spill] sm:$0xff] }
 0x5d6   : > { %9558 = vmatmul.mubr.bf16.gmra.mrb[40].mxu1 %v13424_v20 }
 0x5d7   : > { %v12890_v61 = vadd.f32 %v9298_v16, %v12746_v40  ;;  %9561 = vmatprep.mubr.bf16.mxu1 %v13425_v32 }
 0x5d9   : > { %v9299_v27 = vpop.f32.mrb[192].mxu1 }
 0x5da   : > { %v9300_v21 = vpop.f32.mrb[193].mxu1 }
 0x5db   : > { %v9301_v48 = vadd.f32 %v9300_v21, %v9299_v27  ;;  %v9302_v41 = vpop.f32.mrb[194].mxu1 }
 0x5dc   : > { %v9303_v39 = vpop.f32.mrb[195].mxu1 }
 0x5dd   : > { %v12894_v23 = vadd.f32 %v9301_v48, %v12750_v55  ;;  %v9304_v22 = vadd.f32 %v9303_v39, %v9302_v41 }
 0x5de   : > { %9562 = vmatmul.mubr.bf16.gmra.mrb[44].mxu1 %v13426_v62 }
 0x5df   : > { %v12898_v42 = vadd.f32 %v9304_v22, %v12757_v1  ;;  %9565 = vmatprep.mubr.bf16.mxu1 %v13427_v24 }
 0x5e1   : > { %v9305_v40 = vpop.f32.mrb[196].mxu1 }
 0x5e2   : > { %v9306_v29 = vpop.f32.mrb[197].mxu1 }
 0x5e3   : > { %v9307_v31 = vadd.f32 %v9306_v29, %v9305_v40  ;;  %v9308_v28 = vpop.f32.mrb[198].mxu1 }
 0x5e4   : > { %v9309_v51 = vpop.f32.mrb[199].mxu1 }
 0x5e5   : > { %v12902_v54 = vadd.f32 %v9307_v31, %v12761_v14  ;;  %v9310_v8 = vadd.f32 %v9309_v51, %v9308_v28 }
 0x5e6   : > { %9566 = vmatmul.mubr.bf16.gmra.mrb[48].mxu1 %v13428_v46 }
 0x5e7   : > { %v12906_v55 = vadd.f32 %v9310_v8, %v12768_v59  ;;  %9569 = vmatprep.mubr.bf16.mxu1 %v13429_v52 }
 0x5e9   : > { %v9311_v1 = vpop.f32.mrb[200].mxu1 }
 0x5ea   : > { %v9312_v19 = vpop.f32.mrb[201].mxu1 }
 0x5eb   : > { %v9313_v15 = vadd.f32 %v9312_v19, %v9311_v1  ;;  %v9314_v13 = vpop.f32.mrb[202].mxu1 }
 0x5ec   : > { %v9315_v58 = vpop.f32.mrb[203].mxu1 }
 0x5ed   : > { %v12910_v44 = vadd.f32 %v9313_v15, %v12773_v43  ;;  %v9316_v53 = vadd.f32 %v9315_v58, %v9314_v13 }
 0x5ee   : > { %9570 = vmatmul.mubr.bf16.gmra.mrb[52].mxu1 %v13430_v18 }
 0x5ef   : > { %v12914_v14 = vadd.f32 %v9316_v53, %v12781_v26  ;;  %9573 = vmatprep.mubr.bf16.mxu1 %v13431_v2 }
 0x5f1   : > { %v9317_v59 = vpop.f32.mrb[204].mxu1 }
 0x5f2   : > { %v9318_v10 = vpop.f32.mrb[205].mxu1 }
 0x5f3   : > { %v9319_v16 = vadd.f32 %v9318_v10, %v9317_v59  ;;  %v9320_v20 = vpop.f32.mrb[206].mxu1 }
 0x5f4   : > { %v9321_v32 = vpop.f32.mrb[207].mxu1 }
 0x5f5   : > { %v12918_v27 = vadd.f32 %v9319_v16, %v12790_v37  ;;  %v9322_v21 = vadd.f32 %v9321_v32, %v9320_v20 }
 0x5f6   : > { %9574 = vmatmul.mubr.bf16.gmra.mrb[56].mxu1 %v12798_v49 }
 0x5f7   : > { %v12922_v43 = vadd.f32 %v9322_v21, %v12795_v4 }
 0x5f9   : > { %v9323_v48 = vpop.f32.mrb[208].mxu1 }
 0x5fa   : > { %v9324_v41 = vpop.f32.mrb[209].mxu1 }
 0x5fb   : > { %v9325_v26 = vadd.f32 %v9324_v41, %v9323_v48  ;;  %v9326_v39 = vpop.f32.mrb[210].mxu1 }
 0x5fc   : > { %v9327_v22 = vpop.f32.mrb[211].mxu1 }
 0x5fd   : > { %v12925_v62 = vadd.f32 %v9325_v26, %v12802_v30  ;;  %v9328_v24 = vadd.f32 %v9327_v22, %v9326_v39 }
 0x5ff   : > { %v12928_v40 = vadd.f32 %v9328_v24, %v12807_v50 }
 0x601   : > { %v9329_v37 = vpop.f32.mrb[212].mxu1 }
 0x602   : > { %v9330_v29 = vpop.f32.mrb[213].mxu1 }
 0x603   : > { %v9331_v31 = vadd.f32 %v9330_v29, %v9329_v37  ;;  %v9332_v28 = vpop.f32.mrb[214].mxu1 }
 0x604   : > { %v9333_v49 = vpop.f32.mrb[215].mxu1 }
 0x605   : > { %v12931_v4 = vadd.f32 %v9331_v31, %v12810_v35  ;;  %v9334_v51 = vadd.f32 %v9333_v49, %v9332_v28 }
 0x607   : > { %v12934_v8 = vadd.f32 %v9334_v51, %v12815_v33 }
 0x609   : > { %v9335_v46 = vpop.f32.mrb[216].mxu1 }
 0x60a   : > { %v9336_v52 = vpop.f32.mrb[217].mxu1 }
 0x60b   : > { %v9337_v30 = vadd.f32 %v9336_v52, %v9335_v46  ;;  %v9338_v1 = vpop.f32.mrb[218].mxu1 }
 0x60c   : > { %v9339_v19 = vpop.f32.mrb[219].mxu1 }
 0x60d   : > { %v12937_v50 = vadd.f32 %v9337_v30, %v12818_v0  ;;  %v9340_v15 = vadd.f32 %v9339_v19, %v9338_v1 }
 0x60f   : > { %v12940_v13 = vadd.f32 %v9340_v15, %v12822_v47 }
 0x611   : > { %v9357_v58 = vpop.f32.mrb[220].mxu1 }
 0x612   : > { %v9358_v53 = vpop.f32.mrb[221].mxu1 }
 0x613   : > { %v9359_v35 = vadd.f32 %v9358_v53, %v9357_v58  ;;  %v9360_v18 = vpop.f32.mrb[222].mxu1 }
 0x614   : > { %v9361_v2 = vpop.f32.mrb[223].mxu1 }
 0x615   : > { %v9362_v59 = vadd.f32 %v9361_v2, %v9360_v18  ;;  %v12943_v16 = vadd.f32 %v9359_v35, %v12825_v3 }
 0x617   : > { %v12952_v41 = vadd.f32 %v9362_v59, %v12829_v56 }
 0x619   : > { %v9363_v33 = vpop.f32.mrb[224].mxu1 }
 0x61a   : > { %v9364_v10 = vpop.f32.mrb[225].mxu1 }
 0x61b   : > { %v9365_v20 = vadd.f32 %v9364_v10, %v9363_v33  ;;  %v9366_v32 = vpop.f32.mrb[226].mxu1 }
 0x61c   : > { %v9367_v21 = vpop.f32.mrb[227].mxu1 }
 0x61d   : > { %v9368_v0 = vadd.f32 %v9367_v21, %v9366_v32  ;;  %v12946_v48 = vadd.f32 %v9365_v20, %v12833_v9 }
 0x61f   : > { %v12949_v47 = vadd.f32 %v9368_v0, %v12837_v57 }
 0x621   : > { %v9369_v26 = vpop.f32.mrb[228].mxu1 }
 0x622   : > { %v9370_v39 = vpop.f32.mrb[229].mxu1 }
 0x623   : > { %v9371_v22 = vadd.f32 %v9370_v39, %v9369_v26  ;;  %v9372_v24 = vpop.f32.mrb[230].mxu1 }
 0x624   : > { %v9373_v37 = vpop.f32.mrb[231].mxu1 }
 0x625   : > { %v9374_v3 = vadd.f32 %v9373_v37, %v9372_v24  ;;  %v12955_v29 = vadd.f32 %v9371_v22, %v12841_v25 }
 0x627   : > { %v12958_v31 = vadd.f32 %v9374_v3, %v12845_v38 }
 0x629   : > { %v9375_v9 = vpop.f32.mrb[232].mxu1 }
 0x62a   : > { %v9376_v28 = vpop.f32.mrb[233].mxu1 }
 0x62b   : > { %v9377_v49 = vadd.f32 %v9376_v28, %v9375_v9  ;;  %v9378_v57 = vpop.f32.mrb[234].mxu1 }
 0x62c   : > { %v9379_v51 = vpop.f32.mrb[235].mxu1 }
 0x62d   : > { %v9380_v46 = vadd.f32 %v9379_v51, %v9378_v57  ;;  %v12961_v56 = vadd.f32 %v9377_v49, %v12849_v5 }
 0x62f   : > { %v12964_v52 = vadd.f32 %v9380_v46, %v12852_v11 }
 0x631   : > { %v9381_v30 = vpop.f32.mrb[236].mxu1 }
 0x632   : > { %v9382_v1 = vpop.f32.mrb[237].mxu1 }
 0x633   : > { %v9383_v19 = vadd.f32 %v9382_v1, %v9381_v30  ;;  %v9384_v25 = vpop.f32.mrb[238].mxu1 }
 0x634   : > { %v9385_v15 = vpop.f32.mrb[239].mxu1 }
 0x635   : > { %v9386_v58 = vadd.f32 %v9385_v15, %v9384_v25  ;;  %v12967_v38 = vadd.f32 %v9383_v19, %v12855_v17 }
 0x637   : > { %v12970_v53 = vadd.f32 %v9386_v58, %v12858_v12 }
 0x639   : > { %v9387_v35 = vpop.f32.mrb[240].mxu1 }
 0x63a   : > { %v9388_v18 = vpop.f32.mrb[241].mxu1 }
 0x63b   : > { %v9389_v2 = vadd.f32 %v9388_v18, %v9387_v35  ;;  %v9390_v5 = vpop.f32.mrb[242].mxu1 }
 0x63c   : > { %v9391_v59 = vpop.f32.mrb[243].mxu1 }
 0x63d   : > { %v9392_v33 = vadd.f32 %v9391_v59, %v9390_v5  ;;  %v12973_v11 = vadd.f32 %v9389_v2, %v12862_v63 }
 0x63f   : > { %v12976_v10 = vadd.f32 %v9392_v33, %v12866_v6 }
 0x641   : > { %v9393_v20 = vpop.f32.mrb[244].mxu1 }
 0x642   : > { %v9394_v32 = vpop.f32.mrb[245].mxu1 }
 0x643   : > { %v9395_v21 = vadd.f32 %v9394_v32, %v9393_v20  ;;  %v9396_v17 = vpop.f32.mrb[246].mxu1 }
 0x644   : > { %v9397_v0 = vpop.f32.mrb[247].mxu1 }
 0x645   : > { %v9398_v26 = vadd.f32 %v9397_v0, %v9396_v17  ;;  %v12979_v12 = vadd.f32 %v9395_v21, %v12870_v60 }
 0x647   : > { %v12982_v39 = vadd.f32 %v9398_v26, %v12874_v45 }
 0x649   : > { %v9399_v22 = vpop.f32.mrb[248].mxu1 }
 0x64a   : > { %v9400_v24 = vpop.f32.mrb[249].mxu1 }
 0x64b   : > { %v9401_v37 = vadd.f32 %v9400_v24, %v9399_v22  ;;  %v9402_v63 = vpop.f32.mrb[250].mxu1 }
 0x64c   : > { %v9403_v3 = vpop.f32.mrb[251].mxu1 }
 0x64d   : > { %v9404_v9 = vadd.f32 %v9403_v3, %v9402_v63  ;;  %v12985_v6 = vadd.f32 %v9401_v37, %v12878_v36 }
 0x64f   : > { %v12988_v28 = vadd.f32 %v9404_v9, %v12882_v34 }
 0x651   : > { %v9405_v49 = vpop.f32.mrb[252].mxu1 }
 0x652   : > { %v9406_v57 = vpop.f32.mrb[253].mxu1 }
 0x653   : > { %v9407_v51 = vadd.f32 %v9406_v57, %v9405_v49  ;;  %v9408_v60 = vpop.f32.mrb[254].mxu1 }
 0x654   : > { %v9409_v46 = vpop.f32.mrb[255].mxu1 }
 0x655   : > { %v9410_v30 = vadd.f32 %v9409_v46, %v9408_v60  ;;  %v12991_v45 = vadd.f32 %v9407_v51, %v12886_v7 }
 0x657   : > { %v12994_v1 = vadd.f32 %v9410_v30, %v12890_v61 }
 0x659   : > { %v9411_v19 = vpop.f32.mrb[0].mxu1 }
 0x65a   : > { %v9412_v25 = vpop.f32.mrb[1].mxu1 }
 0x65b   : > { %v9413_v15 = vadd.f32 %v9412_v25, %v9411_v19  ;;  %v9414_v36 = vpop.f32.mrb[2].mxu1  ;;  %v8693_v25 = vld [vmem:[%s10651_s23 + $0x24] sm:$0xff]  }
 0x65c   : > { %v9415_v58 = vpop.f32.mrb[3].mxu1 }
 0x65d   : > { %v9416_v35 = vadd.f32 %v9415_v58, %v9414_v36  ;;  %v12997_v34 = vadd.f32 %v9413_v15, %v12894_v23  ;;  %v8956_v36 = vld [vmem:[%s10651_s23 + $0x18] sm:$0xff]   ;;  %v7505_v58 = vunpack.c.l.bf16 %v8693_v25 }
 0x65f   : > { %v13000_v18 = vadd.f32 %v9416_v35, %v12898_v42  ;;  %v8695_v35 = vld [vmem:[%s10651_s23 + $0x2c] sm:$0x1] }
 0x661   : > { %v9417_v2 = vpop.f32.mrb[4].mxu1 }
 0x662   : > { %v9418_v5 = vpop.f32.mrb[5].mxu1 }
 0x663   : > { %v9419_v59 = vadd.f32 %v9418_v5, %v9417_v2  ;;  %v9420_v7 = vpop.f32.mrb[6].mxu1 }
 0x664   : > { %v9421_v33 = vpop.f32.mrb[7].mxu1 }
 0x665   : > { %v9422_v20 = vadd.f32 %v9421_v33, %v9420_v7  ;;  %v13003_v61 = vadd.f32 %v9419_v59, %v12902_v54  ;;  %v7506_v59 = vunpack.c.h.bf16 %v8693_v25  ;;  %v8692_v7 = vld [vmem:[%s10651_s23 + $0x20] sm:$0x1] }
 0x667   : > { %v13006_v32 = vadd.f32 %v9422_v20, %v12906_v55  ;;  %v8847_v20 = vunpack.c.h.bf16 %v8956_v36 }
 0x669   : > { %v9423_v21 = vpop.f32.mrb[8].mxu1 }
 0x66a   : > { %v9424_v17 = vpop.f32.mrb[9].mxu1 }
 0x66b   : > { %v9425_v0 = vadd.f32 %v9424_v17, %v9423_v21  ;;  %v9426_v23 = vpop.f32.mrb[10].mxu1  ;;  %v8699_v21 = vld [vmem:[%s10651_s23 + $0x3c] sm:$0xff]   ;;  %v7507_v17 = vunpack.c.l.bf16 %v8695_v35 }
 0x66c   : > { %v9427_v26 = vpop.f32.mrb[11].mxu1 }
 0x66d   : > { %v9428_v22 = vadd.f32 %v9427_v26, %v9426_v23  ;;  %v13009_v42 = vadd.f32 %v9425_v0, %v12910_v44  ;;  %v8957_v0 = vld [vmem:[%s10651_s23 + $0x30] sm:$0xff]   ;;  %v7604_v26 = vrot.slane %v7505_v58, 1 }
 0x66f   : > { %v13012_v24 = vadd.f32 %v9428_v22, %v12914_v14  ;;  %v7504_v22 = vunpack.c.l.bf16 %v8692_v7 }
 0x671   : > { %v9429_v37 = vpop.f32.mrb[12].mxu1  ;;  %v7602_v58 = vrot.slane %v7504_v22, 1  ;;  %v8704_v22 = vld [vmem:[%s10651_s23 + $0x50] sm:$0x1] }
 0x672   : > { %v9430_v63 = vpop.f32.mrb[13].mxu1 }
 0x673   : > { %v9431_v54 = vadd.f32 %v9430_v63, %v9429_v37  ;;  %v9432_v3 = vpop.f32.mrb[14].mxu1  ;;  %v8701_v37 = vld [vmem:[%s10651_s23 + $0x44] sm:$0x1]  ;;  %v8698_v63 = vld [vmem:[%s10651_s23 + $0x38] sm:$0x1] }
 0x674   : > { %v9433_v55 = vpop.f32.mrb[15].mxu1 }
 0x675   : > { %v9434_v9 = vadd.f32 %v9433_v55, %v9432_v3  ;;  %v13015_v49 = vadd.f32 %v9431_v54, %v12918_v27  ;;  %v7605_v54 = vrot.slane %v7506_v59, 1  ;;  %v7511_v3 = vunpack.c.l.bf16 %v8699_v21 }
 0x676   : > { %v7512_v55 = vunpack.c.h.bf16 %v8699_v21 }
 0x677   : > { %v13018_v57 = vadd.f32 %v9434_v9, %v12922_v43  ;;  %v8705_v9 = vld [vmem:[%s10651_s23 + $0x54] sm:$0xff]  }
 0x678   : > { %v7517_v35 = vunpack.c.l.bf16 %v8705_v9 }
 0x679   : > { %13432 = vst [vmem:[#allocation13_spill] sm:$0xff] %v13018_v57  ;;  %v9435_v44 = vpop.f32.mrb[16].mxu1  ;;  %v8959_v57 = vld [vmem:[%s10651_s23 + $0x60] sm:$0xff]  }
 0x67a   : > { %v9436_v51 = vpop.f32.mrb[17].mxu1 }
 0x67b   : > { %v9437_v14 = vadd.f32 %v9436_v51, %v9435_v44  ;;  %v9438_v60 = vpop.f32.mrb[18].mxu1  ;;  %v8958_v44 = vld [vmem:[%s10651_s23 + $0x48] sm:$0xff]  }
 0x67c   : > { %v9439_v46 = vpop.f32.mrb[19].mxu1 }
 0x67d   : > { %v9440_v30 = vadd.f32 %v9439_v46, %v9438_v60  ;;  %v13021_v19 = vadd.f32 %v9437_v14, %v12925_v62  ;;  %v8846_v62 = vunpack.c.l.bf16 %v8956_v36  ;;  %v7600_v60 = vrot.slane %v8847_v20, 1  ;;  %v8707_v20 = vld [vmem:[%s10651_s23 + $0x5c] sm:$0x1] }
 0x67e   : > { %v8850_v46 = vunpack.c.l.bf16 %v8957_v0  ;;  %v7510_v36 = vunpack.c.l.bf16 %v8698_v63  ;;  %v8711_v63 = vld [vmem:[%s10651_s23 + $0x6c] sm:$0xff]  }
 0x67f   : > { %v13025_v15 = vadd.f32 %v9440_v30, %v12928_v40  ;;  %v7599_v14 = vrot.slane %v8846_v62, 1  ;;  %v8851_v30 = vunpack.c.h.bf16 %v8957_v0  ;;  %v8855_v62 = vunpack.c.h.bf16 %v8958_v44 }
 0x680   : > { %v7609_v0 = vrot.slane %v8850_v46, 1 }
 0x681   : > { %13433 = vst [vmem:[#allocation14_spill] sm:$0xff] %v13025_v15  ;;  %v9441_v27 = vpop.f32.mrb[20].mxu1  ;;  %v7516_v15 = vunpack.c.l.bf16 %v8704_v22 }
 0x682   : > { %v9442_v43 = vpop.f32.mrb[21].mxu1 }
 0x683   : > { %v9443_v2 = vadd.f32 %v9442_v43, %v9441_v27  ;;  %v9444_v5 = vpop.f32.mrb[22].mxu1  ;;  %v7513_v27 = vunpack.c.l.bf16 %v8701_v37  ;;  %v7610_v37 = vrot.slane %v8851_v30, 1 }
 0x684   : > { %v9445_v33 = vpop.f32.mrb[23].mxu1 }
 0x685   : > { %v9446_v40 = vadd.f32 %v9445_v33, %v9444_v5  ;;  %v13033_v23 = vadd.f32 %v9443_v2, %v12931_v4  ;;  %v7607_v4 = vrot.slane %v7507_v17, 1  ;;  %v7518_v2 = vunpack.c.h.bf16 %v8705_v9 }
 0x686   : > { %v8854_v5 = vunpack.c.l.bf16 %v8958_v44  ;;  %v7615_v33 = vrot.slane %v7512_v55, 1  ;;  %v13045_v17 = vsel %vm987_vm1, %v7599_v14, %v7600_v60  ;;  %v7617_v9 = vrot.slane %v7513_v27, 1 }
 0x687   : > { %13434 = vst [vmem:[#allocation9_spill] sm:$0xff] %v13033_v23  ;;  %v13040_v51 = vadd.f32 %v9446_v40, %v12934_v8  ;;  %v7614_v8 = vrot.slane %v7511_v3, 1  ;;  %v7606_v40 = vsel %vm987_vm1, %v7604_v26, %v7605_v54  ;;  %v7612_v23 = vrot.slane %v7510_v36, 1 }
 0x688   : > { %v7624_v3 = vrot.slane %v7517_v35, 1  ;;  %v7625_v55 = vrot.slane %v7518_v2, 1  ;;  %v7619_v44 = vrot.slane %v8854_v5, 1  ;;  %v7620_v26 = vrot.slane %v8855_v62, 1  ;;  %v13064_v2 = vld [vmem:[%s13365_s5] ss:$0 sm:$0xff] }
 0x689   : > { %13435 = vst [vmem:[#allocation10_spill] sm:$0xff] %v13040_v51  ;;  %v9447_v25 = vpop.f32.mrb[24].mxu1  ;;  %v7523_v14 = vunpack.c.l.bf16 %v8711_v63  ;;  %v7608_v30 = vsel %vm987_vm1, %v7605_v54, %v7607_v4  ;;  %v7603_v27 = vsel %vm987_vm1, %v7600_v60, %v7602_v58  ;;  %v13059_v36 = vsel %vm987_vm1, %v7614_v8, %v7615_v33  ;;  %v8713_v60 = vld [vmem:[%s10651_s23 + $0x74] sm:$0x1]  ;;  %v13077_v58 = vld [vmem:[%s13366_s6] ss:$0 sm:$0xff] }
 0x68a   : > { %v9448_v43 = vpop.f32.mrb[25].mxu1  ;;  %v13067_v5 = vsel %vm987_vm1, %v7609_v0, %v7610_v37  ;;  %v8858_v54 = vunpack.c.l.bf16 %v8959_v57  ;;  %v13083_v8 = vsel %vm987_vm1, %v7624_v3, %v7625_v55  ;;  %v8710_v0 = vld [vmem:[%s10651_s23 + $0x68] sm:$0x1] }
 0x68b   : > { %v9449_v59 = vadd.f32 %v9448_v43, %v9447_v25  ;;  %v9450_v7 = vpop.f32.mrb[26].mxu1  ;;  %v7519_v43 = vunpack.c.l.bf16 %v8707_v20  ;;  %v13087_v20 = vsel %vm987_vm1, %v7619_v44, %v7620_v26  ;;  %v8717_v3 = vld [vmem:[%s10651_s23 + $0x84] sm:$0xff]  }
 0x68c   : > { %v9451_v21 = vpop.f32.mrb[27].mxu1 }
 0x68d   : > { %v9452_v51 = vadd.f32 %v9451_v21, %v9450_v7  ;;  %v13050_v25 = vadd.f32 %v9449_v59, %v12937_v50  ;;  %v7524_v50 = vunpack.c.h.bf16 %v8711_v63  ;;  %v13080_v7 = vsel %vm987_vm1, %v7610_v37, %v7612_v23 }
 0x68e   : > { %v7634_v21 = vrot.slane %v7523_v14, 1 }
 0x68f   : > { %v13054_v46 = vadd.f32 %v9452_v51, %v12940_v13  ;;  %v13070_v13 = vsel %vm987_vm1, %v7615_v33, %v7617_v9  ;;  %v8859_v51 = vunpack.c.h.bf16 %v8959_v57  ;;  %v7627_v33 = vrot.slane %v7519_v43, 1 }
 0x690   : > { %v7635_v37 = vrot.slane %v7524_v50, 1  ;;  %v7525_v9 = vunpack.c.l.bf16 %v8713_v60  ;;  %v7529_v60 = vunpack.c.l.bf16 %v8717_v3 }
 0x691   : > { %v9547_v35 = vpop.f32.mrb[28].mxu1  ;;  %v7630_v44 = vrot.slane %v8859_v51, 1 }
 0x692   : > { %v7258_v4 = vadd.f32 %v9547_v35, %v12946_v48  ;;  %v7249_v59 = vpop.f32.mrb[29].mxu1  ;;  %v7622_v48 = vrot.slane %v7516_v15, 1  ;;  %v7629_v35 = vrot.slane %v8858_v54, 1 }
 0x693   : > { %v7250_v62 = vadd.f32 %v7249_v59, %v12943_v16  ;;  %v9548_v57 = vpop.f32.mrb[30].mxu1  ;;  %v13098_v59 = vsel %vm987_vm1, %v7625_v55, %v7627_v33 }
 0x694   : > { %v7385_v22 = vmul.f32 %v13064_v2, %v7258_v4  ;;  %v7261_v63 = vadd.f32 %v9548_v57, %v12949_v47  ;;  %v7252_v23 = vpop.f32.mrb[31].mxu1  ;;  %v7522_v4 = vunpack.c.l.bf16 %v8710_v0  ;;  %v8960_v57 = vld [vmem:[%s10651_s23 + $0x78] sm:$0xff]   ;;  %v13106_v51 = vsel %vm987_vm1, %v7620_v26, %v7622_v48 }
 0x695   : > { %v7383_v43 = vmul.f32 %v13064_v2, %v7250_v62  ;;  %v7253_v16 = vadd.f32 %v7252_v23, %v12952_v41  ;;  %v7530_v62 = vunpack.c.h.bf16 %v8717_v3  ;;  %v7637_v23 = vrot.slane %v7525_v9, 1 }
 0x696   : > { %v7424_v15 = vadd.f32 %v13077_v58, %v7385_v22  ;;  %v7386_v14 = vmul.f32 %v13064_v2, %v7261_v63  ;;  %v13109_v22 = vsel %vm987_vm1, %v7634_v21, %v7635_v37  ;;  %v13114_v63 = vsel %vm987_vm1, %v7629_v35, %v7630_v44 }
 0x697   : > { %v7422_v47 = vadd.f32 %v13077_v58, %v7383_v43  ;;  %v7384_v50 = vmul.f32 %v13064_v2, %v7253_v16  ;;  %v7632_v48 = vrot.slane %v7522_v4, 1  ;;  %v8862_v21 = vunpack.c.l.bf16 %v8960_v57 }
 0x698   : > { %v7713_v41 = vadd.f32 %v7606_v40, %v7424_v15  ;;  %v7425_v54 = vadd.f32 %v13077_v58, %v7386_v14  ;;  %v7644_v15 = vrot.slane %v7529_v60, 1  ;;  %v13122_v14 = vrot.slane %v7530_v62, 1 }
 0x699   : > { %v7711_v55 = vadd.f32 %v13045_v17, %v7422_v47  ;;  %v7423_v33 = vadd.f32 %v13077_v58, %v7384_v50  ;;  %v9551_v0 = vpop.f32.mrb[32].mxu1 }
 0x69a   : > { %v7714_v40 = vadd.f32 %v7608_v30, %v7425_v54  ;;  %v7274_v3 = vadd.f32 %v9551_v0, %v12961_v56  ;;  %v7265_v26 = vpop.f32.mrb[33].mxu1  ;;  %v7745_v35 = vmax.f32 %v7713_v41, 0.0 }
 0x69b   : > { %v7712_v43 = vadd.f32 %v7603_v27, %v7423_v33  ;;  %v7266_v17 = vadd.f32 %v7265_v26, %v12955_v29  ;;  %v9552_v16 = vpop.f32.mrb[34].mxu1  ;;  %v7743_v50 = vmax.f32 %v7711_v55, 0.0  ;;  %v8719_v29 = vld [vmem:[%s10651_s23 + $0x8c] sm:$0x1]  ;;  %v8863_v33 = vunpack.c.h.bf16 %v8960_v57 }
 0x69c   : > { %v7746_v47 = vmax.f32 %v7714_v40, 0.0  ;;  %v7389_v9 = vmul.f32 %v13064_v2, %v7274_v3  ;;  %v7277_v30 = vadd.f32 %v9552_v16, %v12964_v52  ;;  %v7268_v56 = vpop.f32.mrb[35].mxu1  ;;  %v13134_v55 = vsel %vm987_vm1, %v7635_v37, %v7637_v23  ;;  %v8716_v3 = vld [vmem:[%s10651_s23 + $0x80] sm:$0x1] }
 0x69d   : > { %v7744_v4 = vmax.f32 %v7712_v43, 0.0  ;;  %v7387_v54 = vmul.f32 %v13064_v2, %v7266_v17  ;;  %v7269_v27 = vadd.f32 %v7268_v56, %v12958_v31  ;;  %v13144_v57 = vsel %vm987_vm1, %v7630_v44, %v7632_v48  ;;  %v8723_v17 = vld [vmem:[%s10651_s23 + $0x9c] sm:$0xff]  }
 0x69e   : > { %v8884_v60 = vpack.c.bf16 %v7746_v47, %v7745_v35  ;;  %v7428_v62 = vadd.f32 %v13077_v58, %v7389_v9  ;;  %v7390_v41 = vmul.f32 %v13064_v2, %v7277_v30  ;;  %v7531_v43 = vunpack.c.l.bf16 %v8719_v29 }
 0x69f   : > { %v8879_v0 = vpack.c.bf16 %v7744_v4, %v7743_v50  ;;  %v7426_v40 = vadd.f32 %v13077_v58, %v7387_v54  ;;  %v7388_v52 = vmul.f32 %v13064_v2, %v7269_v27  ;;  %v13152_v35 = vsel %vm987_vm1, %v7644_v15, %v13122_v14  ;;  %v8961_v27 = vld [vmem:[%s10651_s23 + $0x90] sm:$0xff]  }
 0x6a0   : > { %8964 = vst [vmem:[%s13138_s30 + $0x8] sm:$0xff] %v8884_v60   ;;  %v7717_v31 = vadd.f32 %v13059_v36, %v7428_v62  ;;  %v7429_v26 = vadd.f32 %v13077_v58, %v7390_v41  ;;  %v7639_v47 = vrot.slane %v8862_v21, 1  ;;  %v13156_v48 = vrot.slane %v8863_v33, 1 }
 0x6a1   : > { %8880 = vst [vmem:[%s13138_s30] sm:$0xff] %v8879_v0   ;;  %v7715_v37 = vadd.f32 %v13067_v5, %v7426_v40  ;;  %v7427_v23 = vadd.f32 %v13077_v58, %v7388_v52  ;;  %v9555_v16 = vpop.f32.mrb[36].mxu1  ;;  %v7528_v30 = vunpack.c.l.bf16 %v8716_v3  ;;  %v7535_v4 = vunpack.c.l.bf16 %v8723_v17 }
 0x6a2   : > { %v7718_v36 = vadd.f32 %v13070_v13, %v7429_v26  ;;  %v7290_v9 = vadd.f32 %v9555_v16, %v12973_v11  ;;  %v7281_v44 = vpop.f32.mrb[37].mxu1  ;;  %v7536_v54 = vunpack.c.h.bf16 %v8723_v17  ;;  %v7749_v29 = vmax.f32 %v7717_v31, 0.0  ;;  %v8725_v26 = vld [vmem:[%s10651_s23 + $0xa4] sm:$0x1] }
 0x6a3   : > { %v7716_v56 = vadd.f32 %v13080_v7, %v7427_v23  ;;  %v7282_v5 = vadd.f32 %v7281_v44, %v12967_v38  ;;  %v9556_v50 = vpop.f32.mrb[38].mxu1  ;;  %v7747_v60 = vmax.f32 %v7715_v37, 0.0  ;;  %v8866_v40 = vunpack.c.l.bf16 %v8961_v27 }
 0x6a4   : > { %v7750_v15 = vmax.f32 %v7718_v36, 0.0  ;;  %v7393_v21 = vmul.f32 %v13064_v2, %v7290_v9  ;;  %v7293_v11 = vadd.f32 %v9556_v50, %v12976_v10  ;;  %v7284_v13 = vpop.f32.mrb[39].mxu1  ;;  %v8867_v10 = vunpack.c.h.bf16 %v8961_v27 }
 0x6a5   : > { %v7748_v62 = vmax.f32 %v7716_v56, 0.0  ;;  %v7391_v41 = vmul.f32 %v13064_v2, %v7282_v5  ;;  %v7285_v38 = vadd.f32 %v7284_v13, %v12970_v53  ;;  %v13175_v53 = vsel %vm987_vm1, %v7639_v47, %v13156_v48 }
 0x6a6   : > { %v8894_v7 = vpack.c.bf16 %v7750_v15, %v7749_v29  ;;  %v7432_v33 = vadd.f32 %v13077_v58, %v7393_v21  ;;  %v7394_v0 = vmul.f32 %v13064_v2, %v7293_v11  ;;  %v7647_v23 = vrot.slane %v7531_v43, 1 }
 0x6a7   : > { %v8889_v52 = vpack.c.bf16 %v7748_v62, %v7747_v60  ;;  %v7430_v3 = vadd.f32 %v13077_v58, %v7391_v41  ;;  %v7392_v31 = vmul.f32 %v13064_v2, %v7285_v38  ;;  %v7642_v44 = vrot.slane %v7528_v30, 1 }
 0x6a8   : > { %8966 = vst [vmem:[%s13138_s30 + $0x18] sm:$0xff] %v8894_v7   ;;  %v7721_v17 = vadd.f32 %v13083_v8, %v7432_v33  ;;  %v7433_v37 = vadd.f32 %v13077_v58, %v7394_v0  ;;  %v7654_v56 = vrot.slane %v7535_v4, 1  ;;  %v13182_v27 = vrot.slane %v7536_v54, 1  ;;  %v8722_v54 = vld [vmem:[%s10651_s23 + $0x98] sm:$0x1] }
 0x6a9   : > { %8965 = vst [vmem:[%s13138_s30 + $0x10] sm:$0xff] %v8889_v52   ;;  %v7719_v16 = vadd.f32 %v13087_v20, %v7430_v3  ;;  %v7431_v36 = vadd.f32 %v13077_v58, %v7392_v31  ;;  %v9559_v9 = vpop.f32.mrb[40].mxu1  ;;  %v7537_v29 = vunpack.c.l.bf16 %v8725_v26  ;;  %v7649_v20 = vrot.slane %v8866_v40, 1  ;;  %v8729_v52 = vld [vmem:[%s10651_s23 + $0xb4] sm:$0xff]  }
 0x6aa   : > { %v7722_v5 = vadd.f32 %v13098_v59, %v7433_v37  ;;  %v7306_v8 = vadd.f32 %v9559_v9, %v12985_v6  ;;  %v7297_v50 = vpop.f32.mrb[41].mxu1  ;;  %v13186_v21 = vrot.slane %v8867_v10, 1  ;;  %v7753_v11 = vmax.f32 %v7721_v17, 0.0 }
 0x6ab   : > { %v7720_v47 = vadd.f32 %v13106_v51, %v7431_v36  ;;  %v7298_v43 = vadd.f32 %v7297_v50, %v12979_v12  ;;  %v9560_v15 = vpop.f32.mrb[42].mxu1  ;;  %v7751_v13 = vmax.f32 %v7719_v16, 0.0  ;;  %v7648_v7 = vsel %vm987_vm1, %v13122_v14, %v7647_v23  ;;  %v8962_v14 = vld [vmem:[%s10651_s23 + $0xa8] sm:$0xff]  }
 0x6ac   : > { %v7754_v30 = vmax.f32 %v7722_v5, 0.0  ;;  %v7397_v4 = vmul.f32 %v13064_v2, %v7306_v8  ;;  %v7309_v59 = vadd.f32 %v9560_v15, %v12988_v28  ;;  %v7300_v6 = vpop.f32.mrb[43].mxu1  ;;  %v7534_v40 = vunpack.c.l.bf16 %v8722_v54 }
 0x6ad   : > { %v7752_v60 = vmax.f32 %v7720_v47, 0.0  ;;  %v7395_v51 = vmul.f32 %v13064_v2, %v7298_v43  ;;  %v7301_v12 = vadd.f32 %v7300_v6, %v12982_v39  ;;  %v7643_v31 = vsel %vm987_vm1, %v13156_v48, %v7642_v44 }
 0x6ae   : > { %v8904_v62 = vpack.c.bf16 %v7754_v30, %v7753_v11  ;;  %v7436_v41 = vadd.f32 %v13077_v58, %v7397_v4  ;;  %v7398_v38 = vmul.f32 %v13064_v2, %v7309_v59  ;;  %v13207_v10 = vsel %vm987_vm1, %v7654_v56, %v13182_v27 }
 0x6af   : > { %v8899_v28 = vpack.c.bf16 %v7752_v60, %v7751_v13  ;;  %v7434_v33 = vadd.f32 %v13077_v58, %v7395_v51  ;;  %v7396_v0 = vmul.f32 %v13064_v2, %v7301_v12  ;;  %v13215_v23 = vsel %vm987_vm1, %v7649_v20, %v13186_v21  ;;  %v8731_v20 = vld [vmem:[%s10651_s23 + $0xbc] sm:$0x1] }
 0x6b0   : > { %8968 = vst [vmem:[%s13138_s30 + $0x28] sm:$0xff] %v8904_v62   ;;  %v7725_v3 = vadd.f32 %v13109_v22, %v7436_v41  ;;  %v7437_v39 = vadd.f32 %v13077_v58, %v7398_v38  ;;  %v7657_v22 = vrot.slane %v7537_v29, 1  ;;  %v7541_v9 = vunpack.c.l.bf16 %v8729_v52  ;;  %v8728_v41 = vld [vmem:[%s10651_s23 + $0xb0] sm:$0x1] }
 0x6b1   : > { %8967 = vst [vmem:[%s13138_s30 + $0x20] sm:$0xff] %v8899_v28   ;;  %v7723_v26 = vadd.f32 %v13114_v63, %v7434_v33  ;;  %v7435_v17 = vadd.f32 %v13077_v58, %v7396_v0  ;;  %v9563_v37 = vpop.f32.mrb[44].mxu1  ;;  %v7542_v44 = vunpack.c.h.bf16 %v8729_v52  ;;  %v7652_v8 = vrot.slane %v7534_v40, 1 }
 0x6b2   : > { %v7726_v16 = vadd.f32 %v13134_v55, %v7437_v39  ;;  %v7322_v48 = vadd.f32 %v9563_v37, %v12997_v34  ;;  %v7313_v36 = vpop.f32.mrb[45].mxu1  ;;  %v8870_v50 = vunpack.c.l.bf16 %v8962_v14  ;;  %v7757_v47 = vmax.f32 %v7725_v3, 0.0 }
 0x6b3   : > { %v7724_v56 = vadd.f32 %v13144_v57, %v7435_v17  ;;  %v7314_v63 = vadd.f32 %v7313_v36, %v12991_v45  ;;  %v9564_v5 = vpop.f32.mrb[46].mxu1  ;;  %v7755_v34 = vmax.f32 %v7723_v26, 0.0  ;;  %v8871_v6 = vunpack.c.h.bf16 %v8962_v14 }
 0x6b4   : > { %v7758_v43 = vmax.f32 %v7726_v16, 0.0  ;;  %v7401_v15 = vmul.f32 %v13064_v2, %v7322_v48  ;;  %v7325_v29 = vadd.f32 %v9564_v5, %v13000_v18  ;;  %v7316_v55 = vpop.f32.mrb[47].mxu1  ;;  %v7543_v60 = vunpack.c.l.bf16 %v8731_v20 }
 0x6b5   : > { %v7756_v11 = vmax.f32 %v7724_v56, 0.0  ;;  %v7399_v30 = vmul.f32 %v13064_v2, %v7314_v63  ;;  %v7317_v45 = vadd.f32 %v7316_v55, %v12994_v1  ;;  %v7658_v1 = vsel %vm987_vm1, %v13182_v27, %v7657_v22  ;;  %v8735_v22 = vld [vmem:[%s10651_s23 + $0xcc] sm:$0xff]  }
 0x6b6   : > { %v8914_v57 = vpack.c.bf16 %v7758_v43, %v7757_v47  ;;  %v7440_v4 = vadd.f32 %v13077_v58, %v7401_v15  ;;  %v7402_v59 = vmul.f32 %v13064_v2, %v7325_v29  ;;  %v7664_v62 = vrot.slane %v7541_v9, 1  ;;  %v8963_v43 = vld [vmem:[%s10651_s23 + $0xc0] sm:$0xff]  }
 0x6b7   : > { %v8909_v54 = vpack.c.bf16 %v7756_v11, %v7755_v34  ;;  %v7438_v13 = vadd.f32 %v13077_v58, %v7399_v30  ;;  %v7400_v18 = vmul.f32 %v13064_v2, %v7317_v45  ;;  %v7653_v0 = vsel %vm987_vm1, %v13186_v21, %v7652_v8 }
 0x6b8   : > { %8970 = vst [vmem:[%s13138_s30 + $0x38] sm:$0xff] %v8914_v57   ;;  %v7729_v51 = vadd.f32 %v13152_v35, %v7440_v4  ;;  %v7441_v12 = vadd.f32 %v13077_v58, %v7402_v59  ;;  %v7665_v40 = vrot.slane %v7542_v44, 1  ;;  %v7659_v39 = vrot.slane %v8870_v50, 1 }
 0x6b9   : > { %8969 = vst [vmem:[%s13138_s30 + $0x30] sm:$0xff] %v8909_v54   ;;  %v7727_v38 = vadd.f32 %v13175_v53, %v7438_v13  ;;  %v7439_v28 = vadd.f32 %v13077_v58, %v7400_v18  ;;  %v9567_v33 = vpop.f32.mrb[48].mxu1  ;;  %v13242_v14 = vrot.slane %v8871_v6, 1  ;;  %v7667_v37 = vrot.slane %v7543_v60, 1 }
 0x6ba   : > { %v7730_v52 = vadd.f32 %v7648_v7, %v7441_v12  ;;  %v7338_v35 = vadd.f32 %v9567_v33, %v13009_v42  ;;  %v7329_v3 = vpop.f32.mrb[49].mxu1  ;;  %v7540_v53 = vunpack.c.l.bf16 %v8728_v41  ;;  %v7761_v16 = vmax.f32 %v7729_v51, 0.0  ;;  %v8734_v33 = vld [vmem:[%s10651_s23 + $0xc8] sm:$0x1] }
 0x6bb   : > { %v7728_v27 = vadd.f32 %v7643_v31, %v7439_v28  ;;  %v7330_v26 = vadd.f32 %v7329_v3, %v13003_v61  ;;  %v9568_v17 = vpop.f32.mrb[50].mxu1  ;;  %v7759_v36 = vmax.f32 %v7727_v38, 0.0  ;;  %v7547_v5 = vunpack.c.l.bf16 %v8735_v22  ;;  %v13436_v38 = vld [vmem:[#allocation14_spill] sm:$0xff] }
 0x6bc   : > { %v7762_v48 = vmax.f32 %v7730_v52, 0.0  ;;  %v7405_v21 = vmul.f32 %v13064_v2, %v7338_v35  ;;  %v7341_v7 = vadd.f32 %v9568_v17, %v13012_v24  ;;  %v7332_v42 = vpop.f32.mrb[51].mxu1  ;;  %v7548_v24 = vunpack.c.h.bf16 %v8735_v22  ;;  %v13437_v52 = vld [vmem:[#allocation13_spill] sm:$0xff] }
 0x6bd   : > { %v7760_v9 = vmax.f32 %v7728_v27, 0.0  ;;  %v7403_v44 = vmul.f32 %v13064_v2, %v7330_v26  ;;  %v7333_v61 = vadd.f32 %v7332_v42, %v13006_v32  ;;  %v7666_v32 = vsel %vm987_vm1, %v7664_v62, %v7665_v40 }
 0x6be   : > { %v8924_v31 = vpack.c.bf16 %v7762_v48, %v7761_v16  ;;  %v7444_v56 = vadd.f32 %v13077_v58, %v7405_v21  ;;  %v7406_v63 = vmul.f32 %v13064_v2, %v7341_v7  ;;  %v7661_v55 = vsel %vm987_vm1, %v7659_v39, %v13242_v14 }
 0x6bf   : > { %v8919_v8 = vpack.c.bf16 %v7760_v9, %v7759_v36  ;;  %v7442_v50 = vadd.f32 %v13077_v58, %v7403_v44  ;;  %v7404_v47 = vmul.f32 %v13064_v2, %v7333_v61  ;;  %v7668_v30 = vsel %vm987_vm1, %v7665_v40, %v7667_v37 }
 0x6c0   : > { %8972 = vst [vmem:[%s13138_s30 + $0x48] sm:$0xff] %v8924_v31   ;;  %v7733_v15 = vadd.f32 %v13207_v10, %v7444_v56  ;;  %v7445_v29 = vadd.f32 %v13077_v58, %v7406_v63  ;;  %v7662_v45 = vrot.slane %v7540_v53, 1  ;;  %v8874_v59 = vunpack.c.l.bf16 %v8963_v43 }
 0x6c1   : > { %8971 = vst [vmem:[%s13138_s30 + $0x40] sm:$0xff] %v8919_v8   ;;  %v7731_v20 = vadd.f32 %v13215_v23, %v7442_v50  ;;  %v7443_v34 = vadd.f32 %v13077_v58, %v7404_v47  ;;  %v9571_v11 = vpop.f32.mrb[52].mxu1  ;;  %v8875_v6 = vunpack.c.h.bf16 %v8963_v43  ;;  %v7674_v60 = vrot.slane %v7547_v5, 1  ;;  %v8737_v23 = vld [vmem:[%s10651_s23 + $0xd4] sm:$0x1]  ;;  %v13438_v5 = vld [vmem:[#allocation9_spill] sm:$0xff] }
 0x6c2   : > { %v7734_v57 = vadd.f32 %v7658_v1, %v7445_v29  ;;  %v7354_v10 = vadd.f32 %v9571_v11, %v13021_v19  ;;  %v7345_v4 = vpop.f32.mrb[53].mxu1  ;;  %v7675_v51 = vrot.slane %v7548_v24, 1  ;;  %v7765_v12 = vmax.f32 %v7733_v15, 0.0  ;;  %s8843_s23 = sshll.u32 %s10480_s27, 11  ;;  %s13314_s27 = scalar_lea.sflag [#allocation5], %s298_s18 }
 0x6c3   : > { %v7732_v54 = vadd.f32 %v7653_v0, %v7443_v34  ;;  %v7346_v13 = vadd.f32 %v7345_v4, %v13015_v49  ;;  %v9572_v18 = vpop.f32.mrb[54].mxu1  ;;  %v7763_v19 = vmax.f32 %v7731_v20, 0.0  ;;  %v7549_v27 = vunpack.c.l.bf16 %v8737_v23  ;;  %v13439_v34 = vld [vmem:[#allocation10_spill] sm:$0xff]  ;;  %s13306_s12 = scalar_lea.hbm %s13367_s7, %s8843_s23 }
 0x6c4   : > { %v7766_v62 = vmax.f32 %v7734_v57, 0.0  ;;  %v7409_v41 = vmul.f32 %v13064_v2, %v7354_v10  ;;  %v7357_v1 = vadd.f32 %v9572_v18, %v13436_v38  ;;  %v7348_v28 = vpop.f32.mrb[55].mxu1  ;;  %v7546_v53 = vunpack.c.l.bf16 %v8734_v33 }
 0x6c5   : > { %v7764_v40 = vmax.f32 %v7732_v54, 0.0  ;;  %v7407_v0 = vmul.f32 %v13064_v2, %v7346_v13  ;;  %v7349_v49 = vadd.f32 %v7348_v28, %v13437_v52  ;;  %v7663_v48 = vsel %vm987_vm1, %v13242_v14, %v7662_v45 }
 0x6c6   : > { %v8934_v35 = vpack.c.bf16 %v7766_v62, %v7765_v12  ;;  %v7448_v3 = vadd.f32 %v13077_v58, %v7409_v41  ;;  %v7410_v39 = vmul.f32 %v13064_v2, %v7357_v1  ;;  %v7669_v36 = vrot.slane %v8874_v59, 1 }
 0x6c7   : > { %v8929_v26 = vpack.c.bf16 %v7764_v40, %v7763_v19  ;;  %v7446_v17 = vadd.f32 %v13077_v58, %v7407_v0  ;;  %v7408_v37 = vmul.f32 %v13064_v2, %v7349_v49  ;;  %v7676_v61 = vsel %vm987_vm1, %v7674_v60, %v7675_v51 }
 0x6c8   : > { %8974 = vst [vmem:[%s13138_s30 + $0x58] sm:$0xff] %v8934_v35   ;;  %v7737_v22 = vadd.f32 %v7666_v32, %v7448_v3  ;;  %v7449_v16 = vadd.f32 %v13077_v58, %v7410_v39  ;;  %v7670_v56 = vrot.slane %v8875_v6, 1  ;;  %v7677_v47 = vrot.slane %v7549_v27, 1 }
 0x6c9   : > { %8973 = vst [vmem:[%s13138_s30 + $0x50] sm:$0xff] %v8929_v26   ;;  %v7735_v21 = vadd.f32 %v7661_v55, %v7446_v17  ;;  %v7447_v7 = vadd.f32 %v13077_v58, %v7408_v37  ;;  %v9575_v42 = vpop.f32.mrb[56].mxu1  ;;  %v7672_v24 = vrot.slane %v7546_v53, 1 }
 0x6ca   : > { %v7738_v9 = vadd.f32 %v7668_v30, %v7449_v16  ;;  %v7370_v44 = vadd.f32 %v9575_v42, %v13050_v25  ;;  %v7361_v31 = vpop.f32.mrb[57].mxu1  ;;  %v7769_v14 = vmax.f32 %v7737_v22, 0.0  ;;  %v7671_v57 = vsel %vm987_vm1, %v7669_v36, %v7670_v56 }
 0x6cb   : > { %v7736_v63 = vadd.f32 %v7663_v48, %v7447_v7  ;;  %v7362_v8 = vadd.f32 %v7361_v31, %v13438_v5  ;;  %v9576_v50 = vpop.f32.mrb[58].mxu1  ;;  %v7767_v55 = vmax.f32 %v7735_v21, 0.0  ;;  %v7678_v59 = vsel %vm987_vm1, %v7675_v51, %v7677_v47 }
 0x6cc   : > { %v7770_v43 = vmax.f32 %v7738_v9, 0.0  ;;  %v7413_v15 = vmul.f32 %v13064_v2, %v7370_v44  ;;  %v7373_v29 = vadd.f32 %v9576_v50, %v13054_v46  ;;  %v7364_v32 = vpop.f32.mrb[59].mxu1  ;;  %v7673_v18 = vsel %vm987_vm1, %v7670_v56, %v7672_v24 }
 0x6cd   : > { %v7768_v25 = vmax.f32 %v7736_v63, 0.0  ;;  %v7411_v20 = vmul.f32 %v13064_v2, %v7362_v8  ;;  %v7365_v11 = vadd.f32 %v7364_v32, %v13439_v34 }
 0x6ce   : > { %v8944_v30 = vpack.c.bf16 %v7770_v43, %v7769_v14  ;;  %v7452_v45 = vadd.f32 %v13077_v58, %v7413_v15  ;;  %v7414_v10 = vmul.f32 %v13064_v2, %v7373_v29 }
 0x6cf   : > { %v8939_v4 = vpack.c.bf16 %v7768_v25, %v7767_v55  ;;  %v7450_v46 = vadd.f32 %v13077_v58, %v7411_v20  ;;  %v7412_v6 = vmul.f32 %v13064_v2, %v7365_v11 }
 0x6d0   : > { %8976 = vst [vmem:[%s13138_s30 + $0x68] sm:$0xff] %v8944_v30   ;;  %v7741_v54 = vadd.f32 %v7676_v61, %v7452_v45  ;;  %v7453_v13 = vadd.f32 %v13077_v58, %v7414_v10 }
 0x6d1   : > { %8975 = vst [vmem:[%s13138_s30 + $0x60] sm:$0xff] %v8939_v4   ;;  %v7739_v60 = vadd.f32 %v7671_v57, %v7450_v46  ;;  %v7451_v23 = vadd.f32 %v13077_v58, %v7412_v6 }
 0x6d2   : > { %v7742_v12 = vadd.f32 %v7678_v59, %v7453_v13  ;;  %v7773_v51 = vmax.f32 %v7741_v54, 0.0 }
 0x6d3   : > { %v7740_v62 = vadd.f32 %v7673_v18, %v7451_v23  ;;  %v7771_v41 = vmax.f32 %v7739_v60, 0.0 }
 0x6d4   : > { %v7774_v2 = vmax.f32 %v7742_v12, 0.0 }
 0x6d5   : > { %v7772_v38 = vmax.f32 %v7740_v62, 0.0 }
 0x6d6   : > { %v8954_v1 = vpack.c.bf16 %v7774_v2, %v7773_v51 }
 0x6d7   : > { %v8949_v58 = vpack.c.bf16 %v7772_v38, %v7771_v41 }
 0x6d8   : > { %8978 = vst [vmem:[%s13138_s30 + $0x78] sm:$0xff] %v8954_v1  }
 0x6d9   : > { %8977 = vst [vmem:[%s13138_s30 + $0x70] sm:$0xff] %v8949_v58  }
 0x6da   : > { %10419 = shalt.err (!%p10416_p6)
}
 0x6db   : > { %s10420_s19 = scalar_lea.hbm %s13306_s12, 2048  ;;  %s10424_s30 = scalar_lea.hbm %s13367_s7, 4096 }
 0x6dc   : > { %p10421_p7 = scmp.ne.s32.totalorder %s13306_s12, %s10420_s19  ;;  %p10425_p0 = scmp.lt.u32.totalorder %s13306_s12, %s13367_s7 }
 0x6dd   : > { %p10426_p2 = scmp.lt.u32.totalorder %s10424_s30, %s10420_s19  ;;  %p10428_p8 = scmp.lt.u32.totalorder %s10420_s19, %s13306_s12 }
 0x6de   : > { %p10422_p9 = pnand %p10421_p7, %p13440_p10 }
 0x6df   : > { %p10427_p4 = por %p10426_p2, %p10425_p0 }
 0x6e0   : > { %p10423_p12 = pneg %p10422_p9 }
 0x6e1   : > { %p10429_p11 = por %p10428_p8, %p10427_p4 }
 0x6e3   : > { %p10430_p13 = pnand %p10429_p11, %p10423_p12 }
 0x6e5   : > { %10433 = shalt.err (!%p10430_p13)
}
 0x6e6   : > { %s10495_s10 = smov 64   ;;  %s10496_s17 = smov 4  }
 0x6e7   : > { %9814 = dma.vmem_to_hbm [thread:$0]  (%p13440_p10), %s13308_s16, 2048, %s13306_s12, %s13314_s27, %s10495_s10, %s10495_s10, %s10496_s17  }
 0x6e8 PF: > { %p9826_p1 = scmp.ge.s32.totalorder %s10488_s29, 2  ;;  %s7967_s20 = sand.u32 1, %s10468_s24  }
 0x6e9   : > { %p13441_p3 = scmp.ne.s32.totalorder %s13378_s13, 0  ;;  %s7968_s21 = scalar_lea.sflag [#allocation5], %s7967_s20 }
 0x6eb   : > { %p9821_p5 = pnand %p9826_p1, %p13441_p3 }
 0x6ed   : > { %10463 = dma.done.wait (!%p9821_p5), %s7968_s21, 2048  }
 0x6ee   : > { %10465 = vsyncadd (!%p9821_p5), %s7968_s21, 4294965248  ;;  %s21_s29 = sadd.s32 1, %s10488_s29   ;;  %s13442_s24 = smov %s10472_s25 }
 0x6ef   : > { %p18_p6 = scmp.ge.s32.totalorder %s21_s29, 4   ;;  %s13443_s25 = smov %s10476_s26 }
 0x6f0   : > { %s13444_s26 = smov %s10590_s14  ;;  %s13445_s27 = smov %s10484_s28 }
 0x6f1   : > { %s13446_s28 = smov %s13448_s9  ;;  %20 = sbr.rel (!%p18_p6) target bundleno = 5 (0x5), region = 98 }
 0x6f8   :  { %7973 = vsyncpa [#allocation4], 1 }
 0x6f9   :  { %7975 = vsyncpa [#allocation4 + $0x1], 1 }
 0x6fa   :  { %7976 = vsyncpa [#allocation5], 1 }
 0x6fb   :  { %7978 = vsyncpa [#allocation5 + $0x1], 1 }

</bundles_post_ra>
